<compile_context>
chip_gen: v7x
topology: tpu7x:2x2x1
jax: 0.10.0
libtpu: 0.0.40
codegen_flags: <defaults>
</compile_context>

<pallas_src>
import functools
import math

import jax
import jax.numpy as jnp
from jax.experimental import pallas as pl
from jax.experimental.pallas import tpu as pltpu


# (C_in, C_out, K, padding) for conv1..conv5 of the PyTorch module.
LAYER_DEFS = (
    (1, 25, 21, 10),
    (25, 20, 17, 8),
    (20, 15, 13, 6),
    (15, 10, 9, 4),
    (10, 1, 1, 0),
)
LEAKY_SLOPE = 0.05
MARGIN = 16          # zero-halo width per lane segment (>= max padding, 8-aligned)


def _round_up(x, m):
    return ((x + m - 1) // m) * m


def _layer_cfg():
    """Static per-layer config: (c_in, c_in_p, c_out, c_out_p, k, pad, is_last)."""
    cfg = []
    n = len(LAYER_DEFS)
    for i, (c_in, c_out, k, pad) in enumerate(LAYER_DEFS):
        c_in_p = 1 if c_in == 1 else _round_up(c_in, 8)
        c_out_p = _round_up(c_out, 8)
        cfg.append((c_in, c_in_p, c_out, c_out_p, k, pad, i == n - 1))
    return tuple(cfg)


def _fused_net_kernel(*refs, L, tb, w_seg, layer_cfg):
    """One grid step = `tb` batch rows: the whole 5-layer net in VMEM.

    refs = (x_ref, w1, b1, ..., w5, b5, o_ref, buf_a, buf_b, rhs_buf)
      x_ref   : (tb, 1, L)     input rows
      w_i/b_i : prepped weights / biases (see prep_params)
      o_ref   : (tb, 1, L)     output rows
      buf_a/b : (c_max, tb*w_seg) ping-pong activations, one haloed segment
                per folded batch row (zero halo columns = "same" padding)
      rhs_buf : (max K*C_in_p, tb*L) im2col right-hand side
    """
    n_layers = len(layer_cfg)
    x_ref = refs[0]
    wb = refs[1:1 + 2 * n_layers]
    o_ref = refs[1 + 2 * n_layers]
    buf_a, buf_b, rhs_buf = refs[2 + 2 * n_layers:]

    nl = tb * L                      # folded lane width of activations / RHS
    c_max = buf_a.shape[0]
    m = MARGIN

    # --- init: zero ONLY the halo lane columns; all interior lanes that are
    # ever read are overwritten earlier in the same grid step.  (Not gated on
    # program_id: scratch is per-core under "parallel" sharding on v7x.)
    halo = jnp.zeros((c_max, m), dtype=jnp.float32)
    for buf in (buf_a, buf_b):
        for t in range(tb):
            base = t * w_seg
            buf[:, base:base + m] = halo                        # left halo
            buf[:, base + m + L:base + 2 * m + L] = halo        # right halo

    # --- scatter the tb input rows into buf_a row 0 (one segment each) ---
    for t in range(tb):
        buf_a[0:1, t * w_seg + m:t * w_seg + m + L] = x_ref[t]

    src, dst = buf_a, buf_b
    for i, (c_in, c_in_p, c_out, c_out_p, k_sz, pad, is_last) in enumerate(layer_cfg):
        w_ref = wb[2 * i]
        b_ref = wb[2 * i + 1]

        if c_in_p == 1:
            # Layer 1: single input channel -> VPU broadcast MACs.  The single
            # source row is loaded once; per-tap windows are in-register lane
            # shifts.  4 independent accumulators break the serial VALU chain.
            row_full = src[0:1, :]                       # (1, tb*w_seg), 1 load
            w_val = w_ref[...]                           # (c_out_p, K)
            n_acc = 4
            accs = [jnp.zeros((c_out_p, nl), jnp.float32) for _ in range(n_acc)]
            for k in range(k_sz):
                start = m - pad + k
                segs = [row_full[:, t * w_seg + start:t * w_seg + start + L]
                        for t in range(tb)]
                row_k = segs[0] if tb == 1 else jnp.concatenate(segs, axis=1)
                accs[k % n_acc] = accs[k % n_acc] + w_val[:, k:k + 1] * row_k
            acc = (accs[0] + accs[1]) + (accs[2] + accs[3])
        elif is_last and k_sz == 1:
            # Layer 5: K=1, one real output channel -> VPU weighted sum over
            # the real input channels + sublane (XLU) reduction.  Skips the
            # RHS pack, the near-empty MXU op and the 7 dead padded channels.
            src_val = src[0:c_in_p, :]                   # loaded once
            w_col = w_ref[...]                           # (c_in_p, 1)
            outs = []
            for t in range(tb):
                win = src_val[:, t * w_seg + m:t * w_seg + m + L]   # (c_in_p, L)
                outs.append(jnp.sum(w_col * win, axis=0, keepdims=True))
            acc = outs[0] if tb == 1 else jnp.concatenate(outs, axis=1)
        else:
            # Layers 2-4: im2col -> ONE MXU matmul with K*C_in_p contraction.
            # Hoisted source load; each tap's shifted window is an in-register
            # lane shift of the value (XLU) followed by a lane-aligned store.
            src_val = src[0:c_in_p, :]                   # (c_in_p, tb*w_seg)
            for k in range(k_sz):
                start = m - pad + k
                for t in range(tb):
                    rhs_buf[k * c_in_p:(k + 1) * c_in_p, t * L:(t + 1) * L] = (
                        src_val[:, t * w_seg + start:t * w_seg + start + L])
            acc = jnp.dot(w_ref[...], rhs_buf[0:k_sz * c_in_p, :],
                          preferred_element_type=jnp.float32)

        acc = acc + b_ref[...]
        if is_last:
            acc = jnp.maximum(acc, 0.0)                          # final ReLU
            for t in range(tb):
                o_ref[t] = acc[0:1, t * L:(t + 1) * L].astype(o_ref.dtype)
        else:
            acc = jnp.where(acc > 0.0, acc, LEAKY_SLOPE * acc)   # LeakyReLU
            for t in range(tb):
                dst[0:c_out_p, t * w_seg + m:t * w_seg + m + L] = (
                    acc[:, t * L:(t + 1) * L].astype(dst.dtype))
            src, dst = dst, src


@jax.jit
def net_forward(x, prepped):
    """x: (B, L) float32 -> (B, L) float32, matching Net.forward."""
    B, L = x.shape
    assert L % 128 == 0, "lane dimension must be a multiple of 128"
    cfg = _layer_cfg()

    # Fold batch rows into the lane dimension (fills the 256-wide MXU on
    # v6e/v7x) while keeping >= 2 parallel grid steps for the 2 v7x cores.
    tb = 2 if (B % 2 == 0 and B >= 4) else 1
    n_steps = B // tb

    w_seg = _round_up(2 * MARGIN + L, 128)                    # 256 for L = 128
    c_max = max(max(c[1], c[3]) for c in cfg)                 # 32
    rhs_rows = max(c[4] * c[1] for c in cfg
                   if c[1] > 1 and not (c[6] and c[4] == 1))  # 544

    x3 = x[:, None, :]                                    # torch.unsqueeze(x, 1)
    inputs = [x3]
    in_specs = [pl.BlockSpec((tb, 1, L), lambda bi: (bi, 0, 0))]
    for (w_p, b_p) in prepped:
        inputs += [w_p, b_p]
        in_specs += [pl.BlockSpec(w_p.shape, lambda bi: (0, 0)),
                     pl.BlockSpec(b_p.shape, lambda bi: (0, 0))]

    kernel = functools.partial(_fused_net_kernel, L=L, tb=tb, w_seg=w_seg,
                               layer_cfg=cfg)
    out3 = pl.pallas_call(
        kernel,
        out_shape=jax.ShapeDtypeStruct((B, 1, L), jnp.float32),
        grid_spec=pltpu.PrefetchScalarGridSpec(
            num_scalar_prefetch=0,
            grid=(n_steps,),
            in_specs=in_specs,
            out_specs=pl.BlockSpec((tb, 1, L), lambda bi: (bi, 0, 0)),
            scratch_shapes=[
                pltpu.VMEM((c_max, tb * w_seg), jnp.float32),   # activation ping
                pltpu.VMEM((c_max, tb * w_seg), jnp.float32),   # activation pong
                pltpu.VMEM((rhs_rows, tb * L), jnp.float32),    # im2col RHS
            ],
        ),
        compiler_params=pltpu.CompilerParams(
            dimension_semantics=("parallel",)),
    )(*inputs)
    return out3[:, 0, :]                                  # torch .squeeze(1)


def init_params(key):
    """Deterministic parameters with the PyTorch Conv1d shapes/init."""
    params = []
    for (c_in, c_out, k, _pad) in LAYER_DEFS:
        key, kw, kb = jax.random.split(key, 3)
        bound = 1.0 / math.sqrt(c_in * k)
        w = jax.random.uniform(kw, (c_out, c_in, k), jnp.float32, -bound, bound)
        b = jax.random.uniform(kb, (c_out,), jnp.float32, -bound, bound)
        params.append((w, b))
    return params


def prep_params(params):
    """Zero-pad channels to multiples of 8 and reshape for the kernel.

    layer 1 (C_in==1)  : (C_out_p, K)                w_p[co, k]             = w[co, 0, k]
    layers 2-4 (im2col): (C_out_p, K*C_in_p)         w_p[co, k*C_in_p + c]  = w[co, c, k]
    layer 5 (K=1)      : (C_in_p, 1) weight column   w_p[c, 0]              = w[0, c, 0]
    Padded channels get zero weights AND zero bias so padded rows stay 0.
    """
    prepped = []
    cfg = _layer_cfg()
    for (c_in, c_in_p, c_out, c_out_p, k, _pad, is_last), (w, b) in zip(cfg, params):
        if c_in == 1:
            w_p = jnp.zeros((c_out_p, k), jnp.float32).at[:c_out, :].set(w[:, 0, :])
            b_p = jnp.zeros((c_out_p, 1), jnp.float32).at[:c_out, 0].set(b)
        elif is_last and k == 1:
            w_p = jnp.zeros((c_in_p, 1), jnp.float32).at[:c_in, 0].set(w[0, :, 0])
            b_p = jnp.zeros((1, 1), jnp.float32).at[0, 0].set(b[0])
        else:
            w_pad = jnp.zeros((c_out_p, c_in_p, k), jnp.float32)
            w_pad = w_pad.at[:c_out, :c_in, :].set(w)
            w_p = jnp.transpose(w_pad, (0, 2, 1)).reshape(c_out_p, k * c_in_p)
            b_p = jnp.zeros((c_out_p, 1), jnp.float32).at[:c_out, 0].set(b)
        prepped.append((w_p, b_p))
    return tuple(prepped)


def _reference_forward(x, params):
    """Pure-JAX reference (lax conv) for correctness checking."""
    h = x[:, None, :]
    n = len(LAYER_DEFS)
    for i, ((_ci, _co, _k, pad), (w, b)) in enumerate(zip(LAYER_DEFS, params)):
        h = jax.lax.conv_general_dilated(
            h, w, window_strides=(1,), padding=[(pad, pad)],
            dimension_numbers=("NCH", "OIH", "NCH"))
        h = h + b[None, :, None]
        if i < n - 1:
            h = jnp.where(h > 0, h, LEAKY_SLOPE * h)
        else:
            h = jnp.maximum(h, 0.0)
    return h[:, 0, :]


if __name__ == "__main__":
    key = jax.random.PRNGKey(0)
    key, kx = jax.random.split(key)

    B, L = 4, 128          # B=4 exercises batch folding (TB=2) with 2 grid steps
    x = jax.random.normal(kx, (B, L), dtype=jnp.float32)

    params = init_params(key)       # raw PyTorch-shaped (w, b) per layer
    prepped = prep_params(params)   # padded / flattened for the kernel

    out = net_forward(x, prepped)
    out = jax.block_until_ready(out)

    ref = _reference_forward(x, params)
    assert out.shape == (B, L)
    max_err = float(jnp.max(jnp.abs(out - ref)))
    if not bool(jnp.allclose(out, ref, atol=1e-4, rtol=1e-4)):
        raise AssertionError(f"mismatch vs reference (max abs err {max_err:.3e})")

    print("KERNEL_OK")
</pallas_src>

<mosaic_0001>
module attributes {stable_mosaic.version = 11 : i64} {
  func.func @_fused_net_kernel(%arg0: i32, %arg1: memref<2x1x128xf32, #tpu.memory_space<vmem>>, %arg2: memref<32x21xf32, #tpu.memory_space<vmem>>, %arg3: memref<32x1xf32, #tpu.memory_space<vmem>>, %arg4: memref<24x544xf32, #tpu.memory_space<vmem>>, %arg5: memref<24x1xf32, #tpu.memory_space<vmem>>, %arg6: memref<16x312xf32, #tpu.memory_space<vmem>>, %arg7: memref<16x1xf32, #tpu.memory_space<vmem>>, %arg8: memref<16x144xf32, #tpu.memory_space<vmem>>, %arg9: memref<16x1xf32, #tpu.memory_space<vmem>>, %arg10: memref<16x1xf32, #tpu.memory_space<vmem>>, %arg11: memref<1x1xf32, #tpu.memory_space<vmem>>, %arg12: memref<2x1x128xf32, #tpu.memory_space<vmem>>, %arg13: memref<32x512xf32, #tpu.memory_space<vmem>>, %arg14: memref<32x512xf32, #tpu.memory_space<vmem>>, %arg15: memref<544x256xf32, #tpu.memory_space<vmem>>) attributes {dimension_semantics = [#tpu.dimension_semantics<parallel>], iteration_bounds = array<i64: 2>, scalar_prefetch = 0 : i64, scratch_operands = 3 : i64, tpu.core_type = #tpu.core_type<tc>, window_params = [{transform_indices = @transform_0, window_bounds = array<i64: 2, 1, 128>}, {pipeline_mode = #tpu.pipeline_mode<synchronous>, transform_indices = @transform_1, window_bounds = array<i64: 32, 21>}, {pipeline_mode = #tpu.pipeline_mode<synchronous>, transform_indices = @transform_2, window_bounds = array<i64: 32, 1>}, {pipeline_mode = #tpu.pipeline_mode<synchronous>, transform_indices = @transform_3, window_bounds = array<i64: 24, 544>}, {pipeline_mode = #tpu.pipeline_mode<synchronous>, transform_indices = @transform_4, window_bounds = array<i64: 24, 1>}, {pipeline_mode = #tpu.pipeline_mode<synchronous>, transform_indices = @transform_5, window_bounds = array<i64: 16, 312>}, {pipeline_mode = #tpu.pipeline_mode<synchronous>, transform_indices = @transform_6, window_bounds = array<i64: 16, 1>}, {pipeline_mode = #tpu.pipeline_mode<synchronous>, transform_indices = @transform_7, window_bounds = array<i64: 16, 144>}, {pipeline_mode = #tpu.pipeline_mode<synchronous>, transform_indices = @transform_8, window_bounds = array<i64: 16, 1>}, {pipeline_mode = #tpu.pipeline_mode<synchronous>, transform_indices = @transform_9, window_bounds = array<i64: 16, 1>}, {pipeline_mode = #tpu.pipeline_mode<synchronous>, transform_indices = @transform_10, window_bounds = array<i64: 1, 1>}, {transform_indices = @transform_11, window_bounds = array<i64: 2, 1, 128>}]} {
    %cst = arith.constant 0.000000e+00 : f32
    %0 = vector.broadcast %cst : f32 to vector<32x16xf32>
    %c0 = arith.constant 0 : index
    %c0_0 = arith.constant 0 : index
    %1 = vector.load %arg13[%c0, %c0_0] : memref<32x512xf32, #tpu.memory_space<vmem>>, vector<32x16xf32>
    tpu.vector_store %arg13[%c0, %c0_0], %0 {strides = array<i32>} : memref<32x512xf32, #tpu.memory_space<vmem>>, vector<32x16xf32>,
    %c0_1 = arith.constant 0 : index
    %c144 = arith.constant 144 : index
    %2 = vector.load %arg13[%c0_1, %c144] : memref<32x512xf32, #tpu.memory_space<vmem>>, vector<32x16xf32>
    tpu.vector_store %arg13[%c0_1, %c144], %0 {strides = array<i32>} : memref<32x512xf32, #tpu.memory_space<vmem>>, vector<32x16xf32>,
    %c0_2 = arith.constant 0 : index
    %c256 = arith.constant 256 : index
    %3 = vector.load %arg13[%c0_2, %c256] : memref<32x512xf32, #tpu.memory_space<vmem>>, vector<32x16xf32>
    tpu.vector_store %arg13[%c0_2, %c256], %0 {strides = array<i32>} : memref<32x512xf32, #tpu.memory_space<vmem>>, vector<32x16xf32>,
    %c0_3 = arith.constant 0 : index
    %c400 = arith.constant 400 : index
    %4 = vector.load %arg13[%c0_3, %c400] : memref<32x512xf32, #tpu.memory_space<vmem>>, vector<32x16xf32>
    tpu.vector_store %arg13[%c0_3, %c400], %0 {strides = array<i32>} : memref<32x512xf32, #tpu.memory_space<vmem>>, vector<32x16xf32>,
    %c0_4 = arith.constant 0 : index
    %c0_5 = arith.constant 0 : index
    %5 = vector.load %arg14[%c0_4, %c0_5] : memref<32x512xf32, #tpu.memory_space<vmem>>, vector<32x16xf32>
    tpu.vector_store %arg14[%c0_4, %c0_5], %0 {strides = array<i32>} : memref<32x512xf32, #tpu.memory_space<vmem>>, vector<32x16xf32>,
    %c0_6 = arith.constant 0 : index
    %c144_7 = arith.constant 144 : index
    %6 = vector.load %arg14[%c0_6, %c144_7] : memref<32x512xf32, #tpu.memory_space<vmem>>, vector<32x16xf32>
    tpu.vector_store %arg14[%c0_6, %c144_7], %0 {strides = array<i32>} : memref<32x512xf32, #tpu.memory_space<vmem>>, vector<32x16xf32>,
    %c0_8 = arith.constant 0 : index
    %c256_9 = arith.constant 256 : index
    %7 = vector.load %arg14[%c0_8, %c256_9] : memref<32x512xf32, #tpu.memory_space<vmem>>, vector<32x16xf32>
    tpu.vector_store %arg14[%c0_8, %c256_9], %0 {strides = array<i32>} : memref<32x512xf32, #tpu.memory_space<vmem>>, vector<32x16xf32>,
    %c0_10 = arith.constant 0 : index
    %c400_11 = arith.constant 400 : index
    %8 = vector.load %arg14[%c0_10, %c400_11] : memref<32x512xf32, #tpu.memory_space<vmem>>, vector<32x16xf32>
    tpu.vector_store %arg14[%c0_10, %c400_11], %0 {strides = array<i32>} : memref<32x512xf32, #tpu.memory_space<vmem>>, vector<32x16xf32>,
    %c0_12 = arith.constant 0 : index
    %c0_13 = arith.constant 0 : index
    %c0_14 = arith.constant 0 : index
    %9 = vector.load %arg1[%c0_12, %c0_13, %c0_14] : memref<2x1x128xf32, #tpu.memory_space<vmem>>, vector<1x1x128xf32>
    %10 = vector.shape_cast %9 : vector<1x1x128xf32> to vector<1x128xf32>
    %c0_15 = arith.constant 0 : index
    %c16 = arith.constant 16 : index
    %11 = vector.load %arg13[%c0_15, %c16] : memref<32x512xf32, #tpu.memory_space<vmem>>, vector<1x128xf32>
    tpu.vector_store %arg13[%c0_15, %c16], %10 {strides = array<i32>} : memref<32x512xf32, #tpu.memory_space<vmem>>, vector<1x128xf32>,
    %c1 = arith.constant 1 : index
    %c0_16 = arith.constant 0 : index
    %c0_17 = arith.constant 0 : index
    %12 = vector.load %arg1[%c1, %c0_16, %c0_17] : memref<2x1x128xf32, #tpu.memory_space<vmem>>, vector<1x1x128xf32>
    %13 = vector.shape_cast %12 : vector<1x1x128xf32> to vector<1x128xf32>
    %c0_18 = arith.constant 0 : index
    %c272 = arith.constant 272 : index
    %14 = vector.load %arg13[%c0_18, %c272] : memref<32x512xf32, #tpu.memory_space<vmem>>, vector<1x128xf32>
    tpu.vector_store %arg13[%c0_18, %c272], %13 {strides = array<i32>} : memref<32x512xf32, #tpu.memory_space<vmem>>, vector<1x128xf32>,
    %c0_19 = arith.constant 0 : index
    %c0_20 = arith.constant 0 : index
    %15 = vector.load %arg13[%c0_19, %c0_20] : memref<32x512xf32, #tpu.memory_space<vmem>>, vector<1x512xf32>
    %c0_21 = arith.constant 0 : index
    %c0_22 = arith.constant 0 : index
    %16 = vector.load %arg2[%c0_21, %c0_22] : memref<32x21xf32, #tpu.memory_space<vmem>>, vector<32x21xf32>
    %cst_23 = arith.constant 0.000000e+00 : f32
    %17 = vector.broadcast %cst_23 : f32 to vector<32x256xf32>
    %cst_24 = arith.constant 0.000000e+00 : f32
    %18 = vector.broadcast %cst_24 : f32 to vector<32x256xf32>
    %cst_25 = arith.constant 0.000000e+00 : f32
    %19 = vector.broadcast %cst_25 : f32 to vector<32x256xf32>
    %cst_26 = arith.constant 0.000000e+00 : f32
    %20 = vector.broadcast %cst_26 : f32 to vector<32x256xf32>
    %21 = vector.extract_strided_slice %15 {offsets = [0, 6], sizes = [1, 128], strides = [1, 1]} : vector<1x512xf32> to vector<1x128xf32>
    %22 = vector.extract_strided_slice %15 {offsets = [0, 262], sizes = [1, 128], strides = [1, 1]} : vector<1x512xf32> to vector<1x128xf32>
    %23 = tpu.concatenate %21, %22 in 1 : vector<1x128xf32>, vector<1x128xf32> -> vector<1x256xf32>
    %24 = vector.extract_strided_slice %16 {offsets = [0, 0], sizes = [32, 1], strides = [1, 1]} : vector<32x21xf32> to vector<32x1xf32>
    %25 = vector.broadcast %24 : vector<32x1xf32> to vector<32x256xf32>
    %26 = vector.broadcast %23 : vector<1x256xf32> to vector<32x256xf32>
    %27 = arith.mulf %25, %26 : vector<32x256xf32>
    %28 = arith.addf %17, %27 : vector<32x256xf32>
    %29 = vector.extract_strided_slice %15 {offsets = [0, 7], sizes = [1, 128], strides = [1, 1]} : vector<1x512xf32> to vector<1x128xf32>
    %30 = vector.extract_strided_slice %15 {offsets = [0, 263], sizes = [1, 128], strides = [1, 1]} : vector<1x512xf32> to vector<1x128xf32>
    %31 = tpu.concatenate %29, %30 in 1 : vector<1x128xf32>, vector<1x128xf32> -> vector<1x256xf32>
    %32 = vector.extract_strided_slice %16 {offsets = [0, 1], sizes = [32, 1], strides = [1, 1]} : vector<32x21xf32> to vector<32x1xf32>
    %33 = vector.broadcast %32 : vector<32x1xf32> to vector<32x256xf32>
    %34 = vector.broadcast %31 : vector<1x256xf32> to vector<32x256xf32>
    %35 = arith.mulf %33, %34 : vector<32x256xf32>
    %36 = arith.addf %18, %35 : vector<32x256xf32>
    %37 = vector.extract_strided_slice %15 {offsets = [0, 8], sizes = [1, 128], strides = [1, 1]} : vector<1x512xf32> to vector<1x128xf32>
    %38 = vector.extract_strided_slice %15 {offsets = [0, 264], sizes = [1, 128], strides = [1, 1]} : vector<1x512xf32> to vector<1x128xf32>
    %39 = tpu.concatenate %37, %38 in 1 : vector<1x128xf32>, vector<1x128xf32> -> vector<1x256xf32>
    %40 = vector.extract_strided_slice %16 {offsets = [0, 2], sizes = [32, 1], strides = [1, 1]} : vector<32x21xf32> to vector<32x1xf32>
    %41 = vector.broadcast %40 : vector<32x1xf32> to vector<32x256xf32>
    %42 = vector.broadcast %39 : vector<1x256xf32> to vector<32x256xf32>
    %43 = arith.mulf %41, %42 : vector<32x256xf32>
    %44 = arith.addf %19, %43 : vector<32x256xf32>
    %45 = vector.extract_strided_slice %15 {offsets = [0, 9], sizes = [1, 128], strides = [1, 1]} : vector<1x512xf32> to vector<1x128xf32>
    %46 = vector.extract_strided_slice %15 {offsets = [0, 265], sizes = [1, 128], strides = [1, 1]} : vector<1x512xf32> to vector<1x128xf32>
    %47 = tpu.concatenate %45, %46 in 1 : vector<1x128xf32>, vector<1x128xf32> -> vector<1x256xf32>
    %48 = vector.extract_strided_slice %16 {offsets = [0, 3], sizes = [32, 1], strides = [1, 1]} : vector<32x21xf32> to vector<32x1xf32>
    %49 = vector.broadcast %48 : vector<32x1xf32> to vector<32x256xf32>
    %50 = vector.broadcast %47 : vector<1x256xf32> to vector<32x256xf32>
    %51 = arith.mulf %49, %50 : vector<32x256xf32>
    %52 = arith.addf %20, %51 : vector<32x256xf32>
    %53 = vector.extract_strided_slice %15 {offsets = [0, 10], sizes = [1, 128], strides = [1, 1]} : vector<1x512xf32> to vector<1x128xf32>
    %54 = vector.extract_strided_slice %15 {offsets = [0, 266], sizes = [1, 128], strides = [1, 1]} : vector<1x512xf32> to vector<1x128xf32>
    %55 = tpu.concatenate %53, %54 in 1 : vector<1x128xf32>, vector<1x128xf32> -> vector<1x256xf32>
    %56 = vector.extract_strided_slice %16 {offsets = [0, 4], sizes = [32, 1], strides = [1, 1]} : vector<32x21xf32> to vector<32x1xf32>
    %57 = vector.broadcast %56 : vector<32x1xf32> to vector<32x256xf32>
    %58 = vector.broadcast %55 : vector<1x256xf32> to vector<32x256xf32>
    %59 = arith.mulf %57, %58 : vector<32x256xf32>
    %60 = arith.addf %28, %59 : vector<32x256xf32>
    %61 = vector.extract_strided_slice %15 {offsets = [0, 11], sizes = [1, 128], strides = [1, 1]} : vector<1x512xf32> to vector<1x128xf32>
    %62 = vector.extract_strided_slice %15 {offsets = [0, 267], sizes = [1, 128], strides = [1, 1]} : vector<1x512xf32> to vector<1x128xf32>
    %63 = tpu.concatenate %61, %62 in 1 : vector<1x128xf32>, vector<1x128xf32> -> vector<1x256xf32>
    %64 = vector.extract_strided_slice %16 {offsets = [0, 5], sizes = [32, 1], strides = [1, 1]} : vector<32x21xf32> to vector<32x1xf32>
    %65 = vector.broadcast %64 : vector<32x1xf32> to vector<32x256xf32>
    %66 = vector.broadcast %63 : vector<1x256xf32> to vector<32x256xf32>
    %67 = arith.mulf %65, %66 : vector<32x256xf32>
    %68 = arith.addf %36, %67 : vector<32x256xf32>
    %69 = vector.extract_strided_slice %15 {offsets = [0, 12], sizes = [1, 128], strides = [1, 1]} : vector<1x512xf32> to vector<1x128xf32>
    %70 = vector.extract_strided_slice %15 {offsets = [0, 268], sizes = [1, 128], strides = [1, 1]} : vector<1x512xf32> to vector<1x128xf32>
    %71 = tpu.concatenate %69, %70 in 1 : vector<1x128xf32>, vector<1x128xf32> -> vector<1x256xf32>
    %72 = vector.extract_strided_slice %16 {offsets = [0, 6], sizes = [32, 1], strides = [1, 1]} : vector<32x21xf32> to vector<32x1xf32>
    %73 = vector.broadcast %72 : vector<32x1xf32> to vector<32x256xf32>
    %74 = vector.broadcast %71 : vector<1x256xf32> to vector<32x256xf32>
    %75 = arith.mulf %73, %74 : vector<32x256xf32>
    %76 = arith.addf %44, %75 : vector<32x256xf32>
    %77 = vector.extract_strided_slice %15 {offsets = [0, 13], sizes = [1, 128], strides = [1, 1]} : vector<1x512xf32> to vector<1x128xf32>
    %78 = vector.extract_strided_slice %15 {offsets = [0, 269], sizes = [1, 128], strides = [1, 1]} : vector<1x512xf32> to vector<1x128xf32>
    %79 = tpu.concatenate %77, %78 in 1 : vector<1x128xf32>, vector<1x128xf32> -> vector<1x256xf32>
    %80 = vector.extract_strided_slice %16 {offsets = [0, 7], sizes = [32, 1], strides = [1, 1]} : vector<32x21xf32> to vector<32x1xf32>
    %81 = vector.broadcast %80 : vector<32x1xf32> to vector<32x256xf32>
    %82 = vector.broadcast %79 : vector<1x256xf32> to vector<32x256xf32>
    %83 = arith.mulf %81, %82 : vector<32x256xf32>
    %84 = arith.addf %52, %83 : vector<32x256xf32>
    %85 = vector.extract_strided_slice %15 {offsets = [0, 14], sizes = [1, 128], strides = [1, 1]} : vector<1x512xf32> to vector<1x128xf32>
    %86 = vector.extract_strided_slice %15 {offsets = [0, 270], sizes = [1, 128], strides = [1, 1]} : vector<1x512xf32> to vector<1x128xf32>
    %87 = tpu.concatenate %85, %86 in 1 : vector<1x128xf32>, vector<1x128xf32> -> vector<1x256xf32>
    %88 = vector.extract_strided_slice %16 {offsets = [0, 8], sizes = [32, 1], strides = [1, 1]} : vector<32x21xf32> to vector<32x1xf32>
    %89 = vector.broadcast %88 : vector<32x1xf32> to vector<32x256xf32>
    %90 = vector.broadcast %87 : vector<1x256xf32> to vector<32x256xf32>
    %91 = arith.mulf %89, %90 : vector<32x256xf32>
    %92 = arith.addf %60, %91 : vector<32x256xf32>
    %93 = vector.extract_strided_slice %15 {offsets = [0, 15], sizes = [1, 128], strides = [1, 1]} : vector<1x512xf32> to vector<1x128xf32>
    %94 = vector.extract_strided_slice %15 {offsets = [0, 271], sizes = [1, 128], strides = [1, 1]} : vector<1x512xf32> to vector<1x128xf32>
    %95 = tpu.concatenate %93, %94 in 1 : vector<1x128xf32>, vector<1x128xf32> -> vector<1x256xf32>
    %96 = vector.extract_strided_slice %16 {offsets = [0, 9], sizes = [32, 1], strides = [1, 1]} : vector<32x21xf32> to vector<32x1xf32>
    %97 = vector.broadcast %96 : vector<32x1xf32> to vector<32x256xf32>
    %98 = vector.broadcast %95 : vector<1x256xf32> to vector<32x256xf32>
    %99 = arith.mulf %97, %98 : vector<32x256xf32>
    %100 = arith.addf %68, %99 : vector<32x256xf32>
    %101 = vector.extract_strided_slice %15 {offsets = [0, 16], sizes = [1, 128], strides = [1, 1]} : vector<1x512xf32> to vector<1x128xf32>
    %102 = vector.extract_strided_slice %15 {offsets = [0, 272], sizes = [1, 128], strides = [1, 1]} : vector<1x512xf32> to vector<1x128xf32>
    %103 = tpu.concatenate %101, %102 in 1 : vector<1x128xf32>, vector<1x128xf32> -> vector<1x256xf32>
    %104 = vector.extract_strided_slice %16 {offsets = [0, 10], sizes = [32, 1], strides = [1, 1]} : vector<32x21xf32> to vector<32x1xf32>
    %105 = vector.broadcast %104 : vector<32x1xf32> to vector<32x256xf32>
    %106 = vector.broadcast %103 : vector<1x256xf32> to vector<32x256xf32>
    %107 = arith.mulf %105, %106 : vector<32x256xf32>
    %108 = arith.addf %76, %107 : vector<32x256xf32>
    %109 = vector.extract_strided_slice %15 {offsets = [0, 17], sizes = [1, 128], strides = [1, 1]} : vector<1x512xf32> to vector<1x128xf32>
    %110 = vector.extract_strided_slice %15 {offsets = [0, 273], sizes = [1, 128], strides = [1, 1]} : vector<1x512xf32> to vector<1x128xf32>
    %111 = tpu.concatenate %109, %110 in 1 : vector<1x128xf32>, vector<1x128xf32> -> vector<1x256xf32>
    %112 = vector.extract_strided_slice %16 {offsets = [0, 11], sizes = [32, 1], strides = [1, 1]} : vector<32x21xf32> to vector<32x1xf32>
    %113 = vector.broadcast %112 : vector<32x1xf32> to vector<32x256xf32>
    %114 = vector.broadcast %111 : vector<1x256xf32> to vector<32x256xf32>
    %115 = arith.mulf %113, %114 : vector<32x256xf32>
    %116 = arith.addf %84, %115 : vector<32x256xf32>
    %117 = vector.extract_strided_slice %15 {offsets = [0, 18], sizes = [1, 128], strides = [1, 1]} : vector<1x512xf32> to vector<1x128xf32>
    %118 = vector.extract_strided_slice %15 {offsets = [0, 274], sizes = [1, 128], strides = [1, 1]} : vector<1x512xf32> to vector<1x128xf32>
    %119 = tpu.concatenate %117, %118 in 1 : vector<1x128xf32>, vector<1x128xf32> -> vector<1x256xf32>
    %120 = vector.extract_strided_slice %16 {offsets = [0, 12], sizes = [32, 1], strides = [1, 1]} : vector<32x21xf32> to vector<32x1xf32>
    %121 = vector.broadcast %120 : vector<32x1xf32> to vector<32x256xf32>
    %122 = vector.broadcast %119 : vector<1x256xf32> to vector<32x256xf32>
    %123 = arith.mulf %121, %122 : vector<32x256xf32>
    %124 = arith.addf %92, %123 : vector<32x256xf32>
    %125 = vector.extract_strided_slice %15 {offsets = [0, 19], sizes = [1, 128], strides = [1, 1]} : vector<1x512xf32> to vector<1x128xf32>
    %126 = vector.extract_strided_slice %15 {offsets = [0, 275], sizes = [1, 128], strides = [1, 1]} : vector<1x512xf32> to vector<1x128xf32>
    %127 = tpu.concatenate %125, %126 in 1 : vector<1x128xf32>, vector<1x128xf32> -> vector<1x256xf32>
    %128 = vector.extract_strided_slice %16 {offsets = [0, 13], sizes = [32, 1], strides = [1, 1]} : vector<32x21xf32> to vector<32x1xf32>
    %129 = vector.broadcast %128 : vector<32x1xf32> to vector<32x256xf32>
    %130 = vector.broadcast %127 : vector<1x256xf32> to vector<32x256xf32>
    %131 = arith.mulf %129, %130 : vector<32x256xf32>
    %132 = arith.addf %100, %131 : vector<32x256xf32>
    %133 = vector.extract_strided_slice %15 {offsets = [0, 20], sizes = [1, 128], strides = [1, 1]} : vector<1x512xf32> to vector<1x128xf32>
    %134 = vector.extract_strided_slice %15 {offsets = [0, 276], sizes = [1, 128], strides = [1, 1]} : vector<1x512xf32> to vector<1x128xf32>
    %135 = tpu.concatenate %133, %134 in 1 : vector<1x128xf32>, vector<1x128xf32> -> vector<1x256xf32>
    %136 = vector.extract_strided_slice %16 {offsets = [0, 14], sizes = [32, 1], strides = [1, 1]} : vector<32x21xf32> to vector<32x1xf32>
    %137 = vector.broadcast %136 : vector<32x1xf32> to vector<32x256xf32>
    %138 = vector.broadcast %135 : vector<1x256xf32> to vector<32x256xf32>
    %139 = arith.mulf %137, %138 : vector<32x256xf32>
    %140 = arith.addf %108, %139 : vector<32x256xf32>
    %141 = vector.extract_strided_slice %15 {offsets = [0, 21], sizes = [1, 128], strides = [1, 1]} : vector<1x512xf32> to vector<1x128xf32>
    %142 = vector.extract_strided_slice %15 {offsets = [0, 277], sizes = [1, 128], strides = [1, 1]} : vector<1x512xf32> to vector<1x128xf32>
    %143 = tpu.concatenate %141, %142 in 1 : vector<1x128xf32>, vector<1x128xf32> -> vector<1x256xf32>
    %144 = vector.extract_strided_slice %16 {offsets = [0, 15], sizes = [32, 1], strides = [1, 1]} : vector<32x21xf32> to vector<32x1xf32>
    %145 = vector.broadcast %144 : vector<32x1xf32> to vector<32x256xf32>
    %146 = vector.broadcast %143 : vector<1x256xf32> to vector<32x256xf32>
    %147 = arith.mulf %145, %146 : vector<32x256xf32>
    %148 = arith.addf %116, %147 : vector<32x256xf32>
    %149 = vector.extract_strided_slice %15 {offsets = [0, 22], sizes = [1, 128], strides = [1, 1]} : vector<1x512xf32> to vector<1x128xf32>
    %150 = vector.extract_strided_slice %15 {offsets = [0, 278], sizes = [1, 128], strides = [1, 1]} : vector<1x512xf32> to vector<1x128xf32>
    %151 = tpu.concatenate %149, %150 in 1 : vector<1x128xf32>, vector<1x128xf32> -> vector<1x256xf32>
    %152 = vector.extract_strided_slice %16 {offsets = [0, 16], sizes = [32, 1], strides = [1, 1]} : vector<32x21xf32> to vector<32x1xf32>
    %153 = vector.broadcast %152 : vector<32x1xf32> to vector<32x256xf32>
    %154 = vector.broadcast %151 : vector<1x256xf32> to vector<32x256xf32>
    %155 = arith.mulf %153, %154 : vector<32x256xf32>
    %156 = arith.addf %124, %155 : vector<32x256xf32>
    %157 = vector.extract_strided_slice %15 {offsets = [0, 23], sizes = [1, 128], strides = [1, 1]} : vector<1x512xf32> to vector<1x128xf32>
    %158 = vector.extract_strided_slice %15 {offsets = [0, 279], sizes = [1, 128], strides = [1, 1]} : vector<1x512xf32> to vector<1x128xf32>
    %159 = tpu.concatenate %157, %158 in 1 : vector<1x128xf32>, vector<1x128xf32> -> vector<1x256xf32>
    %160 = vector.extract_strided_slice %16 {offsets = [0, 17], sizes = [32, 1], strides = [1, 1]} : vector<32x21xf32> to vector<32x1xf32>
    %161 = vector.broadcast %160 : vector<32x1xf32> to vector<32x256xf32>
    %162 = vector.broadcast %159 : vector<1x256xf32> to vector<32x256xf32>
    %163 = arith.mulf %161, %162 : vector<32x256xf32>
    %164 = arith.addf %132, %163 : vector<32x256xf32>
    %165 = vector.extract_strided_slice %15 {offsets = [0, 24], sizes = [1, 128], strides = [1, 1]} : vector<1x512xf32> to vector<1x128xf32>
    %166 = vector.extract_strided_slice %15 {offsets = [0, 280], sizes = [1, 128], strides = [1, 1]} : vector<1x512xf32> to vector<1x128xf32>
    %167 = tpu.concatenate %165, %166 in 1 : vector<1x128xf32>, vector<1x128xf32> -> vector<1x256xf32>
    %168 = vector.extract_strided_slice %16 {offsets = [0, 18], sizes = [32, 1], strides = [1, 1]} : vector<32x21xf32> to vector<32x1xf32>
    %169 = vector.broadcast %168 : vector<32x1xf32> to vector<32x256xf32>
    %170 = vector.broadcast %167 : vector<1x256xf32> to vector<32x256xf32>
    %171 = arith.mulf %169, %170 : vector<32x256xf32>
    %172 = arith.addf %140, %171 : vector<32x256xf32>
    %173 = vector.extract_strided_slice %15 {offsets = [0, 25], sizes = [1, 128], strides = [1, 1]} : vector<1x512xf32> to vector<1x128xf32>
    %174 = vector.extract_strided_slice %15 {offsets = [0, 281], sizes = [1, 128], strides = [1, 1]} : vector<1x512xf32> to vector<1x128xf32>
    %175 = tpu.concatenate %173, %174 in 1 : vector<1x128xf32>, vector<1x128xf32> -> vector<1x256xf32>
    %176 = vector.extract_strided_slice %16 {offsets = [0, 19], sizes = [32, 1], strides = [1, 1]} : vector<32x21xf32> to vector<32x1xf32>
    %177 = vector.broadcast %176 : vector<32x1xf32> to vector<32x256xf32>
    %178 = vector.broadcast %175 : vector<1x256xf32> to vector<32x256xf32>
    %179 = arith.mulf %177, %178 : vector<32x256xf32>
    %180 = arith.addf %148, %179 : vector<32x256xf32>
    %181 = vector.extract_strided_slice %15 {offsets = [0, 26], sizes = [1, 128], strides = [1, 1]} : vector<1x512xf32> to vector<1x128xf32>
    %182 = vector.extract_strided_slice %15 {offsets = [0, 282], sizes = [1, 128], strides = [1, 1]} : vector<1x512xf32> to vector<1x128xf32>
    %183 = tpu.concatenate %181, %182 in 1 : vector<1x128xf32>, vector<1x128xf32> -> vector<1x256xf32>
    %184 = vector.extract_strided_slice %16 {offsets = [0, 20], sizes = [32, 1], strides = [1, 1]} : vector<32x21xf32> to vector<32x1xf32>
    %185 = vector.broadcast %184 : vector<32x1xf32> to vector<32x256xf32>
    %186 = vector.broadcast %183 : vector<1x256xf32> to vector<32x256xf32>
    %187 = arith.mulf %185, %186 : vector<32x256xf32>
    %188 = arith.addf %156, %187 : vector<32x256xf32>
    %189 = arith.addf %188, %164 : vector<32x256xf32>
    %190 = arith.addf %172, %180 : vector<32x256xf32>
    %191 = arith.addf %189, %190 : vector<32x256xf32>
    %c0_27 = arith.constant 0 : index
    %c0_28 = arith.constant 0 : index
    %192 = vector.load %arg3[%c0_27, %c0_28] : memref<32x1xf32, #tpu.memory_space<vmem>>, vector<32x1xf32>
    %193 = vector.broadcast %192 : vector<32x1xf32> to vector<32x256xf32>
    %194 = arith.addf %191, %193 : vector<32x256xf32>
    %cst_29 = arith.constant 0.000000e+00 : f32
    %195 = vector.broadcast %cst_29 : f32 to vector<32x256xf32>
    %196 = arith.cmpf ogt, %194, %195 : vector<32x256xf32>
    %cst_30 = arith.constant 5.000000e-02 : f32
    %197 = vector.broadcast %cst_30 : f32 to vector<32x256xf32>
    %198 = arith.mulf %197, %194 : vector<32x256xf32>
    %199 = arith.select %196, %194, %198 : vector<32x256xi1>, vector<32x256xf32>
    %200 = vector.extract_strided_slice %199 {offsets = [0, 0], sizes = [32, 128], strides = [1, 1]} : vector<32x256xf32> to vector<32x128xf32>
    %c0_31 = arith.constant 0 : index
    %c16_32 = arith.constant 16 : index
    %201 = vector.load %arg14[%c0_31, %c16_32] : memref<32x512xf32, #tpu.memory_space<vmem>>, vector<32x128xf32>
    tpu.vector_store %arg14[%c0_31, %c16_32], %200 {strides = array<i32>} : memref<32x512xf32, #tpu.memory_space<vmem>>, vector<32x128xf32>,
    %202 = vector.extract_strided_slice %199 {offsets = [0, 128], sizes = [32, 128], strides = [1, 1]} : vector<32x256xf32> to vector<32x128xf32>
    %c0_33 = arith.constant 0 : index
    %c272_34 = arith.constant 272 : index
    %203 = vector.load %arg14[%c0_33, %c272_34] : memref<32x512xf32, #tpu.memory_space<vmem>>, vector<32x128xf32>
    tpu.vector_store %arg14[%c0_33, %c272_34], %202 {strides = array<i32>} : memref<32x512xf32, #tpu.memory_space<vmem>>, vector<32x128xf32>,
    %c0_35 = arith.constant 0 : index
    %c0_36 = arith.constant 0 : index
    %204 = vector.load %arg14[%c0_35, %c0_36] : memref<32x512xf32, #tpu.memory_space<vmem>>, vector<32x512xf32>
    %205 = vector.extract_strided_slice %204 {offsets = [0, 8], sizes = [32, 128], strides = [1, 1]} : vector<32x512xf32> to vector<32x128xf32>
    %c0_37 = arith.constant 0 : index
    %c0_38 = arith.constant 0 : index
    %206 = vector.load %arg15[%c0_37, %c0_38] : memref<544x256xf32, #tpu.memory_space<vmem>>, vector<32x128xf32>
    tpu.vector_store %arg15[%c0_37, %c0_38], %205 {strides = array<i32>} : memref<544x256xf32, #tpu.memory_space<vmem>>, vector<32x128xf32>,
    %207 = vector.extract_strided_slice %204 {offsets = [0, 264], sizes = [32, 128], strides = [1, 1]} : vector<32x512xf32> to vector<32x128xf32>
    %c0_39 = arith.constant 0 : index
    %c128 = arith.constant 128 : index
    %208 = vector.load %arg15[%c0_39, %c128] : memref<544x256xf32, #tpu.memory_space<vmem>>, vector<32x128xf32>
    tpu.vector_store %arg15[%c0_39, %c128], %207 {strides = array<i32>} : memref<544x256xf32, #tpu.memory_space<vmem>>, vector<32x128xf32>,
    %209 = vector.extract_strided_slice %204 {offsets = [0, 9], sizes = [32, 128], strides = [1, 1]} : vector<32x512xf32> to vector<32x128xf32>
    %c32 = arith.constant 32 : index
    %c0_40 = arith.constant 0 : index
    %210 = vector.load %arg15[%c32, %c0_40] : memref<544x256xf32, #tpu.memory_space<vmem>>, vector<32x128xf32>
    tpu.vector_store %arg15[%c32, %c0_40], %209 {strides = array<i32>} : memref<544x256xf32, #tpu.memory_space<vmem>>, vector<32x128xf32>,
    %211 = vector.extract_strided_slice %204 {offsets = [0, 265], sizes = [32, 128], strides = [1, 1]} : vector<32x512xf32> to vector<32x128xf32>
    %c32_41 = arith.constant 32 : index
    %c128_42 = arith.constant 128 : index
    %212 = vector.load %arg15[%c32_41, %c128_42] : memref<544x256xf32, #tpu.memory_space<vmem>>, vector<32x128xf32>
    tpu.vector_store %arg15[%c32_41, %c128_42], %211 {strides = array<i32>} : memref<544x256xf32, #tpu.memory_space<vmem>>, vector<32x128xf32>,
    %213 = vector.extract_strided_slice %204 {offsets = [0, 10], sizes = [32, 128], strides = [1, 1]} : vector<32x512xf32> to vector<32x128xf32>
    %c64 = arith.constant 64 : index
    %c0_43 = arith.constant 0 : index
    %214 = vector.load %arg15[%c64, %c0_43] : memref<544x256xf32, #tpu.memory_space<vmem>>, vector<32x128xf32>
    tpu.vector_store %arg15[%c64, %c0_43], %213 {strides = array<i32>} : memref<544x256xf32, #tpu.memory_space<vmem>>, vector<32x128xf32>,
    %215 = vector.extract_strided_slice %204 {offsets = [0, 266], sizes = [32, 128], strides = [1, 1]} : vector<32x512xf32> to vector<32x128xf32>
    %c64_44 = arith.constant 64 : index
    %c128_45 = arith.constant 128 : index
    %216 = vector.load %arg15[%c64_44, %c128_45] : memref<544x256xf32, #tpu.memory_space<vmem>>, vector<32x128xf32>
    tpu.vector_store %arg15[%c64_44, %c128_45], %215 {strides = array<i32>} : memref<544x256xf32, #tpu.memory_space<vmem>>, vector<32x128xf32>,
    %217 = vector.extract_strided_slice %204 {offsets = [0, 11], sizes = [32, 128], strides = [1, 1]} : vector<32x512xf32> to vector<32x128xf32>
    %c96 = arith.constant 96 : index
    %c0_46 = arith.constant 0 : index
    %218 = vector.load %arg15[%c96, %c0_46] : memref<544x256xf32, #tpu.memory_space<vmem>>, vector<32x128xf32>
    tpu.vector_store %arg15[%c96, %c0_46], %217 {strides = array<i32>} : memref<544x256xf32, #tpu.memory_space<vmem>>, vector<32x128xf32>,
    %219 = vector.extract_strided_slice %204 {offsets = [0, 267], sizes = [32, 128], strides = [1, 1]} : vector<32x512xf32> to vector<32x128xf32>
    %c96_47 = arith.constant 96 : index
    %c128_48 = arith.constant 128 : index
    %220 = vector.load %arg15[%c96_47, %c128_48] : memref<544x256xf32, #tpu.memory_space<vmem>>, vector<32x128xf32>
    tpu.vector_store %arg15[%c96_47, %c128_48], %219 {strides = array<i32>} : memref<544x256xf32, #tpu.memory_space<vmem>>, vector<32x128xf32>,
    %221 = vector.extract_strided_slice %204 {offsets = [0, 12], sizes = [32, 128], strides = [1, 1]} : vector<32x512xf32> to vector<32x128xf32>
    %c128_49 = arith.constant 128 : index
    %c0_50 = arith.constant 0 : index
    %222 = vector.load %arg15[%c128_49, %c0_50] : memref<544x256xf32, #tpu.memory_space<vmem>>, vector<32x128xf32>
    tpu.vector_store %arg15[%c128_49, %c0_50], %221 {strides = array<i32>} : memref<544x256xf32, #tpu.memory_space<vmem>>, vector<32x128xf32>,
    %223 = vector.extract_strided_slice %204 {offsets = [0, 268], sizes = [32, 128], strides = [1, 1]} : vector<32x512xf32> to vector<32x128xf32>
    %c128_51 = arith.constant 128 : index
    %c128_52 = arith.constant 128 : index
    %224 = vector.load %arg15[%c128_51, %c128_52] : memref<544x256xf32, #tpu.memory_space<vmem>>, vector<32x128xf32>
    tpu.vector_store %arg15[%c128_51, %c128_52], %223 {strides = array<i32>} : memref<544x256xf32, #tpu.memory_space<vmem>>, vector<32x128xf32>,
    %225 = vector.extract_strided_slice %204 {offsets = [0, 13], sizes = [32, 128], strides = [1, 1]} : vector<32x512xf32> to vector<32x128xf32>
    %c160 = arith.constant 160 : index
    %c0_53 = arith.constant 0 : index
    %226 = vector.load %arg15[%c160, %c0_53] : memref<544x256xf32, #tpu.memory_space<vmem>>, vector<32x128xf32>
    tpu.vector_store %arg15[%c160, %c0_53], %225 {strides = array<i32>} : memref<544x256xf32, #tpu.memory_space<vmem>>, vector<32x128xf32>,
    %227 = vector.extract_strided_slice %204 {offsets = [0, 269], sizes = [32, 128], strides = [1, 1]} : vector<32x512xf32> to vector<32x128xf32>
    %c160_54 = arith.constant 160 : index
    %c128_55 = arith.constant 128 : index
    %228 = vector.load %arg15[%c160_54, %c128_55] : memref<544x256xf32, #tpu.memory_space<vmem>>, vector<32x128xf32>
    tpu.vector_store %arg15[%c160_54, %c128_55], %227 {strides = array<i32>} : memref<544x256xf32, #tpu.memory_space<vmem>>, vector<32x128xf32>,
    %229 = vector.extract_strided_slice %204 {offsets = [0, 14], sizes = [32, 128], strides = [1, 1]} : vector<32x512xf32> to vector<32x128xf32>
    %c192 = arith.constant 192 : index
    %c0_56 = arith.constant 0 : index
    %230 = vector.load %arg15[%c192, %c0_56] : memref<544x256xf32, #tpu.memory_space<vmem>>, vector<32x128xf32>
    tpu.vector_store %arg15[%c192, %c0_56], %229 {strides = array<i32>} : memref<544x256xf32, #tpu.memory_space<vmem>>, vector<32x128xf32>,
    %231 = vector.extract_strided_slice %204 {offsets = [0, 270], sizes = [32, 128], strides = [1, 1]} : vector<32x512xf32> to vector<32x128xf32>
    %c192_57 = arith.constant 192 : index
    %c128_58 = arith.constant 128 : index
    %232 = vector.load %arg15[%c192_57, %c128_58] : memref<544x256xf32, #tpu.memory_space<vmem>>, vector<32x128xf32>
    tpu.vector_store %arg15[%c192_57, %c128_58], %231 {strides = array<i32>} : memref<544x256xf32, #tpu.memory_space<vmem>>, vector<32x128xf32>,
    %233 = vector.extract_strided_slice %204 {offsets = [0, 15], sizes = [32, 128], strides = [1, 1]} : vector<32x512xf32> to vector<32x128xf32>
    %c224 = arith.constant 224 : index
    %c0_59 = arith.constant 0 : index
    %234 = vector.load %arg15[%c224, %c0_59] : memref<544x256xf32, #tpu.memory_space<vmem>>, vector<32x128xf32>
    tpu.vector_store %arg15[%c224, %c0_59], %233 {strides = array<i32>} : memref<544x256xf32, #tpu.memory_space<vmem>>, vector<32x128xf32>,
    %235 = vector.extract_strided_slice %204 {offsets = [0, 271], sizes = [32, 128], strides = [1, 1]} : vector<32x512xf32> to vector<32x128xf32>
    %c224_60 = arith.constant 224 : index
    %c128_61 = arith.constant 128 : index
    %236 = vector.load %arg15[%c224_60, %c128_61] : memref<544x256xf32, #tpu.memory_space<vmem>>, vector<32x128xf32>
    tpu.vector_store %arg15[%c224_60, %c128_61], %235 {strides = array<i32>} : memref<544x256xf32, #tpu.memory_space<vmem>>, vector<32x128xf32>,
    %237 = vector.extract_strided_slice %204 {offsets = [0, 16], sizes = [32, 128], strides = [1, 1]} : vector<32x512xf32> to vector<32x128xf32>
    %c256_62 = arith.constant 256 : index
    %c0_63 = arith.constant 0 : index
    %238 = vector.load %arg15[%c256_62, %c0_63] : memref<544x256xf32, #tpu.memory_space<vmem>>, vector<32x128xf32>
    tpu.vector_store %arg15[%c256_62, %c0_63], %237 {strides = array<i32>} : memref<544x256xf32, #tpu.memory_space<vmem>>, vector<32x128xf32>,
    %239 = vector.extract_strided_slice %204 {offsets = [0, 272], sizes = [32, 128], strides = [1, 1]} : vector<32x512xf32> to vector<32x128xf32>
    %c256_64 = arith.constant 256 : index
    %c128_65 = arith.constant 128 : index
    %240 = vector.load %arg15[%c256_64, %c128_65] : memref<544x256xf32, #tpu.memory_space<vmem>>, vector<32x128xf32>
    tpu.vector_store %arg15[%c256_64, %c128_65], %239 {strides = array<i32>} : memref<544x256xf32, #tpu.memory_space<vmem>>, vector<32x128xf32>,
    %241 = vector.extract_strided_slice %204 {offsets = [0, 17], sizes = [32, 128], strides = [1, 1]} : vector<32x512xf32> to vector<32x128xf32>
    %c288 = arith.constant 288 : index
    %c0_66 = arith.constant 0 : index
    %242 = vector.load %arg15[%c288, %c0_66] : memref<544x256xf32, #tpu.memory_space<vmem>>, vector<32x128xf32>
    tpu.vector_store %arg15[%c288, %c0_66], %241 {strides = array<i32>} : memref<544x256xf32, #tpu.memory_space<vmem>>, vector<32x128xf32>,
    %243 = vector.extract_strided_slice %204 {offsets = [0, 273], sizes = [32, 128], strides = [1, 1]} : vector<32x512xf32> to vector<32x128xf32>
    %c288_67 = arith.constant 288 : index
    %c128_68 = arith.constant 128 : index
    %244 = vector.load %arg15[%c288_67, %c128_68] : memref<544x256xf32, #tpu.memory_space<vmem>>, vector<32x128xf32>
    tpu.vector_store %arg15[%c288_67, %c128_68], %243 {strides = array<i32>} : memref<544x256xf32, #tpu.memory_space<vmem>>, vector<32x128xf32>,
    %245 = vector.extract_strided_slice %204 {offsets = [0, 18], sizes = [32, 128], strides = [1, 1]} : vector<32x512xf32> to vector<32x128xf32>
    %c320 = arith.constant 320 : index
    %c0_69 = arith.constant 0 : index
    %246 = vector.load %arg15[%c320, %c0_69] : memref<544x256xf32, #tpu.memory_space<vmem>>, vector<32x128xf32>
    tpu.vector_store %arg15[%c320, %c0_69], %245 {strides = array<i32>} : memref<544x256xf32, #tpu.memory_space<vmem>>, vector<32x128xf32>,
    %247 = vector.extract_strided_slice %204 {offsets = [0, 274], sizes = [32, 128], strides = [1, 1]} : vector<32x512xf32> to vector<32x128xf32>
    %c320_70 = arith.constant 320 : index
    %c128_71 = arith.constant 128 : index
    %248 = vector.load %arg15[%c320_70, %c128_71] : memref<544x256xf32, #tpu.memory_space<vmem>>, vector<32x128xf32>
    tpu.vector_store %arg15[%c320_70, %c128_71], %247 {strides = array<i32>} : memref<544x256xf32, #tpu.memory_space<vmem>>, vector<32x128xf32>,
    %249 = vector.extract_strided_slice %204 {offsets = [0, 19], sizes = [32, 128], strides = [1, 1]} : vector<32x512xf32> to vector<32x128xf32>
    %c352 = arith.constant 352 : index
    %c0_72 = arith.constant 0 : index
    %250 = vector.load %arg15[%c352, %c0_72] : memref<544x256xf32, #tpu.memory_space<vmem>>, vector<32x128xf32>
    tpu.vector_store %arg15[%c352, %c0_72], %249 {strides = array<i32>} : memref<544x256xf32, #tpu.memory_space<vmem>>, vector<32x128xf32>,
    %251 = vector.extract_strided_slice %204 {offsets = [0, 275], sizes = [32, 128], strides = [1, 1]} : vector<32x512xf32> to vector<32x128xf32>
    %c352_73 = arith.constant 352 : index
    %c128_74 = arith.constant 128 : index
    %252 = vector.load %arg15[%c352_73, %c128_74] : memref<544x256xf32, #tpu.memory_space<vmem>>, vector<32x128xf32>
    tpu.vector_store %arg15[%c352_73, %c128_74], %251 {strides = array<i32>} : memref<544x256xf32, #tpu.memory_space<vmem>>, vector<32x128xf32>,
    %253 = vector.extract_strided_slice %204 {offsets = [0, 20], sizes = [32, 128], strides = [1, 1]} : vector<32x512xf32> to vector<32x128xf32>
    %c384 = arith.constant 384 : index
    %c0_75 = arith.constant 0 : index
    %254 = vector.load %arg15[%c384, %c0_75] : memref<544x256xf32, #tpu.memory_space<vmem>>, vector<32x128xf32>
    tpu.vector_store %arg15[%c384, %c0_75], %253 {strides = array<i32>} : memref<544x256xf32, #tpu.memory_space<vmem>>, vector<32x128xf32>,
    %255 = vector.extract_strided_slice %204 {offsets = [0, 276], sizes = [32, 128], strides = [1, 1]} : vector<32x512xf32> to vector<32x128xf32>
    %c384_76 = arith.constant 384 : index
    %c128_77 = arith.constant 128 : index
    %256 = vector.load %arg15[%c384_76, %c128_77] : memref<544x256xf32, #tpu.memory_space<vmem>>, vector<32x128xf32>
    tpu.vector_store %arg15[%c384_76, %c128_77], %255 {strides = array<i32>} : memref<544x256xf32, #tpu.memory_space<vmem>>, vector<32x128xf32>,
    %257 = vector.extract_strided_slice %204 {offsets = [0, 21], sizes = [32, 128], strides = [1, 1]} : vector<32x512xf32> to vector<32x128xf32>
    %c416 = arith.constant 416 : index
    %c0_78 = arith.constant 0 : index
    %258 = vector.load %arg15[%c416, %c0_78] : memref<544x256xf32, #tpu.memory_space<vmem>>, vector<32x128xf32>
    tpu.vector_store %arg15[%c416, %c0_78], %257 {strides = array<i32>} : memref<544x256xf32, #tpu.memory_space<vmem>>, vector<32x128xf32>,
    %259 = vector.extract_strided_slice %204 {offsets = [0, 277], sizes = [32, 128], strides = [1, 1]} : vector<32x512xf32> to vector<32x128xf32>
    %c416_79 = arith.constant 416 : index
    %c128_80 = arith.constant 128 : index
    %260 = vector.load %arg15[%c416_79, %c128_80] : memref<544x256xf32, #tpu.memory_space<vmem>>, vector<32x128xf32>
    tpu.vector_store %arg15[%c416_79, %c128_80], %259 {strides = array<i32>} : memref<544x256xf32, #tpu.memory_space<vmem>>, vector<32x128xf32>,
    %261 = vector.extract_strided_slice %204 {offsets = [0, 22], sizes = [32, 128], strides = [1, 1]} : vector<32x512xf32> to vector<32x128xf32>
    %c448 = arith.constant 448 : index
    %c0_81 = arith.constant 0 : index
    %262 = vector.load %arg15[%c448, %c0_81] : memref<544x256xf32, #tpu.memory_space<vmem>>, vector<32x128xf32>
    tpu.vector_store %arg15[%c448, %c0_81], %261 {strides = array<i32>} : memref<544x256xf32, #tpu.memory_space<vmem>>, vector<32x128xf32>,
    %263 = vector.extract_strided_slice %204 {offsets = [0, 278], sizes = [32, 128], strides = [1, 1]} : vector<32x512xf32> to vector<32x128xf32>
    %c448_82 = arith.constant 448 : index
    %c128_83 = arith.constant 128 : index
    %264 = vector.load %arg15[%c448_82, %c128_83] : memref<544x256xf32, #tpu.memory_space<vmem>>, vector<32x128xf32>
    tpu.vector_store %arg15[%c448_82, %c128_83], %263 {strides = array<i32>} : memref<544x256xf32, #tpu.memory_space<vmem>>, vector<32x128xf32>,
    %265 = vector.extract_strided_slice %204 {offsets = [0, 23], sizes = [32, 128], strides = [1, 1]} : vector<32x512xf32> to vector<32x128xf32>
    %c480 = arith.constant 480 : index
    %c0_84 = arith.constant 0 : index
    %266 = vector.load %arg15[%c480, %c0_84] : memref<544x256xf32, #tpu.memory_space<vmem>>, vector<32x128xf32>
    tpu.vector_store %arg15[%c480, %c0_84], %265 {strides = array<i32>} : memref<544x256xf32, #tpu.memory_space<vmem>>, vector<32x128xf32>,
    %267 = vector.extract_strided_slice %204 {offsets = [0, 279], sizes = [32, 128], strides = [1, 1]} : vector<32x512xf32> to vector<32x128xf32>
    %c480_85 = arith.constant 480 : index
    %c128_86 = arith.constant 128 : index
    %268 = vector.load %arg15[%c480_85, %c128_86] : memref<544x256xf32, #tpu.memory_space<vmem>>, vector<32x128xf32>
    tpu.vector_store %arg15[%c480_85, %c128_86], %267 {strides = array<i32>} : memref<544x256xf32, #tpu.memory_space<vmem>>, vector<32x128xf32>,
    %269 = vector.extract_strided_slice %204 {offsets = [0, 24], sizes = [32, 128], strides = [1, 1]} : vector<32x512xf32> to vector<32x128xf32>
    %c512 = arith.constant 512 : index
    %c0_87 = arith.constant 0 : index
    %270 = vector.load %arg15[%c512, %c0_87] : memref<544x256xf32, #tpu.memory_space<vmem>>, vector<32x128xf32>
    tpu.vector_store %arg15[%c512, %c0_87], %269 {strides = array<i32>} : memref<544x256xf32, #tpu.memory_space<vmem>>, vector<32x128xf32>,
    %271 = vector.extract_strided_slice %204 {offsets = [0, 280], sizes = [32, 128], strides = [1, 1]} : vector<32x512xf32> to vector<32x128xf32>
    %c512_88 = arith.constant 512 : index
    %c128_89 = arith.constant 128 : index
    %272 = vector.load %arg15[%c512_88, %c128_89] : memref<544x256xf32, #tpu.memory_space<vmem>>, vector<32x128xf32>
    tpu.vector_store %arg15[%c512_88, %c128_89], %271 {strides = array<i32>} : memref<544x256xf32, #tpu.memory_space<vmem>>, vector<32x128xf32>,
    %c0_90 = arith.constant 0 : index
    %c0_91 = arith.constant 0 : index
    %273 = vector.load %arg4[%c0_90, %c0_91] : memref<24x544xf32, #tpu.memory_space<vmem>>, vector<24x544xf32>
    %c0_92 = arith.constant 0 : index
    %c0_93 = arith.constant 0 : index
    %274 = vector.load %arg15[%c0_92, %c0_93] : memref<544x256xf32, #tpu.memory_space<vmem>>, vector<544x256xf32>
    %cst_94 = arith.constant dense<0.000000e+00> : vector<24x256xf32>
    %275 = tpu.matmul %273, %274, %cst_94 {dimension_numbers = #tpu.dot_dimension_numbers<[1], [0], [0], [1], [0, 0, 1, 1], [], []>} : vector<24x544xf32>, vector<544x256xf32>, vector<24x256xf32> -> vector<24x256xf32>
    %c0_95 = arith.constant 0 : index
    %c0_96 = arith.constant 0 : index
    %276 = vector.load %arg5[%c0_95, %c0_96] : memref<24x1xf32, #tpu.memory_space<vmem>>, vector<24x1xf32>
    %277 = vector.broadcast %276 : vector<24x1xf32> to vector<24x256xf32>
    %278 = arith.addf %275, %277 : vector<24x256xf32>
    %cst_97 = arith.constant 0.000000e+00 : f32
    %279 = vector.broadcast %cst_97 : f32 to vector<24x256xf32>
    %280 = arith.cmpf ogt, %278, %279 : vector<24x256xf32>
    %cst_98 = arith.constant 5.000000e-02 : f32
    %281 = vector.broadcast %cst_98 : f32 to vector<24x256xf32>
    %282 = arith.mulf %281, %278 : vector<24x256xf32>
    %283 = arith.select %280, %278, %282 : vector<24x256xi1>, vector<24x256xf32>
    %284 = vector.extract_strided_slice %283 {offsets = [0, 0], sizes = [24, 128], strides = [1, 1]} : vector<24x256xf32> to vector<24x128xf32>
    %c0_99 = arith.constant 0 : index
    %c16_100 = arith.constant 16 : index
    %285 = vector.load %arg13[%c0_99, %c16_100] : memref<32x512xf32, #tpu.memory_space<vmem>>, vector<24x128xf32>
    tpu.vector_store %arg13[%c0_99, %c16_100], %284 {strides = array<i32>} : memref<32x512xf32, #tpu.memory_space<vmem>>, vector<24x128xf32>,
    %286 = vector.extract_strided_slice %283 {offsets = [0, 128], sizes = [24, 128], strides = [1, 1]} : vector<24x256xf32> to vector<24x128xf32>
    %c0_101 = arith.constant 0 : index
    %c272_102 = arith.constant 272 : index
    %287 = vector.load %arg13[%c0_101, %c272_102] : memref<32x512xf32, #tpu.memory_space<vmem>>, vector<24x128xf32>
    tpu.vector_store %arg13[%c0_101, %c272_102], %286 {strides = array<i32>} : memref<32x512xf32, #tpu.memory_space<vmem>>, vector<24x128xf32>,
    %c0_103 = arith.constant 0 : index
    %c0_104 = arith.constant 0 : index
    %288 = vector.load %arg13[%c0_103, %c0_104] : memref<32x512xf32, #tpu.memory_space<vmem>>, vector<24x512xf32>
    %289 = vector.extract_strided_slice %288 {offsets = [0, 10], sizes = [24, 128], strides = [1, 1]} : vector<24x512xf32> to vector<24x128xf32>
    %c0_105 = arith.constant 0 : index
    %c0_106 = arith.constant 0 : index
    %290 = vector.load %arg15[%c0_105, %c0_106] : memref<544x256xf32, #tpu.memory_space<vmem>>, vector<24x128xf32>
    tpu.vector_store %arg15[%c0_105, %c0_106], %289 {strides = array<i32>} : memref<544x256xf32, #tpu.memory_space<vmem>>, vector<24x128xf32>,
    %291 = vector.extract_strided_slice %288 {offsets = [0, 266], sizes = [24, 128], strides = [1, 1]} : vector<24x512xf32> to vector<24x128xf32>
    %c0_107 = arith.constant 0 : index
    %c128_108 = arith.constant 128 : index
    %292 = vector.load %arg15[%c0_107, %c128_108] : memref<544x256xf32, #tpu.memory_space<vmem>>, vector<24x128xf32>
    tpu.vector_store %arg15[%c0_107, %c128_108], %291 {strides = array<i32>} : memref<544x256xf32, #tpu.memory_space<vmem>>, vector<24x128xf32>,
    %293 = vector.extract_strided_slice %288 {offsets = [0, 11], sizes = [24, 128], strides = [1, 1]} : vector<24x512xf32> to vector<24x128xf32>
    %c24 = arith.constant 24 : index
    %c0_109 = arith.constant 0 : index
    %294 = vector.load %arg15[%c24, %c0_109] : memref<544x256xf32, #tpu.memory_space<vmem>>, vector<24x128xf32>
    tpu.vector_store %arg15[%c24, %c0_109], %293 {strides = array<i32>} : memref<544x256xf32, #tpu.memory_space<vmem>>, vector<24x128xf32>,
    %295 = vector.extract_strided_slice %288 {offsets = [0, 267], sizes = [24, 128], strides = [1, 1]} : vector<24x512xf32> to vector<24x128xf32>
    %c24_110 = arith.constant 24 : index
    %c128_111 = arith.constant 128 : index
    %296 = vector.load %arg15[%c24_110, %c128_111] : memref<544x256xf32, #tpu.memory_space<vmem>>, vector<24x128xf32>
    tpu.vector_store %arg15[%c24_110, %c128_111], %295 {strides = array<i32>} : memref<544x256xf32, #tpu.memory_space<vmem>>, vector<24x128xf32>,
    %297 = vector.extract_strided_slice %288 {offsets = [0, 12], sizes = [24, 128], strides = [1, 1]} : vector<24x512xf32> to vector<24x128xf32>
    %c48 = arith.constant 48 : index
    %c0_112 = arith.constant 0 : index
    %298 = vector.load %arg15[%c48, %c0_112] : memref<544x256xf32, #tpu.memory_space<vmem>>, vector<24x128xf32>
    tpu.vector_store %arg15[%c48, %c0_112], %297 {strides = array<i32>} : memref<544x256xf32, #tpu.memory_space<vmem>>, vector<24x128xf32>,
    %299 = vector.extract_strided_slice %288 {offsets = [0, 268], sizes = [24, 128], strides = [1, 1]} : vector<24x512xf32> to vector<24x128xf32>
    %c48_113 = arith.constant 48 : index
    %c128_114 = arith.constant 128 : index
    %300 = vector.load %arg15[%c48_113, %c128_114] : memref<544x256xf32, #tpu.memory_space<vmem>>, vector<24x128xf32>
    tpu.vector_store %arg15[%c48_113, %c128_114], %299 {strides = array<i32>} : memref<544x256xf32, #tpu.memory_space<vmem>>, vector<24x128xf32>,
    %301 = vector.extract_strided_slice %288 {offsets = [0, 13], sizes = [24, 128], strides = [1, 1]} : vector<24x512xf32> to vector<24x128xf32>
    %c72 = arith.constant 72 : index
    %c0_115 = arith.constant 0 : index
    %302 = vector.load %arg15[%c72, %c0_115] : memref<544x256xf32, #tpu.memory_space<vmem>>, vector<24x128xf32>
    tpu.vector_store %arg15[%c72, %c0_115], %301 {strides = array<i32>} : memref<544x256xf32, #tpu.memory_space<vmem>>, vector<24x128xf32>,
    %303 = vector.extract_strided_slice %288 {offsets = [0, 269], sizes = [24, 128], strides = [1, 1]} : vector<24x512xf32> to vector<24x128xf32>
    %c72_116 = arith.constant 72 : index
    %c128_117 = arith.constant 128 : index
    %304 = vector.load %arg15[%c72_116, %c128_117] : memref<544x256xf32, #tpu.memory_space<vmem>>, vector<24x128xf32>
    tpu.vector_store %arg15[%c72_116, %c128_117], %303 {strides = array<i32>} : memref<544x256xf32, #tpu.memory_space<vmem>>, vector<24x128xf32>,
    %305 = vector.extract_strided_slice %288 {offsets = [0, 14], sizes = [24, 128], strides = [1, 1]} : vector<24x512xf32> to vector<24x128xf32>
    %c96_118 = arith.constant 96 : index
    %c0_119 = arith.constant 0 : index
    %306 = vector.load %arg15[%c96_118, %c0_119] : memref<544x256xf32, #tpu.memory_space<vmem>>, vector<24x128xf32>
    tpu.vector_store %arg15[%c96_118, %c0_119], %305 {strides = array<i32>} : memref<544x256xf32, #tpu.memory_space<vmem>>, vector<24x128xf32>,
    %307 = vector.extract_strided_slice %288 {offsets = [0, 270], sizes = [24, 128], strides = [1, 1]} : vector<24x512xf32> to vector<24x128xf32>
    %c96_120 = arith.constant 96 : index
    %c128_121 = arith.constant 128 : index
    %308 = vector.load %arg15[%c96_120, %c128_121] : memref<544x256xf32, #tpu.memory_space<vmem>>, vector<24x128xf32>
    tpu.vector_store %arg15[%c96_120, %c128_121], %307 {strides = array<i32>} : memref<544x256xf32, #tpu.memory_space<vmem>>, vector<24x128xf32>,
    %309 = vector.extract_strided_slice %288 {offsets = [0, 15], sizes = [24, 128], strides = [1, 1]} : vector<24x512xf32> to vector<24x128xf32>
    %c120 = arith.constant 120 : index
    %c0_122 = arith.constant 0 : index
    %310 = vector.load %arg15[%c120, %c0_122] : memref<544x256xf32, #tpu.memory_space<vmem>>, vector<24x128xf32>
    tpu.vector_store %arg15[%c120, %c0_122], %309 {strides = array<i32>} : memref<544x256xf32, #tpu.memory_space<vmem>>, vector<24x128xf32>,
    %311 = vector.extract_strided_slice %288 {offsets = [0, 271], sizes = [24, 128], strides = [1, 1]} : vector<24x512xf32> to vector<24x128xf32>
    %c120_123 = arith.constant 120 : index
    %c128_124 = arith.constant 128 : index
    %312 = vector.load %arg15[%c120_123, %c128_124] : memref<544x256xf32, #tpu.memory_space<vmem>>, vector<24x128xf32>
    tpu.vector_store %arg15[%c120_123, %c128_124], %311 {strides = array<i32>} : memref<544x256xf32, #tpu.memory_space<vmem>>, vector<24x128xf32>,
    %313 = vector.extract_strided_slice %288 {offsets = [0, 16], sizes = [24, 128], strides = [1, 1]} : vector<24x512xf32> to vector<24x128xf32>
    %c144_125 = arith.constant 144 : index
    %c0_126 = arith.constant 0 : index
    %314 = vector.load %arg15[%c144_125, %c0_126] : memref<544x256xf32, #tpu.memory_space<vmem>>, vector<24x128xf32>
    tpu.vector_store %arg15[%c144_125, %c0_126], %313 {strides = array<i32>} : memref<544x256xf32, #tpu.memory_space<vmem>>, vector<24x128xf32>,
    %315 = vector.extract_strided_slice %288 {offsets = [0, 272], sizes = [24, 128], strides = [1, 1]} : vector<24x512xf32> to vector<24x128xf32>
    %c144_127 = arith.constant 144 : index
    %c128_128 = arith.constant 128 : index
    %316 = vector.load %arg15[%c144_127, %c128_128] : memref<544x256xf32, #tpu.memory_space<vmem>>, vector<24x128xf32>
    tpu.vector_store %arg15[%c144_127, %c128_128], %315 {strides = array<i32>} : memref<544x256xf32, #tpu.memory_space<vmem>>, vector<24x128xf32>,
    %317 = vector.extract_strided_slice %288 {offsets = [0, 17], sizes = [24, 128], strides = [1, 1]} : vector<24x512xf32> to vector<24x128xf32>
    %c168 = arith.constant 168 : index
    %c0_129 = arith.constant 0 : index
    %318 = vector.load %arg15[%c168, %c0_129] : memref<544x256xf32, #tpu.memory_space<vmem>>, vector<24x128xf32>
    tpu.vector_store %arg15[%c168, %c0_129], %317 {strides = array<i32>} : memref<544x256xf32, #tpu.memory_space<vmem>>, vector<24x128xf32>,
    %319 = vector.extract_strided_slice %288 {offsets = [0, 273], sizes = [24, 128], strides = [1, 1]} : vector<24x512xf32> to vector<24x128xf32>
    %c168_130 = arith.constant 168 : index
    %c128_131 = arith.constant 128 : index
    %320 = vector.load %arg15[%c168_130, %c128_131] : memref<544x256xf32, #tpu.memory_space<vmem>>, vector<24x128xf32>
    tpu.vector_store %arg15[%c168_130, %c128_131], %319 {strides = array<i32>} : memref<544x256xf32, #tpu.memory_space<vmem>>, vector<24x128xf32>,
    %321 = vector.extract_strided_slice %288 {offsets = [0, 18], sizes = [24, 128], strides = [1, 1]} : vector<24x512xf32> to vector<24x128xf32>
    %c192_132 = arith.constant 192 : index
    %c0_133 = arith.constant 0 : index
    %322 = vector.load %arg15[%c192_132, %c0_133] : memref<544x256xf32, #tpu.memory_space<vmem>>, vector<24x128xf32>
    tpu.vector_store %arg15[%c192_132, %c0_133], %321 {strides = array<i32>} : memref<544x256xf32, #tpu.memory_space<vmem>>, vector<24x128xf32>,
    %323 = vector.extract_strided_slice %288 {offsets = [0, 274], sizes = [24, 128], strides = [1, 1]} : vector<24x512xf32> to vector<24x128xf32>
    %c192_134 = arith.constant 192 : index
    %c128_135 = arith.constant 128 : index
    %324 = vector.load %arg15[%c192_134, %c128_135] : memref<544x256xf32, #tpu.memory_space<vmem>>, vector<24x128xf32>
    tpu.vector_store %arg15[%c192_134, %c128_135], %323 {strides = array<i32>} : memref<544x256xf32, #tpu.memory_space<vmem>>, vector<24x128xf32>,
    %325 = vector.extract_strided_slice %288 {offsets = [0, 19], sizes = [24, 128], strides = [1, 1]} : vector<24x512xf32> to vector<24x128xf32>
    %c216 = arith.constant 216 : index
    %c0_136 = arith.constant 0 : index
    %326 = vector.load %arg15[%c216, %c0_136] : memref<544x256xf32, #tpu.memory_space<vmem>>, vector<24x128xf32>
    tpu.vector_store %arg15[%c216, %c0_136], %325 {strides = array<i32>} : memref<544x256xf32, #tpu.memory_space<vmem>>, vector<24x128xf32>,
    %327 = vector.extract_strided_slice %288 {offsets = [0, 275], sizes = [24, 128], strides = [1, 1]} : vector<24x512xf32> to vector<24x128xf32>
    %c216_137 = arith.constant 216 : index
    %c128_138 = arith.constant 128 : index
    %328 = vector.load %arg15[%c216_137, %c128_138] : memref<544x256xf32, #tpu.memory_space<vmem>>, vector<24x128xf32>
    tpu.vector_store %arg15[%c216_137, %c128_138], %327 {strides = array<i32>} : memref<544x256xf32, #tpu.memory_space<vmem>>, vector<24x128xf32>,
    %329 = vector.extract_strided_slice %288 {offsets = [0, 20], sizes = [24, 128], strides = [1, 1]} : vector<24x512xf32> to vector<24x128xf32>
    %c240 = arith.constant 240 : index
    %c0_139 = arith.constant 0 : index
    %330 = vector.load %arg15[%c240, %c0_139] : memref<544x256xf32, #tpu.memory_space<vmem>>, vector<24x128xf32>
    tpu.vector_store %arg15[%c240, %c0_139], %329 {strides = array<i32>} : memref<544x256xf32, #tpu.memory_space<vmem>>, vector<24x128xf32>,
    %331 = vector.extract_strided_slice %288 {offsets = [0, 276], sizes = [24, 128], strides = [1, 1]} : vector<24x512xf32> to vector<24x128xf32>
    %c240_140 = arith.constant 240 : index
    %c128_141 = arith.constant 128 : index
    %332 = vector.load %arg15[%c240_140, %c128_141] : memref<544x256xf32, #tpu.memory_space<vmem>>, vector<24x128xf32>
    tpu.vector_store %arg15[%c240_140, %c128_141], %331 {strides = array<i32>} : memref<544x256xf32, #tpu.memory_space<vmem>>, vector<24x128xf32>,
    %333 = vector.extract_strided_slice %288 {offsets = [0, 21], sizes = [24, 128], strides = [1, 1]} : vector<24x512xf32> to vector<24x128xf32>
    %c264 = arith.constant 264 : index
    %c0_142 = arith.constant 0 : index
    %334 = vector.load %arg15[%c264, %c0_142] : memref<544x256xf32, #tpu.memory_space<vmem>>, vector<24x128xf32>
    tpu.vector_store %arg15[%c264, %c0_142], %333 {strides = array<i32>} : memref<544x256xf32, #tpu.memory_space<vmem>>, vector<24x128xf32>,
    %335 = vector.extract_strided_slice %288 {offsets = [0, 277], sizes = [24, 128], strides = [1, 1]} : vector<24x512xf32> to vector<24x128xf32>
    %c264_143 = arith.constant 264 : index
    %c128_144 = arith.constant 128 : index
    %336 = vector.load %arg15[%c264_143, %c128_144] : memref<544x256xf32, #tpu.memory_space<vmem>>, vector<24x128xf32>
    tpu.vector_store %arg15[%c264_143, %c128_144], %335 {strides = array<i32>} : memref<544x256xf32, #tpu.memory_space<vmem>>, vector<24x128xf32>,
    %337 = vector.extract_strided_slice %288 {offsets = [0, 22], sizes = [24, 128], strides = [1, 1]} : vector<24x512xf32> to vector<24x128xf32>
    %c288_145 = arith.constant 288 : index
    %c0_146 = arith.constant 0 : index
    %338 = vector.load %arg15[%c288_145, %c0_146] : memref<544x256xf32, #tpu.memory_space<vmem>>, vector<24x128xf32>
    tpu.vector_store %arg15[%c288_145, %c0_146], %337 {strides = array<i32>} : memref<544x256xf32, #tpu.memory_space<vmem>>, vector<24x128xf32>,
    %339 = vector.extract_strided_slice %288 {offsets = [0, 278], sizes = [24, 128], strides = [1, 1]} : vector<24x512xf32> to vector<24x128xf32>
    %c288_147 = arith.constant 288 : index
    %c128_148 = arith.constant 128 : index
    %340 = vector.load %arg15[%c288_147, %c128_148] : memref<544x256xf32, #tpu.memory_space<vmem>>, vector<24x128xf32>
    tpu.vector_store %arg15[%c288_147, %c128_148], %339 {strides = array<i32>} : memref<544x256xf32, #tpu.memory_space<vmem>>, vector<24x128xf32>,
    %c0_149 = arith.constant 0 : index
    %c0_150 = arith.constant 0 : index
    %341 = vector.load %arg6[%c0_149, %c0_150] : memref<16x312xf32, #tpu.memory_space<vmem>>, vector<16x312xf32>
    %c0_151 = arith.constant 0 : index
    %c0_152 = arith.constant 0 : index
    %342 = vector.load %arg15[%c0_151, %c0_152] : memref<544x256xf32, #tpu.memory_space<vmem>>, vector<312x256xf32>
    %cst_153 = arith.constant dense<0.000000e+00> : vector<16x256xf32>
    %343 = tpu.matmul %341, %342, %cst_153 {dimension_numbers = #tpu.dot_dimension_numbers<[1], [0], [0], [1], [0, 0, 1, 1], [], []>} : vector<16x312xf32>, vector<312x256xf32>, vector<16x256xf32> -> vector<16x256xf32>
    %c0_154 = arith.constant 0 : index
    %c0_155 = arith.constant 0 : index
    %344 = vector.load %arg7[%c0_154, %c0_155] : memref<16x1xf32, #tpu.memory_space<vmem>>, vector<16x1xf32>
    %345 = vector.broadcast %344 : vector<16x1xf32> to vector<16x256xf32>
    %346 = arith.addf %343, %345 : vector<16x256xf32>
    %cst_156 = arith.constant 0.000000e+00 : f32
    %347 = vector.broadcast %cst_156 : f32 to vector<16x256xf32>
    %348 = arith.cmpf ogt, %346, %347 : vector<16x256xf32>
    %cst_157 = arith.constant 5.000000e-02 : f32
    %349 = vector.broadcast %cst_157 : f32 to vector<16x256xf32>
    %350 = arith.mulf %349, %346 : vector<16x256xf32>
    %351 = arith.select %348, %346, %350 : vector<16x256xi1>, vector<16x256xf32>
    %352 = vector.extract_strided_slice %351 {offsets = [0, 0], sizes = [16, 128], strides = [1, 1]} : vector<16x256xf32> to vector<16x128xf32>
    %c0_158 = arith.constant 0 : index
    %c16_159 = arith.constant 16 : index
    %353 = vector.load %arg14[%c0_158, %c16_159] : memref<32x512xf32, #tpu.memory_space<vmem>>, vector<16x128xf32>
    tpu.vector_store %arg14[%c0_158, %c16_159], %352 {strides = array<i32>} : memref<32x512xf32, #tpu.memory_space<vmem>>, vector<16x128xf32>,
    %354 = vector.extract_strided_slice %351 {offsets = [0, 128], sizes = [16, 128], strides = [1, 1]} : vector<16x256xf32> to vector<16x128xf32>
    %c0_160 = arith.constant 0 : index
    %c272_161 = arith.constant 272 : index
    %355 = vector.load %arg14[%c0_160, %c272_161] : memref<32x512xf32, #tpu.memory_space<vmem>>, vector<16x128xf32>
    tpu.vector_store %arg14[%c0_160, %c272_161], %354 {strides = array<i32>} : memref<32x512xf32, #tpu.memory_space<vmem>>, vector<16x128xf32>,
    %c0_162 = arith.constant 0 : index
    %c0_163 = arith.constant 0 : index
    %356 = vector.load %arg14[%c0_162, %c0_163] : memref<32x512xf32, #tpu.memory_space<vmem>>, vector<16x512xf32>
    %357 = vector.extract_strided_slice %356 {offsets = [0, 12], sizes = [16, 128], strides = [1, 1]} : vector<16x512xf32> to vector<16x128xf32>
    %c0_164 = arith.constant 0 : index
    %c0_165 = arith.constant 0 : index
    %358 = vector.load %arg15[%c0_164, %c0_165] : memref<544x256xf32, #tpu.memory_space<vmem>>, vector<16x128xf32>
    tpu.vector_store %arg15[%c0_164, %c0_165], %357 {strides = array<i32>} : memref<544x256xf32, #tpu.memory_space<vmem>>, vector<16x128xf32>,
    %359 = vector.extract_strided_slice %356 {offsets = [0, 268], sizes = [16, 128], strides = [1, 1]} : vector<16x512xf32> to vector<16x128xf32>
    %c0_166 = arith.constant 0 : index
    %c128_167 = arith.constant 128 : index
    %360 = vector.load %arg15[%c0_166, %c128_167] : memref<544x256xf32, #tpu.memory_space<vmem>>, vector<16x128xf32>
    tpu.vector_store %arg15[%c0_166, %c128_167], %359 {strides = array<i32>} : memref<544x256xf32, #tpu.memory_space<vmem>>, vector<16x128xf32>,
    %361 = vector.extract_strided_slice %356 {offsets = [0, 13], sizes = [16, 128], strides = [1, 1]} : vector<16x512xf32> to vector<16x128xf32>
    %c16_168 = arith.constant 16 : index
    %c0_169 = arith.constant 0 : index
    %362 = vector.load %arg15[%c16_168, %c0_169] : memref<544x256xf32, #tpu.memory_space<vmem>>, vector<16x128xf32>
    tpu.vector_store %arg15[%c16_168, %c0_169], %361 {strides = array<i32>} : memref<544x256xf32, #tpu.memory_space<vmem>>, vector<16x128xf32>,
    %363 = vector.extract_strided_slice %356 {offsets = [0, 269], sizes = [16, 128], strides = [1, 1]} : vector<16x512xf32> to vector<16x128xf32>
    %c16_170 = arith.constant 16 : index
    %c128_171 = arith.constant 128 : index
    %364 = vector.load %arg15[%c16_170, %c128_171] : memref<544x256xf32, #tpu.memory_space<vmem>>, vector<16x128xf32>
    tpu.vector_store %arg15[%c16_170, %c128_171], %363 {strides = array<i32>} : memref<544x256xf32, #tpu.memory_space<vmem>>, vector<16x128xf32>,
    %365 = vector.extract_strided_slice %356 {offsets = [0, 14], sizes = [16, 128], strides = [1, 1]} : vector<16x512xf32> to vector<16x128xf32>
    %c32_172 = arith.constant 32 : index
    %c0_173 = arith.constant 0 : index
    %366 = vector.load %arg15[%c32_172, %c0_173] : memref<544x256xf32, #tpu.memory_space<vmem>>, vector<16x128xf32>
    tpu.vector_store %arg15[%c32_172, %c0_173], %365 {strides = array<i32>} : memref<544x256xf32, #tpu.memory_space<vmem>>, vector<16x128xf32>,
    %367 = vector.extract_strided_slice %356 {offsets = [0, 270], sizes = [16, 128], strides = [1, 1]} : vector<16x512xf32> to vector<16x128xf32>
    %c32_174 = arith.constant 32 : index
    %c128_175 = arith.constant 128 : index
    %368 = vector.load %arg15[%c32_174, %c128_175] : memref<544x256xf32, #tpu.memory_space<vmem>>, vector<16x128xf32>
    tpu.vector_store %arg15[%c32_174, %c128_175], %367 {strides = array<i32>} : memref<544x256xf32, #tpu.memory_space<vmem>>, vector<16x128xf32>,
    %369 = vector.extract_strided_slice %356 {offsets = [0, 15], sizes = [16, 128], strides = [1, 1]} : vector<16x512xf32> to vector<16x128xf32>
    %c48_176 = arith.constant 48 : index
    %c0_177 = arith.constant 0 : index
    %370 = vector.load %arg15[%c48_176, %c0_177] : memref<544x256xf32, #tpu.memory_space<vmem>>, vector<16x128xf32>
    tpu.vector_store %arg15[%c48_176, %c0_177], %369 {strides = array<i32>} : memref<544x256xf32, #tpu.memory_space<vmem>>, vector<16x128xf32>,
    %371 = vector.extract_strided_slice %356 {offsets = [0, 271], sizes = [16, 128], strides = [1, 1]} : vector<16x512xf32> to vector<16x128xf32>
    %c48_178 = arith.constant 48 : index
    %c128_179 = arith.constant 128 : index
    %372 = vector.load %arg15[%c48_178, %c128_179] : memref<544x256xf32, #tpu.memory_space<vmem>>, vector<16x128xf32>
    tpu.vector_store %arg15[%c48_178, %c128_179], %371 {strides = array<i32>} : memref<544x256xf32, #tpu.memory_space<vmem>>, vector<16x128xf32>,
    %373 = vector.extract_strided_slice %356 {offsets = [0, 16], sizes = [16, 128], strides = [1, 1]} : vector<16x512xf32> to vector<16x128xf32>
    %c64_180 = arith.constant 64 : index
    %c0_181 = arith.constant 0 : index
    %374 = vector.load %arg15[%c64_180, %c0_181] : memref<544x256xf32, #tpu.memory_space<vmem>>, vector<16x128xf32>
    tpu.vector_store %arg15[%c64_180, %c0_181], %373 {strides = array<i32>} : memref<544x256xf32, #tpu.memory_space<vmem>>, vector<16x128xf32>,
    %375 = vector.extract_strided_slice %356 {offsets = [0, 272], sizes = [16, 128], strides = [1, 1]} : vector<16x512xf32> to vector<16x128xf32>
    %c64_182 = arith.constant 64 : index
    %c128_183 = arith.constant 128 : index
    %376 = vector.load %arg15[%c64_182, %c128_183] : memref<544x256xf32, #tpu.memory_space<vmem>>, vector<16x128xf32>
    tpu.vector_store %arg15[%c64_182, %c128_183], %375 {strides = array<i32>} : memref<544x256xf32, #tpu.memory_space<vmem>>, vector<16x128xf32>,
    %377 = vector.extract_strided_slice %356 {offsets = [0, 17], sizes = [16, 128], strides = [1, 1]} : vector<16x512xf32> to vector<16x128xf32>
    %c80 = arith.constant 80 : index
    %c0_184 = arith.constant 0 : index
    %378 = vector.load %arg15[%c80, %c0_184] : memref<544x256xf32, #tpu.memory_space<vmem>>, vector<16x128xf32>
    tpu.vector_store %arg15[%c80, %c0_184], %377 {strides = array<i32>} : memref<544x256xf32, #tpu.memory_space<vmem>>, vector<16x128xf32>,
    %379 = vector.extract_strided_slice %356 {offsets = [0, 273], sizes = [16, 128], strides = [1, 1]} : vector<16x512xf32> to vector<16x128xf32>
    %c80_185 = arith.constant 80 : index
    %c128_186 = arith.constant 128 : index
    %380 = vector.load %arg15[%c80_185, %c128_186] : memref<544x256xf32, #tpu.memory_space<vmem>>, vector<16x128xf32>
    tpu.vector_store %arg15[%c80_185, %c128_186], %379 {strides = array<i32>} : memref<544x256xf32, #tpu.memory_space<vmem>>, vector<16x128xf32>,
    %381 = vector.extract_strided_slice %356 {offsets = [0, 18], sizes = [16, 128], strides = [1, 1]} : vector<16x512xf32> to vector<16x128xf32>
    %c96_187 = arith.constant 96 : index
    %c0_188 = arith.constant 0 : index
    %382 = vector.load %arg15[%c96_187, %c0_188] : memref<544x256xf32, #tpu.memory_space<vmem>>, vector<16x128xf32>
    tpu.vector_store %arg15[%c96_187, %c0_188], %381 {strides = array<i32>} : memref<544x256xf32, #tpu.memory_space<vmem>>, vector<16x128xf32>,
    %383 = vector.extract_strided_slice %356 {offsets = [0, 274], sizes = [16, 128], strides = [1, 1]} : vector<16x512xf32> to vector<16x128xf32>
    %c96_189 = arith.constant 96 : index
    %c128_190 = arith.constant 128 : index
    %384 = vector.load %arg15[%c96_189, %c128_190] : memref<544x256xf32, #tpu.memory_space<vmem>>, vector<16x128xf32>
    tpu.vector_store %arg15[%c96_189, %c128_190], %383 {strides = array<i32>} : memref<544x256xf32, #tpu.memory_space<vmem>>, vector<16x128xf32>,
    %385 = vector.extract_strided_slice %356 {offsets = [0, 19], sizes = [16, 128], strides = [1, 1]} : vector<16x512xf32> to vector<16x128xf32>
    %c112 = arith.constant 112 : index
    %c0_191 = arith.constant 0 : index
    %386 = vector.load %arg15[%c112, %c0_191] : memref<544x256xf32, #tpu.memory_space<vmem>>, vector<16x128xf32>
    tpu.vector_store %arg15[%c112, %c0_191], %385 {strides = array<i32>} : memref<544x256xf32, #tpu.memory_space<vmem>>, vector<16x128xf32>,
    %387 = vector.extract_strided_slice %356 {offsets = [0, 275], sizes = [16, 128], strides = [1, 1]} : vector<16x512xf32> to vector<16x128xf32>
    %c112_192 = arith.constant 112 : index
    %c128_193 = arith.constant 128 : index
    %388 = vector.load %arg15[%c112_192, %c128_193] : memref<544x256xf32, #tpu.memory_space<vmem>>, vector<16x128xf32>
    tpu.vector_store %arg15[%c112_192, %c128_193], %387 {strides = array<i32>} : memref<544x256xf32, #tpu.memory_space<vmem>>, vector<16x128xf32>,
    %389 = vector.extract_strided_slice %356 {offsets = [0, 20], sizes = [16, 128], strides = [1, 1]} : vector<16x512xf32> to vector<16x128xf32>
    %c128_194 = arith.constant 128 : index
    %c0_195 = arith.constant 0 : index
    %390 = vector.load %arg15[%c128_194, %c0_195] : memref<544x256xf32, #tpu.memory_space<vmem>>, vector<16x128xf32>
    tpu.vector_store %arg15[%c128_194, %c0_195], %389 {strides = array<i32>} : memref<544x256xf32, #tpu.memory_space<vmem>>, vector<16x128xf32>,
    %391 = vector.extract_strided_slice %356 {offsets = [0, 276], sizes = [16, 128], strides = [1, 1]} : vector<16x512xf32> to vector<16x128xf32>
    %c128_196 = arith.constant 128 : index
    %c128_197 = arith.constant 128 : index
    %392 = vector.load %arg15[%c128_196, %c128_197] : memref<544x256xf32, #tpu.memory_space<vmem>>, vector<16x128xf32>
    tpu.vector_store %arg15[%c128_196, %c128_197], %391 {strides = array<i32>} : memref<544x256xf32, #tpu.memory_space<vmem>>, vector<16x128xf32>,
    %c0_198 = arith.constant 0 : index
    %c0_199 = arith.constant 0 : index
    %393 = vector.load %arg8[%c0_198, %c0_199] : memref<16x144xf32, #tpu.memory_space<vmem>>, vector<16x144xf32>
    %c0_200 = arith.constant 0 : index
    %c0_201 = arith.constant 0 : index
    %394 = vector.load %arg15[%c0_200, %c0_201] : memref<544x256xf32, #tpu.memory_space<vmem>>, vector<144x256xf32>
    %cst_202 = arith.constant dense<0.000000e+00> : vector<16x256xf32>
    %395 = tpu.matmul %393, %394, %cst_202 {dimension_numbers = #tpu.dot_dimension_numbers<[1], [0], [0], [1], [0, 0, 1, 1], [], []>} : vector<16x144xf32>, vector<144x256xf32>, vector<16x256xf32> -> vector<16x256xf32>
    %c0_203 = arith.constant 0 : index
    %c0_204 = arith.constant 0 : index
    %396 = vector.load %arg9[%c0_203, %c0_204] : memref<16x1xf32, #tpu.memory_space<vmem>>, vector<16x1xf32>
    %397 = vector.broadcast %396 : vector<16x1xf32> to vector<16x256xf32>
    %398 = arith.addf %395, %397 : vector<16x256xf32>
    %cst_205 = arith.constant 0.000000e+00 : f32
    %399 = vector.broadcast %cst_205 : f32 to vector<16x256xf32>
    %400 = arith.cmpf ogt, %398, %399 : vector<16x256xf32>
    %cst_206 = arith.constant 5.000000e-02 : f32
    %401 = vector.broadcast %cst_206 : f32 to vector<16x256xf32>
    %402 = arith.mulf %401, %398 : vector<16x256xf32>
    %403 = arith.select %400, %398, %402 : vector<16x256xi1>, vector<16x256xf32>
    %404 = vector.extract_strided_slice %403 {offsets = [0, 0], sizes = [16, 128], strides = [1, 1]} : vector<16x256xf32> to vector<16x128xf32>
    %c0_207 = arith.constant 0 : index
    %c16_208 = arith.constant 16 : index
    %405 = vector.load %arg13[%c0_207, %c16_208] : memref<32x512xf32, #tpu.memory_space<vmem>>, vector<16x128xf32>
    tpu.vector_store %arg13[%c0_207, %c16_208], %404 {strides = array<i32>} : memref<32x512xf32, #tpu.memory_space<vmem>>, vector<16x128xf32>,
    %406 = vector.extract_strided_slice %403 {offsets = [0, 128], sizes = [16, 128], strides = [1, 1]} : vector<16x256xf32> to vector<16x128xf32>
    %c0_209 = arith.constant 0 : index
    %c272_210 = arith.constant 272 : index
    %407 = vector.load %arg13[%c0_209, %c272_210] : memref<32x512xf32, #tpu.memory_space<vmem>>, vector<16x128xf32>
    tpu.vector_store %arg13[%c0_209, %c272_210], %406 {strides = array<i32>} : memref<32x512xf32, #tpu.memory_space<vmem>>, vector<16x128xf32>,
    %c0_211 = arith.constant 0 : index
    %c0_212 = arith.constant 0 : index
    %408 = vector.load %arg13[%c0_211, %c0_212] : memref<32x512xf32, #tpu.memory_space<vmem>>, vector<16x512xf32>
    %c0_213 = arith.constant 0 : index
    %c0_214 = arith.constant 0 : index
    %409 = vector.load %arg10[%c0_213, %c0_214] : memref<16x1xf32, #tpu.memory_space<vmem>>, vector<16x1xf32>
    %410 = vector.extract_strided_slice %408 {offsets = [0, 16], sizes = [16, 128], strides = [1, 1]} : vector<16x512xf32> to vector<16x128xf32>
    %411 = vector.broadcast %409 : vector<16x1xf32> to vector<16x128xf32>
    %412 = arith.mulf %411, %410 : vector<16x128xf32>
    %cst_215 = arith.constant dense<0.000000e+00> : vector<128xf32>
    %413 = vector.multi_reduction <add>, %412, %cst_215 [0] : vector<16x128xf32> to vector<128xf32>
    %414 = vector.shape_cast %413 : vector<128xf32> to vector<1x128xf32>
    %415 = vector.extract_strided_slice %408 {offsets = [0, 272], sizes = [16, 128], strides = [1, 1]} : vector<16x512xf32> to vector<16x128xf32>
    %416 = vector.broadcast %409 : vector<16x1xf32> to vector<16x128xf32>
    %417 = arith.mulf %416, %415 : vector<16x128xf32>
    %cst_216 = arith.constant dense<0.000000e+00> : vector<128xf32>
    %418 = vector.multi_reduction <add>, %417, %cst_216 [0] : vector<16x128xf32> to vector<128xf32>
    %419 = vector.shape_cast %418 : vector<128xf32> to vector<1x128xf32>
    %420 = tpu.concatenate %414, %419 in 1 : vector<1x128xf32>, vector<1x128xf32> -> vector<1x256xf32>
    %c0_217 = arith.constant 0 : index
    %c0_218 = arith.constant 0 : index
    %421 = vector.load %arg11[%c0_217, %c0_218] : memref<1x1xf32, #tpu.memory_space<vmem>>, vector<1x1xf32>
    %422 = vector.broadcast %421 : vector<1x1xf32> to vector<1x256xf32>
    %423 = arith.addf %420, %422 : vector<1x256xf32>
    %cst_219 = arith.constant 0.000000e+00 : f32
    %424 = vector.broadcast %cst_219 : f32 to vector<1x256xf32>
    %425 = arith.maximumf %423, %424 : vector<1x256xf32>
    %426 = vector.extract_strided_slice %425 {offsets = [0, 0], sizes = [1, 128], strides = [1, 1]} : vector<1x256xf32> to vector<1x128xf32>
    %c0_220 = arith.constant 0 : index
    %c0_221 = arith.constant 0 : index
    %c0_222 = arith.constant 0 : index
    %427 = vector.load %arg12[%c0_220, %c0_221, %c0_222] : memref<2x1x128xf32, #tpu.memory_space<vmem>>, vector<1x1x128xf32>
    %428 = vector.shape_cast %427 : vector<1x1x128xf32> to vector<1x128xf32>
    %429 = vector.shape_cast %426 : vector<1x128xf32> to vector<1x1x128xf32>
    tpu.vector_store %arg12[%c0_220, %c0_221, %c0_222], %429 {strides = array<i32>} : memref<2x1x128xf32, #tpu.memory_space<vmem>>, vector<1x1x128xf32>,
    %430 = vector.extract_strided_slice %425 {offsets = [0, 128], sizes = [1, 128], strides = [1, 1]} : vector<1x256xf32> to vector<1x128xf32>
    %c1_223 = arith.constant 1 : index
    %c0_224 = arith.constant 0 : index
    %c0_225 = arith.constant 0 : index
    %431 = vector.load %arg12[%c1_223, %c0_224, %c0_225] : memref<2x1x128xf32, #tpu.memory_space<vmem>>, vector<1x1x128xf32>
    %432 = vector.shape_cast %431 : vector<1x1x128xf32> to vector<1x128xf32>
    %433 = vector.shape_cast %430 : vector<1x128xf32> to vector<1x1x128xf32>
    tpu.vector_store %arg12[%c1_223, %c0_224, %c0_225], %433 {strides = array<i32>} : memref<2x1x128xf32, #tpu.memory_space<vmem>>, vector<1x1x128xf32>,
    return
  }
  func.func @transform_0(%arg0: i32) -> (i32, i32, i32) {
    %c0_i32 = arith.constant 0 : i32
    %c0_i32_0 = arith.constant 0 : i32
    %c0_i32_1 = arith.constant 0 : i32
    return %arg0, %c0_i32, %c0_i32_0 : i32, i32, i32
  }
  func.func @transform_1(%arg0: i32) -> (i32, i32) {
    %c0_i32 = arith.constant 0 : i32
    %c0_i32_0 = arith.constant 0 : i32
    %c0_i32_1 = arith.constant 0 : i32
    return %c0_i32, %c0_i32_0 : i32, i32
  }
  func.func @transform_2(%arg0: i32) -> (i32, i32) {
    %c0_i32 = arith.constant 0 : i32
    %c0_i32_0 = arith.constant 0 : i32
    %c0_i32_1 = arith.constant 0 : i32
    return %c0_i32, %c0_i32_0 : i32, i32
  }
  func.func @transform_3(%arg0: i32) -> (i32, i32) {
    %c0_i32 = arith.constant 0 : i32
    %c0_i32_0 = arith.constant 0 : i32
    %c0_i32_1 = arith.constant 0 : i32
    return %c0_i32, %c0_i32_0 : i32, i32
  }
  func.func @transform_4(%arg0: i32) -> (i32, i32) {
    %c0_i32 = arith.constant 0 : i32
    %c0_i32_0 = arith.constant 0 : i32
    %c0_i32_1 = arith.constant 0 : i32
    return %c0_i32, %c0_i32_0 : i32, i32
  }
  func.func @transform_5(%arg0: i32) -> (i32, i32) {
    %c0_i32 = arith.constant 0 : i32
    %c0_i32_0 = arith.constant 0 : i32
    %c0_i32_1 = arith.constant 0 : i32
    return %c0_i32, %c0_i32_0 : i32, i32
  }
  func.func @transform_6(%arg0: i32) -> (i32, i32) {
    %c0_i32 = arith.constant 0 : i32
    %c0_i32_0 = arith.constant 0 : i32
    %c0_i32_1 = arith.constant 0 : i32
    return %c0_i32, %c0_i32_0 : i32, i32
  }
  func.func @transform_7(%arg0: i32) -> (i32, i32) {
    %c0_i32 = arith.constant 0 : i32
    %c0_i32_0 = arith.constant 0 : i32
    %c0_i32_1 = arith.constant 0 : i32
    return %c0_i32, %c0_i32_0 : i32, i32
  }
  func.func @transform_8(%arg0: i32) -> (i32, i32) {
    %c0_i32 = arith.constant 0 : i32
    %c0_i32_0 = arith.constant 0 : i32
    %c0_i32_1 = arith.constant 0 : i32
    return %c0_i32, %c0_i32_0 : i32, i32
  }
  func.func @transform_9(%arg0: i32) -> (i32, i32) {
    %c0_i32 = arith.constant 0 : i32
    %c0_i32_0 = arith.constant 0 : i32
    %c0_i32_1 = arith.constant 0 : i32
    return %c0_i32, %c0_i32_0 : i32, i32
  }
  func.func @transform_10(%arg0: i32) -> (i32, i32) {
    %c0_i32 = arith.constant 0 : i32
    %c0_i32_0 = arith.constant 0 : i32
    %c0_i32_1 = arith.constant 0 : i32
    return %c0_i32, %c0_i32_0 : i32, i32
  }
  func.func @transform_11(%arg0: i32) -> (i32, i32, i32) {
    %c0_i32 = arith.constant 0 : i32
    %c0_i32_0 = arith.constant 0 : i32
    %c0_i32_1 = arith.constant 0 : i32
    return %arg0, %c0_i32, %c0_i32_0 : i32, i32, i32
  }
}

</mosaic_0001>

<bundles_post_ra>
// kernel: net_forward.1
= control target key start
LH: loop header
LB: loop body
LE: loop exit
PB: predicated region body
PF: predicated region fallthrough
CT: control target
= control target key end

     0   :  { %s9279_s0 = inlined_call_operand.vmem [shape: f32[4,1,128], index: 0, kind: input, shape index: {}]   ;;  %s9280_s1 = inlined_call_operand.vmem [shape: f32[32,21], index: 1, kind: input, shape index: {}]   ;;  %s9281_s2 = inlined_call_operand.vmem [shape: f32[32,1], index: 2, kind: input, shape index: {}]   ;;  %s9282_s3 = inlined_call_operand.vmem [shape: f32[24,544], index: 3, kind: input, shape index: {}]   ;;  %s9283_s4 = inlined_call_operand.vmem [shape: f32[24,1], index: 4, kind: input, shape index: {}]   ;;  %s9284_s5 = inlined_call_operand.vmem [shape: f32[16,312], index: 5, kind: input, shape index: {}]   ;;  %s9285_s6 = inlined_call_operand.vmem [shape: f32[16,1], index: 6, kind: input, shape index: {}]   ;;  %s9286_s7 = inlined_call_operand.hbm [shape: f32[16,144], index: 7, kind: input, shape index: {}]   ;;  %s9287_s8 = inlined_call_operand.vmem [shape: f32[16,1], index: 8, kind: input, shape index: {}]   ;;  %s9288_s9 = inlined_call_operand.vmem [shape: f32[16,1], index: 9, kind: input, shape index: {}]   ;;  %s9289_s10 = inlined_call_operand.<no memory space> [shape: f32[1,1], index: 10, kind: input, shape index: {}]   ;;  %s9290_s11 = inlined_call_operand.hbm [shape: f32[4,1,128], index: 11, kind: output, shape index: {}]  }
   0x1   :  { %9428 = sst [smem:[#allocation114_spill]] %s9279_s0  ;;  %v16_v0 = vstv %s9289_s10 }
   0x2   :  { %9429 = sst [smem:[#allocation115_spill]] %s9280_s1  ;;  %17 = vst [vmem:[#allocation5] sm:$0x1] %v16_v0 }
   0x3   :  { %9430 = sst [smem:[#allocation116_spill]] %s9281_s2 }
   0x4   :  { %9431 = sst [smem:[#allocation117_spill]] %s9286_s7 }
   0x5   :  { %18 = vsyncpa [#allocation7], 0 }
   0x6   :  { %19 = vsyncpa [#allocation8], 0 }
   0x7   :  { %21 = vsyncpa [#allocation8 + $0x1], 0  ;;  %s6592_s19 = smov 0   ;;  %s6594_s20 = smov 0  }
   0x8   :  { %s6596_s21 = smov 0   ;;  %s6598_s22 = smov 0  }
   0x9 LB: > { %9432 = sst [smem:[#allocation12_spill]] %s6466_s19  ;;  %s6613_s10 = sadd.s32 4294967295, %s6478_s22   ;;  %s6478_s22 = sphi %s6598_s22, %s9872_s22   ;;  %s6474_s21 = sphi %s6596_s21, %s9874_s21   ;;  %s6470_s20 = sphi %s6594_s20, %s9876_s20   ;;  %s6466_s19 = sphi %s6592_s19, %s9875_s19  }
   0xa   : > { %9433 = sst [smem:[#allocation13_spill]] %s6474_s21  ;;  %s4679_s23 = sadd.s32 4294967294, %s6478_s22  }
   0xb   : > { %9434 = sst [smem:[#allocation14_spill]] %s6478_s22  ;;  %s6617_s24 = sadd.s32 1, %s6478_s22  }
   0xc   : > { %9435 = sst [smem:[#allocation15_spill]] %s6617_s24  ;;  %s270_s25 = sadd.s32 1, %s6474_s21 }
   0xd   : > { %s267_s26 = ssub.s32 %s6478_s22, %s6617_s24  ;;  %p280_p0 = scmp.ne.s32.totalorder %s6474_s21, %s6470_s20 }
   0xe   : > { %p268_p1 = scmp.eq.s32.totalorder %s267_s26, 0  ;;  %p281_p2 = scmp.eq.s32.totalorder %s6613_s10, 1 }
   0xf   : > { %p286_p3 = scmp.ne.s32.totalorder %s6470_s20, %s6466_s19  ;;  %p287_p4 = scmp.eq.s32.totalorder %s4679_s23, 1 }
  0x10   : > { %s6628_s27 = scalar_select %p268_p1, %s6474_s21, %s270_s25  }
  0x11   : > { %p6630_p5 = por %p281_p2, %p280_p0  ;;  %p6634_p6 = por %p287_p4, %p286_p3 }
  0x12   : > { %9436 = sst [smem:[#allocation16_spill]] %s6628_s27  ;;  %p4680_p7 = scmp.ge.s32.totalorder %s6478_s22, 1 }
  0x13   : > { %s9437_s28 = scalar_select %p6630_p5, 1, 0 }
  0x14   : > { %s9438_s29 = scalar_select %p6634_p6, 1, 0 }
  0x15   : > { %p294_p8 = scmp.lt.s32.totalorder %s6478_s22, 3  ;;  %p9291_p9 = scmp.eq.s32.totalorder %s6613_s10, 0 }
  0x16   : > { %9439 = sst [smem:[#allocation17_spill]] %s9438_s29  ;;  %s6480_s12 = smov [#allocation6]  }
  0x17   : > { %p6641_p10 = pnand %p4680_p7, %p294_p8  ;;  %s324_s13 = sshll.u32 %s6480_s12, 4  ;;  %s325_s13 = int_to_ptr.vmem [resolvable:$true] %s324_s13 }
  0x18   : > { %s9442_s7 = sld [smem:[#allocation117_spill]] }
  0x19   : > { %s9440_s30 = scalar_select %p6641_p10, 1, 0 }
  0x1a   : > { %p4984_p11 = pneg %p6641_p10 }
  0x1c   : > { %p6649_p12 = pnand %p9291_p9, %p4984_p11 }
  0x1e   : > { %s6384_s17 = scalar_lea.hbm %s9442_s7, 512  ;;  %p6386_p0 = pneg %p6649_p12 }
  0x1f   : > { %p6385_p13 = scmp.ne.s32.totalorder %s9442_s7, %s6384_s17  ;;  %p6391_p3 = scmp.lt.u32.totalorder %s6384_s17, %s9442_s7 }
  0x21   : > { %p6387_p1 = pnand %p6386_p0, %p6385_p13 }
  0x23   : > { %p6388_p2 = pneg %p6387_p1 }
  0x25   : > { %p6393_p4 = pnand %p6391_p3, %p6388_p2 }
  0x27   : > { %6396 = shalt.err (!%p6393_p4)
}
  0x28   : > { %s6397_s12 = scalar_lea.vmem %s325_s13, 512  ;;  %p6405_p9 = scmp.lt.s32.totalorder %s325_s13, %s325_s13 }
  0x29   : > { %p6398_p7 = scmp.ne.s32.totalorder %s325_s13, %s6397_s12  ;;  %p6406_p6 = scmp.lt.s32.totalorder %s6397_s12, %s6397_s12 }
  0x2b   : > { %p6400_p8 = pnand %p6398_p7, %p6386_p0  ;;  %p6407_p5 = por %p6406_p6, %p6405_p9 }
  0x2d   : > { %p6401_p11 = pneg %p6400_p8 }
  0x2f   : > { %p6408_p10 = pnand %p6407_p5, %p6401_p11 }
  0x31   : > { %6411 = shalt.err (!%p6408_p10)
}
  0x32   : > { %s6481_s15 = smov 256   ;;  %s6482_s16 = smov 16  }
  0x33   : > { %4987 = dma.hbm_to_vmem [thread:$0]  (!%p6649_p12), %s9442_s7, 512, %s325_s13, [#allocation7], %s6481_s15, %s6481_s15, %s6482_s16  }
  0x34   : > { %p9443_p13 = scmp.ne.s32.totalorder %s9440_s30, 0 }
  0x36   : > { %357 = sbr.rel (%p9443_p13) target bundleno = 2849 (0xb21), region = 64 }
  0x3d   : > { %p9444_p1 = scmp.eq.s32.totalorder %s6613_s10, 0 }
  0x3f   : > { %6457 = dma.done.wait (%p9444_p1), [#allocation7], 512   ;;  %p9445_p0 = pmov %p9444_p1 }
  0x40   : > { %vm402_vm0 = vcmask 130048   ;;  %s4686_s17 = sshll.u32 %s6613_s10, 1  ;;  %v9300_v1 = vmov 0.0   ;;  %v9302_v2 = vmov 0   ;;  %v6485_v3 = vmov 1   ;;  %s9446_s0 = sld [smem:[#allocation114_spill]] }
  0x41   : > { %6459 = vsyncadd (%p9445_p0), [#allocation7], 4294966784  ;;  %403 = vst.msk [vmem:[#allocation2] sm:$0xff] %vm402_vm0, %v9300_v1  ;;  %p397_p5 = scmp.lt.s32.totalorder %s4686_s17, 3  ;;  %3122 = vmatprep.mubr.f32.mxu1 %v9300_v1  ;;  %5075 = vset.pattern.permute.xlu1 %v9302_v2  ;;  %vm407_vm1 = vcmask 261248   ;;  %s9447_s1 = sld [smem:[#allocation115_spill]]  ;;  %v467_v22 = vlaneseq }
  0x42   : > { %404 = vst.msk [vmem:[#allocation2 + $0x20] sm:$0xff] %vm402_vm0, %v9300_v1  ;;  %405 = vst.msk [vmem:[#allocation2 + $0x40] sm:$0xff] %vm402_vm0, %v9300_v1  ;;  %5077 = vset.pattern.permute.xlu0 %v6485_v3  ;;  %s9363_s12 = smov 16   ;;  %v6487_v9 = vmov 2   ;;  %v6488_v11 = vmov 4   ;;  %v6489_v12 = vmov 3  }
  0x43   : > { %412 = vst.msk [vmem:[#allocation2 + $0x10] sm:$0xff] %vm402_vm0, %v9300_v1  ;;  %413 = vst.msk [vmem:[#allocation2 + $0x30] sm:$0xff] %vm402_vm0, %v9300_v1  ;;  %s9878_s17 = smov (!%p397_p5, %s4686_s17), 3  ;;  %v6490_v13 = vmov 5   ;;  %v6491_v14 = vmov 6   ;;  %v6492_v15 = vmov 7  }
  0x44   : > { %414 = vst.msk [vmem:[#allocation2 + $0x50] sm:$0xff] %vm402_vm0, %v9300_v1  ;;  %420 = vst.msk [vmem:[#allocation3] sm:$0xff] %vm402_vm0, %v9300_v1  ;;  %v6493_v16 = vmov 8   ;;  %v6494_v17 = vmov 9   ;;  %v6495_v18 = vmov 10   ;;  %v6496_v19 = vmov 11  }
  0x45   : > { %421 = vst.msk [vmem:[#allocation3 + $0x20] sm:$0xff] %vm402_vm0, %v9300_v1  ;;  %422 = vst.msk [vmem:[#allocation3 + $0x40] sm:$0xff] %vm402_vm0, %v9300_v1  ;;  %v6497_v20 = vmov 12   ;;  %vm445_vm2 = vcmask 1040512   ;;  %vm447_vm3 = vcmask 122880   ;;  %v468_v24 = vshrl.u32 %v467_v22, 7 }
  0x46   : > { %423 = vst.msk [vmem:[#allocation3 + $0x60] sm:$0xff] %vm402_vm0, %v9300_v1  ;;  %428 = vst.msk [vmem:[#allocation3 + $0x10] sm:$0xff] %vm402_vm0, %v9300_v1  ;;  %s399_s14 = scalar_lea.vmem %s9446_s0, %s9878_s17  ;;  %s6498_s13 = smov 122   ;;  %v9305_v54 = vmov 13   ;;  %v9304_v57 = vmov 14   ;;  %v9306_v62 = vmov 15  }
  0x47   : > { %429 = vst.msk [vmem:[#allocation3 + $0x30] sm:$0xff] %vm402_vm0, %v9300_v1  ;;  %430 = vst.msk [vmem:[#allocation3 + $0x50] sm:$0xff] %vm402_vm0, %v9300_v1  ;;  %v4687_v4 = vld [vmem:[%s399_s14] ss:$0 sm:$0xff]  ;;  %v6726_v5 = vld [vmem:[%s9447_s1 + $0x8] sm:$0xff]  ;;  %v6782_v25 = vsub.s32 0, %v468_v24 }
  0x48   : > { %431 = vst.msk [vmem:[#allocation3 + $0x70] sm:$0xff] %vm402_vm0, %v9300_v1  ;;  %442 = vrot.lane.b32.xlu0 %v4687_v4, %s9363_s12  ;;  %503 = vperm.xlu1 %5075, %v6726_v5   ;;  %v4689_v6 = vld [vmem:[%s399_s14 + $0x1] ss:$0 sm:$0xff]  ;;  %v6733_v7 = vld [vmem:[%s9447_s1 + $0x10] sm:$0xff]  ;;  %v6749_v10 = vld [vmem:[%s9447_s1 + $0x18] sm:$0xff]  ;;  %v484_v26 = vsub.s32 2, %v468_v24 }
  0x49   : > { %408 = vst.msk [vmem:[#allocation2 + $0x8] sm:$0xff] %vm407_vm1, %v9300_v1  ;;  %409 = vst.msk [vmem:[#allocation2 + $0x28] sm:$0xff] %vm407_vm1, %v9300_v1  ;;  %v6740_v8 = vld [vmem:[%s9447_s1] sm:$0xff]  ;;  %v473_v28 = vsub.s32 1, %v468_v24  ;;  %v488_v32 = vsub.s32 3, %v468_v24  ;;  %s6499_s14 = smov 121  }
  0x4a   : > { %410 = vst.msk [vmem:[#allocation2 + $0x48] sm:$0xff] %vm407_vm1, %v9300_v1  ;;  %416 = vst.msk [vmem:[#allocation2 + $0x18] sm:$0xff] %vm407_vm1, %v9300_v1  ;;  %s9360_s25 = smov 120   ;;  %s9327_s26 = smov 119   ;;  %vm479_vm4 = vcmask 998400   ;;  %vm544_vm5 = vcmask 990208  }
  0x4b   : > { %417 = vst.msk [vmem:[#allocation2 + $0x38] sm:$0xff] %vm407_vm1, %v9300_v1  ;;  %418 = vst.msk [vmem:[#allocation2 + $0x58] sm:$0xff] %vm407_vm1, %v9300_v1  ;;  %s9319_s15 = smov 118   ;;  %s9307_s16 = smov 117   ;;  %vm597_vm6 = vcmask 982016   ;;  %vm650_vm7 = vcmask 973824  }
  0x4c   : > { %424 = vst.msk [vmem:[#allocation3 + $0x8] sm:$0xff] %vm407_vm1, %v9300_v1  ;;  %425 = vst.msk [vmem:[#allocation3 + $0x28] sm:$0xff] %vm407_vm1, %v9300_v1  ;;  %456 = vrot.lane.b32.xlu0 %v4689_v6, %s9363_s12  ;;  %508 = vperm.xlu1 %5075, %v6733_v7   ;;  %s9298_s18 = smov 116   ;;  %s9294_s23 = smov 115   ;;  %vm703_vm8 = vcmask 965632   ;;  %vm756_vm9 = vcmask 957440  }
  0x4d   : > { %426 = vst.msk [vmem:[#allocation3 + $0x48] sm:$0xff] %vm407_vm1, %v9300_v1  ;;  %427 = vst.msk [vmem:[#allocation3 + $0x68] sm:$0xff] %vm407_vm1, %v9300_v1  ;;  %s9296_s17 = smov 114   ;;  %s9338_s30 = smov 113   ;;  %vm809_vm10 = vcmask 949248   ;;  %vm862_vm11 = vcmask 941056  }
  0x4e   : > { %432 = vst.msk [vmem:[#allocation3 + $0x18] sm:$0xff] %vm407_vm1, %v9300_v1  ;;  %433 = vst.msk [vmem:[#allocation3 + $0x38] sm:$0xff] %vm407_vm1, %v9300_v1  ;;  %s9500_s2 = sld [smem:[#allocation116_spill]]  ;;  %s9514_s12 = smov 103   ;;  %vm915_vm12 = vcmask 932864   ;;  %vm9405_vm13 = vcmask 924672  }
  0x4f   : > { %434 = vst.msk [vmem:[#allocation3 + $0x58] sm:$0xff] %vm407_vm1, %v9300_v1  ;;  %435 = vst.msk [vmem:[#allocation3 + $0x78] sm:$0xff] %vm407_vm1, %v9300_v1  ;;  %vm9402_vm14 = vcmask 916480   ;;  %vm9401_vm15 = vcmask 908288   ;;  %vm9400_vm1 = vcmask 900096   ;;  %s9746_s0 = smov 108  }
  0x50   : > { %5076 = vset.pattern.permute.xlu1 %v6485_v3  ;;  %558 = vperm.xlu0 %5077, %v6726_v5   ;;  %v9312_v3 = vmov 16   ;;  %s9748_s1 = smov 106   ;;  %s9760_s21 = smov 104  }
  0x51   : > { %554 = vperm.xlu1 %5076, %v6740_v8   ;;  %s9813_s19 = smov 109   ;;  %s393_s7 = sand.u32 1, %s6470_s20  }
  0x52   : > { %p9867_p9 = scmp.ne.s32.totalorder %s9437_s28, 0 }
  0x54   : > { %5078 = vset.pattern.permute.xlu0 %v6487_v9 }
  0x55   : > { %562 = vperm.xlu1 %5076, %v6733_v7   ;;  %607 = vperm.xlu0 %5078, %v6740_v8  }
  0x59   : > { %566 = vperm.xlu1 %5076, %v6749_v10   ;;  %619 = vperm.xlu0 %5078, %v6749_v10  }
  0x5d   : > { %5079 = vset.pattern.permute.xlu1 %v6487_v9  ;;  %5087 = vset.pattern.permute.xlu0 %v6488_v11 }
  0x5e   : > { %611 = vperm.xlu1 %5079, %v6726_v5   ;;  %725 = vperm.xlu0 %5087, %v6749_v10  }
  0x62   : > { %615 = vperm.xlu1 %5079, %v6733_v7   ;;  %5088 = vset.pattern.permute.xlu0 %v6489_v12 }
  0x63   : > { %664 = vperm.xlu0 %5088, %v6726_v5  }
  0x66   : > { %5080 = vset.pattern.permute.xlu1 %v6489_v12 }
  0x67   : > { %660 = vperm.xlu1 %5080, %v6740_v8   ;;  %668 = vperm.xlu0 %5088, %v6733_v7  }
  0x6b   : > { %5081 = vset.pattern.permute.xlu1 %v6488_v11  ;;  %5093 = vset.pattern.permute.xlu0 %v6490_v13 }
  0x6c   : > { %713 = vperm.xlu1 %5081, %v6740_v8   ;;  %766 = vperm.xlu0 %5093, %v6740_v8  }
  0x70   : > { %717 = vperm.xlu1 %5081, %v6726_v5  }
  0x74   : > { %5082 = vset.pattern.permute.xlu1 %v6490_v13 }
  0x75   : > { %770 = vperm.xlu1 %5082, %v6726_v5  }
  0x79   : > { %5083 = vset.pattern.permute.xlu1 %v6491_v14 }
  0x7a   : > { %819 = vperm.xlu1 %5083, %v6740_v8  }
  0x7e   : > { %5084 = vset.pattern.permute.xlu1 %v6492_v15 }
  0x7f   : > { %872 = vperm.xlu1 %5084, %v6740_v8  }
  0x83   : > { %876 = vperm.xlu1 %5084, %v6726_v5  }
  0x87   : > { %5085 = vset.pattern.permute.xlu1 %v6493_v16 }
  0x88   : > { %929 = vperm.xlu1 %5085, %v6726_v5  }
  0x8c   : > { %5086 = vset.pattern.permute.xlu1 %v6488_v11 }
  0x8d   : > { %721 = vperm.xlu1 %5086, %v6733_v7  }
  0x91   : > { %5089 = vset.pattern.permute.xlu1 %v6494_v17 }
  0x92   : > { %978 = vperm.xlu1 %5089, %v6740_v8  }
  0x96   : > { %982 = vperm.xlu1 %5089, %v6726_v5  }
  0x9a   : > { %5090 = vset.pattern.permute.xlu1 %v6495_v18 }
  0x9b   : > { %1035 = vperm.xlu1 %5090, %v6726_v5  }
  0x9f   : > { %5091 = vset.pattern.permute.xlu1 %v6496_v19 }
  0xa0   : > { %1084 = vperm.xlu1 %5091, %v6740_v8  }
  0xa4   : > { %5092 = vset.pattern.permute.xlu1 %v6497_v20 }
  0xa5   : > { %1137 = vperm.xlu1 %5092, %v6740_v8  }
  0xa9   : > { %1141 = vperm.xlu1 %5092, %v6726_v5  }
  0xad   : > { %5094 = vset.pattern.permute.xlu1 %v6489_v12 }
  0xae   : > { %672 = vperm.xlu1 %5094, %v6749_v10  }
  0xb2   : > { %5095 = vset.pattern.permute.xlu1 %v6490_v13 }
  0xba   : > { %v443_v21 = vpop.permute.xlu0 %442 }
  0xbb   : > { %446 = vst.msk [vmem:[#allocation2] sm:$0x1] %vm445_vm2, %v443_v21 }
  0xbc   : > { %448 = vst.msk [vmem:[#allocation2 + $0x8] sm:$0x1] %vm447_vm3, %v443_v21 }
  0xbe   : > { %v457_v23 = vpop.permute.xlu0 %456 }
  0xbf   : > { %459 = vst.msk [vmem:[#allocation2 + $0x10] sm:$0x1] %vm445_vm2, %v457_v23  ;;  %vm1180_vm2 = vcmask 891904  }
  0xc0   : > { %460 = vst.msk [vmem:[#allocation2 + $0x18] sm:$0x1] %vm447_vm3, %v457_v23  ;;  %vm1233_vm3 = vcmask 883712  }
  0xc7   : > { %v461_v27 = vld [vmem:[#allocation2] ss:$8 sm:$0xf]  ;;  %v6789_v31 = vpop.permute.xlu1 %503 }
  0xc8   : > { %v6785_v29 = vrot.slane %v461_v27, %v6782_v25  ;;  %v6787_v30 = vrot.slane %v461_v27, %v484_v26  ;;  %v6793_v33 = vrot.slane %v461_v27, %v473_v28  ;;  %v6799_v35 = vrot.slane %v461_v27, %v488_v32 }
  0xca   : > { %490 = vrot.lane.b32.xlu0 %v6787_v30, %s6498_s13  ;;  %475 = vrot.lane.b32.xlu1 %v6785_v29, %s6498_s13 }
  0xcb   : > { %v6795_v34 = vpop.permute.xlu1 %508 }
  0xce   : > { %542 = vrot.lane.b32.xlu0 %v6793_v33, %s6499_s14  ;;  %477 = vrot.lane.b32.xlu1 %v6793_v33, %s6498_s13 }
  0xcf   : > { %v6890_v51 = vpop.permute.xlu0 %558 }
  0xd0   : > { %v6801_v36 = vpop.permute.xlu1 %554 }
  0xd2   : > { %549 = vrot.lane.b32.xlu0 %v6799_v35, %s6499_s14  ;;  %492 = vrot.lane.b32.xlu1 %v6799_v35, %s6498_s13  ;;  %s9358_s13 = smov 112  }
  0xd4   : > { %v6805_v37 = vpop.permute.xlu1 %562  ;;  %v6901_v53 = vpop.permute.xlu0 %607 }
  0xd6   : > { %593 = vrot.lane.b32.xlu0 %v6785_v29, %s9360_s25  ;;  %540 = vrot.lane.b32.xlu1 %v6785_v29, %s6499_s14 }
  0xd8   : > { %v6813_v38 = vpop.permute.xlu1 %566  ;;  %v6909_v56 = vpop.permute.xlu0 %619 }
  0xda   : > { %600 = vrot.lane.b32.xlu0 %v6787_v30, %s9360_s25  ;;  %547 = vrot.lane.b32.xlu1 %v6787_v30, %s6499_s14  ;;  %s9344_s14 = smov 110  }
  0xdd   : > { %v6819_v39 = vpop.permute.xlu1 %611  ;;  %v6918_v59 = vpop.permute.xlu0 %725 }
  0xde   : > { %648 = vrot.lane.b32.xlu0 %v6793_v33, %s9327_s26  ;;  %595 = vrot.lane.b32.xlu1 %v6793_v33, %s9360_s25 }
  0xe1   : > { %v6825_v40 = vpop.permute.xlu1 %615 }
  0xe2   : > { %655 = vrot.lane.b32.xlu0 %v6799_v35, %s9327_s26  ;;  %602 = vrot.lane.b32.xlu1 %v6799_v35, %s9360_s25  ;;  %v6926_v61 = vpop.permute.xlu0 %664  ;;  %s9737_s25 = smov 118  }
  0xe6   : > { %708 = vrot.lane.b32.xlu0 %v6799_v35, %s9319_s15  ;;  %646 = vrot.lane.b32.xlu1 %v6785_v29, %s9327_s26  ;;  %v6831_v41 = vpop.permute.xlu1 %660  ;;  %v6933_v0 = vpop.permute.xlu0 %668 }
  0xea   : > { %699 = vrot.lane.b32.xlu0 %v6785_v29, %s9319_s15  ;;  %653 = vrot.lane.b32.xlu1 %v6787_v30, %s9327_s26  ;;  %s9412_s26 = smov 105  }
  0xeb   : > { %v6837_v42 = vpop.permute.xlu1 %713  ;;  %v6944_v6 = vpop.permute.xlu0 %766 }
  0xee   : > { %778 = vperm.xlu0 %5093, %v6749_v10   ;;  %706 = vrot.lane.b32.xlu1 %v6787_v30, %s9319_s15 }
  0xef   : > { %v6842_v43 = vpop.permute.xlu1 %717 }
  0xf2   : > { %5096 = vset.pattern.permute.xlu0 %v6491_v14  ;;  %701 = vrot.lane.b32.xlu1 %v6793_v33, %s9319_s15  ;;  %s9416_s15 = smov 107  }
  0xf3   : > { %823 = vperm.xlu0 %5096, %v6726_v5  }
  0xf4   : > { %v6848_v44 = vpop.permute.xlu1 %770 }
  0xf6   : > { %759 = vrot.lane.b32.xlu1 %v6787_v30, %s9307_s16 }
  0xf7   : > { %761 = vrot.lane.b32.xlu0 %v6799_v35, %s9307_s16 }
  0xf9   : > { %v6855_v45 = vpop.permute.xlu1 %819 }
  0xfa   : > { %774 = vperm.xlu1 %5095, %v6733_v7   ;;  %9448 = vst [vmem:[#allocation18_spill] sm:$0xff] %v6855_v45 }
  0xfb   : > { %827 = vperm.xlu0 %5096, %v6733_v7  }
  0xfe   : > { %812 = vrot.lane.b32.xlu1 %v6787_v30, %s9298_s18  ;;  %v6862_v46 = vpop.permute.xlu1 %872 }
  0xff   : > { %5099 = vset.pattern.permute.xlu0 %v6492_v15  ;;  %5097 = vset.pattern.permute.xlu1 %v6491_v14  ;;  %9449 = vst [vmem:[#allocation19_spill] sm:$0xff] %v6862_v46  ;;  %v9467_v46 = vmov 13  }
 0x100   : > { %884 = vperm.xlu0 %5099, %v6749_v10  }
 0x102   : > { %814 = vrot.lane.b32.xlu1 %v6799_v35, %s9298_s18  ;;  %v6867_v47 = vpop.permute.xlu1 %876 }
 0x103   : > { %9450 = vst [vmem:[#allocation20_spill] sm:$0xff] %v6867_v47 }
 0x104   : > { %867 = vrot.lane.b32.xlu0 %v6799_v35, %s9294_s23 }
 0x105   : > { %5100 = vset.pattern.permute.xlu0 %v6493_v16 }
 0x106   : > { %831 = vperm.xlu1 %5097, %v6749_v10  }
 0x107   : > { %v6874_v48 = vpop.permute.xlu1 %929 }
 0x108   : > { %925 = vperm.xlu0 %5100, %v6740_v8   ;;  %9451 = vst [vmem:[#allocation21_spill] sm:$0xff] %v6874_v48 }
 0x10a   : > { %865 = vrot.lane.b32.xlu1 %v6787_v30, %s9294_s23 }
 0x10b   : > { %5098 = vset.pattern.permute.xlu1 %v6492_v15 }
 0x10c   : > { %933 = vperm.xlu0 %5100, %v6733_v7   ;;  %v6880_v49 = vpop.permute.xlu1 %721 }
 0x10e   : > { %880 = vperm.xlu1 %5098, %v6733_v7  }
 0x110   : > { %805 = vrot.lane.b32.xlu0 %v6785_v29, %s9298_s18 }
 0x111   : > { %5106 = vset.pattern.permute.xlu0 %v6494_v17  ;;  %v6888_v50 = vpop.permute.xlu1 %978 }
 0x112   : > { %918 = vrot.lane.b32.xlu1 %v6787_v30, %s9296_s17  ;;  %9452 = vst [vmem:[#allocation22_spill] sm:$0xff] %v6888_v50  ;;  %v9329_v50 = vmov 20  }
 0x113   : > { %5101 = vset.pattern.permute.xlu1 %v6493_v16 }
 0x114   : > { %858 = vrot.lane.b32.xlu0 %v6785_v29, %s9294_s23 }
 0x115   : > { %v6899_v52 = vpop.permute.xlu1 %982 }
 0x116   : > { %920 = vrot.lane.b32.xlu1 %v6799_v35, %s9296_s17  ;;  %9453 = vst [vmem:[#allocation23_spill] sm:$0xff] %v6899_v52  ;;  %v9462_v52 = vmov 17  }
 0x118   : > { %911 = vrot.lane.b32.xlu0 %v6785_v29, %s9296_s17 }
 0x11a   : > { %937 = vperm.xlu1 %5101, %v6749_v10   ;;  %v6907_v55 = vpop.permute.xlu1 %1035 }
 0x11b   : > { %9454 = vst [vmem:[#allocation24_spill] sm:$0xff] %v6907_v55 }
 0x11c   : > { %971 = vrot.lane.b32.xlu0 %v6787_v30, %s9338_s30 }
 0x11e   : > { %5102 = vset.pattern.permute.xlu1 %v9305_v54 }
 0x11f   : > { %1190 = vperm.xlu1 %5102, %v6740_v8   ;;  %v6916_v58 = vpop.permute.xlu1 %1084 }
 0x120   : > { %986 = vperm.xlu0 %5106, %v6733_v7   ;;  %9455 = vst [vmem:[#allocation25_spill] sm:$0xff] %v6916_v58  ;;  %v9323_v58 = vmov 19  }
 0x123   : > { %5103 = vset.pattern.permute.xlu1 %v9304_v57 }
 0x124   : > { %5107 = vset.pattern.permute.xlu0 %v6495_v18  ;;  %1243 = vperm.xlu1 %5103, %v6740_v8   ;;  %v6924_v60 = vpop.permute.xlu1 %1137 }
 0x125   : > { %1031 = vperm.xlu0 %5107, %v6740_v8   ;;  %9456 = vst [vmem:[#allocation26_spill] sm:$0xff] %v6924_v60 }
 0x128   : > { %1247 = vperm.xlu1 %5103, %v6726_v5   ;;  %v6931_v63 = vpop.permute.xlu1 %1141 }
 0x129   : > { %1026 = vrot.lane.b32.xlu0 %v6799_v35, %s9358_s13  ;;  %9457 = vst [vmem:[#allocation27_spill] sm:$0xff] %v6931_v63 }
 0x12c   : > { %5104 = vset.pattern.permute.xlu1 %v9306_v62 }
 0x12d   : > { %1043 = vperm.xlu0 %5107, %v6749_v10   ;;  %1300 = vperm.xlu1 %5104, %v6726_v5   ;;  %v6942_v4 = vpop.permute.xlu1 %672 }
 0x131   : > { %5110 = vset.pattern.permute.xlu0 %v6496_v19  ;;  %5105 = vset.pattern.permute.xlu1 %v9312_v3 }
 0x132   : > { %1088 = vperm.xlu0 %5110, %v6726_v5   ;;  %1349 = vperm.xlu1 %5105, %v6740_v8  }
 0x136   : > { %1092 = vperm.xlu0 %5110, %v6733_v7   ;;  %752 = vrot.lane.b32.xlu1 %v6785_v29, %s9307_s16 }
 0x137   : > { %5108 = vset.pattern.permute.xlu1 %v6494_v17 }
 0x13a   : > { %1132 = vrot.lane.b32.xlu0 %v6799_v35, %s9344_s14  ;;  %754 = vrot.lane.b32.xlu1 %v6793_v33, %s9307_s16  ;;  %s9414_s16 = smov 106  }
 0x13b   : > { %5113 = vset.pattern.permute.xlu0 %v6497_v20 }
 0x13c   : > { %v6952_v9 = vpop.permute.xlu0 %490  ;;  %v6954_v11 = vpop.permute.xlu1 %475 }
 0x13e   : > { %1149 = vperm.xlu0 %5113, %v6749_v10   ;;  %807 = vrot.lane.b32.xlu1 %v6793_v33, %s9298_s18  ;;  %s9418_s18 = smov 108  }
 0x140   : > { %v6959_v12 = vpop.permute.xlu0 %542  ;;  %v6961_v13 = vpop.permute.xlu1 %477 }
 0x142   : > { %5114 = vset.pattern.permute.xlu0 %v9305_v54  ;;  %860 = vrot.lane.b32.xlu1 %v6793_v33, %s9294_s23  ;;  %s9354_s23 = smov 111  }
 0x143   : > { %1194 = vperm.xlu0 %5114, %v6726_v5  }
 0x144   : > { %v6967_v14 = vpop.permute.xlu1 %492  ;;  %v6969_v15 = vpop.permute.xlu0 %549 }
 0x146   : > { %913 = vrot.lane.b32.xlu1 %v6793_v33, %s9296_s17  ;;  %s9420_s17 = smov 109  }
 0x147   : > { %964 = vrot.lane.b32.xlu0 %v6785_v29, %s9338_s30 }
 0x148   : > { %v6975_v16 = vpop.permute.xlu1 %540  ;;  %v6979_v17 = vpop.permute.xlu0 %593 }
 0x14a   : > { %973 = vrot.lane.b32.xlu1 %v6799_v35, %s9338_s30 }
 0x14b   : > { %1017 = vrot.lane.b32.xlu0 %v6785_v29, %s9358_s13 }
 0x14c   : > { %v6983_v21 = vpop.permute.xlu1 %547  ;;  %v6988_v22 = vpop.permute.xlu0 %600 }
 0x14e   : > { %990 = vperm.xlu1 %5108, %v6749_v10  }
 0x14f   : > { %1070 = vrot.lane.b32.xlu0 %v6785_v29, %s9354_s23 }
 0x150   : > { %v6990_v23 = vpop.permute.xlu1 %595  ;;  %v6998_v24 = vpop.permute.xlu0 %648 }
 0x152   : > { %1024 = vrot.lane.b32.xlu1 %v6787_v30, %s9358_s13 }
 0x153   : > { %1123 = vrot.lane.b32.xlu0 %v6785_v29, %s9344_s14  ;;  %5109 = vset.pattern.permute.xlu1 %v6495_v18 }
 0x154   : > { %v7000_v26 = vpop.permute.xlu1 %602  ;;  %v7008_v27 = vpop.permute.xlu0 %655 }
 0x156   : > { %1039 = vperm.xlu1 %5109, %v6733_v7  }
 0x157   : > { %1183 = vrot.lane.b32.xlu0 %v6787_v30, %s9420_s17 }
 0x158   : > { %v7010_v18 = vpop.permute.xlu1 %646  ;;  %v7018_v28 = vpop.permute.xlu0 %708 }
 0x15a   : > { %1077 = vrot.lane.b32.xlu1 %v6787_v30, %s9354_s23 }
 0x15b   : > { %1198 = vperm.xlu0 %5114, %v6733_v7   ;;  %5111 = vset.pattern.permute.xlu1 %v6496_v19 }
 0x15c   : > { %v7020_v32 = vpop.permute.xlu1 %653  ;;  %v7028_v19 = vpop.permute.xlu0 %699 }
 0x15e   : > { %1079 = vrot.lane.b32.xlu1 %v6799_v35, %s9354_s23 }
 0x15f   : > { %1238 = vrot.lane.b32.xlu0 %v6799_v35, %s9418_s18 }
 0x160   : > { %5121 = vset.pattern.permute.xlu0 %v9304_v57  ;;  %v7030_v1 = vpop.permute.xlu1 %706  ;;  %v9310_v57 = vmov 17  }
 0x162   : > { %1096 = vperm.xlu1 %5111, %v6749_v10  }
 0x163   : > { %1255 = vperm.xlu0 %5121, %v6749_v10  }
 0x164   : > { %v7037_v54 = vpop.permute.xlu1 %701 }
 0x166   : > { %1130 = vrot.lane.b32.xlu1 %v6787_v30, %s9344_s14 }
 0x167   : > { %5122 = vset.pattern.permute.xlu0 %v9306_v62  ;;  %5112 = vset.pattern.permute.xlu1 %v6497_v20 }
 0x168   : > { %1296 = vperm.xlu0 %5122, %v6740_v8   ;;  %v7045_v62 = vpop.permute.xlu1 %759 }
 0x16a   : > { %1145 = vperm.xlu1 %5112, %v6733_v7  }
 0x16c   : > { %1304 = vperm.xlu0 %5122, %v6733_v7  }
 0x16d   : > { %v7034_v2 = vpop.permute.xlu0 %778 }
 0x16e   : > { %9458 = vst [vmem:[#allocation28_spill] sm:$0xff] %v7034_v2  ;;  %5115 = vset.pattern.permute.xlu1 %v9310_v57  ;;  %v9317_v57 = vmov 18  }
 0x16f   : > { %1402 = vperm.xlu1 %5115, %v6740_v8  }
 0x170   : > { %5123 = vset.pattern.permute.xlu0 %v9312_v3 }
 0x171   : > { %1353 = vperm.xlu0 %5123, %v6726_v5  }
 0x172   : > { %v7042_v20 = vpop.permute.xlu0 %823 }
 0x173   : > { %9459 = vst [vmem:[#allocation29_spill] sm:$0xff] %v7042_v20  ;;  %1406 = vperm.xlu1 %5115, %v6726_v5   ;;  %v9470_v20 = vmov 18  }
 0x175   : > { %1344 = vrot.lane.b32.xlu0 %v6799_v35, %s9414_s16 }
 0x176   : > { %v7049_v60 = vpop.permute.xlu0 %761 }
 0x177   : > { %5116 = vset.pattern.permute.xlu1 %v9317_v57 }
 0x178   : > { %1459 = vperm.xlu1 %5116, %v6726_v5  }
 0x179   : > { %1361 = vperm.xlu0 %5123, %v6749_v10   ;;  %v7054_v3 = vpop.permute.xlu1 %774 }
 0x17a   : > { %9460 = vst [vmem:[#allocation30_spill] sm:$0xff] %v7054_v3  ;;  %v7056_v63 = vpop.permute.xlu0 %827 }
 0x17b   : > { %9461 = vst [vmem:[#allocation31_spill] sm:$0xff] %v7056_v63 }
 0x17c   : > { %5117 = vset.pattern.permute.xlu1 %v9323_v58 }
 0x17d   : > { %1229 = vrot.lane.b32.xlu0 %v6785_v29, %s9418_s18  ;;  %1508 = vperm.xlu1 %5117, %v6740_v8   ;;  %v7062_v55 = vpop.permute.xlu1 %812 }
 0x17e   : > { %5126 = vset.pattern.permute.xlu0 %v9462_v52 }
 0x17f   : > { %v7065_v57 = vpop.permute.xlu0 %884 }
 0x180   : > { %9463 = vst [vmem:[#allocation32_spill] sm:$0xff] %v7065_v57 }
 0x181   : > { %1282 = vrot.lane.b32.xlu0 %v6785_v29, %s9416_s15  ;;  %5118 = vset.pattern.permute.xlu1 %v9329_v50  ;;  %v7070_v48 = vpop.permute.xlu1 %814 }
 0x182   : > { %1561 = vperm.xlu1 %5118, %v6740_v8  }
 0x183   : > { %v7073_v58 = vpop.permute.xlu0 %867 }
 0x185   : > { %1335 = vrot.lane.b32.xlu0 %v6785_v29, %s9414_s16  ;;  %v7077_v47 = vpop.permute.xlu1 %831 }
 0x186   : > { %9464 = vst [vmem:[#allocation33_spill] sm:$0xff] %v7077_v47  ;;  %1565 = vperm.xlu1 %5118, %v6726_v5  }
 0x187   : > { %v7080_v57 = vpop.permute.xlu0 %925 }
 0x188   : > { %9465 = vst [vmem:[#allocation34_spill] sm:$0xff] %v7080_v57 }
 0x189   : > { %1395 = vrot.lane.b32.xlu0 %v6787_v30, %s9412_s26  ;;  %v7084_v50 = vpop.permute.xlu1 %865 }
 0x18a   : > { %966 = vrot.lane.b32.xlu1 %v6793_v33, %s9338_s30  ;;  %s9375_s30 = smov 104  }
 0x18b   : > { %v7088_v63 = vpop.permute.xlu0 %933  ;;  %5119 = vset.pattern.permute.xlu1 %v9467_v46 }
 0x18c   : > { %9466 = vst [vmem:[#allocation35_spill] sm:$0xff] %v7088_v63 }
 0x18d   : > { %1410 = vperm.xlu0 %5126, %v6733_v7   ;;  %v7092_v47 = vpop.permute.xlu1 %880 }
 0x18e   : > { %9468 = vst [vmem:[#allocation36_spill] sm:$0xff] %v7092_v47  ;;  %1019 = vrot.lane.b32.xlu1 %v6793_v33, %s9358_s13  ;;  %s9739_s13 = smov 116  }
 0x18f   : > { %v7096_v57 = vpop.permute.xlu0 %805 }
 0x190   : > { %9469 = vst [vmem:[#allocation37_spill] sm:$0xff] %v7096_v57 }
 0x191   : > { %5127 = vset.pattern.permute.xlu0 %v9470_v20  ;;  %v7099_v2 = vpop.permute.xlu1 %918 }
 0x192   : > { %9471 = vst [vmem:[#allocation38_spill] sm:$0xff] %v7099_v2  ;;  %1455 = vperm.xlu0 %5127, %v6740_v8   ;;  %1072 = vrot.lane.b32.xlu1 %v6793_v33, %s9354_s23  ;;  %s9365_s23 = smov 103  }
 0x193   : > { %v7104_v63 = vpop.permute.xlu0 %858 }
 0x194   : > { %9472 = vst [vmem:[#allocation39_spill] sm:$0xff] %v7104_v63  ;;  %v9477_v63 = vmov 19  }
 0x195   : > { %v7106_v46 = vpop.permute.xlu1 %920 }
 0x196   : > { %9473 = vst [vmem:[#allocation40_spill] sm:$0xff] %v7106_v46  ;;  %1450 = vrot.lane.b32.xlu0 %v6799_v35, %s9375_s30  ;;  %1125 = vrot.lane.b32.xlu1 %v6793_v33, %s9344_s14  ;;  %s6525_s14 = smov 102   ;;  %v9489_v46 = vmov 0  }
 0x197   : > { %v7112_v47 = vpop.permute.xlu0 %911 }
 0x198   : > { %9474 = vst [vmem:[#allocation41_spill] sm:$0xff] %v7112_v47  ;;  %v9481_v47 = vmov 14  }
 0x199   : > { %v7114_v57 = vpop.permute.xlu1 %937 }
 0x19a   : > { %9475 = vst [vmem:[#allocation42_spill] sm:$0xff] %v7114_v57  ;;  %1467 = vperm.xlu0 %5127, %v6749_v10   ;;  %1185 = vrot.lane.b32.xlu1 %v6799_v35, %s9420_s17 }
 0x19b   : > { %v7119_v45 = vpop.permute.xlu0 %971 }
 0x19c   : > { %9476 = vst [vmem:[#allocation43_spill] sm:$0xff] %v7119_v45 }
 0x19e   : > { %5130 = vset.pattern.permute.xlu0 %v9477_v63  ;;  %1202 = vperm.xlu1 %5119, %v6749_v10   ;;  %v7123_v3 = vpop.permute.xlu1 %1190 }
 0x19f   : > { %9478 = vst [vmem:[#allocation44_spill] sm:$0xff] %v7123_v3  ;;  %1512 = vperm.xlu0 %5130, %v6726_v5   ;;  %v7126_v2 = vpop.permute.xlu0 %986 }
 0x1a0   : > { %9479 = vst [vmem:[#allocation45_spill] sm:$0xff] %v7126_v2  ;;  %v9485_v2 = vmov 20  }
 0x1a2   : > { %1236 = vrot.lane.b32.xlu1 %v6787_v30, %s9418_s18 }
 0x1a3   : > { %1516 = vperm.xlu0 %5130, %v6733_v7   ;;  %v7131_v57 = vpop.permute.xlu1 %1243  ;;  %5120 = vset.pattern.permute.xlu1 %v9481_v47  ;;  %v9486_v47 = vmov 15  }
 0x1a4   : > { %9480 = vst [vmem:[#allocation46_spill] sm:$0xff] %v7131_v57  ;;  %v7134_v45 = vpop.permute.xlu0 %1031 }
 0x1a5   : > { %9482 = vst [vmem:[#allocation47_spill] sm:$0xff] %v7134_v45 }
 0x1a6   : > { %1251 = vperm.xlu1 %5120, %v6733_v7  }
 0x1a7   : > { %1556 = vrot.lane.b32.xlu0 %v6799_v35, %s6525_s14  ;;  %v7139_v5 = vpop.permute.xlu1 %1247 }
 0x1a8   : > { %9483 = vst [vmem:[#allocation48_spill] sm:$0xff] %v7139_v5  ;;  %v7141_v3 = vpop.permute.xlu0 %1026  ;;  %5133 = vset.pattern.permute.xlu0 %v9485_v2 }
 0x1a9   : > { %9484 = vst [vmem:[#allocation49_spill] sm:$0xff] %v7141_v3 }
 0x1aa   : > { %1289 = vrot.lane.b32.xlu1 %v6787_v30, %s9416_s15 }
 0x1ab   : > { %1573 = vperm.xlu0 %5133, %v6749_v10   ;;  %5124 = vset.pattern.permute.xlu1 %v9486_v47 }
 0x1ac   : > { %v7148_v57 = vpop.permute.xlu1 %1300  ;;  %v7150_v45 = vpop.permute.xlu0 %1043 }
 0x1ad   : > { %9487 = vst [vmem:[#allocation50_spill] sm:$0xff] %v7148_v57  ;;  %9488 = vst [vmem:[#allocation51_spill] sm:$0xff] %v7150_v45  ;;  %v9494_v45 = vmov 16  }
 0x1ae   : > { %1291 = vrot.lane.b32.xlu1 %v6799_v35, %s9416_s15 }
 0x1af   : > { %5134 = vset.pattern.permute.xlu0 %v9489_v46 }
 0x1b0   : > { %498 = vperm.xlu0 %5134, %v6740_v8  }
 0x1b1   : > { %v7156_v5 = vpop.permute.xlu0 %1088  ;;  %v7158_v3 = vpop.permute.xlu1 %1349 }
 0x1b2   : > { %9490 = vst [vmem:[#allocation52_spill] sm:$0xff] %v7156_v5  ;;  %9491 = vst [vmem:[#allocation53_spill] sm:$0xff] %v7158_v3  ;;  %1308 = vperm.xlu1 %5124, %v6749_v10  }
 0x1b4   : > { %513 = vperm.xlu0 %5134, %v6749_v10  }
 0x1b5   : > { %v7162_v47 = vpop.permute.xlu0 %1092  ;;  %v7164_v57 = vpop.permute.xlu1 %752 }
 0x1b6   : > { %9492 = vst [vmem:[#allocation54_spill] sm:$0xff] %v7162_v47  ;;  %9493 = vst [vmem:[#allocation55_spill] sm:$0xff] %v7164_v57  ;;  %1342 = vrot.lane.b32.xlu1 %v6787_v30, %s9414_s16 }
 0x1b7   : > { %5125 = vset.pattern.permute.xlu1 %v9494_v45 }
 0x1b8   : > { %1441 = vrot.lane.b32.xlu0 %v6785_v29, %s9375_s30 }
 0x1b9   : > { %v7171_v8 = vpop.permute.xlu0 %1132  ;;  %v7173_v5 = vpop.permute.xlu1 %754 }
 0x1ba   : > { %9495 = vst [vmem:[#allocation56_spill] sm:$0xff] %v7171_v8  ;;  %9496 = vst [vmem:[#allocation57_spill] sm:$0xff] %v7173_v5  ;;  %1357 = vperm.xlu1 %5125, %v6733_v7   ;;  %v1624_v8 = vld [vmem:[%s9500_s2] sm:$0xff] }
 0x1bc   : > { %1494 = vrot.lane.b32.xlu0 %v6785_v29, %s9365_s23  ;;  %s9738_s23 = smov 117  }
 0x1bd   : > { %v7178_v3 = vpop.permute.xlu1 %807  ;;  %v7180_v47 = vpop.permute.xlu0 %1149 }
 0x1be   : > { %9497 = vst [vmem:[#allocation58_spill] sm:$0xff] %v7178_v3  ;;  %9498 = vst [vmem:[#allocation59_spill] sm:$0xff] %v7180_v47  ;;  %1176 = vrot.lane.b32.xlu1 %v6785_v29, %s9420_s17 }
 0x1bf   : > { %5128 = vset.pattern.permute.xlu1 %v9462_v52  ;;  %v1627_v52 = vld [vmem:[%s9500_s2 + $0x18] sm:$0xff] }
 0x1c0   : > { %1547 = vrot.lane.b32.xlu0 %v6785_v29, %s6525_s14 }
 0x1c1   : > { %v7187_v45 = vpop.permute.xlu1 %860 }
 0x1c2   : > { %9499 = vst [vmem:[#allocation60_spill] sm:$0xff] %v7187_v45  ;;  %v7192_v57 = vpop.permute.xlu0 %1194  ;;  %1178 = vrot.lane.b32.xlu1 %v6793_v33, %s9420_s17 }
 0x1c3   : > { %9501 = vst [vmem:[#allocation61_spill] sm:$0xff] %v7192_v57 }
 0x1c4   : > { %1630 = vperm.xlu0 %5134, %v1624_v8  }
 0x1c5   : > { %v7196_v47 = vpop.permute.xlu1 %913 }
 0x1c6   : > { %9502 = vst [vmem:[#allocation62_spill] sm:$0xff] %v7196_v47  ;;  %v7201_v3 = vpop.permute.xlu0 %964  ;;  %1231 = vrot.lane.b32.xlu1 %v6793_v33, %s9418_s18  ;;  %s9743_s18 = smov 112  }
 0x1c7   : > { %9503 = vst [vmem:[#allocation63_spill] sm:$0xff] %v7201_v3 }
 0x1c8   : > { %1645 = vperm.xlu0 %5134, %v1627_v52  }
 0x1c9   : > { %v7205_v45 = vpop.permute.xlu1 %973 }
 0x1ca   : > { %9504 = vst [vmem:[#allocation64_spill] sm:$0xff] %v7205_v45  ;;  %v7207_v5 = vpop.permute.xlu0 %1017  ;;  %1284 = vrot.lane.b32.xlu1 %v6793_v33, %s9416_s15  ;;  %s9744_s15 = smov 111  }
 0x1cb   : > { %9505 = vst [vmem:[#allocation65_spill] sm:$0xff] %v7207_v5 }
 0x1cd   : > { %v7211_v8 = vpop.permute.xlu1 %990 }
 0x1ce   : > { %9506 = vst [vmem:[#allocation66_spill] sm:$0xff] %v7211_v8  ;;  %v7213_v57 = vpop.permute.xlu0 %1070  ;;  %1337 = vrot.lane.b32.xlu1 %v6793_v33, %s9414_s16  ;;  %s9745_s16 = smov 110  }
 0x1cf   : > { %9507 = vst [vmem:[#allocation67_spill] sm:$0xff] %v7213_v57 }
 0x1d1   : > { %v7217_v47 = vpop.permute.xlu1 %1024 }
 0x1d2   : > { %v7219_v3 = vpop.permute.xlu0 %1123  ;;  %1397 = vrot.lane.b32.xlu1 %v6799_v35, %s9412_s26 }
 0x1d3   : > { %9508 = vst [vmem:[#allocation68_spill] sm:$0xff] %v7219_v3 }
 0x1d5   : > { %v7223_v52 = vpop.permute.xlu1 %1039 }
 0x1d6   : > { %9509 = vst [vmem:[#allocation69_spill] sm:$0xff] %v7223_v52  ;;  %1414 = vperm.xlu1 %5128, %v6749_v10   ;;  %v7226_v5 = vpop.permute.xlu0 %1183 }
 0x1d7   : > { %9510 = vst [vmem:[#allocation70_spill] sm:$0xff] %v7226_v5 }
 0x1d9   : > { %v7228_v45 = vpop.permute.xlu1 %1077 }
 0x1da   : > { %9511 = vst [vmem:[#allocation71_spill] sm:$0xff] %v7228_v45  ;;  %1448 = vrot.lane.b32.xlu1 %v6787_v30, %s9375_s30  ;;  %v7235_v8 = vpop.permute.xlu0 %1198 }
 0x1db   : > { %5129 = vset.pattern.permute.xlu1 %v9470_v20  ;;  %9512 = vst [vmem:[#allocation72_spill] sm:$0xff] %v7235_v8 }
 0x1dd   : > { %v7233_v57 = vpop.permute.xlu1 %1079 }
 0x1de   : > { %1463 = vperm.xlu1 %5129, %v6733_v7   ;;  %v7243_v5 = vpop.permute.xlu0 %1238 }
 0x1df   : > { %9515 = vst [vmem:[#allocation74_spill] sm:$0xff] %v7243_v5 }
 0x1e1   : > { %v7238_v3 = vpop.permute.xlu1 %1096 }
 0x1e2   : > { %9513 = vst [vmem:[#allocation73_spill] sm:$0xff] %v7238_v3  ;;  %1501 = vrot.lane.b32.xlu1 %v6787_v30, %s9514_s12  ;;  %v7249_v20 = vpop.permute.xlu0 %1255 }
 0x1e3   : > { %5131 = vset.pattern.permute.xlu1 %v9477_v63  ;;  %9517 = vst [vmem:[#allocation76_spill] sm:$0xff] %v7249_v20 }
 0x1e5   : > { %v7245_v52 = vpop.permute.xlu1 %1130 }
 0x1e6   : > { %9516 = vst [vmem:[#allocation75_spill] sm:$0xff] %v7245_v52  ;;  %1503 = vrot.lane.b32.xlu1 %v6799_v35, %s9514_s12 }
 0x1e7   : > { %v7254_v8 = vpop.permute.xlu0 %1296 }
 0x1e8   : > { %9519 = vst [vmem:[#allocation78_spill] sm:$0xff] %v7254_v8 }
 0x1e9   : > { %v7251_v45 = vpop.permute.xlu1 %1145 }
 0x1ea   : > { %9518 = vst [vmem:[#allocation77_spill] sm:$0xff] %v7251_v45  ;;  %1520 = vperm.xlu1 %5131, %v6749_v10   ;;  %v9572_v45 = vld [vmem:[#allocation20_spill] sm:$0xff] }
 0x1eb   : > { %v7264_v35 = vpop.permute.xlu0 %1304 }
 0x1ec   : > { %9522 = vst [vmem:[#allocation81_spill] sm:$0xff] %v7264_v35 }
 0x1ee   : > { %1554 = vrot.lane.b32.xlu1 %v6787_v30, %s6525_s14  ;;  %v7258_v3 = vpop.permute.xlu1 %1402 }
 0x1ef   : > { %9520 = vst [vmem:[#allocation79_spill] sm:$0xff] %v7258_v3  ;;  %5132 = vset.pattern.permute.xlu1 %v9485_v2 }
 0x1f0   : > { %v7271_v10 = vpop.permute.xlu0 %1353 }
 0x1f1   : > { %9524 = vst [vmem:[#allocation83_spill] sm:$0xff] %v7271_v10 }
 0x1f2   : > { %1569 = vperm.xlu1 %5132, %v6733_v7   ;;  %v7262_v63 = vpop.permute.xlu1 %1406 }
 0x1f3   : > { %9521 = vst [vmem:[#allocation80_spill] sm:$0xff] %v7262_v63 }
 0x1f4   : > { %v7279_v2 = vpop.permute.xlu0 %1344 }
 0x1f5   : > { %9526 = vst [vmem:[#allocation85_spill] sm:$0xff] %v7279_v2  ;;  %v545_v2 = vsel %vm544_vm5, %v6975_v16, %v6959_v12  ;;  %v604_v16 = vsel %vm597_vm6, %v6988_v22, %v7000_v26 }
 0x1f6   : > { %1388 = vrot.lane.b32.xlu1 %v6785_v29, %s9412_s26 }
 0x1f7   : > { %v7268_v20 = vpop.permute.xlu1 %1459  ;;  %5135 = vset.pattern.permute.xlu1 %v9489_v46 }
 0x1f8   : > { %9523 = vst [vmem:[#allocation82_spill] sm:$0xff] %v7268_v20  ;;  %v7287_v46 = vpop.permute.xlu0 %1361  ;;  %v1625_v20 = vld [vmem:[%s9500_s2 + $0x8] sm:$0xff] }
 0x1f9   : > { %9529 = vst [vmem:[#allocation88_spill] sm:$0xff] %v7287_v46 }
 0x1fa   : > { %1390 = vrot.lane.b32.xlu1 %v6793_v33, %s9412_s26  ;;  %s9742_s26 = smov 113  }
 0x1fc   : > { %v7275_v30 = vpop.permute.xlu1 %1508  ;;  %v7299_v3 = vpop.permute.xlu0 %1229 }
 0x1fd   : > { %9525 = vst [vmem:[#allocation84_spill] sm:$0xff] %v7275_v30  ;;  %9531 = vst [vmem:[#allocation90_spill] sm:$0xff] %v7299_v3 }
 0x1fe   : > { %1443 = vrot.lane.b32.xlu1 %v6793_v33, %s9375_s30  ;;  %s9722_s30 = smov 16  }
 0x200   : > { %v7305_v46 = vpop.permute.xlu0 %1282 }
 0x201   : > { %v7281_v7 = vpop.permute.xlu1 %1561  ;;  %9534 = vst [vmem:[#allocation93_spill] sm:$0xff] %v7305_v46  ;;  %v494_v46 = vsel %vm479_vm4, %v6952_v9, %v6967_v14  ;;  %v598_v9 = vsel %vm597_vm6, %v6979_v17, %v6990_v23 }
 0x202   : > { %9527 = vst [vmem:[#allocation86_spill] sm:$0xff] %v7281_v7  ;;  %1496 = vrot.lane.b32.xlu1 %v6793_v33, %s9514_s12  ;;  %v1626_v7 = vld [vmem:[%s9500_s2 + $0x10] sm:$0xff]  ;;  %v7333_v5 = vrot.slane %v494_v46, %v6782_v25  ;;  %v651_v46 = vsel %vm650_vm7, %v7010_v18, %v6998_v24  ;;  %v629_v24 = vrot.slane %v604_v16, %v6782_v25  ;;  %s9736_s12 = smov 119   ;;  %s9755_s2 = smov 105  }
 0x203   : > { %v657_v18 = vsel %vm650_vm7, %v7020_v32, %v7008_v27 }
 0x204   : > { %v7309_v10 = vpop.permute.xlu0 %1335  ;;  %9544 = vst [vmem:[#allocation103_spill] sm:$0xff] %v7333_v5  ;;  %v529_v23 = vmul.f32 %v7333_v5, %v6795_v34  ;;  %v682_v32 = vrot.slane %v657_v18, %v6782_v25  ;;  %v816_v18 = vsel %vm809_vm10, %v7062_v55, %v7070_v48 }
 0x205   : > { %v7285_v29 = vpop.permute.xlu1 %1565  ;;  %9536 = vst [vmem:[#allocation95_spill] sm:$0xff] %v7309_v10 }
 0x206   : > { %9528 = vst [vmem:[#allocation87_spill] sm:$0xff] %v7285_v29  ;;  %1549 = vrot.lane.b32.xlu1 %v6793_v33, %s6525_s14  ;;  %v686_v55 = vmul.f32 %v682_v32, %v6926_v61  ;;  %s9735_s14 = smov 120  }
 0x208   : > { %v7315_v8 = vpop.permute.xlu0 %1395 }
 0x209   : > { %v7294_v63 = vpop.permute.xlu1 %966  ;;  %9539 = vst [vmem:[#allocation98_spill] sm:$0xff] %v7315_v8 }
 0x20a   : > { %9530 = vst [vmem:[#allocation89_spill] sm:$0xff] %v7294_v63  ;;  %1635 = vperm.xlu1 %5135, %v1625_v20   ;;  %v9578_v63 = vld [vmem:[#allocation21_spill] sm:$0xff] }
 0x20c   : > { %v7325_v10 = vpop.permute.xlu0 %1410 }
 0x20d   : > { %v7301_v30 = vpop.permute.xlu1 %1019  ;;  %9541 = vst [vmem:[#allocation100_spill] sm:$0xff] %v7325_v10 }
 0x20e   : > { %9532 = vst [vmem:[#allocation91_spill] sm:$0xff] %v7301_v30  ;;  %1640 = vperm.xlu1 %5135, %v1626_v7   ;;  %v480_v7 = vsel %vm479_vm4, %v6954_v11, %v6961_v13  ;;  %v551_v11 = vsel %vm544_vm5, %v6983_v21, %v6969_v15  ;;  %v572_v13 = vrot.slane %v545_v2, %v6782_v25  ;;  %vm9411_vm4 = vcmask 875520  }
 0x20f   : > { %v576_v15 = vrot.slane %v551_v11, %v6782_v25  ;;  %v527_v21 = vmul.f32 %v7333_v5, %v6789_v31  ;;  %v625_v2 = vrot.slane %v598_v9, %v6782_v25  ;;  %v704_v9 = vsel %vm703_vm8, %v7028_v19, %v7037_v54 }
 0x210   : > { %v7366_v11 = vmul.f32 %v572_v13, %v6801_v36  ;;  %v7369_v22 = vmul.f32 %v572_v13, %v6890_v51  ;;  %v7372_v26 = vmul.f32 %v572_v13, %v6805_v37  ;;  %v763_v54 = vsel %vm756_vm9, %v7045_v62, %v7049_v60 }
 0x211   : > { %v7303_v29 = vpop.permute.xlu1 %1072  ;;  %v578_v10 = vmul.f32 %v576_v15, %v6801_v36  ;;  %v7396_v16 = vmul.f32 %v625_v2, %v6901_v53  ;;  %v7403_v36 = vmul.f32 %v576_v15, %v6813_v38  ;;  %v731_v19 = vrot.slane %v704_v9, %v6782_v25 }
 0x212   : > { %9533 = vst [vmem:[#allocation92_spill] sm:$0xff] %v7303_v29  ;;  %v633_v60 = vmul.f32 %v629_v24, %v6819_v39  ;;  %vm9406_vm5 = vcmask 867328  }
 0x213   : > { %v738_v48 = vmul.f32 %v731_v19, %v6842_v43 }
 0x215   : > { %v7307_v33 = vpop.permute.xlu1 %1125 }
 0x216   : > { %9535 = vst [vmem:[#allocation94_spill] sm:$0xff] %v7307_v33  ;;  %v9570_v33 = vld [vmem:[#allocation19_spill] sm:$0xff] }
 0x219   : > { %v7311_v35 = vpop.permute.xlu1 %1185 }
 0x21a   : > { %9537 = vst [vmem:[#allocation96_spill] sm:$0xff] %v7311_v35  ;;  %v9562_v35 = vld [vmem:[#allocation55_spill] sm:$0xff] }
 0x21d   : > { %v7313_v20 = vpop.permute.xlu1 %1202 }
 0x21e   : > { %9538 = vst [vmem:[#allocation97_spill] sm:$0xff] %v7313_v20  ;;  %v7328_v20 = vrot.slane %v480_v7, %v6782_v25  ;;  %v7363_v7 = vpop.permute.xlu0 %1455 }
 0x21f   : > { %9546 = vst [vmem:[#allocation105_spill] sm:$0xff] %v7363_v7  ;;  %v580_v7 = vmul.f32 %v576_v15, %v6890_v51  ;;  %v7406_v51 = vmul.f32 %v625_v2, %v6819_v39 }
 0x220   : > { %9542 = vst [vmem:[#allocation101_spill] sm:$0xff] %v7328_v20  ;;  %v7343_v12 = vmul.f32 %v7328_v20, %v6789_v31  ;;  %v7347_v14 = vmul.f32 %v7328_v20, %v6795_v34  ;;  %v710_v31 = vsel %vm703_vm8, %v7030_v1, %v7018_v28  ;;  %v7378_v34 = vmul.f32 %v572_v13, %v6813_v38 }
 0x221   : > { %v7317_v3 = vpop.permute.xlu1 %1236  ;;  %v678_v1 = vrot.slane %v651_v46, %v6782_v25  ;;  %v7391_v28 = vmul.f32 %v576_v15, %v6805_v37  ;;  %v735_v27 = vrot.slane %v710_v31, %v6782_v25  ;;  %v7409_v37 = vmul.f32 %v625_v2, %v6825_v40 }
 0x222   : > { %9540 = vst [vmem:[#allocation99_spill] sm:$0xff] %v7317_v3  ;;  %v7414_v46 = vmul.f32 %v625_v2, %v6909_v56  ;;  %v631_v31 = vmul.f32 %v629_v24, %v6901_v53  ;;  %v7419_v38 = vmul.f32 %v629_v24, %v6909_v56  ;;  %v7421_v62 = vpop.permute.xlu0 %1450  ;;  %v635_v2 = vmul.f32 %v629_v24, %v6825_v40  ;;  %v9561_v3 = vld [vmem:[#allocation57_spill] sm:$0xff] }
 0x223   : > { %9548 = vst [vmem:[#allocation107_spill] sm:$0xff] %v7421_v62  ;;  %v7424_v15 = vmul.f32 %v678_v1, %v6831_v41  ;;  %v7434_v39 = vmul.f32 %v678_v1, %v6926_v61  ;;  %v7437_v53 = vmul.f32 %v678_v1, %v6933_v0  ;;  %v7440_v56 = vmul.f32 %v678_v1, %v6942_v4 }
 0x224   : > { %v739_v62 = vmul.f32 %v735_v27, %v6842_v43  ;;  %v741_v5 = vmul.f32 %v735_v27, %v6880_v49  ;;  %v869_v40 = vsel %vm862_vm11, %v7084_v50, %v7073_v58  ;;  %v841_v24 = vrot.slane %v816_v18, %v6782_v25  ;;  %v9554_v18 = vld [vmem:[#allocation38_spill] sm:$0xff] }
 0x225   : > { %v7330_v8 = vpop.permute.xlu1 %1251  ;;  %v690_v1 = vmul.f32 %v682_v32, %v6942_v4  ;;  %v740_v20 = vmul.f32 %v731_v19, %v6880_v49  ;;  %v7459_v43 = vmul.f32 %v735_v27, %v6918_v59  ;;  %v894_v61 = vrot.slane %v869_v40, %v6782_v25  ;;  %v9560_v40 = vld [vmem:[#allocation18_spill] sm:$0xff] }
 0x226   : > { %9543 = vst [vmem:[#allocation102_spill] sm:$0xff] %v7330_v8  ;;  %v788_v8 = vrot.slane %v763_v54, %v6782_v25  ;;  %v684_v54 = vmul.f32 %v682_v32, %v6831_v41  ;;  %v747_v50 = vadd.f32 %v739_v62, %v527_v21  ;;  %v7468_v49 = vpop.permute.xlu0 %1467  ;;  %v7477_v21 = vmul.f32 %v731_v19, %v6918_v59  ;;  %v9559_v62 = vld [vmem:[#allocation30_spill] sm:$0xff] }
 0x227   : > { %9551 = vst [vmem:[#allocation110_spill] sm:$0xff] %v7459_v43 }
 0x228   : > { %v790_v41 = vmul.f32 %v788_v8, %v6944_v6  ;;  %v792_v58 = vmul.f32 %v788_v8, %v6848_v44  ;;  %9558 = vst [vmem:[#allocation113_spill] sm:$0xff] %v7477_v21  ;;  %v794_v43 = vmul.f32 %v788_v8, %v9559_v62  ;;  %v9569_v21 = vld [vmem:[#allocation33_spill] sm:$0xff] }
 0x229   : > { %v7353_v17 = vpop.permute.xlu1 %1289 }
 0x22a   : > { %9545 = vst [vmem:[#allocation104_spill] sm:$0xff] %v7353_v17  ;;  %v7456_v17 = vmul.f32 %v735_v27, %v6837_v42  ;;  %v7474_v27 = vmul.f32 %v731_v19, %v6837_v42  ;;  %v9566_v42 = vld [vmem:[#allocation29_spill] sm:$0xff] }
 0x22c   : > { %9550 = vst [vmem:[#allocation109_spill] sm:$0xff] %v7456_v17  ;;  %v749_v17 = vadd.f32 %v741_v5, %v529_v23  ;;  %9557 = vst [vmem:[#allocation112_spill] sm:$0xff] %v7474_v27  ;;  %v7488_v5 = vadd.f32 %v790_v41, %v578_v10  ;;  %v845_v23 = vmul.f32 %v841_v24, %v9566_v42  ;;  %v9574_v41 = vld [vmem:[#allocation37_spill] sm:$0xff] }
 0x22d   : > { %v7393_v13 = vpop.permute.xlu1 %1291  ;;  %v849_v27 = vmul.f32 %v841_v24, %v9569_v21 }
 0x22e   : > { %9547 = vst [vmem:[#allocation106_spill] sm:$0xff] %v7393_v13  ;;  %9565 = vst [vmem:[#allocation18_spill] sm:$0xff] %v7488_v5  ;;  %v7514_v5 = vpop.permute.xlu0 %1512 }
 0x231   : > { %v7431_v9 = vpop.permute.xlu1 %1308 }
 0x232   : > { %9549 = vst [vmem:[#allocation108_spill] sm:$0xff] %v7431_v9  ;;  %v688_v9 = vmul.f32 %v682_v32, %v6933_v0  ;;  %v9553_v0 = vld [vmem:[#allocation40_spill] sm:$0xff]  ;;  %v7471_v32 = vadd.f32 %v738_v48, %v7343_v12  ;;  %v7486_v12 = vadd.f32 %v740_v20, %v7347_v14  ;;  %v7494_v48 = vadd.f32 %v792_v58, %v580_v7  ;;  %v9573_v14 = vld [vmem:[#allocation58_spill] sm:$0xff] }
 0x233   : > { %v922_v4 = vsel %vm915_vm12, %v9554_v18, %v9553_v0  ;;  %9555 = vst [vmem:[#allocation40_spill] sm:$0xff] %v7468_v49  ;;  %v757_v0 = vsel %vm756_vm9, %v9562_v35, %v9561_v3  ;;  %v9563_v18 = vld [vmem:[#allocation28_spill] sm:$0xff]  ;;  %v896_v3 = vmul.f32 %v894_v61, %v9570_v33  ;;  %v9571_v35 = vld [vmem:[#allocation31_spill] sm:$0xff]  ;;  %v898_v20 = vmul.f32 %v894_v61, %v9572_v45 }
 0x234   : > { %9556 = vst [vmem:[#allocation38_spill] sm:$0xff] %v7471_v32  ;;  %v796_v49 = vmul.f32 %v788_v8, %v9563_v18  ;;  %9564 = vst [vmem:[#allocation30_spill] sm:$0xff] %v7486_v12  ;;  %v947_v59 = vrot.slane %v922_v4, %v6782_v25  ;;  %v847_v8 = vmul.f32 %v841_v24, %v9571_v35  ;;  %v9575_v4 = vld [vmem:[#allocation32_spill] sm:$0xff]  ;;  %v9581_v32 = vld [vmem:[#allocation35_spill] sm:$0xff] }
 0x235   : > { %v7461_v13 = vpop.permute.xlu1 %1342  ;;  %9568 = vst [vmem:[#allocation55_spill] sm:$0xff] %v7494_v48  ;;  %v784_v10 = vrot.slane %v757_v0, %v6782_v25  ;;  %v810_v29 = vsel %vm809_vm10, %v9574_v41, %v9573_v14  ;;  %v902_v30 = vmul.f32 %v894_v61, %v9575_v4  ;;  %v7506_v7 = vadd.f32 %v794_v43, %v7391_v28  ;;  %v9579_v14 = vld [vmem:[#allocation60_spill] sm:$0xff]  ;;  %v9580_v41 = vld [vmem:[#allocation39_spill] sm:$0xff] }
 0x236   : > { %9552 = vst [vmem:[#allocation111_spill] sm:$0xff] %v7461_v13  ;;  %v843_v13 = vmul.f32 %v841_v24, %v9560_v40  ;;  %v7512_v24 = vadd.f32 %v796_v49, %v7403_v36  ;;  %9577 = vst [vmem:[#allocation28_spill] sm:$0xff] %v7514_v5  ;;  %v7516_v0 = vadd.f32 %v845_v23, %v633_v60  ;;  %v9583_v23 = vld [vmem:[#allocation62_spill] sm:$0xff]  ;;  %v9584_v5 = vld [vmem:[#allocation41_spill] sm:$0xff] }
 0x237   : > { %v951_v12 = vmul.f32 %v947_v59, %v9578_v63  ;;  %v863_v52 = vsel %vm862_vm11, %v9580_v41, %v9579_v14  ;;  %v953_v28 = vmul.f32 %v947_v59, %v9581_v32  ;;  %v837_v36 = vrot.slane %v810_v29, %v6782_v25 }
 0x238   : > { %v7508_v58 = vadd.f32 %v843_v13, %v631_v31  ;;  %v7526_v13 = vadd.f32 %v849_v27, %v7419_v38  ;;  %v7528_v31 = vadd.f32 %v896_v3, %v684_v54  ;;  %v7533_v60 = vadd.f32 %v898_v20, %v686_v55  ;;  %v9585_v38 = vld [vmem:[#allocation42_spill] sm:$0xff] }
 0x239   : > { %v7492_v19 = vpop.permute.xlu1 %1357  ;;  %v789_v49 = vmul.f32 %v784_v10, %v6944_v6  ;;  %v916_v14 = vsel %vm915_vm12, %v9584_v5, %v9583_v23  ;;  %v7539_v41 = vadd.f32 %v902_v30, %v690_v1  ;;  %v7544_v54 = vmul.f32 %v947_v59, %v9585_v38 }
 0x23a   : > { %9567 = vst [vmem:[#allocation57_spill] sm:$0xff] %v7492_v19  ;;  %v9576_v19 = vld [vmem:[#allocation36_spill] sm:$0xff]  ;;  %v890_v29 = vrot.slane %v863_v52, %v6782_v25  ;;  %v7550_v55 = vadd.f32 %v951_v12, %v747_v50  ;;  %v791_v6 = vmul.f32 %v784_v10, %v6848_v44  ;;  %v793_v3 = vmul.f32 %v784_v10, %v9559_v62  ;;  %v7564_v50 = vpop.permute.xlu0 %1516 }
 0x23b   : > { %v900_v48 = vmul.f32 %v894_v61, %v9576_v19  ;;  %v7531_v61 = vadd.f32 %v847_v8, %v635_v2  ;;  %9586 = vst [vmem:[#allocation33_spill] sm:$0xff] %v7544_v54  ;;  %v9587_v2 = vld [vmem:[#allocation34_spill] sm:$0xff]  ;;  %v7554_v5 = vadd.f32 %v953_v28, %v749_v17  ;;  %v842_v1 = vmul.f32 %v837_v36, %v9560_v40  ;;  %v9590_v52 = vld [vmem:[#allocation64_spill] sm:$0xff]  ;;  %v9591_v8 = vld [vmem:[#allocation43_spill] sm:$0xff] }
 0x23c   : > { %v7548_v27 = vmul.f32 %v947_v59, %v9587_v2  ;;  %v975_v59 = vsel %vm9405_vm13, %v9591_v8, %v9590_v52  ;;  %9592 = vst [vmem:[#allocation20_spill] sm:$0xff] %v7564_v50  ;;  %v7567_v44 = vadd.f32 %v789_v49, %v7366_v11  ;;  %v844_v17 = vmul.f32 %v837_v36, %v9566_v42  ;;  %v9605_v8 = vld [vmem:[#allocation30_spill] sm:$0xff] }
 0x23d   : > { %v7523_v43 = vpop.permute.xlu1 %1176  ;;  %v846_v62 = vmul.f32 %v837_v36, %v9571_v35  ;;  %v848_v12 = vmul.f32 %v837_v36, %v9569_v21  ;;  %v897_v40 = vmul.f32 %v890_v29, %v9572_v45  ;;  %v899_v20 = vmul.f32 %v890_v29, %v9576_v19 }
 0x23e   : > { %9582 = vst [vmem:[#allocation29_spill] sm:$0xff] %v7523_v43  ;;  %v7541_v43 = vadd.f32 %v900_v48, %v688_v9  ;;  %9588 = vst [vmem:[#allocation19_spill] sm:$0xff] %v7548_v27  ;;  %v795_v9 = vmul.f32 %v784_v10, %v9563_v18  ;;  %v943_v48 = vrot.slane %v916_v14, %v6782_v25  ;;  %v9593_v10 = vld [vmem:[#allocation49_spill] sm:$0xff] }
 0x23f   : > { %v895_v18 = vmul.f32 %v890_v29, %v9570_v33  ;;  %v1028_v28 = vsel %vm9402_vm14, %v7217_v47, %v9593_v10  ;;  %v7579_v23 = vadd.f32 %v791_v6, %v7369_v22  ;;  %v7582_v11 = vadd.f32 %v793_v3, %v7372_v26  ;;  %v9595_v22 = vld [vmem:[#allocation71_spill] sm:$0xff]  ;;  %v9620_v27 = vld [vmem:[#allocation73_spill] sm:$0xff] }
 0x240   : > { %v901_v42 = vmul.f32 %v890_v29, %v9575_v4  ;;  %v1000_v21 = vrot.slane %v975_v59, %v6782_v25  ;;  %v7589_v45 = vadd.f32 %v795_v9, %v7378_v34  ;;  %v7592_v33 = vadd.f32 %v842_v1, %v7396_v16  ;;  %v9602_v9 = vld [vmem:[#allocation56_spill] sm:$0xff]  ;;  %v9603_v1 = vld [vmem:[#allocation75_spill] sm:$0xff] }
 0x241   : > { %v7556_v30 = vpop.permute.xlu1 %1178  ;;  %v950_v47 = vmul.f32 %v943_v48, %v9578_v63  ;;  %v1081_v19 = vsel %vm9401_vm15, %v9595_v22, %v7233_v57  ;;  %v7599_v26 = vadd.f32 %v844_v17, %v7406_v51  ;;  %v7602_v4 = vadd.f32 %v846_v62, %v7409_v37  ;;  %v7618_v51 = vpop.permute.xlu0 %1556  ;;  %v9606_v17 = vld [vmem:[#allocation45_spill] sm:$0xff]  ;;  %v9607_v62 = vld [vmem:[#allocation66_spill] sm:$0xff] }
 0x242   : > { %9589 = vst [vmem:[#allocation31_spill] sm:$0xff] %v7556_v30  ;;  %v952_v36 = vmul.f32 %v943_v48, %v9581_v32  ;;  %v1053_v34 = vrot.slane %v1028_v28, %v6782_v25  ;;  %v7607_v49 = vadd.f32 %v848_v12, %v7414_v46  ;;  %v7610_v16 = vadd.f32 %v895_v18, %v7424_v15  ;;  %v9597_v32 = vld [vmem:[#allocation22_spill] sm:$0xff]  ;;  %v9608_v18 = vld [vmem:[#allocation47_spill] sm:$0xff] }
 0x243   : > { %v7613_v63 = vadd.f32 %v897_v40, %v7434_v39  ;;  %v7616_v57 = vadd.f32 %v899_v20, %v7437_v53  ;;  %9596 = vst [vmem:[#allocation37_spill] sm:$0xff] %v7618_v51  ;;  %v7621_v37 = vadd.f32 %v901_v42, %v7440_v56  ;;  %v1002_v14 = vmul.f32 %v1000_v21, %v9597_v32  ;;  %v9600_v39 = vld [vmem:[#allocation38_spill] sm:$0xff]  ;;  %v9601_v53 = vld [vmem:[#allocation23_spill] sm:$0xff]  ;;  %v9609_v20 = vld [vmem:[#allocation24_spill] sm:$0xff] }
 0x244   : > { %v1106_v29 = vrot.slane %v1081_v19, %v6782_v25  ;;  %v7626_v46 = vmul.f32 %v943_v48, %v9587_v2  ;;  %v7631_v6 = vadd.f32 %v950_v47, %v9600_v39  ;;  %v1004_v3 = vmul.f32 %v1000_v21, %v9601_v53  ;;  %v9610_v28 = vld [vmem:[#allocation51_spill] sm:$0xff]  ;;  %v9611_v47 = vld [vmem:[#allocation69_spill] sm:$0xff] }
 0x245   : > { %v7586_v35 = vpop.permute.xlu1 %1231  ;;  %v1134_v56 = vsel %vm9400_vm1, %v9603_v1, %v9602_v9  ;;  %v7638_v52 = vmul.f32 %v943_v48, %v9585_v38  ;;  %v7641_v59 = vadd.f32 %v952_v36, %v9605_v8  ;;  %v1006_v2 = vmul.f32 %v1000_v21, %v9606_v17  ;;  %v9612_v19 = vld [vmem:[#allocation89_spill] sm:$0xff]  ;;  %v9613_v39 = vld [vmem:[#allocation63_spill] sm:$0xff]  ;;  %v9614_v48 = vld [vmem:[#allocation18_spill] sm:$0xff] }
 0x246   : > { %9594 = vst [vmem:[#allocation58_spill] sm:$0xff] %v7586_v35  ;;  %9598 = vst [vmem:[#allocation32_spill] sm:$0xff] %v7626_v46  ;;  %v1008_v12 = vmul.f32 %v1000_v21, %v9607_v62  ;;  %v1055_v40 = vmul.f32 %v1053_v34, %v9608_v18  ;;  %v1057_v10 = vmul.f32 %v1053_v34, %v9609_v20  ;;  %v9615_v36 = vld [vmem:[#allocation25_spill] sm:$0xff]  ;;  %v9616_v8 = vld [vmem:[#allocation52_spill] sm:$0xff] }
 0x247   : > { %9604 = vst [vmem:[#allocation21_spill] sm:$0xff] %v7638_v52  ;;  %v1061_v42 = vmul.f32 %v1053_v34, %v9610_v28  ;;  %v1059_v22 = vmul.f32 %v1053_v34, %v9611_v47  ;;  %v969_v38 = vsel %vm9405_vm13, %v9613_v39, %v9612_v19  ;;  %v7653_v9 = vadd.f32 %v1002_v14, %v9614_v48  ;;  %v9619_v52 = vld [vmem:[#allocation54_spill] sm:$0xff]  ;;  %v9621_v46 = vld [vmem:[#allocation91_spill] sm:$0xff]  ;;  %v9622_v19 = vld [vmem:[#allocation65_spill] sm:$0xff]  ;;  %v7668_v39 = vpop.permute.xlu0 %1573 }
 0x248   : > { %v1108_v1 = vmul.f32 %v1106_v29, %v9615_v36  ;;  %v1110_v50 = vmul.f32 %v1106_v29, %v9616_v8  ;;  %v1159_v21 = vrot.slane %v1134_v56, %v6782_v25  ;;  %v1112_v34 = vmul.f32 %v1106_v29, %v9619_v52  ;;  %9623 = vst [vmem:[#allocation39_spill] sm:$0xff] %v7668_v39 }
 0x249   : > { %v7628_v15 = vpop.permute.xlu1 %1284  ;;  %v1114_v54 = vmul.f32 %v1106_v29, %v9620_v27  ;;  %v1022_v14 = vsel %vm9402_vm14, %v9622_v19, %v9621_v46  ;;  %v7671_v48 = vadd.f32 %v1006_v2, %v7506_v7  ;;  %v7674_v56 = vadd.f32 %v1008_v12, %v7512_v24 }
 0x24a   : > { %9599 = vst [vmem:[#allocation36_spill] sm:$0xff] %v7628_v15  ;;  %v9618_v15 = vld [vmem:[#allocation55_spill] sm:$0xff]  ;;  %v7681_v29 = vadd.f32 %v1055_v40, %v7508_v58  ;;  %v7684_v46 = vadd.f32 %v1057_v10, %v7516_v0  ;;  %v7687_v19 = vadd.f32 %v1061_v42, %v7526_v13  ;;  %v7690_v7 = vadd.f32 %v1059_v22, %v7531_v61  ;;  %v9628_v61 = vld [vmem:[#allocation77_spill] sm:$0xff]  ;;  %v9629_v42 = vld [vmem:[#allocation26_spill] sm:$0xff] }
 0x24b   : > { %v7661_v35 = vadd.f32 %v1004_v3, %v9618_v15  ;;  %v996_v15 = vrot.slane %v969_v38, %v6782_v25  ;;  %v9624_v3 = vld [vmem:[#allocation92_spill] sm:$0xff]  ;;  %v7693_v24 = vadd.f32 %v1108_v1, %v7528_v31  ;;  %v7696_v2 = vadd.f32 %v1110_v50, %v7533_v60  ;;  %v9631_v38 = vld [vmem:[#allocation94_spill] sm:$0xff] }
 0x24c   : > { %v1049_v58 = vrot.slane %v1022_v14, %v6782_v25  ;;  %v7703_v0 = vadd.f32 %v1112_v34, %v7541_v43  ;;  %v7706_v13 = vadd.f32 %v1114_v54, %v7539_v41  ;;  %v1165_v10 = vmul.f32 %v1159_v21, %v9628_v61  ;;  %v9632_v1 = vld [vmem:[#allocation68_spill] sm:$0xff]  ;;  %v9633_v43 = vld [vmem:[#allocation59_spill] sm:$0xff] }
 0x24d   : > { %v7658_v51 = vpop.permute.xlu1 %1337  ;;  %v7711_v22 = vmul.f32 %v1159_v21, %v9629_v42  ;;  %v1001_v60 = vmul.f32 %v996_v15, %v9597_v32  ;;  %v1003_v50 = vmul.f32 %v996_v15, %v9601_v53  ;;  %v1128_v14 = vsel %vm9400_vm1, %v9632_v1, %v9631_v38 }
 0x24e   : > { %9617 = vst [vmem:[#allocation60_spill] sm:$0xff] %v7658_v51  ;;  %v9625_v51 = vld [vmem:[#allocation67_spill] sm:$0xff]  ;;  %v7719_v34 = vmul.f32 %v1159_v21, %v9633_v43  ;;  %v1005_v41 = vmul.f32 %v996_v15, %v9606_v17  ;;  %v1007_v54 = vmul.f32 %v996_v15, %v9607_v62  ;;  %v1054_v53 = vmul.f32 %v1049_v58, %v9608_v18 }
 0x24f   : > { %v1075_v30 = vsel %vm9401_vm15, %v9625_v51, %v9624_v3  ;;  %v9626_v51 = vld [vmem:[#allocation27_spill] sm:$0xff]  ;;  %9630 = vst [vmem:[#allocation62_spill] sm:$0xff] %v7711_v22  ;;  %v9634_v3 = vld [vmem:[#allocation96_spill] sm:$0xff]  ;;  %v499_v22 = vpop.permute.xlu0 %498  ;;  %v1058_v38 = vmul.f32 %v1049_v58, %v9611_v47  ;;  %v7735_v17 = vadd.f32 %v1165_v10, %v7554_v5  ;;  %v1060_v62 = vmul.f32 %v1049_v58, %v9610_v28 }
 0x250   : > { %v1163_v12 = vmul.f32 %v1159_v21, %v9626_v51  ;;  %v1102_v31 = vrot.slane %v1075_v30, %v6782_v25  ;;  %v9635_v30 = vld [vmem:[#allocation70_spill] sm:$0xff]  ;;  %v1155_v1 = vrot.slane %v1128_v14, %v6782_v25  ;;  %v7744_v18 = vadd.f32 %v1003_v50, %v7579_v23  ;;  %v9645_v50 = vld [vmem:[#allocation44_spill] sm:$0xff] }
 0x251   : > { %v7700_v40 = vpop.permute.xlu1 %1397  ;;  %v1187_v39 = vsel %vm1180_vm2, %v9635_v30, %v9634_v3  ;;  %v7752_v5 = vadd.f32 %v1007_v54, %v7589_v45  ;;  %v7771_v45 = vadd.f32 %v1060_v62, %v7607_v49  ;;  %vm1498_vm1 = vcmask 842752  }
 0x252   : > { %9627 = vst [vmem:[#allocation35_spill] sm:$0xff] %v7700_v40  ;;  %v7727_v32 = vadd.f32 %v1163_v12, %v7550_v55  ;;  %v1056_v40 = vmul.f32 %v1049_v58, %v9609_v20  ;;  %v1107_v15 = vmul.f32 %v1102_v31, %v9615_v36  ;;  %v7741_v55 = vadd.f32 %v1001_v60, %v7567_v44  ;;  %v9640_v58 = vld [vmem:[#allocation99_spill] sm:$0xff] }
 0x253   : > { %v1109_v20 = vmul.f32 %v1102_v31, %v9616_v8  ;;  %v1212_v47 = vrot.slane %v1187_v39, %v6782_v25  ;;  %v7749_v12 = vadd.f32 %v1005_v41, %v7582_v11  ;;  %v1111_v28 = vmul.f32 %v1102_v31, %v9619_v52  ;;  %v9639_v39 = vld [vmem:[#allocation74_spill] sm:$0xff]  ;;  %v9646_v41 = vld [vmem:[#allocation97_spill] sm:$0xff] }
 0x254   : > { %v1113_v36 = vmul.f32 %v1102_v31, %v9620_v27  ;;  %v7757_v44 = vadd.f32 %v1054_v53, %v7592_v33  ;;  %v7760_v23 = vadd.f32 %v1056_v40, %v7599_v26  ;;  %v7763_v8 = vadd.f32 %v1058_v38, %v7602_v4  ;;  %v9642_v52 = vld [vmem:[#allocation106_spill] sm:$0xff]  ;;  %v9643_v26 = vld [vmem:[#allocation104_spill] sm:$0xff]  ;;  %v514_v4 = vpop.permute.xlu0 %513  ;;  %v9650_v38 = vld [vmem:[#allocation103_spill] sm:$0xff] }
 0x255   : > { %v7732_v21 = vpop.permute.xlu1 %1414  ;;  %v1240_v11 = vsel %vm1233_vm3, %v9640_v58, %v9639_v39  ;;  %v7774_v27 = vadd.f32 %v1107_v15, %v7610_v16  ;;  %v1162_v33 = vmul.f32 %v1155_v1, %v9626_v51  ;;  %v1293_v40 = vsel %vm9411_vm4, %v9643_v26, %v9642_v52  ;;  %v9659_v26 = vld [vmem:[#allocation76_spill] sm:$0xff] }
 0x256   : > { %9636 = vst [vmem:[#allocation41_spill] sm:$0xff] %v7732_v21  ;;  %9637 = vst [vmem:[#allocation42_spill] sm:$0xff] %v7760_v23  ;;  %v7781_v31 = vadd.f32 %v1109_v20, %v7613_v63  ;;  %v1164_v60 = vmul.f32 %v1155_v1, %v9628_v61  ;;  %v1214_v14 = vmul.f32 %v1212_v47, %v9645_v50  ;;  %v9649_v61 = vld [vmem:[#allocation101_spill] sm:$0xff]  ;;  %vm9410_vm15 = vcmask 859136   ;;  %v9671_v23 = vld [vmem:[#allocation31_spill] sm:$0xff] }
 0x257   : > { %9638 = vst [vmem:[#allocation34_spill] sm:$0xff] %v7763_v8  ;;  %9641 = vst [vmem:[#allocation64_spill] sm:$0xff] %v7774_v27  ;;  %v1220_v49 = vmul.f32 %v1212_v47, %v9646_v41  ;;  %v7787_v16 = vadd.f32 %v1111_v28, %v7616_v57  ;;  %v7790_v51 = vadd.f32 %v1113_v36, %v7621_v37  ;;  %vm9409_vm14 = vcmask 850944   ;;  %v9653_v37 = vld [vmem:[#allocation61_spill] sm:$0xff] }
 0x258   : > { %9644 = vst [vmem:[#allocation43_spill] sm:$0xff] %v7781_v31  ;;  %v1160_v54 = vmul.f32 %v1155_v1, %v9629_v42  ;;  %v1265_v3 = vrot.slane %v1240_v11, %v6782_v25  ;;  %v1166_v63 = vmul.f32 %v1155_v1, %v9633_v43  ;;  %v1318_v30 = vrot.slane %v1293_v40, %v6782_v25  ;;  %v9655_v1 = vld [vmem:[#allocation72_spill] sm:$0xff]  ;;  %v9657_v11 = vld [vmem:[#allocation46_spill] sm:$0xff]  ;;  %v9669_v27 = vld [vmem:[#allocation81_spill] sm:$0xff] }
 0x259   : > { %v7768_v10 = vpop.permute.xlu1 %1448  ;;  %9647 = vst [vmem:[#allocation49_spill] sm:$0xff] %v7787_v16  ;;  %9648 = vst [vmem:[#allocation71_spill] sm:$0xff] %v7790_v51  ;;  %v524_v53 = vmul.f32 %v9649_v61, %v499_v22  ;;  %v531_v62 = vmul.f32 %v9650_v38, %v514_v4  ;;  %v7801_v57 = vadd.f32 %v1162_v33, %v7631_v6  ;;  %v9658_v33 = vld [vmem:[#allocation48_spill] sm:$0xff]  ;;  %v9668_v16 = vld [vmem:[#allocation113_spill] sm:$0xff]  ;;  %vm1551_vm13 = vcmask 834560  }
 0x25a   : > { %v1216_v20 = vmul.f32 %v1212_v47, %v9653_v37  ;;  %v525_v42 = vmul.f32 %v9650_v38, %v499_v22  ;;  %v530_v28 = vmul.f32 %v9649_v61, %v514_v4  ;;  %v7807_v43 = vadd.f32 %v1164_v60, %v7641_v59  ;;  %v9660_v22 = vld [vmem:[#allocation85_spill] sm:$0xff]  ;;  %v9661_v38 = vld [vmem:[#allocation111_spill] sm:$0xff]  ;;  %v9662_v59 = vld [vmem:[#allocation102_spill] sm:$0xff] }
 0x25b   : > { %9652 = vst [vmem:[#allocation38_spill] sm:$0xff] %v7801_v57  ;;  %v1218_v36 = vmul.f32 %v1212_v47, %v9655_v1  ;;  %v7811_v39 = vadd.f32 %v1220_v49, %v7674_v56  ;;  %v7814_v58 = vadd.f32 %v1214_v14, %v7653_v9  ;;  %v1267_v6 = vmul.f32 %v1265_v3, %v9657_v11  ;;  %v9663_v61 = vld [vmem:[#allocation78_spill] sm:$0xff] }
 0x25c   : > { %9654 = vst [vmem:[#allocation23_spill] sm:$0xff] %v7807_v43  ;;  %v1269_v52 = vmul.f32 %v1265_v3, %v9658_v33  ;;  %v1273_v40 = vmul.f32 %v1265_v3, %v9659_v26  ;;  %v1346_v4 = vsel %vm9406_vm5, %v9661_v38, %v9660_v22  ;;  %v1271_v60 = vmul.f32 %v1265_v3, %v9662_v59  ;;  %v9664_v43 = vld [vmem:[#allocation112_spill] sm:$0xff]  ;;  %v9665_v49 = vld [vmem:[#allocation110_spill] sm:$0xff] }
 0x25d   : > { %v7798_v15 = vpop.permute.xlu1 %1463  ;;  %9656 = vst [vmem:[#allocation56_spill] sm:$0xff] %v7811_v39  ;;  %v1320_v47 = vmul.f32 %v1318_v30, %v9663_v61  ;;  %v744_v56 = vadd.f32 %v9664_v43, %v524_v53  ;;  %v751_v57 = vadd.f32 %v9665_v49, %v531_v62  ;;  %v9666_v14 = vld [vmem:[#allocation50_spill] sm:$0xff]  ;;  %v750_v31 = vadd.f32 %v9668_v16, %v530_v28  ;;  %v9670_v38 = vld [vmem:[#allocation108_spill] sm:$0xff]  ;;  %v9672_v53 = vld [vmem:[#allocation29_spill] sm:$0xff] }
 0x25e   : > { %9651 = vst [vmem:[#allocation22_spill] sm:$0xff] %v7798_v15  ;;  %v1322_v39 = vmul.f32 %v1318_v30, %v9666_v14  ;;  %v9667_v15 = vld [vmem:[#allocation109_spill] sm:$0xff]  ;;  %v7830_v51 = vadd.f32 %v1216_v20, %v7661_v35  ;;  %v1324_v22 = vmul.f32 %v1318_v30, %v9669_v27  ;;  %v1326_v3 = vmul.f32 %v1318_v30, %v9670_v38  ;;  %v9675_v20 = vld [vmem:[#allocation32_spill] sm:$0xff] }
 0x25f   : > { %v745_v21 = vadd.f32 %v9667_v15, %v525_v42  ;;  %v1371_v8 = vrot.slane %v1346_v4, %v6782_v25  ;;  %v1181_v62 = vsel %vm1180_vm2, %v9672_v53, %v9671_v23  ;;  %v7839_v43 = vadd.f32 %v1267_v6, %v7681_v29  ;;  %v9676_v28 = vld [vmem:[#allocation33_spill] sm:$0xff]  ;;  %v9677_v6 = vld [vmem:[#allocation19_spill] sm:$0xff] }
 0x260   : > { %v7842_v15 = vadd.f32 %v1273_v40, %v7687_v19  ;;  %v7845_v35 = vadd.f32 %v1269_v52, %v7684_v46  ;;  %v7848_v16 = vadd.f32 %v1218_v36, %v7671_v48  ;;  %v7851_v30 = vadd.f32 %v1271_v60, %v7690_v7  ;;  %v9678_v19 = vld [vmem:[#allocation21_spill] sm:$0xff]  ;;  %v9682_v53 = vld [vmem:[#allocation35_spill] sm:$0xff] }
 0x261   : > { %v1502_v9 = vpop.permute.xlu1 %1501  ;;  %v956_v42 = vadd.f32 %v9675_v20, %v744_v56  ;;  %v963_v23 = vadd.f32 %v9676_v28, %v751_v57  ;;  %v1328_v29 = vadd.f32 %v1320_v47, %v7693_v24  ;;  %v957_v49 = vadd.f32 %v9677_v6, %v745_v21  ;;  %v9679_v7 = vld [vmem:[#allocation53_spill] sm:$0xff]  ;;  %v9680_v24 = vld [vmem:[#allocation83_spill] sm:$0xff]  ;;  %v9681_v21 = vld [vmem:[#allocation88_spill] sm:$0xff] }
 0x262   : > { %9673 = vst [vmem:[#allocation75_spill] sm:$0xff] %v7842_v15  ;;  %9674 = vst [vmem:[#allocation30_spill] sm:$0xff] %v7851_v30  ;;  %v962_v40 = vadd.f32 %v9678_v19, %v750_v31  ;;  %v1208_v46 = vrot.slane %v1181_v62, %v6782_v25  ;;  %v7861_v48 = vadd.f32 %v1326_v3, %v7706_v13  ;;  %v7872_v31 = vpop.permute.xlu0 %1441  ;;  %v9683_v62 = vld [vmem:[#allocation98_spill] sm:$0xff]  ;;  %v9684_v13 = vld [vmem:[#allocation107_spill] sm:$0xff] }
 0x263   : > { %v1373_v36 = vmul.f32 %v1371_v8, %v9679_v7  ;;  %v7865_v60 = vadd.f32 %v1322_v39, %v7696_v2  ;;  %v7868_v57 = vadd.f32 %v1324_v22, %v7703_v0  ;;  %v1375_v47 = vmul.f32 %v1371_v8, %v9680_v24  ;;  %v9685_v39 = vld [vmem:[#allocation57_spill] sm:$0xff]  ;;  %v9686_v0 = vld [vmem:[#allocation58_spill] sm:$0xff] }
 0x264   : > { %v1379_v56 = vmul.f32 %v1371_v8, %v9681_v21  ;;  %v1452_v3 = vsel %vm9409_vm14, %v7768_v10, %v9684_v13  ;;  %v1175_v2 = vadd.f32 %v7719_v34, %v963_v23  ;;  %v1377_v20 = vmul.f32 %v1371_v8, %v9685_v39  ;;  %v9687_v22 = vld [vmem:[#allocation90_spill] sm:$0xff]  ;;  %v9689_v34 = vld [vmem:[#allocation36_spill] sm:$0xff]  ;;  %v9690_v23 = vld [vmem:[#allocation93_spill] sm:$0xff] }
 0x265   : > { %v1504_v4 = vpop.permute.xlu1 %1503  ;;  %v1234_v28 = vsel %vm1233_vm3, %v9687_v22, %v9686_v0  ;;  %v1168_v19 = vadd.f32 %v1160_v54, %v956_v42  ;;  %v9688_v15 = vld [vmem:[#allocation62_spill] sm:$0xff]  ;;  %v1213_v30 = vmul.f32 %v1208_v46, %v9645_v50  ;;  %v1219_v10 = vmul.f32 %v1208_v46, %v9646_v41  ;;  %v9691_v41 = vld [vmem:[#allocation60_spill] sm:$0xff]  ;;  %v9692_v42 = vld [vmem:[#allocation95_spill] sm:$0xff] }
 0x266   : > { %v1505_v52 = vsel %vm1498_vm1, %v1502_v9, %v1504_v4  ;;  %v1399_v9 = vsel %vm9410_vm15, %v9683_v62, %v9682_v53  ;;  %v1169_v53 = vadd.f32 %v9688_v15, %v957_v49  ;;  %v1174_v62 = vadd.f32 %v1166_v63, %v962_v40  ;;  %v9693_v40 = vld [vmem:[#allocation84_spill] sm:$0xff] }
 0x267   : > { %v7886_v4 = vrot.slane %v1505_v52, %v6782_v25  ;;  %v1287_v8 = vsel %vm9411_vm4, %v9690_v23, %v9689_v34  ;;  %v7897_v13 = vrot.slane %v1399_v9, %v6782_v25  ;;  %v7900_v52 = vrot.slane %v1452_v3, %v6782_v25 }
 0x268   : > { %v1215_v0 = vmul.f32 %v1208_v46, %v9653_v37  ;;  %v1261_v54 = vrot.slane %v1234_v28, %v6782_v25  ;;  %v1381_v15 = vadd.f32 %v1373_v36, %v1169_v53  ;;  %v7905_v63 = vadd.f32 %v1375_v47, %v7727_v32  ;;  %v7917_v37 = vpop.permute.xlu0 %1494  ;;  %v9694_v47 = vld [vmem:[#allocation37_spill] sm:$0xff]  ;;  %v9695_v53 = vld [vmem:[#allocation79_spill] sm:$0xff] }
 0x269   : > { %v7888_v6 = vpop.permute.xlu1 %1520  ;;  %v7908_v50 = vadd.f32 %v1377_v20, %v7735_v17  ;;  %v1340_v49 = vsel %vm9406_vm5, %v9692_v42, %v9691_v41  ;;  %v1532_v9 = vmul.f32 %v7886_v4, %v9693_v40  ;;  %v7915_v22 = vadd.f32 %v1379_v56, %v1175_v2  ;;  %v9696_v56 = vld [vmem:[#allocation105_spill] sm:$0xff] }
 0x26a   : > { %v1217_v36 = vmul.f32 %v1208_v46, %v9655_v1  ;;  %v7921_v32 = vadd.f32 %v1213_v30, %v7741_v55  ;;  %v1314_v17 = vrot.slane %v1287_v8, %v6782_v25  ;;  %v7927_v28 = vadd.f32 %v1219_v10, %v7752_v5  ;;  %v9697_v8 = vld [vmem:[#allocation86_spill] sm:$0xff] }
 0x26b   : > { %v1426_v34 = vmul.f32 %v7897_v13, %v9695_v53  ;;  %v1479_v2 = vmul.f32 %v7900_v52, %v9696_v56  ;;  %v1266_v1 = vmul.f32 %v1261_v54, %v9657_v11  ;;  %v1272_v55 = vmul.f32 %v1261_v54, %v9659_v26 }
 0x26c   : > { %v1367_v30 = vrot.slane %v1340_v49, %v6782_v25  ;;  %v7938_v46 = vadd.f32 %v1215_v0, %v7744_v18  ;;  %v1268_v5 = vmul.f32 %v1261_v54, %v9658_v33  ;;  %v1270_v10 = vmul.f32 %v1261_v54, %v9662_v59  ;;  %v7954_v54 = vpop.permute.xlu0 %1547 }
 0x26d   : > { %v1555_v3 = vpop.permute.xlu1 %1554  ;;  %v1540_v42 = vadd.f32 %v1532_v9, %v1328_v29  ;;  %v1321_v11 = vmul.f32 %v1314_v17, %v9666_v14  ;;  %v1323_v26 = vmul.f32 %v1314_v17, %v9669_v27  ;;  %v1325_v49 = vmul.f32 %v1314_v17, %v9670_v38 }
 0x26e   : > { %v1558_v20 = vsel %vm1551_vm13, %v1555_v3, %v9694_v47  ;;  %v1319_v47 = vmul.f32 %v1314_v17, %v9663_v61  ;;  %v1434_v18 = vadd.f32 %v1426_v34, %v7814_v58  ;;  %v1487_v0 = vadd.f32 %v1479_v2, %v7839_v43  ;;  %v9699_v43 = vld [vmem:[#allocation42_spill] sm:$0xff]  ;;  %v9702_v17 = vld [vmem:[#allocation64_spill] sm:$0xff] }
 0x26f   : > { %v1583_v23 = vrot.slane %v1558_v20, %v6782_v25  ;;  %v7952_v59 = vadd.f32 %v1217_v36, %v7749_v12  ;;  %v7957_v29 = vadd.f32 %v1266_v1, %v7757_v44  ;;  %v7960_v61 = vadd.f32 %v1272_v55, %v7771_v45  ;;  %v9700_v12 = vld [vmem:[#allocation34_spill] sm:$0xff]  ;;  %v9703_v44 = vld [vmem:[#allocation71_spill] sm:$0xff] }
 0x270   : > { %v1372_v27 = vmul.f32 %v1367_v30, %v9679_v7  ;;  %v1378_v14 = vmul.f32 %v1367_v30, %v9681_v21  ;;  %v1609_v58 = vadd.f32 %v1540_v42, %v1487_v0  ;;  %v7968_v36 = vadd.f32 %v1270_v10, %v9700_v12  ;;  %v9705_v45 = vld [vmem:[#allocation43_spill] sm:$0xff]  ;;  %v9706_v7 = vld [vmem:[#allocation49_spill] sm:$0xff] }
 0x271   : > { %v1585_v41 = vmul.f32 %v1583_v23, %v9697_v8  ;;  %v7943_v3 = vpop.permute.xlu1 %1569  ;;  %v7971_v20 = vadd.f32 %v1319_v47, %v9702_v17  ;;  %v7974_v34 = vadd.f32 %v1325_v49, %v9703_v44  ;;  %v7977_v2 = vadd.f32 %v1321_v11, %v9705_v45  ;;  %v9711_v49 = vld [vmem:[#allocation87_spill] sm:$0xff]  ;;  %v9718_v44 = vld [vmem:[#allocation82_spill] sm:$0xff] }
 0x272   : > { %9698 = vst [vmem:[#allocation45_spill] sm:$0xff] %v7943_v3  ;;  %9701 = vst [vmem:[#allocation66_spill] sm:$0xff] %v7968_v36  ;;  %v7980_v21 = vadd.f32 %v1323_v26, %v9706_v7  ;;  %v1374_v1 = vmul.f32 %v1367_v30, %v9680_v24  ;;  %v1376_v55 = vmul.f32 %v1367_v30, %v9685_v39  ;;  %v9712_v0 = vld [vmem:[#allocation39_spill] sm:$0xff]  ;;  %v9714_v26 = vld [vmem:[#allocation41_spill] sm:$0xff] }
 0x273   : > { %v1593_v33 = vadd.f32 %v1585_v41, %v1381_v15  ;;  %v7965_v15 = vadd.f32 %v1268_v5, %v9699_v43  ;;  %9704 = vst [vmem:[#allocation47_spill] sm:$0xff] %v7974_v34  ;;  %v9708_v5 = vld [vmem:[#allocation80_spill] sm:$0xff]  ;;  %v7986_v42 = vadd.f32 %v1372_v27, %v1168_v19  ;;  %v7988_v47 = vadd.f32 %v1378_v14, %v1174_v62 }
 0x274   : > { %9707 = vst [vmem:[#allocation24_spill] sm:$0xff] %v7980_v21  ;;  %v1428_v10 = vmul.f32 %v7897_v13, %v9708_v5  ;;  %v1591_v11 = vmul.f32 %v1583_v23, %v9712_v0  ;;  %v1432_v43 = vmul.f32 %v7897_v13, %v9714_v26  ;;  %v9715_v24 = vld [vmem:[#allocation28_spill] sm:$0xff]  ;;  %v1481_v45 = vmul.f32 %v7900_v52, %v9718_v44 }
 0x275   : > { %v1601_v38 = vadd.f32 %v1593_v33, %v1434_v18  ;;  %v1389_v9 = vpop.permute.xlu1 %1388  ;;  %9709 = vst [vmem:[#allocation51_spill] sm:$0xff] %v7986_v42  ;;  %9710 = vst [vmem:[#allocation69_spill] sm:$0xff] %v7988_v47  ;;  %v1587_v18 = vmul.f32 %v1583_v23, %v9711_v49  ;;  %v7992_v33 = vpop.permute.xlu0 %1630  ;;  %v1534_v39 = vmul.f32 %v7886_v4, %v9715_v24  ;;  %v9716_v30 = vld [vmem:[#allocation20_spill] sm:$0xff] }
 0x276   : > { %9713 = vst [vmem:[#allocation89_spill] sm:$0xff] %v7992_v33  ;;  %v1536_v12 = vmul.f32 %v7886_v4, %v9716_v30  ;;  %v9717_v62 = vld [vmem:[#allocation100_spill] sm:$0xff]  ;;  %v1436_v47 = vadd.f32 %v1428_v10, %v7830_v51  ;;  %v1599_v21 = vadd.f32 %v1591_v11, %v7915_v22  ;;  %v1489_v11 = vadd.f32 %v1481_v45, %v7845_v35 }
 0x277   : > { %v1617_v41 = vadd.f32 %v1609_v58, %v1601_v38  ;;  %v1430_v14 = vmul.f32 %v7897_v13, %v9717_v62  ;;  %v1538_v38 = vmul.f32 %v7886_v4, %v7888_v6  ;;  %v1589_v58 = vmul.f32 %v1583_v23, %v7943_v3  ;;  %v9719_v42 = vld [vmem:[#allocation40_spill] sm:$0xff] }
 0x278   : > { %v1595_v4 = vadd.f32 %v1587_v18, %v7905_v63  ;;  %v9721_v23 = vld [vmem:[#allocation56_spill] sm:$0xff]  ;;  %v1542_v34 = vadd.f32 %v1534_v39, %v7865_v60  ;;  %v1544_v0 = vadd.f32 %v1536_v12, %v7868_v57  ;;  %v9723_v63 = vld [vmem:[#allocation38_spill] sm:$0xff]  ;;  %v9725_v39 = vld [vmem:[#allocation75_spill] sm:$0xff] }
 0x279   : > { %v1649_v19 = vadd.f32 %v7992_v33, %v1617_v41  ;;  %v1391_v27 = vpop.permute.xlu1 %1390  ;;  %v1485_v41 = vmul.f32 %v7900_v52, %v9719_v42  ;;  %v9720_v33 = vld [vmem:[#allocation22_spill] sm:$0xff]  ;;  %v1440_v36 = vadd.f32 %v1432_v43, %v9721_v23  ;;  %v1546_v51 = vadd.f32 %v1538_v38, %v7861_v48  ;;  %v9727_v23 = vld [vmem:[#allocation45_spill] sm:$0xff] }
 0x27a   : > { %v1393_v17 = vsel %vm9410_vm15, %v1389_v9, %v1391_v27  ;;  %v1483_v13 = vmul.f32 %v7900_v52, %v9720_v33  ;;  %v1597_v10 = vadd.f32 %v1589_v58, %v7908_v50  ;;  %v1382_v18 = vadd.f32 %v1374_v1, %v9723_v63  ;;  %v9724_v43 = vld [vmem:[#allocation30_spill] sm:$0xff] }
 0x27b   : > { %vm1657_vm5 = vcmp.gt.f32.partialorder %v1649_v19, 0.0  ;;  %v1665_v7 = vmul.f32 0.05, %v1649_v19  ;;  %v1420_v9 = vrot.slane %v1393_v17, %v6782_v25  ;;  %v1438_v60 = vadd.f32 %v1430_v14, %v7848_v16  ;;  %v9726_v17 = vld [vmem:[#allocation23_spill] sm:$0xff] }
 0x27c   : > { %v1491_v57 = vadd.f32 %v1483_v13, %v9724_v43  ;;  %v1493_v48 = vadd.f32 %v1485_v41, %v9725_v39  ;;  %v1607_v12 = vadd.f32 %v1599_v21, %v1440_v36  ;;  %v1603_v50 = vadd.f32 %v1595_v4, %v1436_v47  ;;  %v9732_v63 = vld [vmem:[#allocation51_spill] sm:$0xff] }
 0x27d   : > { %v1444_v27 = vpop.permute.xlu1 %1443  ;;  %v1673_v3 = vsel %vm1657_vm5, %v1649_v19, %v1665_v7  ;;  %v1425_v38 = vmul.f32 %v1420_v9, %v9695_v53  ;;  %v1611_v58 = vadd.f32 %v1542_v34, %v1489_v11  ;;  %v1605_v1 = vadd.f32 %v1597_v10, %v1438_v60  ;;  %v9733_v11 = vld [vmem:[#allocation69_spill] sm:$0xff] }
 0x27e   : > { %v1446_v52 = vsel %vm9409_vm14, %v7872_v31, %v1444_v27  ;;  %1709 = vrot.lane.b32.xlu1 %v1673_v3, %s9722_s30  ;;  %v1431_v31 = vmul.f32 %v1420_v9, %v9714_v26  ;;  %v1384_v3 = vadd.f32 %v1376_v55, %v9726_v17  ;;  %v1615_v7 = vadd.f32 %v1546_v51, %v1493_v48 }
 0x27f   : > { %v1473_v22 = vrot.slane %v1446_v52, %v6782_v25  ;;  %v1613_v16 = vadd.f32 %v1544_v0, %v1491_v57  ;;  %v1427_v14 = vmul.f32 %v1420_v9, %v9708_v5  ;;  %v1429_v45 = vmul.f32 %v1420_v9, %v9717_v62  ;;  %v9728_v9 = vld [vmem:[#allocation39_spill] sm:$0xff]  ;;  %v9730_v52 = vld [vmem:[#allocation66_spill] sm:$0xff] }
 0x280   : > { %v1623_v21 = vadd.f32 %v1615_v7, %v1607_v12  ;;  %v1619_v55 = vadd.f32 %v1611_v58, %v1603_v50  ;;  %v1433_v26 = vadd.f32 %v1425_v38, %v7921_v32  ;;  %v1646_v58 = vpop.permute.xlu0 %1645 }
 0x281   : > { %v1497_v19 = vpop.permute.xlu1 %1496  ;;  %v1478_v36 = vmul.f32 %v1473_v22, %v9696_v56  ;;  %v1480_v47 = vmul.f32 %v1473_v22, %v9718_v44  ;;  %v1484_v34 = vmul.f32 %v1473_v22, %v9719_v42  ;;  %v1482_v62 = vmul.f32 %v1473_v22, %v9720_v33  ;;  %v9731_v22 = vld [vmem:[#allocation24_spill] sm:$0xff] }
 0x282   : > { %v1499_v35 = vsel %vm1498_vm1, %v7917_v37, %v1497_v19  ;;  %v1439_v37 = vadd.f32 %v1431_v31, %v7927_v28  ;;  %v1435_v28 = vadd.f32 %v1427_v14, %v7938_v46  ;;  %v9729_v46 = vld [vmem:[#allocation47_spill] sm:$0xff]  ;;  %v1621_v31 = vadd.f32 %v1613_v16, %v1605_v1 }
 0x283   : > { %v1526_v53 = vrot.slane %v1499_v35, %v6782_v25  ;;  %v1486_v42 = vadd.f32 %v1478_v36, %v7957_v29  ;;  %v1488_v33 = vadd.f32 %v1480_v47, %v7965_v15 }
 0x285   : > { %v1531_v0 = vmul.f32 %v1526_v53, %v9693_v40  ;;  %v1533_v5 = vmul.f32 %v1526_v53, %v9715_v24  ;;  %v1550_v41 = vpop.permute.xlu1 %1549  ;;  %v1535_v56 = vmul.f32 %v1526_v53, %v9716_v30  ;;  %v1537_v13 = vmul.f32 %v1526_v53, %v7888_v6  ;;  %v9734_v53 = vld [vmem:[#allocation89_spill] sm:$0xff] }
 0x286   : > { %v1552_v44 = vsel %vm1551_vm13, %v7954_v54, %v1550_v41  ;;  %v1437_v40 = vadd.f32 %v1429_v45, %v7952_v59  ;;  %v1492_v24 = vadd.f32 %v1484_v34, %v7960_v61  ;;  %v1490_v61 = vadd.f32 %v1482_v62, %v9730_v52 }
 0x287   : > { %v1579_v32 = vrot.slane %v1552_v44, %v6782_v25  ;;  %v1539_v4 = vadd.f32 %v1531_v0, %v7971_v20  ;;  %v1541_v30 = vadd.f32 %v1533_v5, %v7977_v2  ;;  %v1545_v10 = vadd.f32 %v1537_v13, %v9729_v46 }
 0x288   : > { %v1543_v20 = vadd.f32 %v1535_v56, %v9731_v22 }
 0x289   : > { %v1584_v6 = vmul.f32 %v1579_v32, %v9697_v8  ;;  %v1586_v54 = vmul.f32 %v1579_v32, %v9711_v49  ;;  %v1588_v29 = vmul.f32 %v1579_v32, %v9727_v23  ;;  %v1590_v27 = vmul.f32 %v1579_v32, %v9728_v9  ;;  %v1636_v51 = vpop.permute.xlu1 %1635 }
 0x28a   : > { %v1651_v59 = vadd.f32 %v1636_v51, %v1619_v55  ;;  %v1610_v43 = vadd.f32 %v1541_v30, %v1488_v33  ;;  %v1608_v57 = vadd.f32 %v1539_v4, %v1486_v42  ;;  %v1612_v7 = vadd.f32 %v1543_v20, %v1490_v61 }
 0x28b   : > { %v1592_v15 = vadd.f32 %v1584_v6, %v9732_v63  ;;  %v1598_v2 = vadd.f32 %v1590_v27, %v9733_v11  ;;  %v1594_v60 = vadd.f32 %v1586_v54, %v1382_v18  ;;  %v1596_v8 = vadd.f32 %v1588_v29, %v1384_v3 }
 0x28c   : > { %vm1659_vm13 = vcmp.gt.f32.partialorder %v1651_v59, 0.0  ;;  %v1667_v49 = vmul.f32 0.05, %v1651_v59  ;;  %v1614_v14 = vadd.f32 %v1545_v10, %v1492_v24  ;;  %v1655_v18 = vadd.f32 %v1646_v58, %v1623_v21 }
 0x28d   : > { %v1602_v39 = vadd.f32 %v1594_v60, %v1435_v28  ;;  %v1604_v48 = vadd.f32 %v1596_v8, %v1437_v40  ;;  %v1641_v12 = vpop.permute.xlu1 %1640  ;;  %v1600_v50 = vadd.f32 %v1592_v15, %v1433_v26  ;;  %v1606_v38 = vadd.f32 %v1598_v2, %v1439_v37 }
 0x28e   : > { %v1675_v19 = vsel %vm1659_vm13, %v1651_v59, %v1667_v49  ;;  %v1653_v3 = vadd.f32 %v1641_v12, %v1621_v31  ;;  %v1671_v1 = vmul.f32 0.05, %v1655_v18  ;;  %vm1663_vm13 = vcmp.gt.f32.partialorder %v1655_v18, 0.0 }
 0x28f   : > { %v1618_v17 = vadd.f32 %v1610_v43, %v1602_v39  ;;  %1711 = vrot.lane.b32.xlu0 %v1675_v19, %s9722_s30  ;;  %v1616_v35 = vadd.f32 %v1608_v57, %v1600_v50  ;;  %v1620_v36 = vadd.f32 %v1612_v7, %v1604_v48  ;;  %v1622_v34 = vadd.f32 %v1614_v14, %v1606_v38 }
 0x290   : > { %v1669_v16 = vmul.f32 0.05, %v1653_v3  ;;  %vm1661_vm14 = vcmp.gt.f32.partialorder %v1653_v3, 0.0  ;;  %v1679_v21 = vsel %vm1663_vm13, %v1655_v18, %v1671_v1 }
 0x291   : > { %v1650_v45 = vadd.f32 %v1636_v51, %v1618_v17  ;;  %v1648_v47 = vadd.f32 %v9734_v53, %v1616_v35  ;;  %v1652_v37 = vadd.f32 %v1641_v12, %v1620_v36  ;;  %v1654_v41 = vadd.f32 %v1646_v58, %v1622_v34 }
 0x292   : > { %v1677_v62 = vsel %vm1661_vm14, %v1653_v3, %v1669_v16 }
 0x293   : > { %vm1656_vm1 = vcmp.gt.f32.partialorder %v1648_v47, 0.0  ;;  %v1664_v55 = vmul.f32 0.05, %v1648_v47  ;;  %vm1658_vm5 = vcmp.gt.f32.partialorder %v1650_v45, 0.0  ;;  %v1666_v26 = vmul.f32 0.05, %v1650_v45 }
 0x294   : > { %v1670_v56 = vmul.f32 0.05, %v1654_v41  ;;  %v1668_v13 = vmul.f32 0.05, %v1652_v37  ;;  %vm1662_vm15 = vcmp.gt.f32.partialorder %v1654_v41, 0.0  ;;  %vm1660_vm4 = vcmp.gt.f32.partialorder %v1652_v37, 0.0 }
 0x295   : > { %v1672_v0 = vsel %vm1656_vm1, %v1648_v47, %v1664_v55  ;;  %v1674_v5 = vsel %vm1658_vm5, %v1650_v45, %v1666_v26  ;;  %vm1696_vm1 = vcmask 1047680  }
 0x296   : > { %1684 = vrot.lane.b32.xlu1 %v1672_v0, %s9722_s30  ;;  %1686 = vrot.lane.b32.xlu0 %v1674_v5, %s9722_s30  ;;  %v1678_v44 = vsel %vm1662_vm15, %v1654_v41, %v1670_v56  ;;  %v1676_v42 = vsel %vm1660_vm4, %v1652_v37, %v1668_v13  ;;  %v2714_v41 = vld [vmem:[%s9282_s3 + $0x8] sm:$0xff] }
 0x297   : > { %2956 = vmatprep.mubr.f32.mxu0 %v2714_v41 }
 0x29a   : > { %1715 = vrot.lane.b32.xlu0 %v1679_v21, %s9722_s30  ;;  %1713 = vrot.lane.b32.xlu1 %v1677_v62, %s9722_s30 }
 0x29e   : > { %1690 = vrot.lane.b32.xlu0 %v1678_v44, %s9722_s30  ;;  %1688 = vrot.lane.b32.xlu1 %v1676_v42, %s9722_s30 }
 0x2f0   : > { %v1710_v32 = vpop.permute.xlu1 %1709 }
 0x2f1   : > { %1721 = vst.msk [vmem:[#allocation3 + $0x10] sm:$0xff] %vm1696_vm1, %v1710_v32 }
 0x2f2   : > { %1722 = vst.msk [vmem:[#allocation3 + $0x18] sm:$0xff] %vm402_vm0, %v1710_v32 }
 0x2f8   : > { %v1731_v28 = vld [vmem:[#allocation3 + $0x10] sm:$0xff] }
 0x2f9   : > { %v1732_v40 = vld [vmem:[#allocation3 + $0x18] sm:$0xff] }
 0x2fa   : > { %v8078_v24 = vpack.i.bf16 %v1732_v40, %v1731_v28 }
 0x2fc   : > { %5137 = vrot.lane.b32.xlu1 %v8078_v24, %s9735_s14 }
 0x301   : > { %v1712_v4 = vpop.permute.xlu0 %1711 }
 0x302   : > { %1723 = vst.msk [vmem:[#allocation3 + $0x30] sm:$0xff] %vm1696_vm1, %v1712_v4 }
 0x303   : > { %1724 = vst.msk [vmem:[#allocation3 + $0x38] sm:$0xff] %vm402_vm0, %v1712_v4 }
 0x308   : > { %v1687_v33 = vpop.permute.xlu0 %1686  ;;  %v1685_v30 = vpop.permute.xlu1 %1684 }
 0x309   : > { %v1735_v6 = vld [vmem:[#allocation3 + $0x30] sm:$0xff]  ;;  %1699 = vst.msk [vmem:[#allocation3 + $0x20] sm:$0xff] %vm1696_vm1, %v1687_v33  ;;  %1697 = vst.msk [vmem:[#allocation3] sm:$0xff] %vm1696_vm1, %v1685_v30 }
 0x30a   : > { %v1736_v54 = vld [vmem:[#allocation3 + $0x38] sm:$0xff]  ;;  %1700 = vst.msk [vmem:[#allocation3 + $0x28] sm:$0xff] %vm402_vm0, %v1687_v33  ;;  %1698 = vst.msk [vmem:[#allocation3 + $0x8] sm:$0xff] %vm402_vm0, %v1685_v30 }
 0x30b   : > { %v8088_v23 = vpack.i.bf16 %v1736_v54, %v1735_v6 }
 0x30c   : > { %v1716_v29 = vpop.permute.xlu0 %1715  ;;  %v1714_v9 = vpop.permute.xlu1 %1713 }
 0x30d   : > { %5142 = vrot.lane.b32.xlu0 %v8088_v23, %s9735_s14  ;;  %1727 = vst.msk [vmem:[#allocation3 + $0x70] sm:$0xff] %vm1696_vm1, %v1716_v29  ;;  %1725 = vst.msk [vmem:[#allocation3 + $0x50] sm:$0xff] %vm1696_vm1, %v1714_v9 }
 0x30e   : > { %1728 = vst.msk [vmem:[#allocation3 + $0x78] sm:$0xff] %vm402_vm0, %v1716_v29  ;;  %1726 = vst.msk [vmem:[#allocation3 + $0x58] sm:$0xff] %vm402_vm0, %v1714_v9 }
 0x310   : > { %v1733_v27 = vld [vmem:[#allocation3 + $0x20] sm:$0xff]  ;;  %v1691_v10 = vpop.permute.xlu0 %1690  ;;  %v1689_v59 = vpop.permute.xlu1 %1688 }
 0x311   : > { %v1734_v51 = vld [vmem:[#allocation3 + $0x28] sm:$0xff]  ;;  %v1729_v46 = vld [vmem:[#allocation3] sm:$0xff]  ;;  %1703 = vst.msk [vmem:[#allocation3 + $0x60] sm:$0xff] %vm1696_vm1, %v1691_v10  ;;  %1701 = vst.msk [vmem:[#allocation3 + $0x40] sm:$0xff] %vm1696_vm1, %v1689_v59 }
 0x312   : > { %v1730_v52 = vld [vmem:[#allocation3 + $0x8] sm:$0xff]  ;;  %1704 = vst.msk [vmem:[#allocation3 + $0x68] sm:$0xff] %vm402_vm0, %v1691_v10  ;;  %1702 = vst.msk [vmem:[#allocation3 + $0x48] sm:$0xff] %vm402_vm0, %v1689_v59  ;;  %v8100_v61 = vpack.i.bf16 %v1734_v51, %v1733_v27 }
 0x313   : > { %v8102_v22 = vpack.i.bf16 %v1730_v52, %v1729_v46 }
 0x314   : > { %5152 = vrot.lane.b32.xlu0 %v8100_v61, %s9735_s14  ;;  %v1743_v20 = vld [vmem:[#allocation3 + $0x70] sm:$0xff] }
 0x315   : > { %v1744_v63 = vld [vmem:[#allocation3 + $0x78] sm:$0xff]  ;;  %v1739_v15 = vld [vmem:[#allocation3 + $0x50] sm:$0xff]  ;;  %5147 = vrot.lane.b32.xlu1 %v8102_v22, %s9735_s14 }
 0x316   : > { %v1740_v11 = vld [vmem:[#allocation3 + $0x58] sm:$0xff]  ;;  %v8108_v2 = vpack.i.bf16 %v1744_v63, %v1743_v20 }
 0x317   : > { %v8110_v60 = vpack.i.bf16 %v1740_v11, %v1739_v15 }
 0x318   : > { %5162 = vrot.lane.b32.xlu0 %v8108_v2, %s9735_s14  ;;  %v1741_v8 = vld [vmem:[#allocation3 + $0x60] sm:$0xff] }
 0x319   : > { %v1742_v43 = vld [vmem:[#allocation3 + $0x68] sm:$0xff]  ;;  %v1737_v49 = vld [vmem:[#allocation3 + $0x40] sm:$0xff]  ;;  %5157 = vrot.lane.b32.xlu1 %v8110_v60, %s9735_s14 }
 0x31a   : > { %v1738_v57 = vld [vmem:[#allocation3 + $0x48] sm:$0xff]  ;;  %v8116_v39 = vpack.i.bf16 %v1742_v43, %v1741_v8 }
 0x31b   : > { %v8118_v48 = vpack.i.bf16 %v1738_v57, %v1737_v49 }
 0x31c   : > { %5172 = vrot.lane.b32.xlu0 %v8116_v39, %s9735_s14 }
 0x31d   : > { %5167 = vrot.lane.b32.xlu1 %v8118_v48, %s9735_s14  ;;  %s9740_s14 = smov 115  }
 0x320   : > { %5182 = vrot.lane.b32.xlu0 %v8088_v23, %s9736_s12 }
 0x321   : > { %5177 = vrot.lane.b32.xlu1 %v8078_v24, %s9736_s12 }
 0x324   : > { %5192 = vrot.lane.b32.xlu0 %v8100_v61, %s9736_s12 }
 0x325   : > { %5187 = vrot.lane.b32.xlu1 %v8102_v22, %s9736_s12 }
 0x328   : > { %5202 = vrot.lane.b32.xlu0 %v8108_v2, %s9736_s12 }
 0x329   : > { %5197 = vrot.lane.b32.xlu1 %v8110_v60, %s9736_s12 }
 0x32c   : > { %5212 = vrot.lane.b32.xlu0 %v8116_v39, %s9736_s12 }
 0x32d   : > { %5207 = vrot.lane.b32.xlu1 %v8118_v48, %s9736_s12  ;;  %s9741_s12 = smov 114  }
 0x330   : > { %5222 = vrot.lane.b32.xlu0 %v8088_v23, %s9737_s25 }
 0x331   : > { %5217 = vrot.lane.b32.xlu1 %v8078_v24, %s9737_s25 }
 0x334   : > { %5232 = vrot.lane.b32.xlu0 %v8100_v61, %s9737_s25 }
 0x335   : > { %5227 = vrot.lane.b32.xlu1 %v8102_v22, %s9737_s25 }
 0x338   : > { %5242 = vrot.lane.b32.xlu0 %v8108_v2, %s9737_s25 }
 0x339   : > { %5237 = vrot.lane.b32.xlu1 %v8110_v60, %s9737_s25 }
 0x33c   : > { %5252 = vrot.lane.b32.xlu0 %v8116_v39, %s9737_s25 }
 0x33d   : > { %5247 = vrot.lane.b32.xlu1 %v8118_v48, %s9737_s25 }
 0x340   : > { %5262 = vrot.lane.b32.xlu0 %v8088_v23, %s9738_s23 }
 0x341   : > { %5257 = vrot.lane.b32.xlu1 %v8078_v24, %s9738_s23 }
 0x344   : > { %5272 = vrot.lane.b32.xlu0 %v8100_v61, %s9738_s23 }
 0x345   : > { %5267 = vrot.lane.b32.xlu1 %v8102_v22, %s9738_s23 }
 0x348   : > { %5282 = vrot.lane.b32.xlu0 %v8108_v2, %s9738_s23 }
 0x349   : > { %5277 = vrot.lane.b32.xlu1 %v8110_v60, %s9738_s23 }
 0x34c   : > { %5292 = vrot.lane.b32.xlu0 %v8116_v39, %s9738_s23 }
 0x34d   : > { %5287 = vrot.lane.b32.xlu1 %v8118_v48, %s9738_s23 }
 0x350   : > { %5302 = vrot.lane.b32.xlu0 %v8088_v23, %s9739_s13 }
 0x351   : > { %5297 = vrot.lane.b32.xlu1 %v8078_v24, %s9739_s13 }
 0x354   : > { %5312 = vrot.lane.b32.xlu0 %v8100_v61, %s9739_s13 }
 0x355   : > { %5307 = vrot.lane.b32.xlu1 %v8102_v22, %s9739_s13 }
 0x358   : > { %5322 = vrot.lane.b32.xlu0 %v8108_v2, %s9739_s13 }
 0x359   : > { %5317 = vrot.lane.b32.xlu1 %v8110_v60, %s9739_s13 }
 0x35c   : > { %5332 = vrot.lane.b32.xlu0 %v8116_v39, %s9739_s13 }
 0x35d   : > { %5327 = vrot.lane.b32.xlu1 %v8118_v48, %s9739_s13 }
 0x360   : > { %5342 = vrot.lane.b32.xlu0 %v8088_v23, %s9740_s14 }
 0x361   : > { %5337 = vrot.lane.b32.xlu1 %v8078_v24, %s9740_s14 }
 0x364   : > { %5352 = vrot.lane.b32.xlu0 %v8100_v61, %s9740_s14 }
 0x365   : > { %5347 = vrot.lane.b32.xlu1 %v8102_v22, %s9740_s14 }
 0x368   : > { %5362 = vrot.lane.b32.xlu0 %v8108_v2, %s9740_s14 }
 0x369   : > { %5357 = vrot.lane.b32.xlu1 %v8110_v60, %s9740_s14 }
 0x36c   : > { %5372 = vrot.lane.b32.xlu0 %v8116_v39, %s9740_s14 }
 0x36d   : > { %5367 = vrot.lane.b32.xlu1 %v8118_v48, %s9740_s14 }
 0x36e   : > { %v5138_v12 = vpop.permute.xlu1 %5137 }
 0x36f   : > { %v5140_v50 = vunpack.i.h.bf16 %v5138_v12  ;;  %v5139_v38 = vunpack.i.l.bf16 %v5138_v12 }
 0x370   : > { %5382 = vrot.lane.b32.xlu0 %v8088_v23, %s9741_s12 }
 0x371   : > { %5377 = vrot.lane.b32.xlu1 %v8078_v24, %s9741_s12  ;;  %v1805_v17 = vsel %vm597_vm6, %v5139_v38, %v5140_v50 }
 0x374   : > { %5392 = vrot.lane.b32.xlu0 %v8100_v61, %s9741_s12 }
 0x375   : > { %5387 = vrot.lane.b32.xlu1 %v8102_v22, %s9741_s12 }
 0x378   : > { %5402 = vrot.lane.b32.xlu0 %v8108_v2, %s9741_s12 }
 0x379   : > { %5397 = vrot.lane.b32.xlu1 %v8110_v60, %s9741_s12 }
 0x37c   : > { %5412 = vrot.lane.b32.xlu0 %v8116_v39, %s9741_s12 }
 0x37d   : > { %5407 = vrot.lane.b32.xlu1 %v8118_v48, %s9741_s12 }
 0x37f   : > { %v5143_v31 = vpop.permute.xlu0 %5142 }
 0x380   : > { %v5145_v19 = vunpack.i.h.bf16 %v5143_v31  ;;  %v5144_v58 = vunpack.i.l.bf16 %v5143_v31  ;;  %5422 = vrot.lane.b32.xlu0 %v8088_v23, %s9742_s26 }
 0x381   : > { %5417 = vrot.lane.b32.xlu1 %v8078_v24, %s9742_s26 }
 0x382   : > { %v1806_v7 = vsel %vm597_vm6, %v5144_v58, %v5145_v19 }
 0x383   : > { %v4704_v35 = vpack.c.bf16 %v1806_v7, %v1805_v17 }
 0x384   : > { %5432 = vrot.lane.b32.xlu0 %v8100_v61, %s9742_s26 }
 0x385   : > { %5427 = vrot.lane.b32.xlu1 %v8102_v22, %s9742_s26  ;;  %4705 = vmatprep.subr.bf16.mxu0 %v4704_v35 }
 0x386   : > { %v5153_v14 = vpop.permute.xlu0 %5152 }
 0x387   : > { %v5155_v18 = vunpack.i.h.bf16 %v5153_v14  ;;  %v5154_v3 = vunpack.i.l.bf16 %v5153_v14  ;;  %v5148_v45 = vpop.permute.xlu1 %5147 }
 0x388   : > { %v5150_v36 = vunpack.i.h.bf16 %v5148_v45  ;;  %v5149_v53 = vunpack.i.l.bf16 %v5148_v45  ;;  %5442 = vrot.lane.b32.xlu0 %v8108_v2, %s9742_s26 }
 0x389   : > { %5437 = vrot.lane.b32.xlu1 %v8110_v60, %s9742_s26  ;;  %v1770_v47 = vsel %vm597_vm6, %v5154_v3, %v5155_v18 }
 0x38a   : > { %v5163_v34 = vpop.permute.xlu0 %5162  ;;  %v1769_v55 = vsel %vm597_vm6, %v5149_v53, %v5150_v36 }
 0x38b   : > { %v5165_v26 = vunpack.i.h.bf16 %v5163_v34  ;;  %v5164_v1 = vunpack.i.l.bf16 %v5163_v34  ;;  %v5158_v16 = vpop.permute.xlu1 %5157  ;;  %v4706_v37 = vpack.c.bf16 %v1770_v47, %v1769_v55 }
 0x38c   : > { %v5160_v0 = vunpack.i.h.bf16 %v5158_v16  ;;  %v5159_v5 = vunpack.i.l.bf16 %v5158_v16  ;;  %5452 = vrot.lane.b32.xlu0 %v8116_v39, %s9742_s26 }
 0x38d   : > { %5447 = vrot.lane.b32.xlu1 %v8118_v48, %s9742_s26  ;;  %4707 = vmatpush1.bf16.msra.mxu0 %v4706_v37  ;;  %v1808_v21 = vsel %vm597_vm6, %v5164_v1, %v5165_v26 }
 0x38e   : > { %v5173_v62 = vpop.permute.xlu0 %5172  ;;  %v1807_v56 = vsel %vm597_vm6, %v5159_v5, %v5160_v0 }
 0x38f   : > { %v5175_v13 = vunpack.i.h.bf16 %v5173_v62  ;;  %v5174_v44 = vunpack.i.l.bf16 %v5173_v62  ;;  %v5168_v42 = vpop.permute.xlu1 %5167  ;;  %v4708_v32 = vpack.c.bf16 %v1808_v21, %v1807_v56 }
 0x390   : > { %v5170_v28 = vunpack.i.h.bf16 %v5168_v42  ;;  %v5169_v40 = vunpack.i.l.bf16 %v5168_v42  ;;  %5462 = vrot.lane.b32.xlu0 %v8088_v23, %s9743_s18 }
 0x391   : > { %5457 = vrot.lane.b32.xlu1 %v8078_v24, %s9743_s18  ;;  %4709 = vmatprep.subr.bf16.mxu0 %v4708_v32  ;;  %v1772_v4 = vsel %vm597_vm6, %v5174_v44, %v5175_v13 }
 0x392   : > { %v5183_v33 = vpop.permute.xlu0 %5182  ;;  %v1771_v30 = vsel %vm597_vm6, %v5169_v40, %v5170_v28  ;;  %vm9749_vm6 = vcmask 924672  }
 0x393   : > { %v5185_v6 = vunpack.i.h.bf16 %v5183_v33  ;;  %v5184_v54 = vunpack.i.l.bf16 %v5183_v33  ;;  %v5178_v29 = vpop.permute.xlu1 %5177  ;;  %v4710_v9 = vpack.c.bf16 %v1772_v4, %v1771_v30  ;;  %vm9751_vm14 = vmmov %vm9749_vm6 }
 0x394   : > { %v5180_v27 = vunpack.i.h.bf16 %v5178_v29  ;;  %v5179_v51 = vunpack.i.l.bf16 %v5178_v29  ;;  %5472 = vrot.lane.b32.xlu0 %v8100_v61, %s9743_s18  ;;  %vm9752_vm15 = vmmov %vm9749_vm6 }
 0x395   : > { %5467 = vrot.lane.b32.xlu1 %v8102_v22, %s9743_s18  ;;  %4711 = vmatpush1.bf16.msra.mxu0 %v4710_v9  ;;  %v1862_v46 = vsel %vm650_vm7, %v5184_v54, %v5185_v6  ;;  %vm9753_vm4 = vmmov %vm9749_vm6 }
 0x396   : > { %v5193_v10 = vpop.permute.xlu0 %5192  ;;  %v1861_v59 = vsel %vm650_vm7, %v5179_v51, %v5180_v27  ;;  %vm9754_vm5 = vmmov %vm9753_vm4 }
 0x397   : > { %v5195_v52 = vunpack.i.h.bf16 %v5193_v10  ;;  %v5194_v20 = vunpack.i.l.bf16 %v5193_v10  ;;  %v5188_v63 = vpop.permute.xlu1 %5187  ;;  %v4712_v15 = vpack.c.bf16 %v1862_v46, %v1861_v59  ;;  %vm9756_vm13 = vmmov %vm9753_vm4 }
 0x398   : > { %v5190_v11 = vunpack.i.h.bf16 %v5188_v63  ;;  %v5189_v8 = vunpack.i.l.bf16 %v5188_v63  ;;  %5482 = vrot.lane.b32.xlu0 %v8108_v2, %s9743_s18 }
 0x399   : > { %5477 = vrot.lane.b32.xlu1 %v8110_v60, %s9743_s18  ;;  %4713 = vmatprep.subr.bf16.mxu0 %v4712_v15  ;;  %v1834_v43 = vsel %vm650_vm7, %v5194_v20, %v5195_v52 }
 0x39a   : > { %v5203_v49 = vpop.permute.xlu0 %5202  ;;  %v1833_v57 = vsel %vm650_vm7, %v5189_v8, %v5190_v11 }
 0x39b   : > { %v5205_v12 = vunpack.i.h.bf16 %v5203_v49  ;;  %v5204_v50 = vunpack.i.l.bf16 %v5203_v49  ;;  %v5198_v38 = vpop.permute.xlu1 %5197  ;;  %v4714_v31 = vpack.c.bf16 %v1834_v43, %v1833_v57 }
 0x39c   : > { %v5200_v19 = vunpack.i.h.bf16 %v5198_v38  ;;  %v5199_v58 = vunpack.i.l.bf16 %v5198_v38  ;;  %5492 = vrot.lane.b32.xlu0 %v8116_v39, %s9743_s18 }
 0x39d   : > { %5487 = vrot.lane.b32.xlu1 %v8118_v48, %s9743_s18  ;;  %4715 = vmatpush1.bf16.msra.mxu0 %v4714_v31  ;;  %v1864_v17 = vsel %vm650_vm7, %v5204_v50, %v5205_v12 }
 0x39e   : > { %v5213_v7 = vpop.permute.xlu0 %5212  ;;  %v1863_v35 = vsel %vm650_vm7, %v5199_v58, %v5200_v19 }
 0x39f   : > { %v5215_v14 = vunpack.i.h.bf16 %v5213_v7  ;;  %v5214_v18 = vunpack.i.l.bf16 %v5213_v7  ;;  %v5208_v3 = vpop.permute.xlu1 %5207  ;;  %v4716_v45 = vpack.c.bf16 %v1864_v17, %v1863_v35 }
 0x3a0   : > { %v5210_v36 = vunpack.i.h.bf16 %v5208_v3  ;;  %v5209_v53 = vunpack.i.l.bf16 %v5208_v3  ;;  %5502 = vrot.lane.b32.xlu0 %v8088_v23, %s9744_s15 }
 0x3a1   : > { %5497 = vrot.lane.b32.xlu1 %v8078_v24, %s9744_s15  ;;  %4717 = vmatprep.subr.bf16.mxu0 %v4716_v45  ;;  %v1836_v47 = vsel %vm650_vm7, %v5214_v18, %v5215_v14 }
 0x3a2   : > { %v5223_v34 = vpop.permute.xlu0 %5222  ;;  %v1835_v55 = vsel %vm650_vm7, %v5209_v53, %v5210_v36  ;;  %vm9750_vm7 = vmmov %vm9749_vm6 }
 0x3a3   : > { %v5225_v26 = vunpack.i.h.bf16 %v5223_v34  ;;  %v5224_v1 = vunpack.i.l.bf16 %v5223_v34  ;;  %v5218_v16 = vpop.permute.xlu1 %5217  ;;  %v4718_v37 = vpack.c.bf16 %v1836_v47, %v1835_v55 }
 0x3a4   : > { %v5220_v0 = vunpack.i.h.bf16 %v5218_v16  ;;  %v5219_v5 = vunpack.i.l.bf16 %v5218_v16  ;;  %5512 = vrot.lane.b32.xlu0 %v8100_v61, %s9744_s15 }
 0x3a5   : > { %5507 = vrot.lane.b32.xlu1 %v8102_v22, %s9744_s15  ;;  %4719 = vmatpush1.bf16.msra.mxu0 %v4718_v37  ;;  %v1918_v41 = vsel %vm703_vm8, %v5224_v1, %v5225_v26 }
 0x3a6   : > { %v5233_v21 = vpop.permute.xlu0 %5232  ;;  %v1917_v62 = vsel %vm703_vm8, %v5219_v5, %v5220_v0 }
 0x3a7   : > { %v5235_v56 = vunpack.i.h.bf16 %v5233_v21  ;;  %v5234_v13 = vunpack.i.l.bf16 %v5233_v21  ;;  %v5228_v44 = vpop.permute.xlu1 %5227  ;;  %v4720_v42 = vpack.c.bf16 %v1918_v41, %v1917_v62 }
 0x3a8   : > { %v5230_v32 = vunpack.i.h.bf16 %v5228_v44  ;;  %v5229_v28 = vunpack.i.l.bf16 %v5228_v44  ;;  %5522 = vrot.lane.b32.xlu0 %v8108_v2, %s9744_s15 }
 0x3a9   : > { %5517 = vrot.lane.b32.xlu1 %v8110_v60, %s9744_s15  ;;  %4721 = vmatprep.subr.bf16.mxu0 %v4720_v42  ;;  %v1890_v40 = vsel %vm703_vm8, %v5234_v13, %v5235_v56 }
 0x3aa   : > { %v5243_v4 = vpop.permute.xlu0 %5242  ;;  %v1889_v33 = vsel %vm703_vm8, %v5229_v28, %v5230_v32 }
 0x3ab   : > { %v5245_v30 = vunpack.i.h.bf16 %v5243_v4  ;;  %v5244_v6 = vunpack.i.l.bf16 %v5243_v4  ;;  %v5238_v54 = vpop.permute.xlu1 %5237  ;;  %v4722_v29 = vpack.c.bf16 %v1890_v40, %v1889_v33 }
 0x3ac   : > { %v5240_v9 = vunpack.i.h.bf16 %v5238_v54  ;;  %v5239_v27 = vunpack.i.l.bf16 %v5238_v54  ;;  %5532 = vrot.lane.b32.xlu0 %v8116_v39, %s9744_s15 }
 0x3ad   : > { %5527 = vrot.lane.b32.xlu1 %v8118_v48, %s9744_s15  ;;  %4723 = vmatpush1.bf16.msra.mxu0 %v4722_v29  ;;  %v1920_v51 = vsel %vm703_vm8, %v5244_v6, %v5245_v30 }
 0x3ae   : > { %v5253_v46 = vpop.permute.xlu0 %5252  ;;  %v1919_v10 = vsel %vm703_vm8, %v5239_v27, %v5240_v9 }
 0x3af   : > { %v5255_v59 = vunpack.i.h.bf16 %v5253_v46  ;;  %v5254_v52 = vunpack.i.l.bf16 %v5253_v46  ;;  %v5248_v20 = vpop.permute.xlu1 %5247  ;;  %v4724_v63 = vpack.c.bf16 %v1920_v51, %v1919_v10 }
 0x3b0   : > { %v5250_v15 = vunpack.i.h.bf16 %v5248_v20  ;;  %v5249_v11 = vunpack.i.l.bf16 %v5248_v20  ;;  %5542 = vrot.lane.b32.xlu0 %v8088_v23, %s9745_s16 }
 0x3b1   : > { %5537 = vrot.lane.b32.xlu1 %v8078_v24, %s9745_s16  ;;  %4725 = vmatprep.subr.bf16.mxu0 %v4724_v63  ;;  %v1892_v8 = vsel %vm703_vm8, %v5254_v52, %v5255_v59 }
 0x3b2   : > { %v5263_v43 = vpop.permute.xlu0 %5262  ;;  %v1891_v49 = vsel %vm703_vm8, %v5249_v11, %v5250_v15 }
 0x3b3   : > { %v5265_v57 = vunpack.i.h.bf16 %v5263_v43  ;;  %v5264_v12 = vunpack.i.l.bf16 %v5263_v43  ;;  %v5258_v50 = vpop.permute.xlu1 %5257  ;;  %v4726_v38 = vpack.c.bf16 %v1892_v8, %v1891_v49 }
 0x3b4   : > { %v5260_v31 = vunpack.i.h.bf16 %v5258_v50  ;;  %v5259_v19 = vunpack.i.l.bf16 %v5258_v50  ;;  %5552 = vrot.lane.b32.xlu0 %v8100_v61, %s9745_s16 }
 0x3b5   : > { %5547 = vrot.lane.b32.xlu1 %v8102_v22, %s9745_s16  ;;  %4727 = vmatpush1.bf16.msra.mxu0 %v4726_v38  ;;  %v1974_v58 = vsel %vm756_vm9, %v5264_v12, %v5265_v57 }
 0x3b6   : > { %v5273_v17 = vpop.permute.xlu0 %5272  ;;  %v1973_v7 = vsel %vm756_vm9, %v5259_v19, %v5260_v31 }
 0x3b7   : > { %v5275_v35 = vunpack.i.h.bf16 %v5273_v17  ;;  %v5274_v14 = vunpack.i.l.bf16 %v5273_v17  ;;  %v5268_v18 = vpop.permute.xlu1 %5267  ;;  %v4728_v3 = vpack.c.bf16 %v1974_v58, %v1973_v7 }
 0x3b8   : > { %v5270_v45 = vunpack.i.h.bf16 %v5268_v18  ;;  %v5269_v36 = vunpack.i.l.bf16 %v5268_v18  ;;  %5562 = vrot.lane.b32.xlu0 %v8108_v2, %s9745_s16 }
 0x3b9   : > { %5557 = vrot.lane.b32.xlu1 %v8110_v60, %s9745_s16  ;;  %4729 = vmatprep.subr.bf16.mxu0 %v4728_v3  ;;  %v1946_v53 = vsel %vm756_vm9, %v5274_v14, %v5275_v35 }
 0x3ba   : > { %v5283_v47 = vpop.permute.xlu0 %5282  ;;  %v1945_v34 = vsel %vm756_vm9, %v5269_v36, %v5270_v45 }
 0x3bb   : > { %v5285_v55 = vunpack.i.h.bf16 %v5283_v47  ;;  %v5284_v26 = vunpack.i.l.bf16 %v5283_v47  ;;  %v5278_v1 = vpop.permute.xlu1 %5277  ;;  %v4730_v16 = vpack.c.bf16 %v1946_v53, %v1945_v34 }
 0x3bc   : > { %v5280_v37 = vunpack.i.h.bf16 %v5278_v1  ;;  %v5279_v0 = vunpack.i.l.bf16 %v5278_v1  ;;  %5572 = vrot.lane.b32.xlu0 %v8116_v39, %s9745_s16 }
 0x3bd   : > { %5567 = vrot.lane.b32.xlu1 %v8118_v48, %s9745_s16  ;;  %4731 = vmatpush1.bf16.msra.mxu0 %v4730_v16  ;;  %v1976_v5 = vsel %vm756_vm9, %v5284_v26, %v5285_v55 }
 0x3be   : > { %v5293_v41 = vpop.permute.xlu0 %5292  ;;  %v1975_v21 = vsel %vm756_vm9, %v5279_v0, %v5280_v37 }
 0x3bf   : > { %v5295_v62 = vunpack.i.h.bf16 %v5293_v41  ;;  %v5294_v56 = vunpack.i.l.bf16 %v5293_v41  ;;  %v5288_v13 = vpop.permute.xlu1 %5287  ;;  %v4732_v44 = vpack.c.bf16 %v1976_v5, %v1975_v21 }
 0x3c0   : > { %v5290_v42 = vunpack.i.h.bf16 %v5288_v13  ;;  %v5289_v32 = vunpack.i.l.bf16 %v5288_v13  ;;  %5582 = vrot.lane.b32.xlu0 %v8088_v23, %s9420_s17 }
 0x3c1   : > { %5577 = vrot.lane.b32.xlu1 %v8078_v24, %s9420_s17  ;;  %4733 = vmatprep.subr.bf16.mxu0 %v4732_v44  ;;  %v1948_v28 = vsel %vm756_vm9, %v5294_v56, %v5295_v62 }
 0x3c2   : > { %v5303_v40 = vpop.permute.xlu0 %5302  ;;  %v1947_v4 = vsel %vm756_vm9, %v5289_v32, %v5290_v42 }
 0x3c3   : > { %v5305_v33 = vunpack.i.h.bf16 %v5303_v40  ;;  %v5304_v30 = vunpack.i.l.bf16 %v5303_v40  ;;  %v5298_v6 = vpop.permute.xlu1 %5297  ;;  %v4734_v54 = vpack.c.bf16 %v1948_v28, %v1947_v4 }
 0x3c4   : > { %v5300_v29 = vunpack.i.h.bf16 %v5298_v6  ;;  %v5299_v9 = vunpack.i.l.bf16 %v5298_v6  ;;  %5592 = vrot.lane.b32.xlu0 %v8100_v61, %s9420_s17 }
 0x3c5   : > { %5587 = vrot.lane.b32.xlu1 %v8102_v22, %s9420_s17  ;;  %4735 = vmatpush1.bf16.msra.mxu0 %v4734_v54  ;;  %v2030_v27 = vsel %vm809_vm10, %v5304_v30, %v5305_v33 }
 0x3c6   : > { %v5313_v51 = vpop.permute.xlu0 %5312  ;;  %v2029_v46 = vsel %vm809_vm10, %v5299_v9, %v5300_v29 }
 0x3c7   : > { %v5315_v10 = vunpack.i.h.bf16 %v5313_v51  ;;  %v5314_v59 = vunpack.i.l.bf16 %v5313_v51  ;;  %v5308_v52 = vpop.permute.xlu1 %5307  ;;  %v4736_v20 = vpack.c.bf16 %v2030_v27, %v2029_v46 }
 0x3c8   : > { %v5310_v63 = vunpack.i.h.bf16 %v5308_v52  ;;  %v5309_v15 = vunpack.i.l.bf16 %v5308_v52  ;;  %5602 = vrot.lane.b32.xlu0 %v8108_v2, %s9420_s17 }
 0x3c9   : > { %5597 = vrot.lane.b32.xlu1 %v8110_v60, %s9420_s17  ;;  %4737 = vmatprep.subr.bf16.mxu0 %v4736_v20  ;;  %v2002_v11 = vsel %vm809_vm10, %v5314_v59, %v5315_v10 }
 0x3ca   : > { %v5323_v8 = vpop.permute.xlu0 %5322  ;;  %v2001_v43 = vsel %vm809_vm10, %v5309_v15, %v5310_v63 }
 0x3cb   : > { %v5325_v49 = vunpack.i.h.bf16 %v5323_v8  ;;  %v5324_v57 = vunpack.i.l.bf16 %v5323_v8  ;;  %v5318_v12 = vpop.permute.xlu1 %5317  ;;  %v4738_v50 = vpack.c.bf16 %v2002_v11, %v2001_v43 }
 0x3cc   : > { %v5320_v38 = vunpack.i.h.bf16 %v5318_v12  ;;  %v5319_v31 = vunpack.i.l.bf16 %v5318_v12  ;;  %5612 = vrot.lane.b32.xlu0 %v8116_v39, %s9420_s17 }
 0x3cd   : > { %5607 = vrot.lane.b32.xlu1 %v8118_v48, %s9420_s17  ;;  %4739 = vmatpush1.bf16.msra.mxu0 %v4738_v50  ;;  %v2032_v19 = vsel %vm809_vm10, %v5324_v57, %v5325_v49  ;;  %s9747_s17 = smov 107  }
 0x3ce   : > { %v5333_v58 = vpop.permute.xlu0 %5332  ;;  %v2031_v17 = vsel %vm809_vm10, %v5319_v31, %v5320_v38 }
 0x3cf   : > { %v5335_v7 = vunpack.i.h.bf16 %v5333_v58  ;;  %v5334_v35 = vunpack.i.l.bf16 %v5333_v58  ;;  %v5328_v14 = vpop.permute.xlu1 %5327  ;;  %v4740_v18 = vpack.c.bf16 %v2032_v19, %v2031_v17 }
 0x3d0   : > { %v5330_v3 = vunpack.i.h.bf16 %v5328_v14  ;;  %v5329_v45 = vunpack.i.l.bf16 %v5328_v14  ;;  %5622 = vrot.lane.b32.xlu0 %v8088_v23, %s9746_s0 }
 0x3d1   : > { %5617 = vrot.lane.b32.xlu1 %v8078_v24, %s9746_s0  ;;  %4741 = vmatprep.subr.bf16.mxu0 %v4740_v18  ;;  %v2004_v36 = vsel %vm809_vm10, %v5334_v35, %v5335_v7 }
 0x3d2   : > { %v5343_v53 = vpop.permute.xlu0 %5342  ;;  %v2003_v47 = vsel %vm809_vm10, %v5329_v45, %v5330_v3 }
 0x3d3   : > { %v5345_v34 = vunpack.i.h.bf16 %v5343_v53  ;;  %v5344_v55 = vunpack.i.l.bf16 %v5343_v53  ;;  %v5338_v26 = vpop.permute.xlu1 %5337  ;;  %v4742_v1 = vpack.c.bf16 %v2004_v36, %v2003_v47 }
 0x3d4   : > { %v5340_v16 = vunpack.i.h.bf16 %v5338_v26  ;;  %v5339_v37 = vunpack.i.l.bf16 %v5338_v26  ;;  %5632 = vrot.lane.b32.xlu0 %v8100_v61, %s9746_s0 }
 0x3d5   : > { %5627 = vrot.lane.b32.xlu1 %v8102_v22, %s9746_s0  ;;  %4743 = vmatpush1.bf16.msra.mxu0 %v4742_v1  ;;  %v2086_v0 = vsel %vm862_vm11, %v5344_v55, %v5345_v34  ;;  %v6376_v1 = vld [vmem:[#allocation3 + $0x30] sm:$0xff] }
 0x3d6   : > { %v5353_v5 = vpop.permute.xlu0 %5352  ;;  %v2085_v41 = vsel %vm862_vm11, %v5339_v37, %v5340_v16  ;;  %v6377_v16 = vld [vmem:[#allocation3 + $0x38] sm:$0xff] }
 0x3d7   : > { %v5355_v21 = vunpack.i.h.bf16 %v5353_v5  ;;  %v5354_v62 = vunpack.i.l.bf16 %v5353_v5  ;;  %v5348_v56 = vpop.permute.xlu1 %5347  ;;  %v4744_v13 = vpack.c.bf16 %v2086_v0, %v2085_v41  ;;  %v8388_v37 = vpack.i.bf16 %v6377_v16, %v6376_v1 }
 0x3d8   : > { %v5350_v44 = vunpack.i.h.bf16 %v5348_v56  ;;  %v5349_v42 = vunpack.i.l.bf16 %v5348_v56  ;;  %5642 = vrot.lane.b32.xlu0 %v8108_v2, %s9746_s0  ;;  %v6379_v56 = vld [vmem:[#allocation3 + $0x18] sm:$0xff] }
 0x3d9   : > { %5637 = vrot.lane.b32.xlu1 %v8110_v60, %s9746_s0  ;;  %4745 = vmatprep.subr.bf16.mxu0 %v4744_v13  ;;  %v2058_v32 = vsel %vm862_vm11, %v5354_v62, %v5355_v21  ;;  %v6378_v62 = vld [vmem:[#allocation3 + $0x10] sm:$0xff] }
 0x3da   : > { %v5363_v28 = vpop.permute.xlu0 %5362  ;;  %v2057_v40 = vsel %vm862_vm11, %v5349_v42, %v5350_v44  ;;  %v8391_v13 = vpack.i.bf16 %v6379_v56, %v6378_v62  ;;  %v2713_v62 = vld [vmem:[%s9282_s3] sm:$0xff] }
 0x3db   : > { %v5365_v4 = vunpack.i.h.bf16 %v5363_v28  ;;  %v5364_v33 = vunpack.i.l.bf16 %v5363_v28  ;;  %v5358_v30 = vpop.permute.xlu1 %5357  ;;  %v4746_v6 = vpack.c.bf16 %v2058_v32, %v2057_v40 }
 0x3dc   : > { %v5360_v54 = vunpack.i.h.bf16 %v5358_v30  ;;  %v5359_v29 = vunpack.i.l.bf16 %v5358_v30  ;;  %5652 = vrot.lane.b32.xlu0 %v8116_v39, %s9746_s0 }
 0x3dd   : > { %5647 = vrot.lane.b32.xlu1 %v8118_v48, %s9746_s0  ;;  %4747 = vmatpush1.bf16.msra.mxu0 %v4746_v6  ;;  %v2088_v9 = vsel %vm862_vm11, %v5364_v33, %v5365_v4  ;;  %v6380_v4 = vld [vmem:[#allocation3 + $0x20] sm:$0xff]  ;;  %v6381_v33 = vld [vmem:[#allocation3 + $0x28] sm:$0xff] }
 0x3de   : > { %v5373_v27 = vpop.permute.xlu0 %5372  ;;  %v2087_v51 = vsel %vm862_vm11, %v5359_v29, %v5360_v54  ;;  %v8398_v30 = vpack.i.bf16 %v6381_v33, %v6380_v4 }
 0x3df   : > { %v5375_v46 = vunpack.i.h.bf16 %v5373_v27  ;;  %v5374_v10 = vunpack.i.l.bf16 %v5373_v27  ;;  %v5368_v59 = vpop.permute.xlu1 %5367  ;;  %v4748_v52 = vpack.c.bf16 %v2088_v9, %v2087_v51  ;;  %v6382_v27 = vld [vmem:[#allocation3] sm:$0xff]  ;;  %v6383_v51 = vld [vmem:[#allocation3 + $0x8] sm:$0xff] }
 0x3e0   : > { %v5370_v20 = vunpack.i.h.bf16 %v5368_v59  ;;  %v5369_v63 = vunpack.i.l.bf16 %v5368_v59  ;;  %5662 = vrot.lane.b32.xlu0 %v8088_v23, %s9747_s17 }
 0x3e1   : > { %5657 = vrot.lane.b32.xlu1 %v8078_v24, %s9747_s17  ;;  %4749 = vmatprep.subr.bf16.mxu0 %v4748_v52  ;;  %v2060_v15 = vsel %vm862_vm11, %v5374_v10, %v5375_v46  ;;  %v8401_v46 = vpack.i.bf16 %v6383_v51, %v6382_v27  ;;  %v2718_v27 = vld [vmem:[%s9282_s3 + $0x28] sm:$0xff] }
 0x3e2   : > { %v5383_v11 = vpop.permute.xlu0 %5382  ;;  %v2059_v8 = vsel %vm862_vm11, %v5369_v63, %v5370_v20 }
 0x3e3   : > { %v5385_v43 = vunpack.i.h.bf16 %v5383_v11  ;;  %v5384_v49 = vunpack.i.l.bf16 %v5383_v11  ;;  %v5378_v57 = vpop.permute.xlu1 %5377  ;;  %v4750_v12 = vpack.c.bf16 %v2060_v15, %v2059_v8 }
 0x3e4   : > { %v5380_v50 = vunpack.i.h.bf16 %v5378_v57  ;;  %v5379_v38 = vunpack.i.l.bf16 %v5378_v57  ;;  %5672 = vrot.lane.b32.xlu0 %v8100_v61, %s9747_s17 }
 0x3e5   : > { %5667 = vrot.lane.b32.xlu1 %v8102_v22, %s9747_s17  ;;  %4751 = vmatpush1.bf16.msra.mxu0 %v4750_v12  ;;  %v2142_v24 = vsel %vm915_vm12, %v5384_v49, %v5385_v43 }
 0x3e6   : > { %v5393_v23 = vpop.permute.xlu0 %5392  ;;  %v2141_v31 = vsel %vm915_vm12, %v5379_v38, %v5380_v50 }
 0x3e7   : > { %v5395_v19 = vunpack.i.h.bf16 %v5393_v23  ;;  %v5394_v58 = vunpack.i.l.bf16 %v5393_v23  ;;  %v5388_v17 = vpop.permute.xlu1 %5387  ;;  %v4752_v7 = vpack.c.bf16 %v2142_v24, %v2141_v31 }
 0x3e8   : > { %v5390_v35 = vunpack.i.h.bf16 %v5388_v17  ;;  %v5389_v14 = vunpack.i.l.bf16 %v5388_v17  ;;  %5682 = vrot.lane.b32.xlu0 %v8108_v2, %s9747_s17 }
 0x3e9   : > { %5677 = vrot.lane.b32.xlu1 %v8110_v60, %s9747_s17  ;;  %4753 = vmatprep.subr.bf16.mxu0 %v4752_v7  ;;  %v2114_v61 = vsel %vm915_vm12, %v5394_v58, %v5395_v19 }
 0x3ea   : > { %v5403_v22 = vpop.permute.xlu0 %5402  ;;  %v2113_v18 = vsel %vm915_vm12, %v5389_v14, %v5390_v35 }
 0x3eb   : > { %v5405_v3 = vunpack.i.h.bf16 %v5403_v22  ;;  %v5404_v45 = vunpack.i.l.bf16 %v5403_v22  ;;  %v5398_v36 = vpop.permute.xlu1 %5397  ;;  %v4754_v53 = vpack.c.bf16 %v2114_v61, %v2113_v18 }
 0x3ec   : > { %v5400_v47 = vunpack.i.h.bf16 %v5398_v36  ;;  %v5399_v34 = vunpack.i.l.bf16 %v5398_v36  ;;  %5692 = vrot.lane.b32.xlu0 %v8116_v39, %s9747_s17 }
 0x3ed   : > { %5687 = vrot.lane.b32.xlu1 %v8118_v48, %s9747_s17  ;;  %4755 = vmatpush1.bf16.msra.mxu0 %v4754_v53  ;;  %v2144_v55 = vsel %vm915_vm12, %v5404_v45, %v5405_v3 }
 0x3ee   : > { %v5413_v26 = vpop.permute.xlu0 %5412  ;;  %v2143_v0 = vsel %vm915_vm12, %v5399_v34, %v5400_v47 }
 0x3ef   : > { %v5415_v5 = vunpack.i.h.bf16 %v5413_v26  ;;  %v5414_v41 = vunpack.i.l.bf16 %v5413_v26  ;;  %v5408_v21 = vpop.permute.xlu1 %5407  ;;  %v4756_v44 = vpack.c.bf16 %v2144_v55, %v2143_v0 }
 0x3f0   : > { %v5410_v42 = vunpack.i.h.bf16 %v5408_v21  ;;  %v5409_v32 = vunpack.i.l.bf16 %v5408_v21  ;;  %5702 = vrot.lane.b32.xlu0 %v8388_v37, %s9748_s1 }
 0x3f1   : > { %5697 = vrot.lane.b32.xlu1 %v8391_v13, %s9748_s1  ;;  %4757 = vmatprep.subr.bf16.mxu0 %v4756_v44  ;;  %v2116_v28 = vsel %vm915_vm12, %v5414_v41, %v5415_v5 }
 0x3f2   : > { %v5423_v40 = vpop.permute.xlu0 %5422  ;;  %v2115_v6 = vsel %vm915_vm12, %v5409_v32, %v5410_v42 }
 0x3f3   : > { %v5425_v54 = vunpack.i.h.bf16 %v5423_v40  ;;  %v5424_v29 = vunpack.i.l.bf16 %v5423_v40  ;;  %v5418_v9 = vpop.permute.xlu1 %5417  ;;  %v4758_v10 = vpack.c.bf16 %v2116_v28, %v2115_v6 }
 0x3f4   : > { %v5420_v59 = vunpack.i.h.bf16 %v5418_v9  ;;  %v5419_v52 = vunpack.i.l.bf16 %v5418_v9  ;;  %5712 = vrot.lane.b32.xlu0 %v8398_v30, %s9748_s1  ;;  %v2719_v9 = vld [vmem:[%s9282_s3 + $0x30] sm:$0xff] }
 0x3f5   : > { %5707 = vrot.lane.b32.xlu1 %v8401_v46, %s9748_s1  ;;  %4759 = vmatpush1.bf16.msra.mxu0 %v4758_v10  ;;  %v2198_v20 = vsel %vm9749_vm6, %v5424_v29, %v5425_v54  ;;  %vm9757_vm6 = vmmov %vm9753_vm4 }
 0x3f6   : > { %v5433_v63 = vpop.permute.xlu0 %5432  ;;  %v2197_v15 = vsel %vm9750_vm7, %v5419_v52, %v5420_v59  ;;  %vm9758_vm7 = vcmask 916480  }
 0x3f7   : > { %v5435_v11 = vunpack.i.h.bf16 %v5433_v63  ;;  %v5434_v8 = vunpack.i.l.bf16 %v5433_v63  ;;  %v5428_v43 = vpop.permute.xlu1 %5427  ;;  %v4760_v49 = vpack.c.bf16 %v2198_v20, %v2197_v15  ;;  %v2723_v15 = vld [vmem:[%s9282_s3 + $0x50] sm:$0xff] }
 0x3f8   : > { %v5430_v57 = vunpack.i.h.bf16 %v5428_v43  ;;  %v5429_v12 = vunpack.i.l.bf16 %v5428_v43  ;;  %5722 = vrot.lane.b32.xlu0 %v8108_v2, %s9748_s1 }
 0x3f9   : > { %5717 = vrot.lane.b32.xlu1 %v8110_v60, %s9748_s1  ;;  %4761 = vmatprep.subr.bf16.mxu0 %v4760_v49  ;;  %v2170_v50 = vsel %vm9751_vm14, %v5434_v8, %v5435_v11  ;;  %vm9759_vm14 = vmmov %vm9758_vm7 }
 0x3fa   : > { %v5443_v38 = vpop.permute.xlu0 %5442  ;;  %v2169_v24 = vsel %vm9752_vm15, %v5429_v12, %v5430_v57  ;;  %vm9761_vm15 = vmmov %vm9758_vm7 }
 0x3fb   : > { %v5445_v23 = vunpack.i.h.bf16 %v5443_v38  ;;  %v5444_v31 = vunpack.i.l.bf16 %v5443_v38  ;;  %v5438_v19 = vpop.permute.xlu1 %5437  ;;  %v4762_v58 = vpack.c.bf16 %v2170_v50, %v2169_v24 }
 0x3fc   : > { %v5440_v17 = vunpack.i.h.bf16 %v5438_v19  ;;  %v5439_v7 = vunpack.i.l.bf16 %v5438_v19  ;;  %5732 = vrot.lane.b32.xlu0 %v8116_v39, %s9748_s1 }
 0x3fd   : > { %5727 = vrot.lane.b32.xlu1 %v8118_v48, %s9748_s1  ;;  %4763 = vmatpush1.bf16.msra.mxu0 %v4762_v58  ;;  %v2200_v35 = vsel %vm9753_vm4, %v5444_v31, %v5445_v23  ;;  %vm9762_vm4 = vmmov %vm9758_vm7 }
 0x3fe   : > { %v5453_v14 = vpop.permute.xlu0 %5452  ;;  %v2199_v61 = vsel %vm9754_vm5, %v5439_v7, %v5440_v17  ;;  %vm9763_vm5 = vmmov %vm9762_vm4 }
 0x3ff   : > { %v5455_v22 = vunpack.i.h.bf16 %v5453_v14  ;;  %v5454_v18 = vunpack.i.l.bf16 %v5453_v14  ;;  %v5448_v3 = vpop.permute.xlu1 %5447  ;;  %v4764_v45 = vpack.c.bf16 %v2200_v35, %v2199_v61 }
 0x400   : > { %v5450_v36 = vunpack.i.h.bf16 %v5448_v3  ;;  %v5449_v53 = vunpack.i.l.bf16 %v5448_v3  ;;  %5742 = vrot.lane.b32.xlu0 %v8388_v37, %s9755_s2 }
 0x401   : > { %5737 = vrot.lane.b32.xlu1 %v8391_v13, %s9755_s2  ;;  %4765 = vmatprep.subr.bf16.mxu0 %v4764_v45  ;;  %v2172_v47 = vsel %vm9756_vm13, %v5454_v18, %v5455_v22  ;;  %vm9764_vm13 = vmmov %vm9762_vm4 }
 0x402   : > { %v5463_v34 = vpop.permute.xlu0 %5462  ;;  %v2171_v55 = vsel %vm9757_vm6, %v5449_v53, %v5450_v36  ;;  %vm9765_vm6 = vmmov %vm9762_vm4 }
 0x403   : > { %v5465_v26 = vunpack.i.h.bf16 %v5463_v34  ;;  %v5464_v1 = vunpack.i.l.bf16 %v5463_v34  ;;  %v5458_v16 = vpop.permute.xlu1 %5457  ;;  %v4766_v0 = vpack.c.bf16 %v2172_v47, %v2171_v55 }
 0x404   : > { %v5460_v5 = vunpack.i.h.bf16 %v5458_v16  ;;  %v5459_v41 = vunpack.i.l.bf16 %v5458_v16  ;;  %5752 = vrot.lane.b32.xlu0 %v8398_v30, %s9755_s2 }
 0x405   : > { %5747 = vrot.lane.b32.xlu1 %v8401_v46, %s9755_s2  ;;  %4767 = vmatpush1.bf16.msra.mxu0 %v4766_v0  ;;  %v2254_v21 = vsel %vm9758_vm7, %v5464_v1, %v5465_v26  ;;  %vm9766_vm7 = vmmov %vm9762_vm4 }
 0x406   : > { %v5473_v56 = vpop.permute.xlu0 %5472  ;;  %v2253_v44 = vsel %vm9759_vm14, %v5459_v41, %v5460_v5  ;;  %vm9767_vm14 = vcmask 908288  }
 0x407   : > { %v5475_v42 = vunpack.i.h.bf16 %v5473_v56  ;;  %v5474_v32 = vunpack.i.l.bf16 %v5473_v56  ;;  %v5468_v28 = vpop.permute.xlu1 %5467  ;;  %v4768_v40 = vpack.c.bf16 %v2254_v21, %v2253_v44  ;;  %v2864_v56 = vld [vmem:[%s9283_s4] sm:$0xff] }
 0x408   : > { %v5470_v4 = vunpack.i.h.bf16 %v5468_v28  ;;  %v5469_v33 = vunpack.i.l.bf16 %v5468_v28  ;;  %5762 = vrot.lane.b32.xlu0 %v8388_v37, %s9760_s21  ;;  %2957 = vmatmul.mubr.f32.vlgmr.msra.gmra.mrb[0].mxu0 %v2713_v62 }
 0x409   : > { %v2226_v6 = vsel %vm9761_vm15, %v5474_v32, %v5475_v42  ;;  %5757 = vrot.lane.b32.xlu1 %v8391_v13, %s9760_s21  ;;  %4769 = vmatprep.subr.bf16.mxu0 %v4768_v40  ;;  %v2724_v13 = vld [vmem:[%s9282_s3 + $0x58] sm:$0xff]  ;;  %vm9768_vm15 = vmmov %vm9767_vm14 }
 0x40a   : > { %v2225_v54 = vsel %vm9762_vm4, %v5469_v33, %v5470_v4  ;;  %v5483_v29 = vpop.permute.xlu0 %5482  ;;  %2962 = vmatprep.mubr.f32.mxu0 %v2719_v9  ;;  %vm9769_vm4 = vmmov %vm9767_vm14 }
 0x40b   : > { %v5485_v51 = vunpack.i.h.bf16 %v5483_v29  ;;  %v5484_v37 = vunpack.i.l.bf16 %v5483_v29  ;;  %v5478_v10 = vpop.permute.xlu1 %5477  ;;  %v4770_v59 = vpack.c.bf16 %v2226_v6, %v2225_v54  ;;  %v2866_v54 = vld [vmem:[%s9283_s4 + $0x10] sm:$0xff] }
 0x40c   : > { %v5480_v52 = vunpack.i.h.bf16 %v5478_v10  ;;  %v5479_v20 = vunpack.i.l.bf16 %v5478_v10  ;;  %5772 = vrot.lane.b32.xlu0 %v8398_v30, %s9760_s21  ;;  %2963 = vmatmul.mubr.f32.gmra.mrb[2].mxu0 %v2718_v27 }
 0x40d   : > { %5767 = vrot.lane.b32.xlu1 %v8401_v46, %s9760_s21  ;;  %4771 = vmatpush1.bf16.msra.mxu0 %v4770_v59  ;;  %v2256_v63 = vsel %vm9763_vm5, %v5484_v37, %v5485_v51  ;;  %v2716_v46 = vld [vmem:[%s9282_s3 + $0x18] sm:$0xff]  ;;  %vm9770_vm5 = vmmov %vm9769_vm4 }
 0x40e   : > { %v5493_v11 = vpop.permute.xlu0 %5492  ;;  %v2255_v8 = vsel %vm9764_vm13, %v5479_v20, %v5480_v52  ;;  %2968 = vmatprep.mubr.f32.mxu0 %v2724_v13  ;;  %vm9771_vm13 = vmmov %vm9769_vm4 }
 0x40f   : > { %v5495_v30 = vunpack.i.h.bf16 %v5493_v11  ;;  %v5494_v43 = vunpack.i.l.bf16 %v5493_v11  ;;  %v5488_v49 = vpop.permute.xlu1 %5487  ;;  %v4772_v57 = vpack.c.bf16 %v2256_v63, %v2255_v8 }
 0x410   : > { %v5490_v12 = vunpack.i.h.bf16 %v5488_v49  ;;  %v5489_v50 = vunpack.i.l.bf16 %v5488_v49  ;;  %5782 = vrot.lane.b32.xlu0 %v8108_v2, %s9755_s2  ;;  %2969 = vmatmul.mubr.f32.gmra.mrb[4].mxu0 %v2723_v15 }
 0x411   : > { %v2228_v38 = vsel %vm9765_vm6, %v5494_v43, %v5495_v30  ;;  %5777 = vrot.lane.b32.xlu1 %v8110_v60, %s9755_s2  ;;  %4773 = vmatprep.subr.bf16.mxu0 %v4772_v57  ;;  %vm9772_vm6 = vmmov %vm9769_vm4 }
 0x412   : > { %v2227_v24 = vsel %vm9766_vm7, %v5489_v50, %v5490_v12  ;;  %v5503_v23 = vpop.permute.xlu0 %5502  ;;  %3039 = vmatprep.mubr.f32.mxu0 %v2716_v46  ;;  %vm9773_vm7 = vmmov %vm9769_vm4 }
 0x413   : > { %v5505_v31 = vunpack.i.h.bf16 %v5503_v23  ;;  %v5504_v19 = vunpack.i.l.bf16 %v5503_v23  ;;  %v5498_v58 = vpop.permute.xlu1 %5497  ;;  %v4774_v17 = vpack.c.bf16 %v2228_v38, %v2227_v24 }
 0x414   : > { %v5500_v7 = vunpack.i.h.bf16 %v5498_v58  ;;  %v5499_v35 = vunpack.i.l.bf16 %v5498_v58  ;;  %5792 = vrot.lane.b32.xlu0 %v8116_v39, %s9755_s2 }
 0x415   : > { %5787 = vrot.lane.b32.xlu1 %v8118_v48, %s9755_s2  ;;  %4775 = vmatpush1.bf16.msra.mxu0 %v4774_v17  ;;  %v2310_v14 = vsel %vm9767_vm14, %v5504_v19, %v5505_v31  ;;  %vm9774_vm14 = vmmov %vm9769_vm4 }
 0x416   : > { %v5513_v61 = vpop.permute.xlu0 %5512  ;;  %v2309_v22 = vsel %vm9768_vm15, %v5499_v35, %v5500_v7  ;;  %vm9775_vm15 = vcmask 900096  }
 0x417   : > { %v5515_v18 = vunpack.i.h.bf16 %v5513_v61  ;;  %v5514_v3 = vunpack.i.l.bf16 %v5513_v61  ;;  %v5508_v45 = vpop.permute.xlu1 %5507  ;;  %v4776_v36 = vpack.c.bf16 %v2310_v14, %v2309_v22 }
 0x418   : > { %v5510_v53 = vunpack.i.h.bf16 %v5508_v45  ;;  %v5509_v47 = vunpack.i.l.bf16 %v5508_v45  ;;  %5802 = vrot.lane.b32.xlu0 %v8108_v2, %s9760_s21  ;;  %v2865_v2 = vld [vmem:[%s9283_s4 + $0x8] sm:$0xff] }
 0x419   : > { %v2282_v34 = vsel %vm9769_vm4, %v5514_v3, %v5515_v18  ;;  %5797 = vrot.lane.b32.xlu1 %v8110_v60, %s9760_s21  ;;  %4777 = vmatprep.subr.bf16.mxu0 %v4776_v36  ;;  %vm9776_vm4 = vmmov %vm9775_vm15 }
 0x41a   : > { %v2281_v55 = vsel %vm9770_vm5, %v5509_v47, %v5510_v53  ;;  %v5523_v26 = vpop.permute.xlu0 %5522  ;;  %vm9777_vm5 = vmmov %vm9776_vm4 }
 0x41b   : > { %v5525_v1 = vunpack.i.h.bf16 %v5523_v26  ;;  %v5524_v16 = vunpack.i.l.bf16 %v5523_v26  ;;  %v5518_v0 = vpop.permute.xlu1 %5517  ;;  %v4778_v5 = vpack.c.bf16 %v2282_v34, %v2281_v55 }
 0x41c   : > { %v5520_v41 = vunpack.i.h.bf16 %v5518_v0  ;;  %v5519_v21 = vunpack.i.l.bf16 %v5518_v0  ;;  %5812 = vrot.lane.b32.xlu0 %v8116_v39, %s9760_s21 }
 0x41d   : > { %5807 = vrot.lane.b32.xlu1 %v8118_v48, %s9760_s21  ;;  %4779 = vmatpush1.bf16.msra.mxu0 %v4778_v5  ;;  %v2312_v60 = vsel %vm9771_vm13, %v5524_v16, %v5525_v1  ;;  %vm9778_vm13 = vmmov %vm9776_vm4  ;;  %s4703_s21 = sshll.u32 %s6613_s10, 5  ;;  %s6527_s10 = smov [#allocation9]  }
 0x41e   : > { %v5533_v62 = vpop.permute.xlu0 %5532  ;;  %v2311_v44 = vsel %vm9772_vm6, %v5519_v21, %v5520_v41  ;;  %vm9779_vm6 = vmmov %vm9776_vm4  ;;  %s6416_s22 = sshll.u32 %s6527_s10, 4  ;;  %s6417_s22 = int_to_ptr.vmem [resolvable:$false] %s6416_s22 }
 0x41f   : > { %v5535_v42 = vunpack.i.h.bf16 %v5533_v62  ;;  %v5534_v32 = vunpack.i.l.bf16 %v5533_v62  ;;  %v5528_v39 = vpop.permute.xlu1 %5527  ;;  %v4780_v28 = vpack.c.bf16 %v2312_v60, %v2311_v44  ;;  %s6418_s2 = scalar_lea.vmem %s6417_s22, 64 }
 0x420   : > { %v5530_v40 = vunpack.i.h.bf16 %v5528_v39  ;;  %v5529_v48 = vunpack.i.l.bf16 %v5528_v39  ;;  %2874 = vperm.xlu0 %5134, %v2865_v2  }
 0x421   : > { %v2284_v4 = vsel %vm9773_vm7, %v5534_v32, %v5535_v42  ;;  %2869 = vperm.xlu1 %5135, %v2864_v56   ;;  %4781 = vmatprep.subr.bf16.mxu0 %v4780_v28  ;;  %vm9780_vm7 = vmmov %vm9776_vm4 }
 0x422   : > { %v2283_v33 = vsel %vm9774_vm14, %v5529_v48, %v5530_v40  ;;  %v5543_v6 = vpop.permute.xlu0 %5542  ;;  %vm9781_vm14 = vmmov %vm9776_vm4 }
 0x423   : > { %v5545_v29 = vunpack.i.h.bf16 %v5543_v6  ;;  %v5544_v9 = vunpack.i.l.bf16 %v5543_v6  ;;  %v5538_v27 = vpop.permute.xlu1 %5537  ;;  %v4782_v51 = vpack.c.bf16 %v2284_v4, %v2283_v33 }
 0x424   : > { %v5540_v37 = vunpack.i.h.bf16 %v5538_v27  ;;  %v5539_v10 = vunpack.i.l.bf16 %v5538_v27 }
 0x425   : > { %2879 = vperm.xlu1 %5135, %v2866_v54   ;;  %4783 = vmatpush1.bf16.msra.mxu0 %v4782_v51  ;;  %v2366_v59 = vsel %vm9775_vm15, %v5544_v9, %v5545_v29  ;;  %vm9782_vm15 = vmmov %vm9776_vm4 }
 0x426   : > { %v5553_v52 = vpop.permute.xlu0 %5552  ;;  %v2365_v20 = vsel %vm9776_vm4, %v5539_v10, %v5540_v37  ;;  %vm9783_vm4 = vcmask 875520  }
 0x427   : > { %v5555_v13 = vunpack.i.h.bf16 %v5553_v52  ;;  %v5554_v63 = vunpack.i.l.bf16 %v5553_v52  ;;  %v5548_v15 = vpop.permute.xlu1 %5547  ;;  %v4784_v11 = vpack.c.bf16 %v2366_v59, %v2365_v20 }
 0x428   : > { %v5550_v8 = vunpack.i.h.bf16 %v5548_v15  ;;  %v5549_v30 = vunpack.i.l.bf16 %v5548_v15 }
 0x429   : > { %v2338_v43 = vsel %vm9777_vm5, %v5554_v63, %v5555_v13  ;;  %4785 = vmatprep.subr.bf16.mxu0 %v4784_v11  ;;  %vm9784_vm5 = vmmov %vm9783_vm4 }
 0x42a   : > { %v2337_v49 = vsel %vm9778_vm13, %v5549_v30, %v5550_v8  ;;  %v5563_v57 = vpop.permute.xlu0 %5562  ;;  %vm9785_vm13 = vmmov %vm9783_vm4 }
 0x42b   : > { %v5565_v12 = vunpack.i.h.bf16 %v5563_v57  ;;  %v5564_v50 = vunpack.i.l.bf16 %v5563_v57  ;;  %v5558_v46 = vpop.permute.xlu1 %5557  ;;  %v4786_v38 = vpack.c.bf16 %v2338_v43, %v2337_v49 }
 0x42c   : > { %v5560_v24 = vunpack.i.h.bf16 %v5558_v46  ;;  %v5559_v23 = vunpack.i.l.bf16 %v5558_v46 }
 0x42d   : > { %4787 = vmatpush1.bf16.msra.mxu0 %v4786_v38  ;;  %v2368_v31 = vsel %vm9779_vm6, %v5564_v50, %v5565_v12  ;;  %vm9786_vm6 = vmmov %vm9783_vm4 }
 0x42e   : > { %v5573_v19 = vpop.permute.xlu0 %5572  ;;  %v2367_v58 = vsel %vm9780_vm7, %v5559_v23, %v5560_v24  ;;  %vm9787_vm7 = vmmov %vm9783_vm4 }
 0x42f   : > { %v5575_v17 = vunpack.i.h.bf16 %v5573_v19  ;;  %v5574_v7 = vunpack.i.l.bf16 %v5573_v19  ;;  %v5568_v35 = vpop.permute.xlu1 %5567  ;;  %v4788_v14 = vpack.c.bf16 %v2368_v31, %v2367_v58 }
 0x430   : > { %v5570_v61 = vunpack.i.h.bf16 %v5568_v35  ;;  %v5569_v22 = vunpack.i.l.bf16 %v5568_v35 }
 0x431   : > { %v2340_v18 = vsel %vm9781_vm14, %v5574_v7, %v5575_v17  ;;  %4789 = vmatprep.subr.bf16.mxu0 %v4788_v14  ;;  %vm9788_vm14 = vmmov %vm9783_vm4 }
 0x432   : > { %v2339_v3 = vsel %vm9782_vm15, %v5569_v22, %v5570_v61  ;;  %v5583_v45 = vpop.permute.xlu0 %5582  ;;  %vm9789_vm15 = vmmov %vm9783_vm4 }
 0x433   : > { %v5585_v36 = vunpack.i.h.bf16 %v5583_v45  ;;  %v5584_v53 = vunpack.i.l.bf16 %v5583_v45  ;;  %v5578_v47 = vpop.permute.xlu1 %5577  ;;  %v4790_v34 = vpack.c.bf16 %v2340_v18, %v2339_v3 }
 0x434   : > { %v5580_v55 = vunpack.i.h.bf16 %v5578_v47  ;;  %v5579_v26 = vunpack.i.l.bf16 %v5578_v47 }
 0x435   : > { %4791 = vmatpush1.bf16.msra.mxu0 %v4790_v34  ;;  %v2422_v1 = vsel %vm1180_vm2, %v5584_v53, %v5585_v36 }
 0x436   : > { %v5593_v16 = vpop.permute.xlu0 %5592  ;;  %v2421_v0 = vsel %vm1180_vm2, %v5579_v26, %v5580_v55 }
 0x437   : > { %v5595_v5 = vunpack.i.h.bf16 %v5593_v16  ;;  %v5594_v41 = vunpack.i.l.bf16 %v5593_v16  ;;  %v5588_v21 = vpop.permute.xlu1 %5587  ;;  %v4792_v2 = vpack.c.bf16 %v2422_v1, %v2421_v0 }
 0x438   : > { %v5590_v60 = vunpack.i.h.bf16 %v5588_v21  ;;  %v5589_v62 = vunpack.i.l.bf16 %v5588_v21 }
 0x439   : > { %v2394_v56 = vsel %vm1180_vm2, %v5594_v41, %v5595_v5  ;;  %4793 = vmatprep.subr.bf16.mxu0 %v4792_v2 }
 0x43a   : > { %v2393_v44 = vsel %vm1180_vm2, %v5589_v62, %v5590_v60  ;;  %v5603_v42 = vpop.permute.xlu0 %5602 }
 0x43b   : > { %v5605_v32 = vunpack.i.h.bf16 %v5603_v42  ;;  %v5604_v39 = vunpack.i.l.bf16 %v5603_v42  ;;  %v5598_v28 = vpop.permute.xlu1 %5597  ;;  %v4794_v40 = vpack.c.bf16 %v2394_v56, %v2393_v44 }
 0x43c   : > { %v5600_v48 = vunpack.i.h.bf16 %v5598_v28  ;;  %v5599_v4 = vunpack.i.l.bf16 %v5598_v28 }
 0x43d   : > { %4795 = vmatpush1.bf16.msra.mxu0 %v4794_v40  ;;  %v2424_v33 = vsel %vm1180_vm2, %v5604_v39, %v5605_v32 }
 0x43e   : > { %v5613_v6 = vpop.permute.xlu0 %5612  ;;  %v2423_v54 = vsel %vm1180_vm2, %v5599_v4, %v5600_v48 }
 0x43f   : > { %v5615_v29 = vunpack.i.h.bf16 %v5613_v6  ;;  %v5614_v9 = vunpack.i.l.bf16 %v5613_v6  ;;  %v5608_v27 = vpop.permute.xlu1 %5607  ;;  %v4796_v51 = vpack.c.bf16 %v2424_v33, %v2423_v54 }
 0x440   : > { %v5610_v37 = vunpack.i.h.bf16 %v5608_v27  ;;  %v5609_v10 = vunpack.i.l.bf16 %v5608_v27 }
 0x441   : > { %v2396_v59 = vsel %vm1180_vm2, %v5614_v9, %v5615_v29  ;;  %4797 = vmatprep.subr.bf16.mxu0 %v4796_v51 }
 0x442   : > { %v2395_v52 = vsel %vm1180_vm2, %v5609_v10, %v5610_v37  ;;  %v5623_v20 = vpop.permute.xlu0 %5622 }
 0x443   : > { %v5625_v13 = vunpack.i.h.bf16 %v5623_v20  ;;  %v5624_v63 = vunpack.i.l.bf16 %v5623_v20  ;;  %v5618_v15 = vpop.permute.xlu1 %5617  ;;  %v4798_v11 = vpack.c.bf16 %v2396_v59, %v2395_v52 }
 0x444   : > { %v5620_v8 = vunpack.i.h.bf16 %v5618_v15  ;;  %v5619_v30 = vunpack.i.l.bf16 %v5618_v15 }
 0x445   : > { %4799 = vmatpush1.bf16.msra.mxu0 %v4798_v11  ;;  %v2478_v43 = vsel %vm1233_vm3, %v5624_v63, %v5625_v13 }
 0x446   : > { %v5633_v49 = vpop.permute.xlu0 %5632  ;;  %v2477_v57 = vsel %vm1233_vm3, %v5619_v30, %v5620_v8 }
 0x447   : > { %v5635_v12 = vunpack.i.h.bf16 %v5633_v49  ;;  %v5634_v50 = vunpack.i.l.bf16 %v5633_v49  ;;  %v5628_v46 = vpop.permute.xlu1 %5627  ;;  %v4800_v38 = vpack.c.bf16 %v2478_v43, %v2477_v57 }
 0x448   : > { %v5630_v24 = vunpack.i.h.bf16 %v5628_v46  ;;  %v5629_v23 = vunpack.i.l.bf16 %v5628_v46 }
 0x449   : > { %v2450_v31 = vsel %vm1233_vm3, %v5634_v50, %v5635_v12  ;;  %4801 = vmatprep.subr.bf16.mxu0 %v4800_v38 }
 0x44a   : > { %v2449_v19 = vsel %vm1233_vm3, %v5629_v23, %v5630_v24  ;;  %v5643_v58 = vpop.permute.xlu0 %5642 }
 0x44b   : > { %v5645_v17 = vunpack.i.h.bf16 %v5643_v58  ;;  %v5644_v7 = vunpack.i.l.bf16 %v5643_v58  ;;  %v5638_v35 = vpop.permute.xlu1 %5637  ;;  %v4802_v14 = vpack.c.bf16 %v2450_v31, %v2449_v19 }
 0x44c   : > { %v5640_v61 = vunpack.i.h.bf16 %v5638_v35  ;;  %v5639_v22 = vunpack.i.l.bf16 %v5638_v35 }
 0x44d   : > { %4803 = vmatpush1.bf16.msra.mxu0 %v4802_v14  ;;  %v2480_v18 = vsel %vm1233_vm3, %v5644_v7, %v5645_v17 }
 0x44e   : > { %v5653_v3 = vpop.permute.xlu0 %5652  ;;  %v2479_v45 = vsel %vm1233_vm3, %v5639_v22, %v5640_v61 }
 0x44f   : > { %v5655_v36 = vunpack.i.h.bf16 %v5653_v3  ;;  %v5654_v53 = vunpack.i.l.bf16 %v5653_v3  ;;  %v5648_v47 = vpop.permute.xlu1 %5647  ;;  %v4804_v34 = vpack.c.bf16 %v2480_v18, %v2479_v45 }
 0x450   : > { %v5650_v55 = vunpack.i.h.bf16 %v5648_v47  ;;  %v5649_v26 = vunpack.i.l.bf16 %v5648_v47 }
 0x451   : > { %v2452_v1 = vsel %vm1233_vm3, %v5654_v53, %v5655_v36  ;;  %4805 = vmatprep.subr.bf16.mxu0 %v4804_v34 }
 0x452   : > { %v2451_v16 = vsel %vm1233_vm3, %v5649_v26, %v5650_v55  ;;  %v5663_v0 = vpop.permute.xlu0 %5662 }
 0x453   : > { %v5665_v5 = vunpack.i.h.bf16 %v5663_v0  ;;  %v5664_v41 = vunpack.i.l.bf16 %v5663_v0  ;;  %v5658_v21 = vpop.permute.xlu1 %5657  ;;  %v4806_v2 = vpack.c.bf16 %v2452_v1, %v2451_v16 }
 0x454   : > { %v5660_v60 = vunpack.i.h.bf16 %v5658_v21  ;;  %v5659_v62 = vunpack.i.l.bf16 %v5658_v21 }
 0x455   : > { %4807 = vmatpush1.bf16.msra.mxu0 %v4806_v2  ;;  %v2534_v56 = vsel %vm9783_vm4, %v5664_v41, %v5665_v5 }
 0x456   : > { %v5673_v44 = vpop.permute.xlu0 %5672  ;;  %v2533_v42 = vsel %vm9784_vm5, %v5659_v62, %v5660_v60  ;;  %vm9790_vm5 = vcmask 867328  }
 0x457   : > { %v5675_v32 = vunpack.i.h.bf16 %v5673_v44  ;;  %v5674_v39 = vunpack.i.l.bf16 %v5673_v44  ;;  %v5668_v28 = vpop.permute.xlu1 %5667  ;;  %v4808_v40 = vpack.c.bf16 %v2534_v56, %v2533_v42 }
 0x458   : > { %v5670_v48 = vunpack.i.h.bf16 %v5668_v28  ;;  %v5669_v4 = vunpack.i.l.bf16 %v5668_v28 }
 0x459   : > { %v2506_v33 = vsel %vm9785_vm13, %v5674_v39, %v5675_v32  ;;  %4809 = vmatprep.subr.bf16.mxu0 %v4808_v40  ;;  %vm9791_vm13 = vmmov %vm9790_vm5 }
 0x45a   : > { %v2505_v6 = vsel %vm9786_vm6, %v5669_v4, %v5670_v48  ;;  %v5683_v54 = vpop.permute.xlu0 %5682  ;;  %vm9792_vm6 = vmmov %vm9790_vm5 }
 0x45b   : > { %v5685_v29 = vunpack.i.h.bf16 %v5683_v54  ;;  %v5684_v9 = vunpack.i.l.bf16 %v5683_v54  ;;  %v5678_v27 = vpop.permute.xlu1 %5677  ;;  %v4810_v51 = vpack.c.bf16 %v2506_v33, %v2505_v6 }
 0x45c   : > { %v5680_v37 = vunpack.i.h.bf16 %v5678_v27  ;;  %v5679_v10 = vunpack.i.l.bf16 %v5678_v27 }
 0x45d   : > { %4811 = vmatpush1.bf16.msra.mxu0 %v4810_v51  ;;  %v2536_v59 = vsel %vm9787_vm7, %v5684_v9, %v5685_v29  ;;  %vm9793_vm7 = vmmov %vm9790_vm5 }
 0x45e   : > { %v5693_v52 = vpop.permute.xlu0 %5692  ;;  %v2535_v20 = vsel %vm9788_vm14, %v5679_v10, %v5680_v37  ;;  %vm9794_vm14 = vmmov %vm9790_vm5 }
 0x45f   : > { %v5695_v13 = vunpack.i.h.bf16 %v5693_v52  ;;  %v5694_v63 = vunpack.i.l.bf16 %v5693_v52  ;;  %v5688_v15 = vpop.permute.xlu1 %5687  ;;  %v4812_v11 = vpack.c.bf16 %v2536_v59, %v2535_v20 }
 0x460   : > { %v5690_v8 = vunpack.i.h.bf16 %v5688_v15  ;;  %v5689_v30 = vunpack.i.l.bf16 %v5688_v15 }
 0x461   : > { %v2508_v43 = vsel %vm9789_vm15, %v5694_v63, %v5695_v13  ;;  %4813 = vmatprep.subr.bf16.mxu0 %v4812_v11  ;;  %vm9795_vm15 = vmmov %vm9790_vm5 }
 0x462   : > { %v2507_v49 = vsel %vm9783_vm4, %v5689_v30, %v5690_v8  ;;  %v5703_v57 = vpop.permute.xlu0 %5702  ;;  %vm9796_vm4 = vmmov %vm9790_vm5 }
 0x463   : > { %v5705_v12 = vunpack.i.h.bf16 %v5703_v57  ;;  %v5704_v50 = vunpack.i.l.bf16 %v5703_v57  ;;  %v5698_v46 = vpop.permute.xlu1 %5697  ;;  %v4814_v38 = vpack.c.bf16 %v2508_v43, %v2507_v49 }
 0x464   : > { %v5700_v24 = vunpack.i.h.bf16 %v5698_v46  ;;  %v5699_v23 = vunpack.i.l.bf16 %v5698_v46 }
 0x465   : > { %4815 = vmatpush1.bf16.msra.mxu0 %v4814_v38  ;;  %v2590_v31 = vsel %vm9790_vm5, %v5704_v50, %v5705_v12  ;;  %vm9797_vm5 = vmmov %vm9796_vm4 }
 0x466   : > { %v5713_v19 = vpop.permute.xlu0 %5712  ;;  %v2589_v58 = vsel %vm9791_vm13, %v5699_v23, %v5700_v24  ;;  %vm9798_vm13 = vcmask 859136  }
 0x467   : > { %v5715_v17 = vunpack.i.h.bf16 %v5713_v19  ;;  %v5714_v7 = vunpack.i.l.bf16 %v5713_v19  ;;  %v5708_v35 = vpop.permute.xlu1 %5707  ;;  %v4816_v14 = vpack.c.bf16 %v2590_v31, %v2589_v58 }
 0x468   : > { %v5710_v61 = vunpack.i.h.bf16 %v5708_v35  ;;  %v5709_v22 = vunpack.i.l.bf16 %v5708_v35 }
 0x469   : > { %v2562_v18 = vsel %vm9792_vm6, %v5714_v7, %v5715_v17  ;;  %4817 = vmatprep.subr.bf16.mxu0 %v4816_v14  ;;  %vm9799_vm6 = vmmov %vm9798_vm13 }
 0x46a   : > { %v2561_v3 = vsel %vm9793_vm7, %v5709_v22, %v5710_v61  ;;  %v5723_v45 = vpop.permute.xlu0 %5722  ;;  %vm9800_vm7 = vmmov %vm9799_vm6 }
 0x46b   : > { %v5725_v36 = vunpack.i.h.bf16 %v5723_v45  ;;  %v5724_v53 = vunpack.i.l.bf16 %v5723_v45  ;;  %v5718_v47 = vpop.permute.xlu1 %5717  ;;  %v4818_v34 = vpack.c.bf16 %v2562_v18, %v2561_v3 }
 0x46c   : > { %v5720_v55 = vunpack.i.h.bf16 %v5718_v47  ;;  %v5719_v26 = vunpack.i.l.bf16 %v5718_v47 }
 0x46d   : > { %4819 = vmatpush1.bf16.msra.mxu0 %v4818_v34  ;;  %v2592_v1 = vsel %vm9794_vm14, %v5724_v53, %v5725_v36  ;;  %vm9801_vm14 = vmmov %vm9799_vm6 }
 0x46e   : > { %v5733_v16 = vpop.permute.xlu0 %5732  ;;  %v2591_v0 = vsel %vm9795_vm15, %v5719_v26, %v5720_v55  ;;  %vm9802_vm15 = vcmask 850944  }
 0x46f   : > { %v5735_v5 = vunpack.i.h.bf16 %v5733_v16  ;;  %v5734_v41 = vunpack.i.l.bf16 %v5733_v16  ;;  %v5728_v21 = vpop.permute.xlu1 %5727  ;;  %v4820_v2 = vpack.c.bf16 %v2592_v1, %v2591_v0 }
 0x470   : > { %v5730_v60 = vunpack.i.h.bf16 %v5728_v21  ;;  %v5729_v62 = vunpack.i.l.bf16 %v5728_v21 }
 0x471   : > { %v2564_v56 = vsel %vm9796_vm4, %v5734_v41, %v5735_v5  ;;  %4821 = vmatprep.subr.bf16.mxu0 %v4820_v2  ;;  %vm9803_vm4 = vmmov %vm9802_vm15 }
 0x472   : > { %v2563_v44 = vsel %vm9797_vm5, %v5729_v62, %v5730_v60  ;;  %v5743_v42 = vpop.permute.xlu0 %5742  ;;  %vm9804_vm5 = vmmov %vm9803_vm4 }
 0x473   : > { %v5745_v32 = vunpack.i.h.bf16 %v5743_v42  ;;  %v5744_v39 = vunpack.i.l.bf16 %v5743_v42  ;;  %v5738_v28 = vpop.permute.xlu1 %5737  ;;  %v4822_v40 = vpack.c.bf16 %v2564_v56, %v2563_v44  ;;  %v2715_v56 = vld [vmem:[%s9282_s3 + $0x10] sm:$0xff] }
 0x474   : > { %v5740_v48 = vunpack.i.h.bf16 %v5738_v28  ;;  %v5739_v4 = vunpack.i.l.bf16 %v5738_v28 }
 0x475   : > { %4823 = vmatpush1.bf16.msra.mxu0 %v4822_v40  ;;  %v2646_v33 = vsel %vm9798_vm13, %v5744_v39, %v5745_v32  ;;  %vm9805_vm13 = vmmov %vm9803_vm4  ;;  %v2721_v39 = vld [vmem:[%s9282_s3 + $0x40] sm:$0xff] }
 0x476   : > { %v5753_v6 = vpop.permute.xlu0 %5752  ;;  %v2645_v54 = vsel %vm9799_vm6, %v5739_v4, %v5740_v48 }
 0x477   : > { %v5755_v29 = vunpack.i.h.bf16 %v5753_v6  ;;  %v5754_v9 = vunpack.i.l.bf16 %v5753_v6  ;;  %v5748_v27 = vpop.permute.xlu1 %5747  ;;  %v4824_v51 = vpack.c.bf16 %v2646_v33, %v2645_v54  ;;  %v2720_v54 = vld [vmem:[%s9282_s3 + $0x38] sm:$0xff] }
 0x478   : > { %v5750_v37 = vunpack.i.h.bf16 %v5748_v27  ;;  %v5749_v10 = vunpack.i.l.bf16 %v5748_v27  ;;  %v2726_v27 = vld [vmem:[%s9282_s3 + $0x68] sm:$0xff] }
 0x479   : > { %v2618_v59 = vsel %vm9800_vm7, %v5754_v9, %v5755_v29  ;;  %4825 = vmatprep.subr.bf16.mxu0 %v4824_v51  ;;  %vm9806_vm7 = vmmov %vm9799_vm6 }
 0x47a   : > { %v2617_v52 = vsel %vm9801_vm14, %v5749_v10, %v5750_v37  ;;  %v5763_v20 = vpop.permute.xlu0 %5762  ;;  %vm9807_vm14 = vmmov %vm9799_vm6  ;;  %v2725_v37 = vld [vmem:[%s9282_s3 + $0x60] sm:$0xff] }
 0x47b   : > { %v5765_v13 = vunpack.i.h.bf16 %v5763_v20  ;;  %v5764_v63 = vunpack.i.l.bf16 %v5763_v20  ;;  %v5758_v15 = vpop.permute.xlu1 %5757  ;;  %v4826_v11 = vpack.c.bf16 %v2618_v59, %v2617_v52  ;;  %v2717_v10 = vld [vmem:[%s9282_s3 + $0x20] sm:$0xff]  ;;  %v9812_v59 = vmov 0.0   ;;  %v2722_v52 = vld [vmem:[%s9282_s3 + $0x48] sm:$0xff]  ;;  %v2727_v20 = vld [vmem:[%s9282_s3 + $0x70] sm:$0xff] }
 0x47c   : > { %v5760_v8 = vunpack.i.h.bf16 %v5758_v15  ;;  %v5759_v30 = vunpack.i.l.bf16 %v5758_v15 }
 0x47d   : > { %4827 = vmatpush1.bf16.msra.mxu0 %v4826_v11  ;;  %v2702_v43 = vsel %vm9802_vm15, %v5764_v63, %v5765_v13  ;;  %vm9808_vm15 = vmmov %vm9799_vm6 }
 0x47e   : > { %v5773_v49 = vpop.permute.xlu0 %5772  ;;  %v2701_v57 = vsel %vm9803_vm4, %v5759_v30, %v5760_v8 }
 0x47f   : > { %v5775_v12 = vunpack.i.h.bf16 %v5773_v49  ;;  %v5774_v50 = vunpack.i.l.bf16 %v5773_v49  ;;  %v5768_v46 = vpop.permute.xlu1 %5767  ;;  %v4832_v38 = vpack.c.bf16 %v2702_v43, %v2701_v57 }
 0x480   : > { %v5770_v24 = vunpack.i.h.bf16 %v5768_v46  ;;  %v5769_v23 = vunpack.i.l.bf16 %v5768_v46 }
 0x481   : > { %4833 = vmatprep.subr.bf16.mxu1 %v4832_v38  ;;  %v2674_v31 = vsel %vm9804_vm5, %v5774_v50, %v5775_v12  ;;  %vm9809_vm5 = vmmov %vm9803_vm4 }
 0x482   : > { %v5783_v19 = vpop.permute.xlu0 %5782  ;;  %v2673_v58 = vsel %vm9805_vm13, %v5769_v23, %v5770_v24  ;;  %vm9810_vm13 = vmmov %vm9803_vm4 }
 0x483   : > { %v5785_v17 = vunpack.i.h.bf16 %v5783_v19  ;;  %v5784_v7 = vunpack.i.l.bf16 %v5783_v19  ;;  %v5778_v35 = vpop.permute.xlu1 %5777  ;;  %v4834_v14 = vpack.c.bf16 %v2674_v31, %v2673_v58 }
 0x484   : > { %v5780_v61 = vunpack.i.h.bf16 %v5778_v35  ;;  %v5779_v22 = vunpack.i.l.bf16 %v5778_v35 }
 0x485   : > { %4835 = vmatpush1.bf16.msra.mxu1 %v4834_v14  ;;  %v2648_v18 = vsel %vm9799_vm6, %v5784_v7, %v5785_v17  ;;  %vm9811_vm6 = vmmov %vm9803_vm4 }
 0x486   : > { %v5793_v3 = vpop.permute.xlu0 %5792  ;;  %v2647_v45 = vsel %vm9806_vm7, %v5779_v22, %v5780_v61  ;;  %vm2882_vm7 = vcmask 261120  }
 0x487   : > { %v5795_v36 = vunpack.i.h.bf16 %v5793_v3  ;;  %v5794_v53 = vunpack.i.l.bf16 %v5793_v3  ;;  %v5788_v47 = vpop.permute.xlu1 %5787  ;;  %v4828_v34 = vpack.c.bf16 %v2648_v18, %v2647_v45 }
 0x488   : > { %v5790_v55 = vunpack.i.h.bf16 %v5788_v47  ;;  %v5789_v26 = vunpack.i.l.bf16 %v5788_v47 }
 0x489   : > { %v2620_v1 = vsel %vm9807_vm14, %v5794_v53, %v5795_v36  ;;  %4829 = vmatprep.subr.bf16.mxu0 %v4828_v34 }
 0x48a   : > { %v2619_v16 = vsel %vm9808_vm15, %v5789_v26, %v5790_v55  ;;  %v5803_v0 = vpop.permute.xlu0 %5802 }
 0x48b   : > { %v5805_v5 = vunpack.i.h.bf16 %v5803_v0  ;;  %v5804_v41 = vunpack.i.l.bf16 %v5803_v0  ;;  %v5798_v21 = vpop.permute.xlu1 %5797  ;;  %v4830_v2 = vpack.c.bf16 %v2620_v1, %v2619_v16 }
 0x48c   : > { %v5800_v60 = vunpack.i.h.bf16 %v5798_v21  ;;  %v5799_v62 = vunpack.i.l.bf16 %v5798_v21 }
 0x48d   : > { %4831 = vmatpush1.bf16.msra.mxu0 %v4830_v2  ;;  %v2704_v44 = vsel %vm9803_vm4, %v5804_v41, %v5805_v5 }
 0x48e   : > { %v5813_v42 = vpop.permute.xlu0 %5812  ;;  %v2703_v32 = vsel %vm9809_vm5, %v5799_v62, %v5800_v60 }
 0x48f   : > { %v5815_v28 = vunpack.i.h.bf16 %v5813_v42  ;;  %v5814_v40 = vunpack.i.l.bf16 %v5813_v42  ;;  %v5808_v48 = vpop.permute.xlu1 %5807  ;;  %v4836_v4 = vpack.c.bf16 %v2704_v44, %v2703_v32 }
 0x490   : > { %v5810_v33 = vunpack.i.h.bf16 %v5808_v48  ;;  %v5809_v6 = vunpack.i.l.bf16 %v5808_v48  ;;  %3040 = vmatmul.mubr.f32.vlgmr.msra.gmra.mrb[0].mxu0 %v2715_v56 }
 0x491   : > { %4837 = vmatprep.subr.bf16.mxu1 %v4836_v4  ;;  %3045 = vmatprep.mubr.f32.mxu0 %v2721_v39  ;;  %v2676_v29 = vsel %vm9810_vm13, %v5814_v40, %v5815_v28 }
 0x492   : > { %v2675_v9 = vsel %vm9811_vm6, %v5809_v6, %v5810_v33 }
 0x493   : > { %v4838_v51 = vpack.c.bf16 %v2676_v29, %v2675_v9 }
 0x494   : > { %3046 = vmatmul.mubr.f32.gmra.mrb[2].mxu0 %v2720_v54 }
 0x495   : > { %4839 = vmatpush1.bf16.msra.mxu1 %v4838_v51  ;;  %3051 = vmatprep.mubr.f32.mxu0 %v2726_v27 }
 0x498   : > { %3052 = vmatmul.mubr.f32.gmra.mrb[4].mxu0 %v2725_v37  ;;  %4690 = vmatmul.mubr.msk.f32.vlgmr.msra.gmra.mrb[0].mxu1 %vm2882_vm7, %v2717_v10 }
 0x499   : > { %3128 = vmatprep.mubr.f32.mxu1 %v9812_v59 }
 0x49c   : > { %4691 = vmatmul.mubr.msk.f32.gmra.mrb[2].mxu1 %vm2882_vm7, %v2722_v52 }
 0x49d   : > { %3134 = vmatprep.mubr.f32.mxu1 %v9812_v59 }
 0x49f   : > { %v2875_v38 = vpop.permute.xlu0 %2874 }
 0x4a0   : > { %4692 = vmatmul.mubr.msk.f32.gmra.mrb[4].mxu1 %vm2882_vm7, %v2727_v20  ;;  %v2870_v8 = vpop.permute.xlu1 %2869 }
 0x4a4   : > { %v2880_v61 = vpop.permute.xlu1 %2879 }
 0x563   : > { %v3041_v13 = vpop.f32.mrb[0].mxu0 }
 0x564   : > { %v3043_v63 = vpop.f32.mrb[1].mxu0  ;;  %v4952_v30 = vadd.f32 %v3041_v13, %v2870_v8 }
 0x565   : > { %v4954_v43 = vadd.f32 %v3043_v63, %v2870_v8 }
 0x567   : > { %v3047_v15 = vpop.f32.mrb[2].mxu0 }
 0x568   : > { %v3049_v11 = vpop.f32.mrb[3].mxu0  ;;  %v4956_v23 = vadd.f32 %v3047_v15, %v2875_v38 }
 0x569   : > { %v4958_v19 = vadd.f32 %v3049_v11, %v2875_v38 }
 0x56b   : > { %v3053_v49 = vpop.f32.mrb[4].mxu0  ;;  %v3124_v57 = vpop.f32.mrb[0].mxu1 }
 0x56c   : > { %v4953_v12 = vadd.f32 %v4952_v30, %v3124_v57  ;;  %v3055_v50 = vpop.f32.mrb[5].mxu0  ;;  %v3126_v46 = vpop.f32.mrb[1].mxu1  ;;  %v4960_v18 = vadd.f32 %v3053_v49, %v2880_v61 }
 0x56d   : > { %v4955_v24 = vadd.f32 %v4954_v43, %v3126_v46  ;;  %v4962_v45 = vadd.f32 %v3055_v50, %v2880_v61  ;;  %v3766_v46 = vld [vmem:[%s9284_s5 + $0x8] sm:$0xff] }
 0x56e   : > { %vm3141_vm14 = vcmp.gt.f32.partialorder %v4953_v12, 0.0  ;;  %v3147_v31 = vmul.f32 0.05, %v4953_v12  ;;  %3932 = vmatprep.mubr.f32.mxu1 %v3766_v46 }
 0x56f   : > { %v3130_v58 = vpop.f32.mrb[2].mxu1  ;;  %v3148_v17 = vmul.f32 0.05, %v4955_v24  ;;  %vm3142_vm15 = vcmp.gt.f32.partialorder %v4955_v24, 0.0 }
 0x570   : > { %v4957_v7 = vadd.f32 %v4956_v23, %v3130_v58  ;;  %v3132_v35 = vpop.f32.mrb[3].mxu1  ;;  %v3153_v14 = vsel %vm3141_vm14, %v4953_v12, %v3147_v31 }
 0x571   : > { %v4959_v22 = vadd.f32 %v4958_v19, %v3132_v35  ;;  %3162 = vrot.lane.b32.xlu0 %v3153_v14, %s9722_s30  ;;  %v3154_v55 = vsel %vm3142_vm15, %v4955_v24, %v3148_v17 }
 0x572   : > { %vm3143_vm4 = vcmp.gt.f32.partialorder %v4957_v7, 0.0  ;;  %v3149_v3 = vmul.f32 0.05, %v4957_v7 }
 0x573   : > { %v3136_v36 = vpop.f32.mrb[4].mxu1  ;;  %v3150_v53 = vmul.f32 0.05, %v4959_v22  ;;  %vm3144_vm5 = vcmp.gt.f32.partialorder %v4959_v22, 0.0 }
 0x574   : > { %v4961_v47 = vadd.f32 %v4960_v18, %v3136_v36  ;;  %v3138_v34 = vpop.f32.mrb[5].mxu1  ;;  %v3155_v26 = vsel %vm3143_vm4, %v4957_v7, %v3149_v3  ;;  %v3850_v18 = vld [vmem:[%s9285_s6 + $0x8] sm:$0xff]  ;;  %v3849_v3 = vld [vmem:[%s9285_s6] sm:$0xff]  ;;  %vm9819_vm4 = vcmask 916480  }
 0x575   : > { %v4963_v1 = vadd.f32 %v4962_v45, %v3138_v34  ;;  %3180 = vrot.lane.b32.xlu0 %v3154_v55, %s9722_s30  ;;  %3164 = vrot.lane.b32.xlu1 %v3155_v26, %s9722_s30  ;;  %v3156_v5 = vsel %vm3144_vm5, %v4959_v22, %v3150_v53 }
 0x576   : > { %v3151_v0 = vmul.f32 0.05, %v4961_v47  ;;  %vm3145_vm6 = vcmp.gt.f32.partialorder %v4961_v47, 0.0 }
 0x577   : > { %vm3146_vm13 = vcmp.gt.f32.partialorder %v4963_v1, 0.0  ;;  %v3152_v16 = vmul.f32 0.05, %v4963_v1 }
 0x578   : > { %v3157_v21 = vsel %vm3145_vm6, %v4961_v47, %v3151_v0  ;;  %vm9822_vm6 = vmmov %vm9819_vm4 }
 0x579   : > { %3182 = vrot.lane.b32.xlu1 %v3156_v5, %s9722_s30  ;;  %v3158_v41 = vsel %vm3146_vm13, %v4963_v1, %v3152_v16  ;;  %vm9821_vm13 = vmmov %vm9819_vm4 }
 0x57a   : > { %3184 = vrot.lane.b32.xlu0 %v3158_v41, %s9722_s30 }
 0x57d   : > { %3166 = vrot.lane.b32.xlu1 %v3157_v21, %s9722_s30 }
 0x5e3   : > { %v3163_v2 = vpop.permute.xlu0 %3162 }
 0x5e4   : > { %3171 = vst.msk [vmem:[#allocation2] sm:$0xff] %vm1696_vm1, %v3163_v2 }
 0x5e5   : > { %3172 = vst.msk [vmem:[#allocation2 + $0x8] sm:$0xff] %vm402_vm0, %v3163_v2 }
 0x5e7   : > { %v3181_v60 = vpop.permute.xlu0 %3180  ;;  %v3165_v62 = vpop.permute.xlu1 %3164 }
 0x5e8   : > { %3189 = vst.msk [vmem:[#allocation2 + $0x10] sm:$0xff] %vm1696_vm1, %v3181_v60  ;;  %3173 = vst.msk [vmem:[#allocation2 + $0x20] sm:$0xff] %vm1696_vm1, %v3165_v62 }
 0x5e9   : > { %3190 = vst.msk [vmem:[#allocation2 + $0x18] sm:$0xff] %vm402_vm0, %v3181_v60  ;;  %3174 = vst.msk [vmem:[#allocation2 + $0x28] sm:$0xff] %vm402_vm0, %v3165_v62 }
 0x5eb   : > { %v3195_v56 = vld [vmem:[#allocation2] sm:$0xff]  ;;  %v3183_v42 = vpop.permute.xlu1 %3182 }
 0x5ec   : > { %v3196_v44 = vld [vmem:[#allocation2 + $0x8] sm:$0xff]  ;;  %3191 = vst.msk [vmem:[#allocation2 + $0x30] sm:$0xff] %vm1696_vm1, %v3183_v42  ;;  %v3185_v32 = vpop.permute.xlu0 %3184 }
 0x5ed   : > { %3192 = vst.msk [vmem:[#allocation2 + $0x38] sm:$0xff] %vm402_vm0, %v3183_v42  ;;  %v8594_v39 = vpack.i.bf16 %v3196_v44, %v3195_v56  ;;  %3194 = vst.msk [vmem:[#allocation2 + $0x58] sm:$0xff] %vm402_vm0, %v3185_v32 }
 0x5ee   : > { %3193 = vst.msk [vmem:[#allocation2 + $0x50] sm:$0xff] %vm1696_vm1, %v3185_v32 }
 0x5ef   : > { %5822 = vrot.lane.b32.xlu1 %v8594_v39, %s9738_s23  ;;  %5817 = vrot.lane.b32.xlu0 %v8594_v39, %s9737_s25  ;;  %v3167_v28 = vpop.permute.xlu1 %3166  ;;  %v3197_v40 = vld [vmem:[#allocation2 + $0x10] sm:$0xff]  ;;  %v3199_v33 = vld [vmem:[#allocation2 + $0x20] sm:$0xff] }
 0x5f0   : > { %3175 = vst.msk [vmem:[#allocation2 + $0x40] sm:$0xff] %vm1696_vm1, %v3167_v28  ;;  %v3198_v48 = vld [vmem:[#allocation2 + $0x18] sm:$0xff]  ;;  %v3200_v6 = vld [vmem:[#allocation2 + $0x28] sm:$0xff] }
 0x5f1   : > { %3176 = vst.msk [vmem:[#allocation2 + $0x48] sm:$0xff] %vm402_vm0, %v3167_v28  ;;  %v8616_v4 = vpack.i.bf16 %v3198_v48, %v3197_v40  ;;  %v8634_v54 = vpack.i.bf16 %v3200_v6, %v3199_v33 }
 0x5f3   : > { %5832 = vrot.lane.b32.xlu1 %v8594_v39, %s9740_s14  ;;  %5827 = vrot.lane.b32.xlu0 %v8594_v39, %s9739_s13  ;;  %v3201_v29 = vld [vmem:[#allocation2 + $0x30] sm:$0xff] }
 0x5f4   : > { %v3202_v9 = vld [vmem:[#allocation2 + $0x38] sm:$0xff] }
 0x5f5   : > { %v8652_v27 = vpack.i.bf16 %v3202_v9, %v3201_v29  ;;  %v8682_v52 = vld [vmem:[#allocation2 + $0x50] sm:$0xff]  ;;  %v3206_v20 = vld [vmem:[#allocation2 + $0x58] sm:$0xff] }
 0x5f6   : > { %v6016_v13 = vpack.i.bf16 %v3206_v20, %v8682_v52 }
 0x5f7   : > { %5842 = vrot.lane.b32.xlu1 %v8594_v39, %s9742_s26  ;;  %5837 = vrot.lane.b32.xlu0 %v8594_v39, %s9741_s12  ;;  %v8666_v51 = vld [vmem:[#allocation2 + $0x40] sm:$0xff] }
 0x5f8   : > { %v8668_v37 = vld [vmem:[#allocation2 + $0x48] sm:$0xff] }
 0x5f9   : > { %v5981_v10 = vpack.i.bf16 %v8668_v37, %v8666_v51 }
 0x5fb   : > { %5852 = vrot.lane.b32.xlu1 %v8594_v39, %s9744_s15  ;;  %5847 = vrot.lane.b32.xlu0 %v8594_v39, %s9743_s18 }
 0x5ff   : > { %5862 = vrot.lane.b32.xlu1 %v8616_v4, %s9738_s23  ;;  %5857 = vrot.lane.b32.xlu0 %v8616_v4, %s9737_s25 }
 0x603   : > { %5872 = vrot.lane.b32.xlu1 %v8616_v4, %s9740_s14  ;;  %5867 = vrot.lane.b32.xlu0 %v8616_v4, %s9739_s13 }
 0x607   : > { %5882 = vrot.lane.b32.xlu1 %v8616_v4, %s9742_s26  ;;  %5877 = vrot.lane.b32.xlu0 %v8616_v4, %s9741_s12 }
 0x60b   : > { %5892 = vrot.lane.b32.xlu1 %v8616_v4, %s9744_s15  ;;  %5887 = vrot.lane.b32.xlu0 %v8616_v4, %s9743_s18 }
 0x60f   : > { %5897 = vrot.lane.b32.xlu1 %v8634_v54, %s9737_s25  ;;  %5902 = vrot.lane.b32.xlu0 %v8634_v54, %s9738_s23 }
 0x613   : > { %5907 = vrot.lane.b32.xlu1 %v8634_v54, %s9739_s13  ;;  %5912 = vrot.lane.b32.xlu0 %v8634_v54, %s9740_s14 }
 0x617   : > { %5917 = vrot.lane.b32.xlu1 %v8634_v54, %s9741_s12  ;;  %5922 = vrot.lane.b32.xlu0 %v8634_v54, %s9742_s26 }
 0x61b   : > { %5927 = vrot.lane.b32.xlu1 %v8634_v54, %s9743_s18  ;;  %5932 = vrot.lane.b32.xlu0 %v8634_v54, %s9744_s15 }
 0x61f   : > { %5937 = vrot.lane.b32.xlu1 %v8652_v27, %s9737_s25  ;;  %5942 = vrot.lane.b32.xlu0 %v8652_v27, %s9738_s23 }
 0x623   : > { %5947 = vrot.lane.b32.xlu1 %v8652_v27, %s9739_s13  ;;  %5952 = vrot.lane.b32.xlu0 %v8652_v27, %s9740_s14 }
 0x627   : > { %5957 = vrot.lane.b32.xlu1 %v8652_v27, %s9741_s12  ;;  %5962 = vrot.lane.b32.xlu0 %v8652_v27, %s9742_s26 }
 0x62b   : > { %5967 = vrot.lane.b32.xlu1 %v8652_v27, %s9743_s18  ;;  %5972 = vrot.lane.b32.xlu0 %v8652_v27, %s9744_s15 }
 0x62f   : > { %5982 = vrot.lane.b32.xlu1 %v5981_v10, %s9738_s23  ;;  %5977 = vrot.lane.b32.xlu0 %v5981_v10, %s9737_s25 }
 0x633   : > { %5992 = vrot.lane.b32.xlu1 %v5981_v10, %s9740_s14  ;;  %5987 = vrot.lane.b32.xlu0 %v5981_v10, %s9739_s13 }
 0x637   : > { %6002 = vrot.lane.b32.xlu1 %v5981_v10, %s9742_s26  ;;  %5997 = vrot.lane.b32.xlu0 %v5981_v10, %s9741_s12 }
 0x63b   : > { %6012 = vrot.lane.b32.xlu1 %v5981_v10, %s9744_s15  ;;  %6007 = vrot.lane.b32.xlu0 %v5981_v10, %s9743_s18 }
 0x63f   : > { %6027 = vrot.lane.b32.xlu1 %v8652_v27, %s9745_s16  ;;  %6017 = vrot.lane.b32.xlu0 %v6016_v13, %s9737_s25  ;;  %s9234_s25 = scalar_lea.hbm %s9290_s11, %s4703_s21 }
 0x643   : > { %6037 = vrot.lane.b32.xlu1 %v6016_v13, %s9738_s23  ;;  %6022 = vrot.lane.b32.xlu0 %v8616_v4, %s9745_s16  ;;  %s9236_s23 = scalar_lea.sflag [#allocation8], %s393_s7 }
 0x647   : > { %6042 = vrot.lane.b32.xlu1 %v8634_v54, %s9745_s16  ;;  %6032 = vrot.lane.b32.xlu0 %v8594_v39, %s9745_s16 }
 0x64b   : > { %6047 = vrot.lane.b32.xlu1 %v8616_v4, %s9813_s19  ;;  %6052 = vrot.lane.b32.xlu0 %v6016_v13, %s9739_s13 }
 0x64f   : > { %6062 = vrot.lane.b32.xlu1 %v6016_v13, %s9740_s14  ;;  %6057 = vrot.lane.b32.xlu0 %v5981_v10, %s9745_s16 }
 0x653   : > { %6067 = vrot.lane.b32.xlu1 %v8594_v39, %s9813_s19  ;;  %6072 = vrot.lane.b32.xlu0 %v8652_v27, %s9813_s19 }
 0x657   : > { %6087 = vrot.lane.b32.xlu1 %v5981_v10, %s9813_s19  ;;  %6077 = vrot.lane.b32.xlu0 %v6016_v13, %s9741_s12 }
 0x65b   : > { %6097 = vrot.lane.b32.xlu1 %v6016_v13, %s9742_s26  ;;  %6082 = vrot.lane.b32.xlu0 %v8634_v54, %s9813_s19 }
 0x65f   : > { %6102 = vrot.lane.b32.xlu1 %v8652_v27, %s9746_s0  ;;  %6092 = vrot.lane.b32.xlu0 %v8616_v4, %s9746_s0 }
 0x661   : > { %v8715_v63 = vpop.permute.xlu1 %5822  ;;  %v8717_v15 = vpop.permute.xlu0 %5817 }
 0x662   : > { %v5820_v26 = vunpack.i.h.bf16 %v8717_v15  ;;  %v5819_v1 = vunpack.i.l.bf16 %v8717_v15 }
 0x663   : > { %6117 = vrot.lane.b32.xlu1 %v8634_v54, %s9746_s0  ;;  %6107 = vrot.lane.b32.xlu0 %v6016_v13, %s9743_s18 }
 0x664   : > { %v3225_v62 = vsel %vm703_vm8, %v5819_v1, %v5820_v26 }
 0x665   : > { %v8722_v11 = vpop.permute.xlu1 %5832  ;;  %v8724_v8 = vpop.permute.xlu0 %5827 }
 0x667   : > { %6122 = vrot.lane.b32.xlu1 %v6016_v13, %s9744_s15  ;;  %6112 = vrot.lane.b32.xlu0 %v8594_v39, %s9746_s0 }
 0x669   : > { %v8729_v30 = vpop.permute.xlu1 %5842  ;;  %v8731_v43 = vpop.permute.xlu0 %5837 }
 0x66b   : > { %6127 = vrot.lane.b32.xlu1 %v8616_v4, %s9747_s17  ;;  %6132 = vrot.lane.b32.xlu0 %v5981_v10, %s9746_s0 }
 0x66d   : > { %v8736_v49 = vpop.permute.xlu1 %5852  ;;  %v8738_v57 = vpop.permute.xlu0 %5847 }
 0x66f   : > { %6137 = vrot.lane.b32.xlu1 %v8594_v39, %s9747_s17  ;;  %6142 = vrot.lane.b32.xlu0 %v6016_v13, %s9745_s16 }
 0x671   : > { %v8743_v12 = vpop.permute.xlu1 %5862  ;;  %v5858_v50 = vpop.permute.xlu0 %5857 }
 0x672   : > { %v5860_v34 = vunpack.i.h.bf16 %v5858_v50  ;;  %v5859_v55 = vunpack.i.l.bf16 %v5858_v50 }
 0x673   : > { %6157 = vrot.lane.b32.xlu1 %v6016_v13, %s9813_s19  ;;  %6147 = vrot.lane.b32.xlu0 %v8652_v27, %s9747_s17 }
 0x674   : > { %v3252_v2 = vsel %vm703_vm8, %v5859_v55, %v5860_v34 }
 0x675   : > { %v8751_v38 = vpop.permute.xlu1 %5872  ;;  %v8753_v24 = vpop.permute.xlu0 %5867 }
 0x677   : > { %6162 = vrot.lane.b32.xlu1 %v5981_v10, %s9747_s17  ;;  %6152 = vrot.lane.b32.xlu0 %v8634_v54, %s9747_s17  ;;  %v5824_v10 = vunpack.i.l.bf16 %v8715_v63 }
 0x679   : > { %v8758_v23 = vpop.permute.xlu1 %5882  ;;  %v8760_v31 = vpop.permute.xlu0 %5877 }
 0x67b   : > { %6177 = vrot.lane.b32.xlu1 %v8652_v27, %s9748_s1  ;;  %6167 = vrot.lane.b32.xlu0 %v6016_v13, %s9746_s0 }
 0x67d   : > { %v8765_v19 = vpop.permute.xlu1 %5892  ;;  %v8767_v58 = vpop.permute.xlu0 %5887 }
 0x67f   : > { %6187 = vrot.lane.b32.xlu1 %v6016_v13, %s9747_s17  ;;  %6172 = vrot.lane.b32.xlu0 %v8616_v4, %s9748_s1 }
 0x681   : > { %v5898_v17 = vpop.permute.xlu1 %5897  ;;  %v8772_v7 = vpop.permute.xlu0 %5902 }
 0x682   : > { %v5900_v53 = vunpack.i.h.bf16 %v5898_v17  ;;  %v5899_v47 = vunpack.i.l.bf16 %v5898_v17 }
 0x683   : > { %6192 = vrot.lane.b32.xlu1 %v8634_v54, %s9748_s1  ;;  %6182 = vrot.lane.b32.xlu0 %v8594_v39, %s9748_s1 }
 0x684   : > { %v3226_v21 = vsel %vm703_vm8, %v5899_v47, %v5900_v53 }
 0x685   : > { %v8778_v35 = vpop.permute.xlu1 %5907  ;;  %v8780_v14 = vpop.permute.xlu0 %5912  ;;  %v4842_v32 = vpack.c.bf16 %v3226_v21, %v3225_v62  ;;  %v5904_v21 = vunpack.i.l.bf16 %v8772_v7 }
 0x687   : > { %3754 = vrot.lane.b32.xlu1 %v3206_v20, %s9748_s1  ;;  %3752 = vrot.lane.b32.xlu0 %v8682_v52, %s9748_s1  ;;  %v5865_v52 = vunpack.i.h.bf16 %v8743_v12  ;;  %v5864_v20 = vunpack.i.l.bf16 %v8743_v12 }
 0x689   : > { %v8785_v61 = vpop.permute.xlu1 %5917  ;;  %v8787_v22 = vpop.permute.xlu0 %5922  ;;  %v3294_v53 = vsel %vm756_vm9, %v5864_v20, %v5865_v52 }
 0x68b   : > { %3733 = vrot.lane.b32.xlu1 %v8668_v37, %s9748_s1  ;;  %3731 = vrot.lane.b32.xlu0 %v8666_v51, %s9748_s1  ;;  %v5825_v37 = vunpack.i.h.bf16 %v8715_v63  ;;  %s4685_s1 = sshll.u32 %s393_s7, 1 }
 0x68c   : > { %s395_s27 = scalar_lea.vmem [#allocation9], %s4685_s1 }
 0x68d   : > { %v8799_v45 = vpop.permute.xlu1 %5927  ;;  %v8801_v36 = vpop.permute.xlu0 %5932  ;;  %v3273_v17 = vsel %vm756_vm9, %v5824_v10, %v5825_v37  ;;  %v5909_v37 = vunpack.i.l.bf16 %v8778_v35  ;;  %s4608_s24 = sshll.u32 %s395_s27, 4  ;;  %s9229_s24 = int_to_ptr.vmem [resolvable:$true] %s4608_s24 }
 0x68e   : > { %s6412_s17 = scalar_lea.vmem %s9229_s24, 32  ;;  %p6419_p2 = scmp.lt.s32.totalorder %s9229_s24, %s6417_s22 }
 0x68f   : > { %3858 = vperm.xlu1 %5135, %v3850_v18   ;;  %3853 = vperm.xlu0 %5134, %v3849_v3   ;;  %p6413_p6 = scmp.ne.s32.totalorder %s9229_s24, %s6412_s17  ;;  %p6420_p3 = scmp.lt.s32.totalorder %s6418_s2, %s6412_s17 }
 0x691   : > { %v5938_v16 = vpop.permute.xlu1 %5937  ;;  %v8805_v0 = vpop.permute.xlu0 %5942  ;;  %p6414_p10 = pnand %p6413_p6, %p9867_p9  ;;  %p6421_p4 = por %p6420_p3, %p6419_p2 }
 0x692   : > { %v5940_v5 = vunpack.i.h.bf16 %v5938_v16  ;;  %v5939_v41 = vunpack.i.l.bf16 %v5938_v16  ;;  %v5945_v47 = vunpack.i.h.bf16 %v8805_v0  ;;  %v5944_v26 = vunpack.i.l.bf16 %v8805_v0 }
 0x693   : > { %v5835_v0 = vunpack.i.h.bf16 %v8722_v11  ;;  %p6415_p12 = pneg %p6414_p10 }
 0x694   : > { %v3253_v60 = vsel %vm703_vm8, %v5939_v41, %v5940_v5  ;;  %v5870_v5 = vunpack.i.h.bf16 %v8753_v24  ;;  %v5905_v41 = vunpack.i.h.bf16 %v8772_v7  ;;  %v5834_v7 = vunpack.i.l.bf16 %v8722_v11 }
 0x695   : > { %v5948_v56 = vpop.permute.xlu1 %5947  ;;  %v8811_v44 = vpop.permute.xlu0 %5952  ;;  %v4840_v42 = vpack.c.bf16 %v3253_v60, %v3252_v2  ;;  %v3295_v52 = vsel %vm756_vm9, %v5944_v26, %v5945_v47  ;;  %v5875_v11 = vunpack.i.h.bf16 %v8751_v38  ;;  %p6422_p7 = pnand %p6421_p4, %p6415_p12 }
 0x696   : > { %v5950_v12 = vunpack.i.h.bf16 %v5948_v56  ;;  %v5949_v1 = vunpack.i.l.bf16 %v5948_v56  ;;  %v5910_v56 = vunpack.i.h.bf16 %v8778_v35  ;;  %v3357_v26 = vsel %vm862_vm11, %v5834_v7, %v5835_v0 }
 0x697   : > { %4841 = vmatprep.subr.bf16.mxu1 %v4840_v42  ;;  %v5869_v42 = vunpack.i.l.bf16 %v8753_v24  ;;  %v5914_v7 = vunpack.i.l.bf16 %v8780_v14 }
 0x698   : > { %4843 = vmatpush1.bf16.msra.mxu1 %v4842_v32  ;;  %v3337_v24 = vsel %vm809_vm10, %v5949_v1, %v5950_v12  ;;  %v5845_v1 = vunpack.i.h.bf16 %v8729_v30 }
 0x699   : > { %v8813_v39 = vpop.permute.xlu1 %5957  ;;  %v8815_v28 = vpop.permute.xlu0 %5962  ;;  %v3336_v47 = vsel %vm809_vm10, %v5869_v42, %v5870_v5 }
 0x69a   : > { %v5959_v0 = vunpack.i.l.bf16 %v8813_v39 }
 0x69d   : > { %v8817_v40 = vpop.permute.xlu1 %5967  ;;  %v8819_v48 = vpop.permute.xlu0 %5972 }
 0x6a1   : > { %v5983_v4 = vpop.permute.xlu1 %5982  ;;  %v5978_v33 = vpop.permute.xlu0 %5977 }
 0x6a2   : > { %v5980_v13 = vunpack.i.h.bf16 %v5978_v33  ;;  %v5979_v15 = vunpack.i.l.bf16 %v5978_v33  ;;  %v5985_v34 = vunpack.i.h.bf16 %v5983_v4  ;;  %v5984_v55 = vunpack.i.l.bf16 %v5983_v4 }
 0x6a4   : > { %v3227_v63 = vsel %vm703_vm8, %v5979_v15, %v5980_v13  ;;  %v3275_v10 = vsel %vm756_vm9, %v5984_v55, %v5985_v34  ;;  %v5830_v13 = vunpack.i.h.bf16 %v8724_v8  ;;  %v5829_v15 = vunpack.i.l.bf16 %v8724_v8 }
 0x6a5   : > { %v8821_v6 = vpop.permute.xlu1 %5992  ;;  %v8823_v54 = vpop.permute.xlu0 %5987  ;;  %v4846_v33 = vpack.c.bf16 %v3273_v17, %v3227_v63  ;;  %v3316_v34 = vsel %vm809_vm10, %v5909_v37, %v5910_v56  ;;  %v4852_v63 = vpack.c.bf16 %v3337_v24, %v3336_v47  ;;  %v5880_v37 = vunpack.i.h.bf16 %v8760_v31 }
 0x6a6   : > { %v5990_v55 = vunpack.i.h.bf16 %v8823_v54  ;;  %v5989_v8 = vunpack.i.l.bf16 %v8823_v54  ;;  %v3315_v12 = vsel %vm809_vm10, %v5829_v15, %v5830_v13  ;;  %v5995_v42 = vunpack.i.h.bf16 %v8821_v6 }
 0x6a7   : > { %v5879_v24 = vunpack.i.l.bf16 %v8760_v31 }
 0x6a9   : > { %v8825_v29 = vpop.permute.xlu1 %6002  ;;  %v8827_v9 = vpop.permute.xlu0 %5997 }
 0x6ad   : > { %v8829_v27 = vpop.permute.xlu1 %6012  ;;  %v8831_v51 = vpop.permute.xlu0 %6007 }
 0x6b1   : > { %v8837_v50 = vpop.permute.xlu1 %6027  ;;  %v6018_v46 = vpop.permute.xlu0 %6017 }
 0x6b2   : > { %v6020_v18 = vunpack.i.h.bf16 %v6018_v46  ;;  %v6019_v3 = vunpack.i.l.bf16 %v6018_v46  ;;  %v3274_v46 = vsel %vm756_vm9, %v5904_v21, %v5905_v41 }
 0x6b4   : > { %v3254_v16 = vsel %vm703_vm8, %v6019_v3, %v6020_v18  ;;  %v5874_v3 = vunpack.i.l.bf16 %v8751_v38  ;;  %v5844_v38 = vunpack.i.l.bf16 %v8729_v30  ;;  %v5960_v30 = vunpack.i.h.bf16 %v8813_v39 }
 0x6b5   : > { %v6038_v2 = vpop.permute.xlu1 %6037  ;;  %v8848_v60 = vpop.permute.xlu0 %6022  ;;  %v4844_v62 = vpack.c.bf16 %v3294_v53, %v3254_v16  ;;  %v4850_v53 = vpack.c.bf16 %v3275_v10, %v3274_v46  ;;  %v5915_v10 = vunpack.i.h.bf16 %v8780_v14  ;;  %v5840_v39 = vunpack.i.h.bf16 %v8731_v43 }
 0x6b6   : > { %v6040_v32 = vunpack.i.h.bf16 %v6038_v2  ;;  %v6039_v4 = vunpack.i.l.bf16 %v6038_v2  ;;  %v4854_v2 = vpack.c.bf16 %v3316_v34, %v3315_v12  ;;  %v3378_v54 = vsel %vm862_vm11, %v5874_v3, %v5875_v11 }
 0x6b7   : > { %4845 = vmatprep.subr.bf16.mxu1 %v4844_v62  ;;  %v5955_v62 = vunpack.i.h.bf16 %v8811_v44  ;;  %v5920_v46 = vunpack.i.h.bf16 %v8785_v61  ;;  %v5839_v14 = vunpack.i.l.bf16 %v8731_v43  ;;  %v3421_v31 = vsel %vm915_vm12, %v5959_v0, %v5960_v30 }
 0x6b8   : > { %4847 = vmatpush1.bf16.msra.mxu1 %v4846_v33  ;;  %v3296_v20 = vsel %vm756_vm9, %v6039_v4, %v6040_v32  ;;  %v5994_v32 = vunpack.i.l.bf16 %v8821_v6  ;;  %v3317_v4 = vsel %vm809_vm10, %v5989_v8, %v5990_v55  ;;  %v5954_v33 = vunpack.i.l.bf16 %v8811_v44 }
 0x6b9   : > { %v8862_v17 = vpop.permute.xlu1 %6042  ;;  %v8864_v35 = vpop.permute.xlu0 %6032  ;;  %v4848_v18 = vpack.c.bf16 %v3296_v20, %v3295_v52  ;;  %v4858_v15 = vpack.c.bf16 %v3357_v26, %v3317_v4  ;;  %v3358_v47 = vsel %vm862_vm11, %v5914_v7, %v5915_v10  ;;  %v6000_v43 = vunpack.i.h.bf16 %v8827_v9 }
 0x6ba   : > { %v3359_v11 = vsel %vm862_vm11, %v5994_v32, %v5995_v42  ;;  %v3379_v3 = vsel %vm862_vm11, %v5954_v33, %v5955_v62  ;;  %v5999_v12 = vunpack.i.l.bf16 %v8827_v9  ;;  %vm9814_vm8 = vcmask 924672  }
 0x6bb   : > { %4849 = vmatprep.subr.bf16.mxu1 %v4848_v18  ;;  %v5919_v18 = vunpack.i.l.bf16 %v8785_v61  ;;  %v4862_v61 = vpack.c.bf16 %v3359_v11, %v3358_v47  ;;  %v5855_v62 = vunpack.i.h.bf16 %v8736_v49  ;;  %v5854_v42 = vunpack.i.l.bf16 %v8736_v49  ;;  %vm9815_vm9 = vmmov %vm9814_vm8 }
 0x6bc   : > { %4851 = vmatpush1.bf16.msra.mxu1 %v4850_v53  ;;  %v5850_v32 = vunpack.i.h.bf16 %v8738_v57  ;;  %v5849_v4 = vunpack.i.l.bf16 %v8738_v57  ;;  %v3401_v49 = vsel %vm915_vm12, %v5999_v12, %v6000_v43  ;;  %v5970_v10 = vunpack.i.h.bf16 %v8817_v40  ;;  %vm9816_vm7 = vmmov %vm9814_vm8 }
 0x6bd   : > { %v8876_v16 = vpop.permute.xlu1 %6047  ;;  %v6053_v5 = vpop.permute.xlu0 %6052  ;;  %4853 = vmatprep.subr.bf16.mxu1 %v4852_v63  ;;  %v3420_v63 = vsel %vm915_vm12, %v5879_v24, %v5880_v37  ;;  %v3400_v26 = vsel %vm915_vm12, %v5919_v18, %v5920_v46  ;;  %v6004_v37 = vunpack.i.l.bf16 %v8825_v29  ;;  %v5969_v57 = vunpack.i.l.bf16 %v8817_v40  ;;  %vm9817_vm14 = vmmov %vm9816_vm7 }
 0x6be   : > { %v6055_v41 = vunpack.i.h.bf16 %v6053_v5  ;;  %v6054_v21 = vunpack.i.l.bf16 %v6053_v5  ;;  %v4864_v5 = vpack.c.bf16 %v3421_v31, %v3420_v63  ;;  %v5925_v24 = vunpack.i.h.bf16 %v8787_v22  ;;  %vm9818_vm15 = vmmov %vm9816_vm7 }
 0x6bf   : > { %v5930_v18 = vunpack.i.h.bf16 %v8799_v45  ;;  %v5929_v11 = vunpack.i.l.bf16 %v8799_v45  ;;  %v5895_v47 = vunpack.i.h.bf16 %v8765_v19  ;;  %vm9820_vm5 = vmmov %vm9816_vm7 }
 0x6c0   : > { %4855 = vmatpush1.bf16.msra.mxu1 %v4854_v2  ;;  %v3338_v56 = vsel %vm809_vm10, %v6054_v21, %v6055_v41  ;;  %v3441_v41 = vsel %vm9814_vm8, %v5844_v38, %v5845_v1  ;;  %v3399_v21 = vsel %vm915_vm12, %v5839_v14, %v5840_v39  ;;  %v5885_v2 = vunpack.i.h.bf16 %v8758_v23  ;;  %vm9823_vm8 = vmmov %vm9819_vm4 }
 0x6c1   : > { %v6063_v52 = vpop.permute.xlu1 %6062  ;;  %v8890_v20 = vpop.permute.xlu0 %6057  ;;  %v4856_v6 = vpack.c.bf16 %v3378_v54, %v3338_v56  ;;  %v5884_v54 = vunpack.i.l.bf16 %v8758_v23  ;;  %v5965_v1 = vunpack.i.h.bf16 %v8815_v28  ;;  %v4866_v0 = vpack.c.bf16 %v3400_v26, %v3399_v21 }
 0x6c2   : > { %v6065_v44 = vunpack.i.h.bf16 %v6063_v52  ;;  %v6064_v13 = vunpack.i.l.bf16 %v6063_v52  ;;  %v5964_v23 = vunpack.i.l.bf16 %v8815_v28  ;;  %v6005_v56 = vunpack.i.h.bf16 %v8825_v29 }
 0x6c3   : > { %4857 = vmatprep.subr.bf16.mxu1 %v4856_v6  ;;  %v3462_v52 = vsel %vm9815_vm9, %v5884_v54, %v5885_v2  ;;  %v5890_v6 = vunpack.i.h.bf16 %v8767_v58  ;;  %v5924_v28 = vunpack.i.l.bf16 %v8787_v22  ;;  %v4870_v40 = vpack.c.bf16 %v3441_v41, %v3401_v49 }
 0x6c4   : > { %4859 = vmatpush1.bf16.msra.mxu1 %v4858_v15  ;;  %v3380_v53 = vsel %vm862_vm11, %v6064_v13, %v6065_v44  ;;  %v5889_v15 = vunpack.i.l.bf16 %v8767_v58  ;;  %v3443_v14 = vsel %vm9816_vm7, %v6004_v37, %v6005_v56  ;;  %v6010_v22 = vunpack.i.h.bf16 %v8831_v51  ;;  %vm9825_vm7 = vmmov %vm9819_vm4 }
 0x6c5   : > { %v8902_v34 = vpop.permute.xlu1 %6067  ;;  %v8904_v55 = vpop.permute.xlu0 %6072  ;;  %v4860_v8 = vpack.c.bf16 %v3380_v53, %v3379_v3  ;;  %v3463_v3 = vsel %vm9817_vm14, %v5964_v23, %v5965_v1  ;;  %v6009_v53 = vunpack.i.l.bf16 %v8831_v51  ;;  %v3505_v58 = vsel %vm9819_vm4, %v5969_v57, %v5970_v10 }
 0x6c6   : > { %v3442_v45 = vsel %vm9820_vm5, %v5924_v28, %v5925_v24  ;;  %v3504_v12 = vsel %vm9821_vm13, %v5889_v15, %v5890_v6  ;;  %v3484_v51 = vsel %vm9822_vm6, %v5929_v11, %v5930_v18  ;;  %v6014_v41 = vunpack.i.l.bf16 %v8829_v27 }
 0x6c7   : > { %4861 = vmatprep.subr.bf16.mxu1 %v4860_v8  ;;  %v5894_v8 = vunpack.i.l.bf16 %v8765_v19  ;;  %v4874_v43 = vpack.c.bf16 %v3443_v14, %v3442_v45  ;;  %v4876_v21 = vpack.c.bf16 %v3505_v58, %v3504_v12  ;;  %v3485_v19 = vsel %vm9823_vm8, %v6009_v53, %v6010_v22 }
 0x6c8   : > { %4863 = vmatpush1.bf16.msra.mxu1 %v4862_v61  ;;  %vm9824_vm9 = vcmask 908288   ;;  %v3483_v54 = vsel %vm9825_vm7, %v5849_v4, %v5850_v32  ;;  %v5975_v37 = vunpack.i.h.bf16 %v8819_v48  ;;  %v5974_v49 = vunpack.i.l.bf16 %v8819_v48 }
 0x6c9   : > { %v8918_v9 = vpop.permute.xlu1 %6087  ;;  %v6078_v33 = vpop.permute.xlu0 %6077  ;;  %4865 = vmatprep.subr.bf16.mxu1 %v4864_v5  ;;  %v6015_v5 = vunpack.i.h.bf16 %v8829_v27  ;;  %v3525_v2 = vsel %vm9824_vm9, %v5854_v42, %v5855_v62  ;;  %vm9826_vm14 = vmmov %vm9824_vm9  ;;  %v4878_v56 = vpack.c.bf16 %v3484_v51, %v3483_v54  ;;  %v6030_v32 = vunpack.i.h.bf16 %v8837_v50 }
 0x6ca   : > { %v6080_v38 = vunpack.i.h.bf16 %v6078_v33  ;;  %v6079_v30 = vunpack.i.l.bf16 %v6078_v33  ;;  %v5935_v33 = vunpack.i.h.bf16 %v8801_v36  ;;  %v4882_v42 = vpack.c.bf16 %v3525_v2, %v3485_v19  ;;  %vm9828_vm5 = vmmov %vm9824_vm9 }
 0x6cb   : > { %v6025_v4 = vunpack.i.h.bf16 %v8848_v60  ;;  %v6024_v10 = vunpack.i.l.bf16 %v8848_v60  ;;  %v6035_v28 = vunpack.i.h.bf16 %v8864_v35  ;;  %vm9829_vm13 = vmmov %vm9828_vm5  ;;  %vm9831_vm8 = vcmask 900096  }
 0x6cc   : > { %4867 = vmatpush1.bf16.msra.mxu1 %v4866_v0  ;;  %v3422_v7 = vsel %vm915_vm12, %v6079_v30, %v6080_v38  ;;  %v3546_v30 = vsel %vm9826_vm14, %v5894_v8, %v5895_v47  ;;  %v5934_v0 = vunpack.i.l.bf16 %v8801_v36  ;;  %v6029_v36 = vunpack.i.l.bf16 %v8837_v50  ;;  %vm9830_vm6 = vmmov %vm9828_vm5 }
 0x6cd   : > { %v6098_v44 = vpop.permute.xlu1 %6097  ;;  %v8932_v13 = vpop.permute.xlu0 %6082  ;;  %v4868_v29 = vpack.c.bf16 %v3462_v52, %v3422_v7  ;;  %v6045_v7 = vunpack.i.h.bf16 %v8862_v17  ;;  %v6044_v52 = vunpack.i.l.bf16 %v8862_v17  ;;  %v3547_v50 = vsel %vm9829_vm13, %v5974_v49, %v5975_v37  ;;  %vm9833_vm7 = vmmov %vm9831_vm8 }
 0x6ce   : > { %v6100_v39 = vunpack.i.h.bf16 %v6098_v44  ;;  %v6099_v46 = vunpack.i.l.bf16 %v6098_v44  ;;  %v6034_v44 = vunpack.i.l.bf16 %v8864_v35  ;;  %v3526_v60 = vsel %vm9828_vm5, %v5934_v0, %v5935_v33  ;;  %vm9834_vm14 = vmmov %vm9833_vm7 }
 0x6cf   : > { %4869 = vmatprep.subr.bf16.mxu1 %v4868_v29  ;;  %v3588_v17 = vsel %vm9831_vm8, %v6024_v10, %v6025_v4  ;;  %v3568_v14 = vsel %vm9833_vm7, %v6044_v52, %v6045_v7  ;;  %v6070_v22 = vunpack.i.h.bf16 %v8902_v34  ;;  %v6069_v53 = vunpack.i.l.bf16 %v8902_v34 }
 0x6d0   : > { %4871 = vmatpush1.bf16.msra.mxu1 %v4870_v40  ;;  %v3464_v31 = vsel %vm9818_vm15, %v6099_v46, %v6100_v39  ;;  %vm9827_vm15 = vmmov %vm9824_vm9  ;;  %v6050_v58 = vunpack.i.h.bf16 %v8876_v16  ;;  %v6049_v47 = vunpack.i.l.bf16 %v8876_v16  ;;  %v6060_v45 = vunpack.i.h.bf16 %v8890_v20 }
 0x6d1   : > { %v8946_v61 = vpop.permute.xlu1 %6102  ;;  %v8948_v63 = vpop.permute.xlu0 %6092  ;;  %v4872_v26 = vpack.c.bf16 %v3464_v31, %v3463_v3  ;;  %v3527_v62 = vsel %vm9827_vm15, %v6014_v41, %v6015_v5  ;;  %vm9832_vm9 = vmmov %vm9831_vm8  ;;  %v3567_v3 = vsel %vm9834_vm14, %v6034_v44, %v6035_v28  ;;  %v3609_v5 = vsel %vm1180_vm2, %v6069_v53, %v6070_v22 }
 0x6d2   : > { %v4886_v46 = vpack.c.bf16 %v3527_v62, %v3526_v60  ;;  %v3589_v35 = vsel %vm9832_vm9, %v6029_v36, %v6030_v32  ;;  %v4890_v8 = vpack.c.bf16 %v3568_v14, %v3567_v3  ;;  %v6074_v34 = vunpack.i.l.bf16 %v8904_v55  ;;  %vm9835_vm15 = vmmov %vm9833_vm7 }
 0x6d3   : > { %4873 = vmatprep.subr.bf16.mxu1 %v4872_v26  ;;  %v4888_v31 = vpack.c.bf16 %v3589_v35, %v3588_v17  ;;  %v6059_v26 = vunpack.i.l.bf16 %v8890_v20  ;;  %v6085_v19 = vunpack.i.h.bf16 %v8932_v13  ;;  %v6084_v16 = vunpack.i.l.bf16 %v8932_v13 }
 0x6d4   : > { %4875 = vmatpush1.bf16.msra.mxu1 %v4874_v43  ;;  %v6075_v43 = vunpack.i.h.bf16 %v8904_v55  ;;  %v6095_v2 = vunpack.i.h.bf16 %v8948_v63  ;;  %v6094_v54 = vunpack.i.l.bf16 %v8948_v63  ;;  %v6105_v20 = vunpack.i.h.bf16 %v8946_v61 }
 0x6d5   : > { %v8958_v1 = vpop.permute.xlu1 %6117  ;;  %v6108_v38 = vpop.permute.xlu0 %6107  ;;  %4877 = vmatprep.subr.bf16.mxu1 %v4876_v21  ;;  %v6104_v33 = vunpack.i.l.bf16 %v8946_v61  ;;  %v6090_v0 = vunpack.i.h.bf16 %v8918_v9  ;;  %v3610_v62 = vsel %vm1180_vm2, %v6084_v16, %v6085_v19  ;;  %vm9837_vm5 = vcmask 875520  }
 0x6d6   : > { %v6110_v27 = vunpack.i.h.bf16 %v6108_v38  ;;  %v6109_v23 = vunpack.i.l.bf16 %v6108_v38  ;;  %v3631_v61 = vsel %vm1180_vm2, %v6074_v34, %v6075_v43  ;;  %v3672_v4 = vsel %vm1233_vm3, %v6094_v54, %v6095_v2  ;;  %vm9838_vm13 = vmmov %vm9837_vm5  ;;  %v3769_v2 = vld [vmem:[%s9284_s5 + $0x20] sm:$0xff] }
 0x6d7   : > { %v3673_v36 = vsel %vm1233_vm3, %v6104_v33, %v6105_v20  ;;  %v6120_v52 = vunpack.i.h.bf16 %v8958_v1  ;;  %vm9840_vm8 = vmmov %vm9837_vm5  ;;  %vm9843_vm14 = vcmask 867328  }
 0x6d8   : > { %4879 = vmatpush1.bf16.msra.mxu1 %v4878_v56  ;;  %v3506_v57 = vsel %vm9819_vm4, %v6109_v23, %v6110_v27  ;;  %vm9836_vm4 = vmmov %vm9833_vm7  ;;  %v6089_v27 = vunpack.i.l.bf16 %v8918_v9  ;;  %v4900_v17 = vpack.c.bf16 %v3673_v36, %v3672_v4 }
 0x6d9   : > { %v6123_v6 = vpop.permute.xlu1 %6122  ;;  %v8972_v48 = vpop.permute.xlu0 %6112  ;;  %v4880_v24 = vpack.c.bf16 %v3546_v30, %v3506_v57  ;;  %v3630_v30 = vsel %vm1180_vm2, %v6049_v47, %v6050_v58  ;;  %v3569_v55 = vsel %vm9836_vm4, %v6059_v26, %v6060_v45  ;;  %vm9841_vm9 = vmmov %vm9837_vm5 }
 0x6da   : > { %v6125_v29 = vunpack.i.h.bf16 %v6123_v6  ;;  %v6124_v15 = vunpack.i.l.bf16 %v6123_v6  ;;  %v4894_v63 = vpack.c.bf16 %v3609_v5, %v3569_v55  ;;  %v6114_v32 = vunpack.i.l.bf16 %v8972_v48  ;;  %vm9842_vm7 = vmmov %vm9837_vm5 }
 0x6db   : > { %4881 = vmatprep.subr.bf16.mxu1 %v4880_v24  ;;  %v3611_v7 = vsel %vm1180_vm2, %v6089_v27, %v6090_v0  ;;  %v6119_v6 = vunpack.i.l.bf16 %v8958_v1  ;;  %v3768_v27 = vld [vmem:[%s9284_s5 + $0x18] sm:$0xff]  ;;  %vm9845_vm4 = vmmov %vm9843_vm14 }
 0x6dc   : > { %4883 = vmatpush1.bf16.msra.mxu1 %v4882_v42  ;;  %v3548_v39 = vsel %vm9830_vm6, %v6124_v15, %v6125_v29  ;;  %v6115_v42 = vunpack.i.h.bf16 %v8972_v48  ;;  %v4898_v48 = vpack.c.bf16 %v3611_v7, %v3610_v62  ;;  %vm9839_vm6 = vmmov %vm9837_vm5 }
 0x6dd   : > { %v8980_v40 = vpop.permute.xlu1 %6127  ;;  %v8982_v18 = vpop.permute.xlu0 %6132  ;;  %v4884_v11 = vpack.c.bf16 %v3548_v39, %v3547_v50  ;;  %v3652_v35 = vsel %vm1233_vm3, %v6119_v6, %v6120_v52 }
 0x6de   : > { %v6135_v29 = vunpack.i.h.bf16 %v8982_v18  ;;  %v6134_v15 = vunpack.i.l.bf16 %v8982_v18  ;;  %v3651_v60 = vsel %vm1233_vm3, %v6114_v32, %v6115_v42  ;;  %v6130_v50 = vunpack.i.h.bf16 %v8980_v40 }
 0x6df   : > { %4885 = vmatprep.subr.bf16.mxu1 %v4884_v11  ;;  %v6129_v39 = vunpack.i.l.bf16 %v8980_v40  ;;  %v4902_v18 = vpack.c.bf16 %v3652_v35, %v3651_v60 }
 0x6e0   : > { %4887 = vmatpush1.bf16.msra.mxu1 %v4886_v46 }
 0x6e1   : > { %v6138_v12 = vpop.permute.xlu1 %6137  ;;  %v6143_v51 = vpop.permute.xlu0 %6142  ;;  %4889 = vmatprep.subr.bf16.mxu1 %v4888_v31  ;;  %v3653_v31 = vsel %vm1233_vm3, %v6134_v15, %v6135_v29 }
 0x6e2   : > { %v6145_v41 = vunpack.i.h.bf16 %v6143_v51  ;;  %v6144_v21 = vunpack.i.l.bf16 %v6143_v51  ;;  %v6140_v10 = vunpack.i.h.bf16 %v6138_v12  ;;  %v6139_v9 = vunpack.i.l.bf16 %v6138_v12  ;;  %v3765_v51 = vld [vmem:[%s9284_s5] sm:$0xff] }
 0x6e4   : > { %4891 = vmatpush1.bf16.msra.mxu1 %v4890_v8  ;;  %v3590_v38 = vsel %vm9835_vm15, %v6144_v21, %v6145_v41  ;;  %v3693_v46 = vsel %vm9837_vm5, %v6139_v9, %v6140_v10  ;;  %v3714_v8 = vsel %vm9838_vm13, %v6129_v39, %v6130_v50  ;;  %vm9844_vm15 = vmmov %vm9843_vm14 }
 0x6e5   : > { %v6158_v13 = vpop.permute.xlu1 %6157  ;;  %v9007_v23 = vpop.permute.xlu0 %6147  ;;  %v4892_v56 = vpack.c.bf16 %v3630_v30, %v3590_v38  ;;  %v4906_v40 = vpack.c.bf16 %v3693_v46, %v3653_v31  ;;  %vm9846_vm5 = vmmov %vm9845_vm4 }
 0x6e6   : > { %v6160_v37 = vunpack.i.h.bf16 %v6158_v13  ;;  %v6159_v49 = vunpack.i.l.bf16 %v6158_v13  ;;  %v6150_v45 = vunpack.i.h.bf16 %v9007_v23  ;;  %v6149_v26 = vunpack.i.l.bf16 %v9007_v23  ;;  %vm9847_vm13 = vmmov %vm9845_vm4 }
 0x6e7   : > { %4893 = vmatprep.subr.bf16.mxu1 %v4892_v56 }
 0x6e8   : > { %4895 = vmatpush1.bf16.msra.mxu1 %v4894_v63  ;;  %v3632_v57 = vsel %vm1180_vm2, %v6159_v49, %v6160_v37  ;;  %v3715_v30 = vsel %vm9841_vm9, %v6149_v26, %v6150_v45 }
 0x6e9   : > { %v6163_v24 = vpop.permute.xlu1 %6162  ;;  %v6153_v28 = vpop.permute.xlu0 %6152  ;;  %v4896_v44 = vpack.c.bf16 %v3632_v57, %v3631_v61 }
 0x6ea   : > { %v6165_v11 = vunpack.i.h.bf16 %v6163_v24  ;;  %v6164_v1 = vunpack.i.l.bf16 %v6163_v24  ;;  %v6155_v14 = vunpack.i.h.bf16 %v6153_v28  ;;  %v6154_v3 = vunpack.i.l.bf16 %v6153_v28  ;;  %v3767_v28 = vld [vmem:[%s9284_s5 + $0x10] sm:$0xff] }
 0x6eb   : > { %4897 = vmatprep.subr.bf16.mxu1 %v4896_v44  ;;  %v3770_v44 = vld [vmem:[%s9284_s5 + $0x28] sm:$0xff] }
 0x6ec   : > { %4899 = vmatpush1.bf16.msra.mxu1 %v4898_v48  ;;  %v3695_v43 = vsel %vm9839_vm6, %v6164_v1, %v6165_v11  ;;  %v3694_v5 = vsel %vm9840_vm8, %v6154_v3, %v6155_v14  ;;  %vm9848_vm6 = vmmov %vm9845_vm4  ;;  %vm3861_vm8 = vcmask 457728  }
 0x6ed   : > { %v6178_v22 = vpop.permute.xlu1 %6177  ;;  %v6168_v53 = vpop.permute.xlu0 %6167  ;;  %4901 = vmatprep.subr.bf16.mxu1 %v4900_v17  ;;  %v4910_v13 = vpack.c.bf16 %v3695_v43, %v3694_v5 }
 0x6ee   : > { %v6170_v58 = vunpack.i.h.bf16 %v6168_v53  ;;  %v6169_v47 = vunpack.i.l.bf16 %v6168_v53  ;;  %v6180_v34 = vunpack.i.h.bf16 %v6178_v22  ;;  %v6179_v41 = vunpack.i.l.bf16 %v6178_v22 }
 0x6f0   : > { %4903 = vmatpush1.bf16.msra.mxu1 %v4902_v18  ;;  %v3674_v12 = vsel %vm1233_vm3, %v6169_v47, %v6170_v58  ;;  %v3757_v37 = vsel %vm9844_vm15, %v6179_v41, %v6180_v34 }
 0x6f1   : > { %v6188_v21 = vpop.permute.xlu1 %6187  ;;  %v6173_v19 = vpop.permute.xlu0 %6172  ;;  %v4904_v16 = vpack.c.bf16 %v3714_v8, %v3674_v12 }
 0x6f2   : > { %v6190_v54 = vunpack.i.h.bf16 %v6188_v21  ;;  %v6189_v20 = vunpack.i.l.bf16 %v6188_v21  ;;  %v6175_v33 = vunpack.i.h.bf16 %v6173_v19  ;;  %v6174_v38 = vunpack.i.l.bf16 %v6173_v19 }
 0x6f3   : > { %4905 = vmatprep.subr.bf16.mxu1 %v4904_v16  ;;  %3933 = vmatmul.mubr.f32.vlgmr.msra.gmra.mrb[6].mxu1 %v3765_v51 }
 0x6f4   : > { %4907 = vmatpush1.bf16.msra.mxu1 %v4906_v40  ;;  %v3716_v55 = vsel %vm9842_vm7, %v6189_v20, %v6190_v54  ;;  %v3756_v0 = vsel %vm9843_vm14, %v6174_v38, %v6175_v33  ;;  %3938 = vmatprep.mubr.f32.mxu1 %v3769_v2  ;;  %v4327_v54 = vld [vmem:[#allocation6 + $0x8] sm:$0xff]  ;;  %v4366_v20 = vld [vmem:[%s9287_s8] sm:$0xff] }
 0x6f5   : > { %v6193_v23 = vpop.permute.xlu1 %6192  ;;  %v6183_v56 = vpop.permute.xlu0 %6182  ;;  %v4908_v63 = vpack.c.bf16 %v3716_v55, %v3715_v30  ;;  %v4912_v32 = vpack.c.bf16 %v3757_v37, %v3756_v0  ;;  %v4367_v33 = vld [vmem:[%s9287_s8 + $0x8] sm:$0xff] }
 0x6f6   : > { %v6195_v49 = vunpack.i.h.bf16 %v6193_v23  ;;  %v6194_v61 = vunpack.i.l.bf16 %v6193_v23  ;;  %v6185_v62 = vunpack.i.h.bf16 %v6183_v56  ;;  %v6184_v42 = vunpack.i.l.bf16 %v6183_v56 }
 0x6f7   : > { %4909 = vmatprep.subr.bf16.mxu1 %v4908_v63  ;;  %3939 = vmatmul.mubr.f32.gmra.mrb[8].mxu1 %v3768_v27 }
 0x6f8   : > { %v3736_v4 = vsel %vm9845_vm4, %v6194_v61, %v6195_v49  ;;  %v3735_v10 = vsel %vm9846_vm5, %v6184_v42, %v6185_v62  ;;  %4911 = vmatpush1.bf16.msra.mxu1 %v4910_v13  ;;  %4009 = vmatprep.mubr.f32.mxu1 %v9812_v59  ;;  %vm9853_vm5 = vcmask 916480  }
 0x6f9   : > { %v4914_v9 = vpack.c.bf16 %v3736_v4, %v3735_v10  ;;  %v3755_v57 = vpop.permute.xlu1 %3754  ;;  %v3753_v36 = vpop.permute.xlu0 %3752  ;;  %4913 = vmatprep.subr.bf16.mxu1 %v4912_v32 }
 0x6fa   : > { %v3758_v7 = vsel %vm9847_vm13, %v3753_v36, %v3755_v57  ;;  %vm9854_vm13 = vmmov %vm9853_vm5 }
 0x6fc   : > { %4915 = vmatpush1.bf16.msra.mxu1 %v4914_v9 }
 0x6fd   : > { %v3734_v52 = vpop.permute.xlu1 %3733  ;;  %v3732_v6 = vpop.permute.xlu0 %3731  ;;  %3957 = vmatprep.subr.mxu1 %v3758_v7 }
 0x6fe   : > { %v3737_v24 = vsel %vm9848_vm6, %v3732_v6, %v3734_v52  ;;  %vm9855_vm6 = vmmov %vm9853_vm5 }
 0x700   : > { %3958 = vmatpush1.msra.mxu1 %v3737_v24 }
 0x701   : > { %4693 = vmatmul.mubr.msk.f32.vlgmr.msra.gmra.mrb[6].mxu1 %vm3861_vm8, %v3767_v28 }
 0x702   : > { %4015 = vmatprep.mubr.f32.mxu1 %v9812_v59 }
 0x705   : > { %4694 = vmatmul.mubr.msk.f32.gmra.mrb[8].mxu1 %vm3861_vm8, %v3770_v44  ;;  %vm9856_vm8 = vmmov %vm9853_vm5 }
 0x706   : > { %4695 = vmatprep.mubr.msk.f32.mxu1 %vm402_vm0, %v4327_v54 }
 0x70e   : > { %v3854_v29 = vpop.permute.xlu0 %3853  ;;  %v3859_v46 = vpop.permute.xlu1 %3858 }
 0x7d4   : > { %v4011_v48 = vpop.f32.mrb[6].mxu1 }
 0x7d5   : > { %v4013_v15 = vpop.f32.mrb[7].mxu1  ;;  %v4964_v60 = vadd.f32 %v4011_v48, %v3854_v29 }
 0x7d6   : > { %v4965_v50 = vadd.f32 %v4013_v15, %v3854_v29 }
 0x7d7   : > { %v4026_v1 = vmul.f32 0.05, %v4964_v60  ;;  %vm4022_vm7 = vcmp.gt.f32.partialorder %v4964_v60, 0.0 }
 0x7d8   : > { %vm4023_vm9 = vcmp.gt.f32.partialorder %v4965_v50, 0.0  ;;  %v4027_v39 = vmul.f32 0.05, %v4965_v50  ;;  %v4017_v17 = vpop.f32.mrb[8].mxu1 }
 0x7d9   : > { %v4019_v11 = vpop.f32.mrb[9].mxu1  ;;  %v4966_v35 = vadd.f32 %v4017_v17, %v3859_v46  ;;  %v4030_v18 = vsel %vm4022_vm7, %v4964_v60, %v4026_v1 }
 0x7da   : > { %v4967_v14 = vadd.f32 %v4019_v11, %v3859_v46  ;;  %v4031_v3 = vsel %vm4023_vm9, %v4965_v50, %v4027_v39  ;;  %vm9857_vm9 = vcmask 908288  }
 0x7db   : > { %4048 = vrot.lane.b32.xlu0 %v4031_v3, %s9722_s30  ;;  %v4028_v22 = vmul.f32 0.05, %v4966_v35  ;;  %vm4024_vm15 = vcmp.gt.f32.partialorder %v4966_v35, 0.0  ;;  %vm9858_vm7 = vmmov %vm9857_vm9 }
 0x7dc   : > { %vm4025_vm14 = vcmp.gt.f32.partialorder %v4967_v14, 0.0  ;;  %v4029_v59 = vmul.f32 0.05, %v4967_v14 }
 0x7dd   : > { %v4032_v31 = vsel %vm4024_vm15, %v4966_v35, %v4028_v22  ;;  %vm9860_vm15 = vmmov %vm9858_vm7 }
 0x7de   : > { %v4033_v53 = vsel %vm4025_vm14, %v4967_v14, %v4029_v59  ;;  %vm9859_vm14 = vmmov %vm9858_vm7 }
 0x7df   : > { %4050 = vrot.lane.b32.xlu1 %v4033_v53, %s9722_s30  ;;  %4036 = vrot.lane.b32.xlu0 %v4030_v18, %s9722_s30 }
 0x7e3   : > { %4038 = vrot.lane.b32.xlu1 %v4032_v31, %s9722_s30 }
 0x84d   : > { %v4049_v58 = vpop.permute.xlu0 %4048 }
 0x84e   : > { %4054 = vst.msk [vmem:[#allocation3 + $0x10] sm:$0xff] %vm1696_vm1, %v4049_v58 }
 0x84f   : > { %4055 = vst.msk [vmem:[#allocation3 + $0x18] sm:$0xff] %vm402_vm0, %v4049_v58 }
 0x851   : > { %v4051_v47 = vpop.permute.xlu1 %4050  ;;  %v4037_v40 = vpop.permute.xlu0 %4036 }
 0x852   : > { %4056 = vst.msk [vmem:[#allocation3 + $0x30] sm:$0xff] %vm1696_vm1, %v4051_v47  ;;  %4042 = vst.msk [vmem:[#allocation3] sm:$0xff] %vm1696_vm1, %v4037_v40 }
 0x853   : > { %4057 = vst.msk [vmem:[#allocation3 + $0x38] sm:$0xff] %vm402_vm0, %v4051_v47  ;;  %4043 = vst.msk [vmem:[#allocation3 + $0x8] sm:$0xff] %vm402_vm0, %v4037_v40 }
 0x855   : > { %v4039_v8 = vpop.permute.xlu1 %4038  ;;  %v4060_v34 = vld [vmem:[#allocation3 + $0x10] sm:$0xff] }
 0x856   : > { %4044 = vst.msk [vmem:[#allocation3 + $0x20] sm:$0xff] %vm1696_vm1, %v4039_v8  ;;  %v4061_v41 = vld [vmem:[#allocation3 + $0x18] sm:$0xff] }
 0x857   : > { %4045 = vst.msk [vmem:[#allocation3 + $0x28] sm:$0xff] %vm402_vm0, %v4039_v8  ;;  %v6236_v21 = vpack.i.bf16 %v4061_v41, %v4060_v34 }
 0x859   : > { %v4058_v45 = vld [vmem:[#allocation3] sm:$0xff]  ;;  %v4064_v19 = vld [vmem:[#allocation3 + $0x30] sm:$0xff] }
 0x85a   : > { %v4059_v26 = vld [vmem:[#allocation3 + $0x8] sm:$0xff]  ;;  %v4065_v16 = vld [vmem:[#allocation3 + $0x38] sm:$0xff] }
 0x85b   : > { %v6196_v43 = vpack.i.bf16 %v4059_v26, %v4058_v45  ;;  %v6326_v2 = vpack.i.bf16 %v4065_v16, %v4064_v19 }
 0x85d   : > { %6197 = vrot.lane.b32.xlu0 %v6196_v43, %s9739_s13  ;;  %v4062_v12 = vld [vmem:[#allocation3 + $0x20] sm:$0xff] }
 0x85e   : > { %v4063_v51 = vld [vmem:[#allocation3 + $0x28] sm:$0xff] }
 0x85f   : > { %v6286_v5 = vpack.i.bf16 %v4063_v51, %v4062_v12 }
 0x861   : > { %6287 = vrot.lane.b32.xlu1 %v6286_v5, %s9739_s13  ;;  %6202 = vrot.lane.b32.xlu0 %v6196_v43, %s9740_s14 }
 0x865   : > { %6292 = vrot.lane.b32.xlu1 %v6286_v5, %s9740_s14  ;;  %6207 = vrot.lane.b32.xlu0 %v6196_v43, %s9741_s12 }
 0x869   : > { %6297 = vrot.lane.b32.xlu1 %v6286_v5, %s9741_s12  ;;  %6212 = vrot.lane.b32.xlu0 %v6196_v43, %s9742_s26 }
 0x86d   : > { %6302 = vrot.lane.b32.xlu1 %v6286_v5, %s9742_s26  ;;  %6217 = vrot.lane.b32.xlu0 %v6196_v43, %s9743_s18 }
 0x871   : > { %6307 = vrot.lane.b32.xlu1 %v6286_v5, %s9743_s18  ;;  %6222 = vrot.lane.b32.xlu0 %v6196_v43, %s9744_s15 }
 0x875   : > { %6312 = vrot.lane.b32.xlu1 %v6286_v5, %s9744_s15  ;;  %6227 = vrot.lane.b32.xlu0 %v6196_v43, %s9745_s16 }
 0x879   : > { %6317 = vrot.lane.b32.xlu1 %v6286_v5, %s9745_s16  ;;  %6232 = vrot.lane.b32.xlu0 %v6196_v43, %s9813_s19 }
 0x87d   : > { %6322 = vrot.lane.b32.xlu1 %v6286_v5, %s9813_s19  ;;  %6237 = vrot.lane.b32.xlu0 %v6236_v21, %s9739_s13 }
 0x881   : > { %6327 = vrot.lane.b32.xlu1 %v6326_v2, %s9739_s13  ;;  %6242 = vrot.lane.b32.xlu0 %v6236_v21, %s9740_s14 }
 0x885   : > { %6332 = vrot.lane.b32.xlu1 %v6326_v2, %s9740_s14  ;;  %6247 = vrot.lane.b32.xlu0 %v6236_v21, %s9741_s12 }
 0x889   : > { %6337 = vrot.lane.b32.xlu1 %v6326_v2, %s9741_s12  ;;  %6252 = vrot.lane.b32.xlu0 %v6236_v21, %s9742_s26 }
 0x88d   : > { %6342 = vrot.lane.b32.xlu1 %v6326_v2, %s9742_s26  ;;  %6257 = vrot.lane.b32.xlu0 %v6236_v21, %s9743_s18 }
 0x891   : > { %6347 = vrot.lane.b32.xlu1 %v6326_v2, %s9743_s18  ;;  %6262 = vrot.lane.b32.xlu0 %v6236_v21, %s9744_s15 }
 0x895   : > { %6352 = vrot.lane.b32.xlu1 %v6326_v2, %s9744_s15  ;;  %6267 = vrot.lane.b32.xlu0 %v6236_v21, %s9745_s16 }
 0x899   : > { %6357 = vrot.lane.b32.xlu1 %v6326_v2, %s9745_s16  ;;  %6272 = vrot.lane.b32.xlu0 %v6236_v21, %s9813_s19 }
 0x89d   : > { %6362 = vrot.lane.b32.xlu1 %v6326_v2, %s9813_s19  ;;  %6277 = vrot.lane.b32.xlu0 %v6236_v21, %s9746_s0 }
 0x8a1   : > { %6367 = vrot.lane.b32.xlu1 %v6326_v2, %s9746_s0  ;;  %6282 = vrot.lane.b32.xlu0 %v6196_v43, %s9746_s0 }
 0x8a5   : > { %6372 = vrot.lane.b32.xlu1 %v6286_v5, %s9746_s0  ;;  %4370 = vperm.xlu0 %5134, %v4366_v20  }
 0x8a9   : > { %4375 = vperm.xlu1 %5135, %v4367_v33  }
 0x8cf   : > { %v6198_v38 = vpop.permute.xlu0 %6197 }
 0x8d0   : > { %v6200_v52 = vunpack.i.h.bf16 %v6198_v38  ;;  %v6199_v6 = vunpack.i.l.bf16 %v6198_v38 }
 0x8d2   : > { %v4078_v11 = vsel %vm809_vm10, %v6199_v6, %v6200_v52 }
 0x8d3   : > { %v6288_v30 = vpop.permute.xlu1 %6287  ;;  %v6203_v55 = vpop.permute.xlu0 %6202 }
 0x8d4   : > { %v6290_v9 = vunpack.i.h.bf16 %v6288_v30  ;;  %v6289_v57 = vunpack.i.l.bf16 %v6288_v30  ;;  %v6205_v1 = vunpack.i.h.bf16 %v6203_v55  ;;  %v6204_v35 = vunpack.i.l.bf16 %v6203_v55 }
 0x8d6   : > { %v4079_v29 = vsel %vm809_vm10, %v6289_v57, %v6290_v9  ;;  %v4110_v43 = vsel %vm862_vm11, %v6204_v35, %v6205_v1 }
 0x8d7   : > { %v6293_v0 = vpop.permute.xlu1 %6292  ;;  %v9113_v27 = vpop.permute.xlu0 %6207  ;;  %v4918_v22 = vpack.c.bf16 %v4079_v29, %v4078_v11 }
 0x8d8   : > { %v6295_v15 = vunpack.i.h.bf16 %v6293_v0  ;;  %v6294_v60 = vunpack.i.l.bf16 %v6293_v0  ;;  %v6210_v12 = vunpack.i.h.bf16 %v9113_v27  ;;  %v6209_v51 = vunpack.i.l.bf16 %v9113_v27 }
 0x8da   : > { %v4111_v31 = vsel %vm862_vm11, %v6294_v60, %v6295_v15  ;;  %v4138_v0 = vsel %vm915_vm12, %v6209_v51, %v6210_v12 }
 0x8db   : > { %v6298_v13 = vpop.permute.xlu1 %6297  ;;  %v9115_v23 = vpop.permute.xlu0 %6212  ;;  %v4922_v21 = vpack.c.bf16 %v4111_v31, %v4110_v43 }
 0x8dc   : > { %v6300_v58 = vunpack.i.h.bf16 %v6298_v13  ;;  %v6299_v47 = vunpack.i.l.bf16 %v6298_v13  ;;  %v6215_v27 = vunpack.i.h.bf16 %v9115_v23  ;;  %v6214_v13 = vunpack.i.l.bf16 %v9115_v23 }
 0x8de   : > { %v4139_v2 = vsel %vm915_vm12, %v6299_v47, %v6300_v58 }
 0x8df   : > { %v9117_v56 = vpop.permute.xlu1 %6302  ;;  %v9119_v63 = vpop.permute.xlu0 %6217 }
 0x8e0   : > { %v6305_v54 = vunpack.i.h.bf16 %v9117_v56  ;;  %v6304_v20 = vunpack.i.l.bf16 %v9117_v56  ;;  %v6220_v15 = vunpack.i.h.bf16 %v9119_v63  ;;  %v6219_v60 = vunpack.i.l.bf16 %v9119_v63 }
 0x8e3   : > { %v9121_v37 = vpop.permute.xlu1 %6307  ;;  %v9123_v49 = vpop.permute.xlu0 %6222 }
 0x8e4   : > { %v6310_v6 = vunpack.i.h.bf16 %v9121_v37  ;;  %v6224_v31 = vunpack.i.l.bf16 %v9123_v49 }
 0x8e7   : > { %v9125_v61 = vpop.permute.xlu1 %6312  ;;  %v9127_v62 = vpop.permute.xlu0 %6227 }
 0x8e8   : > { %v6315_v35 = vunpack.i.h.bf16 %v9125_v61 }
 0x8eb   : > { %v9129_v42 = vpop.permute.xlu1 %6317  ;;  %v9131_v32 = vpop.permute.xlu0 %6232 }
 0x8ec   : > { %v6320_v43 = vunpack.i.h.bf16 %v9129_v42  ;;  %v6319_v12 = vunpack.i.l.bf16 %v9129_v42 }
 0x8ef   : > { %v9133_v4 = vpop.permute.xlu1 %6322  ;;  %v6238_v10 = vpop.permute.xlu0 %6237 }
 0x8f0   : > { %v6240_v36 = vunpack.i.h.bf16 %v6238_v10  ;;  %v6239_v7 = vunpack.i.l.bf16 %v6238_v10 }
 0x8f2   : > { %v4096_v17 = vsel %vm809_vm10, %v6239_v7, %v6240_v36  ;;  %v4926_v36 = vpack.c.bf16 %v4139_v2, %v4138_v0 }
 0x8f3   : > { %v6328_v24 = vpop.permute.xlu1 %6327  ;;  %v6243_v28 = vpop.permute.xlu0 %6242 }
 0x8f4   : > { %v6330_v44 = vunpack.i.h.bf16 %v6328_v24  ;;  %v6329_v48 = vunpack.i.l.bf16 %v6328_v24  ;;  %v6245_v50 = vunpack.i.h.bf16 %v6243_v28  ;;  %v6244_v39 = vunpack.i.l.bf16 %v6243_v28 }
 0x8f5   : > { %v6309_v24 = vunpack.i.l.bf16 %v9121_v37 }
 0x8f6   : > { %v4097_v46 = vsel %vm809_vm10, %v6329_v48, %v6330_v44  ;;  %v4124_v45 = vsel %vm862_vm11, %v6244_v39, %v6245_v50  ;;  %vm9849_vm10 = vcmask 924672  }
 0x8f7   : > { %v6333_v14 = vpop.permute.xlu1 %6332  ;;  %v6248_v3 = vpop.permute.xlu0 %6247  ;;  %v4916_v59 = vpack.c.bf16 %v4097_v46, %v4096_v17  ;;  %v4167_v52 = vsel %vm9849_vm10, %v6304_v20, %v6305_v54  ;;  %vm9852_vm4 = vmmov %vm9849_vm10  ;;  %v4195_v1 = vsel %vm9853_vm5, %v6309_v24, %v6310_v6 }
 0x8f8   : > { %v6335_v53 = vunpack.i.h.bf16 %v6333_v14  ;;  %v6334_v18 = vunpack.i.l.bf16 %v6333_v14  ;;  %v6250_v40 = vunpack.i.h.bf16 %v6248_v3  ;;  %v6249_v8 = vunpack.i.l.bf16 %v6248_v3 }
 0x8f9   : > { %4917 = vmatprep.subr.bf16.mxu1 %v4916_v59  ;;  %v4166_v29 = vsel %vm9852_vm4, %v6214_v13, %v6215_v27  ;;  %v6314_v14 = vunpack.i.l.bf16 %v9125_v61 }
 0x8fa   : > { %4919 = vmatpush1.bf16.msra.mxu1 %v4918_v22  ;;  %v4125_v26 = vsel %vm862_vm11, %v6334_v18, %v6335_v53  ;;  %v4152_v30 = vsel %vm915_vm12, %v6249_v8, %v6250_v40  ;;  %vm9850_vm11 = vmmov %vm9849_vm10  ;;  %v4930_v46 = vpack.c.bf16 %v4167_v52, %v4166_v29  ;;  %v4194_v53 = vsel %vm9856_vm8, %v6219_v60, %v6220_v15 }
 0x8fb   : > { %v6338_v5 = vpop.permute.xlu1 %6337  ;;  %v6253_v34 = vpop.permute.xlu0 %6252  ;;  %v4920_v41 = vpack.c.bf16 %v4125_v26, %v4124_v45  ;;  %v6225_v18 = vunpack.i.h.bf16 %v9123_v49  ;;  %v4934_v8 = vpack.c.bf16 %v4195_v1, %v4194_v53  ;;  %v4223_v26 = vsel %vm9857_vm9, %v6314_v14, %v6315_v35 }
 0x8fc   : > { %v6340_v19 = vunpack.i.h.bf16 %v6338_v5  ;;  %v6339_v16 = vunpack.i.l.bf16 %v6338_v5  ;;  %v6255_v33 = vunpack.i.h.bf16 %v6253_v34  ;;  %v6254_v38 = vunpack.i.l.bf16 %v6253_v34 }
 0x8fd   : > { %4921 = vmatprep.subr.bf16.mxu1 %v4920_v41  ;;  %v4222_v41 = vsel %vm9860_vm15, %v6224_v31, %v6225_v18  ;;  %v4326_v18 = vld [vmem:[#allocation6] sm:$0xff]  ;;  %v4329_v31 = vld [vmem:[#allocation6 + $0x18] sm:$0xff] }
 0x8fe   : > { %4923 = vmatpush1.bf16.msra.mxu1 %v4922_v21  ;;  %v4153_v55 = vsel %vm915_vm12, %v6339_v16, %v6340_v19  ;;  %v4180_v48 = vsel %vm9850_vm11, %v6254_v38, %v6255_v33  ;;  %vm9851_vm12 = vmmov %vm9849_vm10  ;;  %v6230_v21 = vunpack.i.h.bf16 %v9127_v62  ;;  %v6229_v19 = vunpack.i.l.bf16 %v9127_v62 }
 0x8ff   : > { %v6343_v10 = vpop.permute.xlu1 %6342  ;;  %v6258_v9 = vpop.permute.xlu0 %6257  ;;  %v4924_v57 = vpack.c.bf16 %v4153_v55, %v4152_v30  ;;  %v4938_v20 = vpack.c.bf16 %v4223_v26, %v4222_v41  ;;  %vm9861_vm10 = vcmask 900096   ;;  %v6325_v30 = vunpack.i.h.bf16 %v9133_v4 }
 0x900   : > { %v6345_v7 = vunpack.i.h.bf16 %v6343_v10  ;;  %v6344_v56 = vunpack.i.l.bf16 %v6343_v10  ;;  %v6260_v28 = vunpack.i.h.bf16 %v6258_v9  ;;  %v6259_v44 = vunpack.i.l.bf16 %v6258_v9  ;;  %vm9862_vm11 = vmmov %vm9861_vm10 }
 0x901   : > { %4925 = vmatprep.subr.bf16.mxu1 %v4924_v57  ;;  %v4251_v38 = vsel %vm9861_vm10, %v6319_v12, %v6320_v43  ;;  %v6324_v55 = vunpack.i.l.bf16 %v9133_v4  ;;  %vm9864_vm4 = vmmov %vm9861_vm10  ;;  %v6235_v9 = vunpack.i.h.bf16 %v9131_v32  ;;  %v6234_v57 = vunpack.i.l.bf16 %v9131_v32 }
 0x902   : > { %4927 = vmatpush1.bf16.msra.mxu1 %v4926_v36  ;;  %v4181_v23 = vsel %vm9851_vm12, %v6344_v56, %v6345_v7  ;;  %v4208_v22 = vsel %vm9854_vm13, %v6259_v44, %v6260_v28  ;;  %vm9863_vm12 = vmmov %vm9861_vm10  ;;  %v4250_v10 = vsel %vm9864_vm4, %v6229_v19, %v6230_v21 }
 0x903   : > { %v6348_v50 = vpop.permute.xlu1 %6347  ;;  %v6263_v39 = vpop.permute.xlu0 %6262  ;;  %v4928_v17 = vpack.c.bf16 %v4181_v23, %v4180_v48  ;;  %v4942_v52 = vpack.c.bf16 %v4251_v38, %v4250_v10  ;;  %v4279_v24 = vsel %vm1180_vm2, %v6324_v55, %v6325_v30  ;;  %v4278_v29 = vsel %vm1180_vm2, %v6234_v57, %v6235_v9 }
 0x904   : > { %v6350_v11 = vunpack.i.h.bf16 %v6348_v50  ;;  %v6349_v37 = vunpack.i.l.bf16 %v6348_v50  ;;  %v6265_v3 = vunpack.i.h.bf16 %v6263_v39  ;;  %v6264_v59 = vunpack.i.l.bf16 %v6263_v39 }
 0x905   : > { %4929 = vmatprep.subr.bf16.mxu1 %v4928_v17  ;;  %v4946_v50 = vpack.c.bf16 %v4279_v24, %v4278_v29 }
 0x906   : > { %4931 = vmatpush1.bf16.msra.mxu1 %v4930_v46  ;;  %v4209_v63 = vsel %vm9855_vm6, %v6349_v37, %v6350_v11  ;;  %v4236_v34 = vsel %vm9858_vm7, %v6264_v59, %v6265_v3 }
 0x907   : > { %v6353_v58 = vpop.permute.xlu1 %6352  ;;  %v6268_v47 = vpop.permute.xlu0 %6267  ;;  %v4932_v40 = vpack.c.bf16 %v4209_v63, %v4208_v22 }
 0x908   : > { %v6355_v45 = vunpack.i.h.bf16 %v6353_v58  ;;  %v6354_v61 = vunpack.i.l.bf16 %v6353_v58  ;;  %v6270_v51 = vunpack.i.h.bf16 %v6268_v47  ;;  %v6269_v5 = vunpack.i.l.bf16 %v6268_v47  ;;  %v4328_v58 = vld [vmem:[#allocation6 + $0x10] sm:$0xff] }
 0x909   : > { %4933 = vmatprep.subr.bf16.mxu1 %v4932_v40 }
 0x90a   : > { %4935 = vmatpush1.bf16.msra.mxu1 %v4934_v8  ;;  %v4237_v49 = vsel %vm9859_vm14, %v6354_v61, %v6355_v45  ;;  %v4264_v13 = vsel %vm9862_vm11, %v6269_v5, %v6270_v51 }
 0x90b   : > { %v6358_v16 = vpop.permute.xlu1 %6357  ;;  %v6273_v2 = vpop.permute.xlu0 %6272  ;;  %v4936_v54 = vpack.c.bf16 %v4237_v49, %v4236_v34 }
 0x90c   : > { %v6360_v33 = vunpack.i.h.bf16 %v6358_v16  ;;  %v6359_v42 = vunpack.i.l.bf16 %v6358_v16  ;;  %v6275_v0 = vunpack.i.h.bf16 %v6273_v2  ;;  %v6274_v27 = vunpack.i.l.bf16 %v6273_v2 }
 0x90d   : > { %4937 = vmatprep.subr.bf16.mxu1 %v4936_v54  ;;  %v4505_v54 = vld [vmem:[%s9288_s9] sm:$0xff] }
 0x90e   : > { %4939 = vmatpush1.bf16.msra.mxu1 %v4938_v20  ;;  %v4265_v62 = vsel %vm9863_vm12, %v6359_v42, %v6360_v33  ;;  %v4292_v48 = vsel %vm1180_vm2, %v6274_v27, %v6275_v0  ;;  %v4506_v33 = vld [vmem:[%s9288_s9 + $0x8] sm:$0xff]  ;;  %v4577_v42 = vld [vmem:[#allocation5] sm:$0x1] }
 0x90f   : > { %v6363_v36 = vpop.permute.xlu1 %6362  ;;  %v6278_v7 = vpop.permute.xlu0 %6277  ;;  %v4940_v56 = vpack.c.bf16 %v4265_v62, %v4264_v13 }
 0x910   : > { %v6365_v6 = vunpack.i.h.bf16 %v6363_v36  ;;  %v6364_v4 = vunpack.i.l.bf16 %v6363_v36  ;;  %v6280_v28 = vunpack.i.h.bf16 %v6278_v7  ;;  %v6279_v44 = vunpack.i.l.bf16 %v6278_v7 }
 0x911   : > { %4941 = vmatprep.subr.bf16.mxu1 %v4940_v56 }
 0x912   : > { %4943 = vmatpush1.bf16.msra.mxu1 %v4942_v52  ;;  %v4293_v23 = vsel %vm1180_vm2, %v6364_v4, %v6365_v6  ;;  %v4320_v37 = vsel %vm1233_vm3, %v6279_v44, %v6280_v28 }
 0x913   : > { %v6368_v15 = vpop.permute.xlu1 %6367  ;;  %v6283_v32 = vpop.permute.xlu0 %6282  ;;  %v4944_v60 = vpack.c.bf16 %v4293_v23, %v4292_v48 }
 0x914   : > { %v6370_v39 = vunpack.i.h.bf16 %v6368_v15  ;;  %v6369_v17 = vunpack.i.l.bf16 %v6368_v15  ;;  %v6285_v46 = vunpack.i.h.bf16 %v6283_v32  ;;  %v6284_v11 = vunpack.i.l.bf16 %v6283_v32 }
 0x915   : > { %4945 = vmatprep.subr.bf16.mxu1 %v4944_v60 }
 0x916   : > { %4947 = vmatpush1.bf16.msra.mxu1 %v4946_v50  ;;  %v4321_v1 = vsel %vm1233_vm3, %v6369_v17, %v6370_v39  ;;  %v4306_v22 = vsel %vm1233_vm3, %v6284_v11, %v6285_v46 }
 0x917   : > { %v6373_v35 = vpop.permute.xlu1 %6372  ;;  %v4948_v14 = vpack.c.bf16 %v4321_v1, %v4320_v37 }
 0x918   : > { %v6375_v3 = vunpack.i.h.bf16 %v6373_v35  ;;  %v6374_v59 = vunpack.i.l.bf16 %v6373_v35 }
 0x919   : > { %4949 = vmatprep.subr.bf16.mxu1 %v4948_v14 }
 0x91a   : > { %v4307_v63 = vsel %vm1233_vm3, %v6374_v59, %v6375_v3 }
 0x91b   : > { %v4950_v53 = vpack.c.bf16 %v4307_v63, %v4306_v22 }
 0x91d   : > { %4951 = vmatpush1.bf16.msra.mxu1 %v4950_v53 }
 0x920   : > { %4449 = vmatmul.mubr.f32.vlgmr.msra.gmra.mrb[10].mxu1 %v4326_v18 }
 0x921   : > { %4696 = vmatprep.mubr.msk.f32.mxu1 %vm402_vm0, %v4329_v31 }
 0x924   : > { %4455 = vmatmul.mubr.f32.gmra.mrb[12].mxu1 %v4328_v58  ;;  %v4371_v47 = vpop.permute.xlu0 %4370 }
 0x928   : > { %v4376_v43 = vpop.permute.xlu1 %4375 }
 0x9f3   : > { %v4450_v40 = vpop.f32.mrb[10].mxu1 }
 0x9f4   : > { %v4451_v8 = vadd.f32 %v4450_v40, %v4371_v47  ;;  %v4452_v45 = vpop.f32.mrb[11].mxu1 }
 0x9f5   : > { %v4453_v61 = vadd.f32 %v4452_v45, %v4371_v47 }
 0x9f6   : > { %vm4461_vm2 = vcmp.gt.f32.partialorder %v4451_v8, 0.0  ;;  %v4465_v26 = vmul.f32 0.05, %v4451_v8 }
 0x9f7   : > { %v4456_v12 = vpop.f32.mrb[12].mxu1  ;;  %v4466_v51 = vmul.f32 0.05, %v4453_v61  ;;  %vm4462_vm3 = vcmp.gt.f32.partialorder %v4453_v61, 0.0 }
 0x9f8   : > { %v4457_v5 = vadd.f32 %v4456_v12, %v4376_v43  ;;  %v4458_v34 = vpop.f32.mrb[13].mxu1  ;;  %v4469_v49 = vsel %vm4461_vm2, %v4451_v8, %v4465_v26 }
 0x9f9   : > { %v4459_v41 = vadd.f32 %v4458_v34, %v4376_v43  ;;  %4475 = vrot.lane.b32.xlu0 %v4469_v49, %s9722_s30  ;;  %v4470_v2 = vsel %vm4462_vm3, %v4453_v61, %v4466_v51 }
 0x9fa   : > { %vm4463_vm5 = vcmp.gt.f32.partialorder %v4457_v5, 0.0  ;;  %v4467_v21 = vmul.f32 0.05, %v4457_v5 }
 0x9fb   : > { %v4468_v19 = vmul.f32 0.05, %v4459_v41  ;;  %vm4464_vm13 = vcmp.gt.f32.partialorder %v4459_v41, 0.0 }
 0x9fc   : > { %v4471_v16 = vsel %vm4463_vm5, %v4457_v5, %v4467_v21 }
 0x9fd   : > { %4477 = vrot.lane.b32.xlu1 %v4471_v16, %s9722_s30  ;;  %4487 = vrot.lane.b32.xlu0 %v4470_v2, %s9722_s30  ;;  %v4472_v20 = vsel %vm4464_vm13, %v4459_v41, %v4468_v19 }
 0xa01   : > { %4489 = vrot.lane.b32.xlu1 %v4472_v20, %s9722_s30  ;;  %4509 = vperm.xlu0 %5134, %v4505_v54  }
 0xa05   : > { %4514 = vperm.xlu1 %5135, %v4506_v33   ;;  %4580 = vperm.xlu0 %5134, %v4577_v42  }
 0xa6b   : > { %v4476_v38 = vpop.permute.xlu0 %4475 }
 0xa6c   : > { %4481 = vst.msk [vmem:[#allocation2] sm:$0xff] %vm1696_vm1, %v4476_v38 }
 0xa6d   : > { %4482 = vst.msk [vmem:[#allocation2 + $0x8] sm:$0xff] %vm402_vm0, %v4476_v38 }
 0xa6f   : > { %v4478_v30 = vpop.permute.xlu1 %4477  ;;  %v4488_v55 = vpop.permute.xlu0 %4487 }
 0xa70   : > { %4483 = vst.msk [vmem:[#allocation2 + $0x20] sm:$0xff] %vm1696_vm1, %v4478_v30  ;;  %4493 = vst.msk [vmem:[#allocation2 + $0x10] sm:$0xff] %vm1696_vm1, %v4488_v55 }
 0xa71   : > { %4484 = vst.msk [vmem:[#allocation2 + $0x28] sm:$0xff] %vm402_vm0, %v4478_v30  ;;  %4494 = vst.msk [vmem:[#allocation2 + $0x18] sm:$0xff] %vm402_vm0, %v4488_v55 }
 0xa73   : > { %v4490_v0 = vpop.permute.xlu1 %4489  ;;  %v4497_v27 = vld [vmem:[#allocation2] sm:$0xff] }
 0xa74   : > { %4495 = vst.msk [vmem:[#allocation2 + $0x30] sm:$0xff] %vm1696_vm1, %v4490_v0  ;;  %v4498_v62 = vld [vmem:[#allocation2 + $0x8] sm:$0xff] }
 0xa75   : > { %4496 = vst.msk [vmem:[#allocation2 + $0x38] sm:$0xff] %vm402_vm0, %v4490_v0 }
 0xa77   : > { %v4499_v10 = vld [vmem:[#allocation2 + $0x10] sm:$0xff]  ;;  %v4501_v52 = vld [vmem:[#allocation2 + $0x20] sm:$0xff] }
 0xa78   : > { %v4500_v9 = vld [vmem:[#allocation2 + $0x18] sm:$0xff]  ;;  %v4502_v6 = vld [vmem:[#allocation2 + $0x28] sm:$0xff] }
 0xa7b   : > { %v4503_v4 = vld [vmem:[#allocation2 + $0x30] sm:$0xff] }
 0xa7c   : > { %v4504_v24 = vld [vmem:[#allocation2 + $0x38] sm:$0xff] }
 0xa80   : > { %v4510_v13 = vpop.permute.xlu0 %4509 }
 0xa81   : > { %v4517_v57 = vmul.f32 %v4510_v13, %v4497_v27  ;;  %v4518_v36 = vmul.f32 %v4510_v13, %v4498_v62  ;;  %v4539_v7 = vmul.f32 %v4510_v13, %v4499_v10  ;;  %v4540_v56 = vmul.f32 %v4510_v13, %v4500_v9 }
 0xa83   : > { %v4521_v15 = vsel %vm1696_vm1, %v4517_v57, 0.0  ;;  %v4530_v32 = vsel %vm402_vm0, %v4518_v36, 0.0  ;;  %v4543_v60 = vsel %vm1696_vm1, %v4539_v7, 0.0  ;;  %v4552_v50 = vsel %vm402_vm0, %v4540_v56, 0.0 }
 0xa84   : > { %v4515_v28 = vpop.permute.xlu1 %4514  ;;  %v4581_v2 = vpop.permute.xlu0 %4580 }
 0xa85   : > { %v4519_v44 = vmul.f32 %v4515_v28, %v4501_v52  ;;  %v4520_v48 = vmul.f32 %v4515_v28, %v4502_v6  ;;  %v4541_v23 = vmul.f32 %v4515_v28, %v4503_v4  ;;  %v4542_v29 = vmul.f32 %v4515_v28, %v4504_v24 }
 0xa86   : > { %v4586_v54 = vrot.slane %v4581_v2, %v6782_v25 }
 0xa87   : > { %v4522_v39 = vsel %vm1696_vm1, %v4519_v44, 0.0  ;;  %v4531_v17 = vsel %vm402_vm0, %v4520_v48, 0.0  ;;  %v4544_v46 = vsel %vm1696_vm1, %v4541_v23, 0.0  ;;  %v4553_v11 = vsel %vm402_vm0, %v4542_v29, 0.0  ;;  %vm9865_vm0 = vmmov %vm9855_vm6 }
 0xa88   : > { %v4523_v37 = vadd.f32 %v4522_v39, %v4521_v15  ;;  %v4532_v1 = vadd.f32 %v4531_v17, %v4530_v32  ;;  %v4545_v35 = vadd.f32 %v4544_v46, %v4543_v60  ;;  %v4554_v14 = vadd.f32 %v4553_v11, %v4552_v50  ;;  %vm9866_vm1 = vmmov %vm9865_vm0 }
 0xa8a   : > { %v4524_v3 = vrot.slane %v4523_v37, 4  ;;  %v4533_v59 = vrot.slane %v4532_v1, 4  ;;  %v4546_v22 = vrot.slane %v4545_v35, 4  ;;  %v4555_v63 = vrot.slane %v4554_v14, 4 }
 0xa8c   : > { %v4525_v53 = vadd.f32 %v4524_v3, %v4523_v37  ;;  %v4534_v18 = vadd.f32 %v4533_v59, %v4532_v1  ;;  %v4547_v31 = vadd.f32 %v4546_v22, %v4545_v35  ;;  %v4556_v58 = vadd.f32 %v4555_v63, %v4554_v14 }
 0xa8e   : > { %v4535_v47 = vrot.slane %v4534_v18, 2  ;;  %v4526_v40 = vrot.slane %v4525_v53, 2  ;;  %v4557_v8 = vrot.slane %v4556_v58, 2  ;;  %v4548_v45 = vrot.slane %v4547_v31, 2 }
 0xa90   : > { %v4536_v61 = vadd.f32 %v4535_v47, %v4534_v18  ;;  %v4527_v26 = vadd.f32 %v4526_v40, %v4525_v53  ;;  %v4558_v43 = vadd.f32 %v4557_v8, %v4556_v58  ;;  %v4549_v12 = vadd.f32 %v4548_v45, %v4547_v31 }
 0xa92   : > { %v4537_v51 = vrot.slane %v4536_v61, 1  ;;  %v4528_v5 = vrot.slane %v4527_v26, 1  ;;  %v4559_v41 = vrot.slane %v4558_v43, 1  ;;  %v4550_v21 = vrot.slane %v4549_v12, 1 }
 0xa94   : > { %v4538_v34 = vadd.f32 %v4537_v51, %v4536_v61  ;;  %v4529_v49 = vadd.f32 %v4528_v5, %v4527_v26  ;;  %v4560_v19 = vadd.f32 %v4559_v41, %v4558_v43  ;;  %v4551_v16 = vadd.f32 %v4550_v21, %v4549_v12 }
 0xa96   : > { %4565 = vrot.lane.b32.xlu0 %v4538_v34, %s9743_s18  ;;  %4563 = vrot.lane.b32.xlu1 %v4529_v49, %s9743_s18 }
 0xa9a   : > { %4573 = vrot.lane.b32.xlu0 %v4560_v19, %s9743_s18  ;;  %4571 = vrot.lane.b32.xlu1 %v4551_v16, %s9743_s18 }
 0xb08   : > { %v4564_v20 = vpop.permute.xlu1 %4563  ;;  %v4566_v33 = vpop.permute.xlu0 %4565 }
 0xb09   : > { %v4567_v42 = vsel %vm9865_vm0, %v4564_v20, %v4566_v33 }
 0xb0a   : > { %v4587_v38 = vadd.f32 %v4586_v54, %v4567_v42 }
 0xb0c   : > { %v4589_v30 = vmax.f32 %v4587_v38, 0.0  ;;  %v4572_v55 = vpop.permute.xlu1 %4571  ;;  %v4574_v0 = vpop.permute.xlu0 %4573 }
 0xb0d   : > { %v4575_v27 = vsel %vm9866_vm1, %v4572_v55, %v4574_v0 }
 0xb0e   : > { %4591 = vst [vmem:[%s395_s27] sm:$0x1] %v4589_v30  ;;  %v4588_v13 = vadd.f32 %v4586_v54, %v4575_v27 }
 0xb10   : > { %v4590_v25 = vmax.f32 %v4588_v13, 0.0 }
 0xb12   : > { %4697 = vst [vmem:[%s395_s27 + $0x1] sm:$0x1] %v4590_v25 }
 0xb13   : > { %6425 = shalt.err (!%p6422_p7)
}
 0xb14   : > { %s6426_s26 = scalar_lea.hbm %s9234_s25, 32  ;;  %s6430_s12 = scalar_lea.hbm %s9290_s11, 64 }
 0xb15   : > { %p6427_p8 = scmp.ne.s32.totalorder %s9234_s25, %s6426_s26  ;;  %p6431_p1 = scmp.lt.u32.totalorder %s9234_s25, %s9290_s11 }
 0xb16   : > { %p6432_p0 = scmp.lt.u32.totalorder %s6430_s12, %s6426_s26  ;;  %p6434_p6 = scmp.lt.u32.totalorder %s6426_s26, %s9234_s25 }
 0xb17   : > { %p6428_p11 = pnand %p6427_p8, %p9867_p9 }
 0xb18   : > { %p6433_p5 = por %p6432_p0, %p6431_p1 }
 0xb19   : > { %p6429_p13 = pneg %p6428_p11 }
 0xb1a   : > { %p6435_p10 = por %p6434_p6, %p6433_p5 }
 0xb1c   : > { %p6436_p12 = pnand %p6435_p10, %p6429_p13 }
 0xb1e   : > { %6439 = shalt.err (!%p6436_p12)
}
 0xb1f   : > { %s6528_s16 = smov 1  }
 0xb20   : > { %4982 = dma.vmem_to_hbm [thread:$0]  (%p9867_p9), %s9229_s24, 32, %s9234_s25, %s9236_s23, %s9722_s30, %s9722_s30, %s6528_s16  }
 0xb21 PF: > { %s9868_s19 = sld [smem:[#allocation14_spill]]  ;;  %s9869_s7 = sld [smem:[#allocation12_spill]] }
 0xb22   : > { %s9870_s1 = sld [smem:[#allocation17_spill]] }
 0xb27   : > { %p4994_p2 = scmp.ge.s32.totalorder %s9868_s19, 2  ;;  %s4623_s27 = sand.u32 1, %s9869_s7  }
 0xb28   : > { %p9871_p3 = scmp.ne.s32.totalorder %s9870_s1, 0  ;;  %s4624_s21 = scalar_lea.sflag [#allocation8], %s4623_s27 }
 0xb2a   : > { %p4989_p4 = pnand %p4994_p2, %p9871_p3 }
 0xb2c   : > { %6461 = dma.done.wait (!%p4989_p4), %s4624_s21, 32  }
 0xb2d   : > { %6463 = vsyncadd (!%p4989_p4), %s4624_s21, 4294967264  ;;  %s9872_s22 = sld [smem:[#allocation15_spill]]  ;;  %s9873_s28 = sld [smem:[#allocation13_spill]] }
 0xb2e   : > { %s9874_s21 = sld [smem:[#allocation16_spill]]  ;;  %s9875_s19 = smov %s6470_s20 }
 0xb33   : > { %p24_p7 = scmp.ge.s32.totalorder %s9872_s22, 4   ;;  %s9876_s20 = smov %s9873_s28 }
 0xb35   :  { %26 = sbr.rel (!%p24_p7) target bundleno = 9 (0x9), region = 106 }
 0xb3c   :  { %4629 = vsyncpa [#allocation7], 1 }
 0xb3d   :  { %4631 = vsyncpa [#allocation7 + $0x1], 1 }
 0xb3e   :  { %4632 = vsyncpa [#allocation8], 1 }
 0xb3f   :  { %4634 = vsyncpa [#allocation8 + $0x1], 1 }

</bundles_post_ra>
